<compile_context>
chip_gen: v6e
topology: v6e:2x2x1
jax: 0.10.0
libtpu: 0.0.40
codegen_flags: <defaults>
</compile_context>

<pallas_src>
import functools

import jax
import jax.numpy as jnp
from jax import lax
from jax.experimental import pallas as pl
from jax.experimental.pallas import tpu as pltpu

NUM_HIDDEN = (32, 32)
LANE = 128


# --------------------------------------------------------------------------------------
# Generic full-block linear kernel (stem / decoder), lane-dense (128-wide) outputs
# --------------------------------------------------------------------------------------
def _linear_kernel(a_ref, w_ref, b_ref, o_ref, *, act):
    acc = jnp.dot(a_ref[...], w_ref[...], preferred_element_type=jnp.float32)
    acc = acc + b_ref[...]
    if act == "relu":
        acc = jnp.maximum(acc, 0.0)
    o_ref[...] = acc.astype(o_ref.dtype)


def pallas_linear_full(a, w, b, act="none"):
    """Single full-block (M,K)@(K,N)+b with optional ReLU (everything fits VMEM)."""
    M, K = a.shape
    N = w.shape[1]
    return pl.pallas_call(
        functools.partial(_linear_kernel, act=act),
        out_shape=jax.ShapeDtypeStruct((M, N), jnp.float32),
        grid=(1,),
        in_specs=[
            pl.BlockSpec((M, K), lambda i: (0, 0)),
            pl.BlockSpec((K, N), lambda i: (0, 0)),
            pl.BlockSpec((1, N), lambda i: (0, 0)),
        ],
        out_specs=pl.BlockSpec((M, N), lambda i: (0, 0)),
    )(a, w, b.reshape(1, N))


# --------------------------------------------------------------------------------------
# Fused ODE block: full Euler loop inside the kernel, grid = (B,)
#   dx/dt = W2 @ tanh(W1 @ x)  (1x1 convs); state + weights stay in VMEM
# --------------------------------------------------------------------------------------
def _ode_kernel(x0_ref, w1_ref, b1_ref, w2_ref, b2_ref, o_ref, x_sc, *, t_steps):
    x_sc[...] = x0_ref[0]

    def step(s, carry):
        x = x_sc[...]
        h1 = jnp.tanh(jnp.dot(x, w1_ref[...], preferred_element_type=jnp.float32)
                      + b1_ref[...])
        x_new = x + jnp.dot(h1, w2_ref[...], preferred_element_type=jnp.float32) + b2_ref[...]
        x_sc[...] = x_new
        o_ref[0, s] = x_new
        return carry

    lax.fori_loop(0, t_steps, step, 0, unroll=True)


def ode_block(params, x0_nodes, t_future):
    """x0_nodes: (B, N, nh0) -> (B, t_future, N, nh0)."""
    B, N, C = x0_nodes.shape
    x0_pad = jnp.pad(x0_nodes, ((0, 0), (0, 0), (0, LANE - C)))
    w1 = jnp.pad(params["ode_w1"], ((0, LANE - C), (0, 0)))          # (128, 128)
    b1 = params["ode_b1"].reshape(1, LANE)
    w2 = jnp.pad(params["ode_w2"], ((0, 0), (0, LANE - C)))          # (128, 128)
    b2 = jnp.pad(params["ode_b2"], (0, LANE - C)).reshape(1, LANE)

    out = pl.pallas_call(
        functools.partial(_ode_kernel, t_steps=t_future),
        out_shape=jax.ShapeDtypeStruct((B, t_future, N, LANE), jnp.float32),
        grid=(B,),
        in_specs=[
            pl.BlockSpec((1, N, LANE), lambda b: (b, 0, 0)),
            pl.BlockSpec((LANE, LANE), lambda b: (0, 0)),
            pl.BlockSpec((1, LANE), lambda b: (0, 0)),
            pl.BlockSpec((LANE, LANE), lambda b: (0, 0)),
            pl.BlockSpec((1, LANE), lambda b: (0, 0)),
        ],
        out_specs=pl.BlockSpec((1, t_future, N, LANE), lambda b: (b, 0, 0, 0)),
        scratch_shapes=[pltpu.VMEM((N, LANE), jnp.float32)],
        compiler_params=pltpu.CompilerParams(dimension_semantics=("parallel",)),
    )(x0_pad, w1, b1, w2, b2)
    return out[..., :C]


# --------------------------------------------------------------------------------------
# Fused recurrent kernel: whole time loop + graph-conv GRU stack + last_conv, grid=(B,)
# --------------------------------------------------------------------------------------
def _recurrent_kernel(net_ref, A_ref, wx_ref, bx_ref, wh_ref, wch_ref, lw_ref,
                      o_ref, h_sc, *, num_layers, hd, t_steps):
    f32 = jnp.float32
    h_sc[...] = jnp.zeros(h_sc.shape, f32)

    def step(t, carry):
        x = net_ref[0, t]                                   # (N, C)
        for i in range(num_layers):                          # static unroll (2 layers)
            h = h_sc[i]                                      # (N, hd)
            A = A_ref[i]                                     # (N, N)
            xg = jnp.dot(A, x, preferred_element_type=f32)   # graph conv of input
            hg = jnp.dot(A, h, preferred_element_type=f32)   # graph conv of hidden
            # fused gate matmuls: x-side -> (N,128) lane-dense [z | r | cand | pad],
            # h-side -> (N, 2*hd) [z | r]; candidate h-side uses (r*hg) separately.
            gx = jnp.dot(xg, wx_ref[i], preferred_element_type=f32) + bx_ref[i]
            gh = jnp.dot(hg, wh_ref[i], preferred_element_type=f32)
            z = jax.nn.sigmoid(gx[:, :hd] + gh[:, :hd])
            r = jax.nn.sigmoid(gx[:, hd:2 * hd] + gh[:, hd:2 * hd])
            cand = gx[:, 2 * hd:3 * hd] + jnp.dot(r * hg, wch_ref[i],
                                                  preferred_element_type=f32)
            h_new = z * h + (1.0 - z) * jnp.tanh(cand)
            h_sc[i] = h_new
            x = h_new
        # fused last_conv (1x1), lane-padded to 128 for unmasked stores
        o_ref[0, t] = jnp.dot(x, lw_ref[...], preferred_element_type=f32)
        return carry

    lax.fori_loop(0, t_steps, step, 0, unroll=True)


def run_recurrent(params, net_seq):
    """net_seq: (B, Tm1, N, nh0) -> sol_y in node form (B, Tm1, N, nh0)."""
    B, Tm1, N, C = net_seq.shape
    num_layers = len(params["cells"])
    hd = NUM_HIDDEN[0]

    A_l, wx_l, bx_l, wh_l, wch_l = [], [], [], [], []
    for cp in params["cells"]:
        E = cp["E"]
        A_l.append(jax.nn.softmax(jax.nn.relu(E @ E.T), axis=-1))     # time-invariant
        din = cp["w_zr"].shape[0] - hd
        wz, wr = cp["w_zr"][:, :hd], cp["w_zr"][:, hd:]
        wc = cp["w_c"]
        wx = jnp.concatenate([wz[:din], wr[:din], wc[:din]], axis=1)  # (din, 3*hd)
        wx_l.append(jnp.pad(wx, ((0, 0), (0, LANE - 3 * hd))))        # -> (din, 128)
        bx = jnp.concatenate([cp["b_zr"], cp["b_c"]], axis=0)         # [bz | br | bc]
        bx_l.append(jnp.pad(bx, (0, LANE - 3 * hd)).reshape(1, LANE))
        wh_l.append(jnp.concatenate([wz[din:], wr[din:]], axis=1))    # (hd, 2*hd)
        wch_l.append(wc[din:])                                        # (hd, hd)

    stk = lambda xs: jnp.stack(xs, 0)
    A_all, wx_all, bx_all, wh_all, wch_all = map(stk, (A_l, wx_l, bx_l, wh_l, wch_l))
    lw = jnp.pad(params["last_w"], ((0, 0), (0, LANE - NUM_HIDDEN[0])))   # (hd, 128)

    L = num_layers
    sol_pad = pl.pallas_call(
        functools.partial(_recurrent_kernel, num_layers=num_layers, hd=hd, t_steps=Tm1),
        out_shape=jax.ShapeDtypeStruct((B, Tm1, N, LANE), jnp.float32),
        grid=(B,),
        in_specs=[
            pl.BlockSpec((1, Tm1, N, C), lambda b: (b, 0, 0, 0)),     # net for all t
            pl.BlockSpec((L, N, N), lambda b: (0, 0, 0)),             # A per cell
            pl.BlockSpec((L, C, LANE), lambda b: (0, 0, 0)),          # fused x-side W
            pl.BlockSpec((L, 1, LANE), lambda b: (0, 0, 0)),          # fused bias
            pl.BlockSpec((L, hd, 2 * hd), lambda b: (0, 0, 0)),       # fused h-side W
            pl.BlockSpec((L, hd, hd), lambda b: (0, 0, 0)),           # cand h-side W
            pl.BlockSpec((hd, LANE), lambda b: (0, 0)),               # last_conv (padded)
        ],
        out_specs=pl.BlockSpec((1, Tm1, N, LANE), lambda b: (b, 0, 0, 0)),
        scratch_shapes=[pltpu.VMEM((L, N, hd), jnp.float32)],         # resident h_t
        compiler_params=pltpu.CompilerParams(dimension_semantics=("parallel",)),
    )(net_seq, A_all, wx_all, bx_all, wh_all, wch_all, lw)
    return sol_pad[..., :NUM_HIDDEN[0]]


# --------------------------------------------------------------------------------------
# grid_sample warp chain as interpolation-matrix matmuls (gather-free), grid=(B,)
# --------------------------------------------------------------------------------------
def _warp_kernel(f0_ref, wt_ref, o_ref, st_sc, *, t_steps):
    st_sc[...] = f0_ref[0]                                   # (C, HW)

    def step(t, carry):
        s_new = jnp.dot(st_sc[...], wt_ref[0, t], preferred_element_type=jnp.float32)
        st_sc[...] = s_new
        o_ref[0, t] = s_new
        return carry

    lax.fori_loop(0, t_steps, step, 0, unroll=True)


def warp_sequence(frame0, warp_mats_T):
    """frame0: (B, C, HW); warp_mats_T: (B, Tm1, HW, HW) -> warped (B, Tm1, C, HW)."""
    B, C, HW = frame0.shape
    Tm1 = warp_mats_T.shape[1]
    return pl.pallas_call(
        functools.partial(_warp_kernel, t_steps=Tm1),
        out_shape=jax.ShapeDtypeStruct((B, Tm1, C, HW), jnp.float32),
        grid=(B,),
        in_specs=[
            pl.BlockSpec((1, C, HW), lambda b: (b, 0, 0)),
            pl.BlockSpec((1, Tm1, HW, HW), lambda b: (b, 0, 0, 0)),
        ],
        out_specs=pl.BlockSpec((1, Tm1, C, HW), lambda b: (b, 0, 0, 0)),
        scratch_shapes=[pltpu.VMEM((C, HW), jnp.float32)],
        compiler_params=pltpu.CompilerParams(dimension_semantics=("parallel",)),
    )(frame0, warp_mats_T)


def build_warp_matrices(pred_flows, H, W):
    """Bilinear grid_sample (padding_mode='border', align_corners=False) expressed as
    per-frame (HW, HW) interpolation matrices built with iota compares (no gathers)."""
    B, Tm1 = pred_flows.shape[:2]
    fx = pred_flows[:, :, 0] / ((W - 1.0) / 2.0)
    fy = pred_flows[:, :, 1] / ((H - 1.0) / 2.0)
    gx = jnp.linspace(-1.0, 1.0, W).reshape(1, 1, 1, W)
    gy = jnp.linspace(-1.0, 1.0, H).reshape(1, 1, H, 1)
    # border padding == clamp the (align_corners=False) source coordinate
    x = jnp.clip((gx + fx + 1.0) * W / 2.0 - 0.5, 0.0, W - 1.0)
    y = jnp.clip((gy + fy + 1.0) * H / 2.0 - 0.5, 0.0, H - 1.0)
    x0 = jnp.floor(x)
    x1 = jnp.minimum(x0 + 1.0, W - 1.0)
    wx = x - x0
    y0 = jnp.floor(y)
    y1 = jnp.minimum(y0 + 1.0, H - 1.0)
    wy = y - y0
    xi = jnp.arange(W, dtype=jnp.float32)
    yi = jnp.arange(H, dtype=jnp.float32)
    Ax = ((1.0 - wx)[..., None] * (xi == x0[..., None]).astype(jnp.float32)
          + wx[..., None] * (xi == x1[..., None]).astype(jnp.float32))    # (B,T,H,W,W)
    Ay = ((1.0 - wy)[..., None] * (yi == y0[..., None]).astype(jnp.float32)
          + wy[..., None] * (yi == y1[..., None]).astype(jnp.float32))    # (B,T,H,W,H)
    w_full = (Ay[..., :, None] * Ax[..., None, :]).reshape(B, Tm1, H * W, H * W)
    return jnp.swapaxes(w_full, -1, -2)   # kernel does state(C,HWsrc) @ WT(HWsrc,HWdst)


# --------------------------------------------------------------------------------------
# Model glue (JAX reshapes/transposes only)
# --------------------------------------------------------------------------------------
def stem(params, frames, B, T, C, H, W):
    """4x4 stride-4 patchify conv + ReLU -> node form (B, T, N, nh0)."""
    H4, W4 = H // 4, W // 4
    nh0 = NUM_HIDDEN[0]
    fr = frames.reshape(B * T, C, H4, 4, W4, 4)
    fr = jnp.transpose(fr, (0, 2, 4, 1, 3, 5)).reshape(B * T * H4 * W4, C * 16)
    stem_w = jnp.pad(params["stem_w"], ((0, 0), (0, LANE - nh0)))     # lane-dense out
    stem_b = jnp.pad(params["stem_b"], (0, LANE - nh0))
    fd = pallas_linear_full(fr, stem_w, stem_b, act="relu")
    return fd[:, :nh0].reshape(B, T, H4 * W4, nh0)


def decoder(params, dec_in_nodes, B, Tm1, H4, W4, fc):
    """1x1 conv (lane-padded to 128) + depth-to-space x4 -> (B, Tm1, fc+3, H, W)."""
    Co = fc + 3
    N = H4 * W4
    M = B * Tm1 * N
    dec_w = jnp.pad(params["dec_w"], ((0, 0), (0, LANE - Co * 16)))
    dec_b = jnp.pad(params["dec_b"], (0, LANE - Co * 16))
    y = pallas_linear_full(dec_in_nodes.reshape(M, dec_in_nodes.shape[-1]), dec_w, dec_b)
    y = y[:, :Co * 16].reshape(B, Tm1, H4, W4, Co, 4, 4)
    y = jnp.transpose(y, (0, 1, 4, 2, 5, 3, 6)).reshape(B, Tm1, Co, H4 * 4, W4 * 4)
    return y


# --------------------------------------------------------------------------------------
# Forward pass
# --------------------------------------------------------------------------------------
def forward(params, frames_tensor, mask_true, cfg):
    B, T, H, W, C = frames_tensor.shape
    fc = C
    H4, W4 = H // 4, W // 4
    IL = cfg.input_length
    Tm1 = cfg.total_length - 1
    t_future = cfg.total_length - IL

    frames = jnp.transpose(frames_tensor, (0, 1, 4, 2, 3)).astype(jnp.float32)  # (B,T,C,H,W)

    # Stem -> node-form embeddings (B, T, N, nh0)
    frames_nodes = stem(params, frames, B, T, C, H, W)

    # ODE extrapolation of the last observed embedding (single fused Euler kernel)
    ode_nodes = ode_block(params, frames_nodes[:, IL - 1], t_future)   # (B,Tf,N,nh0)

    # scheduled-sampling inputs for every timestep (tiny one-shot XLA precompute)
    if cfg.reverse_scheduled_sampling != 1:
        # TODO(synk): reference leaves `net` undefined for reverse_scheduled_sampling != 1.
        raise NotImplementedError("reverse_scheduled_sampling != 1 is undefined in the reference")
    mask_scalar = mask_true[:, :, 0, 0, 0].astype(jnp.float32)          # (B, T_mask)
    nets = []
    for t in range(Tm1):
        if t == 0 or t < IL - 2:
            nets.append(frames_nodes[:, t])
        else:
            m = mask_scalar[:, t - 1][:, None, None]
            alt = ode_nodes[:, t - IL + 1]    # negative index wraps, matching PyTorch
            nets.append(m * frames_nodes[:, t] + (1.0 - m) * alt)
    net_seq = jnp.stack(nets, axis=1)                                   # (B,Tm1,N,nh0)

    # Fused recurrence: both DyGCRN cells + last_conv, all timesteps in one kernel
    sol_nodes = run_recurrent(params, net_seq)                          # (B,Tm1,N,nh0)

    # Decoder over [curr, prev] pairs (prev_0 = skip connection embedding), one kernel
    prev_nodes = jnp.concatenate([frames_nodes[:, :1], sol_nodes[:, :-1]], axis=1)
    dec_in = jnp.concatenate([sol_nodes, prev_nodes], axis=-1)          # (B,Tm1,N,2*nh0)
    pred_outputs = decoder(params, dec_in, B, Tm1, H4, W4, fc)          # (B,Tm1,fc+3,H,W)
    pred_flows = pred_outputs[:, :, :2]
    pred_intermediates = pred_outputs[:, :, 2:2 + fc]
    pred_mask_logits = pred_outputs[:, :, 2 + fc:]                      # (B,Tm1,1,H,W)

    # sequential warping: gather-free interpolation matrices + one chained-matmul kernel
    warp_T = build_warp_matrices(pred_flows, H, W)                      # (B,Tm1,HW,HW)
    frame0 = frames[:, 0].reshape(B, fc, H * W)
    warped_pred_x = warp_sequence(frame0, warp_T).reshape(B, Tm1, fc, H, W)

    # tiny sigmoid-mask blend left to XLA (fused elementwise)
    m = jax.nn.sigmoid(pred_mask_logits)
    pred_x = m * warped_pred_x + (1.0 - m) * pred_intermediates

    next_frames = jnp.transpose(pred_x, (0, 1, 3, 4, 2))                # (B,T-1,H,W,C)

    frame_diff = frames_tensor[:, 1:] - frames_tensor[:, :-1]
    pi_p = jnp.transpose(pred_intermediates, (0, 1, 3, 4, 2))
    inetr_loss = jnp.mean((frame_diff - pi_p) ** 2)
    mse_loss = jnp.mean((next_frames - frames_tensor[:, 1:]) ** 2)
    ode_loss = jnp.mean((ode_nodes - frames_nodes[:, -t_future:]) ** 2)
    loss = mse_loss + inetr_loss + 0.03 * ode_loss
    return next_frames, loss


# --------------------------------------------------------------------------------------
# Config, deterministic parameter init, driver
# --------------------------------------------------------------------------------------
class Config:
    patch_size = 1
    img_channel = 4
    img_width = 16
    input_length = 4
    total_length = 8
    reverse_scheduled_sampling = 1


def init_params(key, cfg, num_hidden):
    fc = cfg.patch_size ** 2 * cfg.img_channel
    nh0 = num_hidden[0]
    width = cfg.img_width // cfg.patch_size
    node_num = (width // 4) ** 2
    ks = jax.random.split(key, 16)

    def w(k, shape, fan_in):
        return jax.random.normal(k, shape, jnp.float32) / jnp.sqrt(float(fan_in))

    params = {
        "stem_w": w(ks[0], (fc * 16, nh0), fc * 16),
        "stem_b": jnp.zeros((nh0,), jnp.float32),
        "dec_w": w(ks[1], (num_hidden[-1] * 2, (fc + 3) * 16), num_hidden[-1] * 2),
        "dec_b": jnp.zeros(((fc + 3) * 16,), jnp.float32),
        "last_w": w(ks[2], (num_hidden[-1], nh0), num_hidden[-1]),
        "ode_w1": w(ks[3], (nh0, 128), nh0),
        "ode_b1": jnp.zeros((128,), jnp.float32),
        "ode_w2": w(ks[4], (128, nh0), 128),
        "ode_b2": jnp.zeros((nh0,), jnp.float32),
        "cells": [],
    }
    kidx = 5
    for i in range(len(num_hidden)):
        dim_in = num_hidden[i - 1]
        hd = num_hidden[i]
        params["cells"].append({
            "E": w(ks[kidx], (node_num, 10), 10),
            "w_zr": w(ks[kidx + 1], (dim_in + hd, 2 * hd), dim_in + hd),
            "b_zr": jnp.zeros((2 * hd,), jnp.float32),
            "w_c": w(ks[kidx + 2], (dim_in + hd, hd), dim_in + hd),
            "b_c": jnp.zeros((hd,), jnp.float32),
        })
        kidx += 3
    return params


if __name__ == "__main__":
    cfg = Config()
    key = jax.random.PRNGKey(0)
    k1, k2, k3 = jax.random.split(key, 3)
    Himg = cfg.img_width // cfg.patch_size
    fc = cfg.patch_size ** 2 * cfg.img_channel
    B = 2

    frames_tensor = jax.random.uniform(k1, (B, cfg.total_length, Himg, Himg, fc), jnp.float32)
    mask_true = (jax.random.uniform(k2, (B, cfg.total_length - 2, Himg, Himg, fc)) > 0.5
                 ).astype(jnp.float32)
    params = init_params(k3, cfg, NUM_HIDDEN)

    fwd = jax.jit(functools.partial(forward, cfg=cfg))
    next_frames, loss = fwd(params, frames_tensor, mask_true)
    jax.block_until_ready((next_frames, loss))
    assert next_frames.shape == (B, cfg.total_length - 1, Himg, Himg, fc)
    print("KERNEL_OK")
</pallas_src>

<mosaic_0001>
module attributes {stable_mosaic.version = 11 : i64} {
  func.func @_linear_kernel(%arg0: i32, %arg1: memref<256x64xf32, #tpu.memory_space<vmem>>, %arg2: memref<64x128xf32, #tpu.memory_space<vmem>>, %arg3: memref<1x128xf32, #tpu.memory_space<vmem>>, %arg4: memref<256x128xf32, #tpu.memory_space<vmem>>) attributes {dimension_semantics = [#tpu.dimension_semantics<arbitrary>], iteration_bounds = array<i64: 1>, scalar_prefetch = 0 : i64, scratch_operands = 0 : i64, tpu.core_type = #tpu.core_type<tc>, window_params = [{pipeline_mode = #tpu.pipeline_mode<synchronous>, transform_indices = @transform_0, window_bounds = array<i64: 256, 64>}, {pipeline_mode = #tpu.pipeline_mode<synchronous>, transform_indices = @transform_1, window_bounds = array<i64: 64, 128>}, {pipeline_mode = #tpu.pipeline_mode<synchronous>, transform_indices = @transform_2, window_bounds = array<i64: 1, 128>}, {pipeline_mode = #tpu.pipeline_mode<synchronous>, transform_indices = @transform_3, window_bounds = array<i64: 256, 128>}]} {
    %c0 = arith.constant 0 : index
    %c0_0 = arith.constant 0 : index
    %0 = vector.load %arg1[%c0, %c0_0] : memref<256x64xf32, #tpu.memory_space<vmem>>, vector<256x64xf32>
    %c0_1 = arith.constant 0 : index
    %c0_2 = arith.constant 0 : index
    %1 = vector.load %arg2[%c0_1, %c0_2] : memref<64x128xf32, #tpu.memory_space<vmem>>, vector<64x128xf32>
    %cst = arith.constant dense<0.000000e+00> : vector<256x128xf32>
    %2 = tpu.matmul %0, %1, %cst {dimension_numbers = #tpu.dot_dimension_numbers<[1], [0], [0], [1], [0, 0, 1, 1], [], []>} : vector<256x64xf32>, vector<64x128xf32>, vector<256x128xf32> -> vector<256x128xf32>
    %c0_3 = arith.constant 0 : index
    %c0_4 = arith.constant 0 : index
    %3 = vector.load %arg3[%c0_3, %c0_4] : memref<1x128xf32, #tpu.memory_space<vmem>>, vector<1x128xf32>
    %4 = vector.broadcast %3 : vector<1x128xf32> to vector<256x128xf32>
    %5 = arith.addf %2, %4 : vector<256x128xf32>
    %cst_5 = arith.constant 0.000000e+00 : f32
    %6 = vector.broadcast %cst_5 : f32 to vector<256x128xf32>
    %7 = arith.maximumf %5, %6 : vector<256x128xf32>
    %c0_6 = arith.constant 0 : index
    %c0_7 = arith.constant 0 : index
    %8 = vector.load %arg4[%c0_6, %c0_7] : memref<256x128xf32, #tpu.memory_space<vmem>>, vector<256x128xf32>
    tpu.vector_store %arg4[%c0_6, %c0_7], %7 {strides = array<i32>} : memref<256x128xf32, #tpu.memory_space<vmem>>, vector<256x128xf32>,
    return
  }
  func.func @transform_0(%arg0: i32) -> (i32, i32) {
    %c0_i32 = arith.constant 0 : i32
    %c0_i32_0 = arith.constant 0 : i32
    %c0_i32_1 = arith.constant 0 : i32
    return %c0_i32, %c0_i32_0 : i32, i32
  }
  func.func @transform_1(%arg0: i32) -> (i32, i32) {
    %c0_i32 = arith.constant 0 : i32
    %c0_i32_0 = arith.constant 0 : i32
    %c0_i32_1 = arith.constant 0 : i32
    return %c0_i32, %c0_i32_0 : i32, i32
  }
  func.func @transform_2(%arg0: i32) -> (i32, i32) {
    %c0_i32 = arith.constant 0 : i32
    %c0_i32_0 = arith.constant 0 : i32
    %c0_i32_1 = arith.constant 0 : i32
    return %c0_i32, %c0_i32_0 : i32, i32
  }
  func.func @transform_3(%arg0: i32) -> (i32, i32) {
    %c0_i32 = arith.constant 0 : i32
    %c0_i32_0 = arith.constant 0 : i32
    %c0_i32_1 = arith.constant 0 : i32
    return %c0_i32, %c0_i32_0 : i32, i32
  }
}

module attributes {stable_mosaic.version = 11 : i64} {
  func.func @_ode_kernel(%arg0: i32, %arg1: memref<1x16x128xf32, #tpu.memory_space<vmem>>, %arg2: memref<128x128xf32, #tpu.memory_space<vmem>>, %arg3: memref<1x128xf32, #tpu.memory_space<vmem>>, %arg4: memref<128x128xf32, #tpu.memory_space<vmem>>, %arg5: memref<1x128xf32, #tpu.memory_space<vmem>>, %arg6: memref<1x4x16x128xf32, #tpu.memory_space<vmem>>, %arg7: memref<16x128xf32, #tpu.memory_space<vmem>>) attributes {dimension_semantics = [#tpu.dimension_semantics<parallel>], iteration_bounds = array<i64: 2>, scalar_prefetch = 0 : i64, scratch_operands = 1 : i64, tpu.core_type = #tpu.core_type<tc>, window_params = [{transform_indices = @transform_0, window_bounds = array<i64: 1, 16, 128>}, {pipeline_mode = #tpu.pipeline_mode<synchronous>, transform_indices = @transform_1, window_bounds = array<i64: 128, 128>}, {pipeline_mode = #tpu.pipeline_mode<synchronous>, transform_indices = @transform_2, window_bounds = array<i64: 1, 128>}, {pipeline_mode = #tpu.pipeline_mode<synchronous>, transform_indices = @transform_3, window_bounds = array<i64: 128, 128>}, {pipeline_mode = #tpu.pipeline_mode<synchronous>, transform_indices = @transform_4, window_bounds = array<i64: 1, 128>}, {transform_indices = @transform_5, window_bounds = array<i64: 1, 4, 16, 128>}]} {
    %c0 = arith.constant 0 : index
    %c0_0 = arith.constant 0 : index
    %c0_1 = arith.constant 0 : index
    %0 = vector.load %arg1[%c0, %c0_0, %c0_1] : memref<1x16x128xf32, #tpu.memory_space<vmem>>, vector<1x16x128xf32>
    %1 = vector.shape_cast %0 : vector<1x16x128xf32> to vector<16x128xf32>
    %c0_2 = arith.constant 0 : index
    %c0_3 = arith.constant 0 : index
    %2 = vector.load %arg7[%c0_2, %c0_3] : memref<16x128xf32, #tpu.memory_space<vmem>>, vector<16x128xf32>
    tpu.vector_store %arg7[%c0_2, %c0_3], %1 {strides = array<i32>} : memref<16x128xf32, #tpu.memory_space<vmem>>, vector<16x128xf32>,
    %c0_i32 = arith.constant 0 : i32
    %c0_4 = arith.constant 0 : index
    %c0_5 = arith.constant 0 : index
    %3 = vector.load %arg7[%c0_4, %c0_5] : memref<16x128xf32, #tpu.memory_space<vmem>>, vector<16x128xf32>
    %c0_6 = arith.constant 0 : index
    %c0_7 = arith.constant 0 : index
    %4 = vector.load %arg2[%c0_6, %c0_7] : memref<128x128xf32, #tpu.memory_space<vmem>>, vector<128x128xf32>
    %cst = arith.constant dense<0.000000e+00> : vector<16x128xf32>
    %5 = tpu.matmul %3, %4, %cst {dimension_numbers = #tpu.dot_dimension_numbers<[1], [0], [0], [1], [0, 0, 1, 1], [], []>} : vector<16x128xf32>, vector<128x128xf32>, vector<16x128xf32> -> vector<16x128xf32>
    %c0_8 = arith.constant 0 : index
    %c0_9 = arith.constant 0 : index
    %6 = vector.load %arg3[%c0_8, %c0_9] : memref<1x128xf32, #tpu.memory_space<vmem>>, vector<1x128xf32>
    %7 = vector.broadcast %6 : vector<1x128xf32> to vector<16x128xf32>
    %8 = arith.addf %5, %7 : vector<16x128xf32>
    %9 = math.tanh %8 : vector<16x128xf32>
    %c0_10 = arith.constant 0 : index
    %c0_11 = arith.constant 0 : index
    %10 = vector.load %arg4[%c0_10, %c0_11] : memref<128x128xf32, #tpu.memory_space<vmem>>, vector<128x128xf32>
    %cst_12 = arith.constant dense<0.000000e+00> : vector<16x128xf32>
    %11 = tpu.matmul %9, %10, %cst_12 {dimension_numbers = #tpu.dot_dimension_numbers<[1], [0], [0], [1], [0, 0, 1, 1], [], []>} : vector<16x128xf32>, vector<128x128xf32>, vector<16x128xf32> -> vector<16x128xf32>
    %12 = arith.addf %3, %11 : vector<16x128xf32>
    %c0_13 = arith.constant 0 : index
    %c0_14 = arith.constant 0 : index
    %13 = vector.load %arg5[%c0_13, %c0_14] : memref<1x128xf32, #tpu.memory_space<vmem>>, vector<1x128xf32>
    %14 = vector.broadcast %13 : vector<1x128xf32> to vector<16x128xf32>
    %15 = arith.addf %12, %14 : vector<16x128xf32>
    %c0_15 = arith.constant 0 : index
    %c0_16 = arith.constant 0 : index
    %16 = vector.load %arg7[%c0_15, %c0_16] : memref<16x128xf32, #tpu.memory_space<vmem>>, vector<16x128xf32>
    tpu.vector_store %arg7[%c0_15, %c0_16], %15 {strides = array<i32>} : memref<16x128xf32, #tpu.memory_space<vmem>>, vector<16x128xf32>,
    %c0_17 = arith.constant 0 : index
    %17 = arith.index_cast %c0_i32 : i32 to index
    %c0_18 = arith.constant 0 : index
    %c0_19 = arith.constant 0 : index
    %18 = vector.load %arg6[%c0_17, %17, %c0_18, %c0_19] : memref<1x4x16x128xf32, #tpu.memory_space<vmem>>, vector<1x1x16x128xf32>
    %19 = vector.shape_cast %18 : vector<1x1x16x128xf32> to vector<16x128xf32>
    %20 = vector.shape_cast %15 : vector<16x128xf32> to vector<1x1x16x128xf32>
    tpu.vector_store %arg6[%c0_17, %17, %c0_18, %c0_19], %20 {strides = array<i32>} : memref<1x4x16x128xf32, #tpu.memory_space<vmem>>, vector<1x1x16x128xf32>,
    %c1_i32 = arith.constant 1 : i32
    %c0_20 = arith.constant 0 : index
    %c0_21 = arith.constant 0 : index
    %21 = vector.load %arg7[%c0_20, %c0_21] : memref<16x128xf32, #tpu.memory_space<vmem>>, vector<16x128xf32>
    %c0_22 = arith.constant 0 : index
    %c0_23 = arith.constant 0 : index
    %22 = vector.load %arg2[%c0_22, %c0_23] : memref<128x128xf32, #tpu.memory_space<vmem>>, vector<128x128xf32>
    %cst_24 = arith.constant dense<0.000000e+00> : vector<16x128xf32>
    %23 = tpu.matmul %21, %22, %cst_24 {dimension_numbers = #tpu.dot_dimension_numbers<[1], [0], [0], [1], [0, 0, 1, 1], [], []>} : vector<16x128xf32>, vector<128x128xf32>, vector<16x128xf32> -> vector<16x128xf32>
    %c0_25 = arith.constant 0 : index
    %c0_26 = arith.constant 0 : index
    %24 = vector.load %arg3[%c0_25, %c0_26] : memref<1x128xf32, #tpu.memory_space<vmem>>, vector<1x128xf32>
    %25 = vector.broadcast %24 : vector<1x128xf32> to vector<16x128xf32>
    %26 = arith.addf %23, %25 : vector<16x128xf32>
    %27 = math.tanh %26 : vector<16x128xf32>
    %c0_27 = arith.constant 0 : index
    %c0_28 = arith.constant 0 : index
    %28 = vector.load %arg4[%c0_27, %c0_28] : memref<128x128xf32, #tpu.memory_space<vmem>>, vector<128x128xf32>
    %cst_29 = arith.constant dense<0.000000e+00> : vector<16x128xf32>
    %29 = tpu.matmul %27, %28, %cst_29 {dimension_numbers = #tpu.dot_dimension_numbers<[1], [0], [0], [1], [0, 0, 1, 1], [], []>} : vector<16x128xf32>, vector<128x128xf32>, vector<16x128xf32> -> vector<16x128xf32>
    %30 = arith.addf %21, %29 : vector<16x128xf32>
    %c0_30 = arith.constant 0 : index
    %c0_31 = arith.constant 0 : index
    %31 = vector.load %arg5[%c0_30, %c0_31] : memref<1x128xf32, #tpu.memory_space<vmem>>, vector<1x128xf32>
    %32 = vector.broadcast %31 : vector<1x128xf32> to vector<16x128xf32>
    %33 = arith.addf %30, %32 : vector<16x128xf32>
    %c0_32 = arith.constant 0 : index
    %c0_33 = arith.constant 0 : index
    %34 = vector.load %arg7[%c0_32, %c0_33] : memref<16x128xf32, #tpu.memory_space<vmem>>, vector<16x128xf32>
    tpu.vector_store %arg7[%c0_32, %c0_33], %33 {strides = array<i32>} : memref<16x128xf32, #tpu.memory_space<vmem>>, vector<16x128xf32>,
    %c0_34 = arith.constant 0 : index
    %35 = arith.index_cast %c1_i32 : i32 to index
    %c0_35 = arith.constant 0 : index
    %c0_36 = arith.constant 0 : index
    %36 = vector.load %arg6[%c0_34, %35, %c0_35, %c0_36] : memref<1x4x16x128xf32, #tpu.memory_space<vmem>>, vector<1x1x16x128xf32>
    %37 = vector.shape_cast %36 : vector<1x1x16x128xf32> to vector<16x128xf32>
    %38 = vector.shape_cast %33 : vector<16x128xf32> to vector<1x1x16x128xf32>
    tpu.vector_store %arg6[%c0_34, %35, %c0_35, %c0_36], %38 {strides = array<i32>} : memref<1x4x16x128xf32, #tpu.memory_space<vmem>>, vector<1x1x16x128xf32>,
    %c2_i32 = arith.constant 2 : i32
    %c0_37 = arith.constant 0 : index
    %c0_38 = arith.constant 0 : index
    %39 = vector.load %arg7[%c0_37, %c0_38] : memref<16x128xf32, #tpu.memory_space<vmem>>, vector<16x128xf32>
    %c0_39 = arith.constant 0 : index
    %c0_40 = arith.constant 0 : index
    %40 = vector.load %arg2[%c0_39, %c0_40] : memref<128x128xf32, #tpu.memory_space<vmem>>, vector<128x128xf32>
    %cst_41 = arith.constant dense<0.000000e+00> : vector<16x128xf32>
    %41 = tpu.matmul %39, %40, %cst_41 {dimension_numbers = #tpu.dot_dimension_numbers<[1], [0], [0], [1], [0, 0, 1, 1], [], []>} : vector<16x128xf32>, vector<128x128xf32>, vector<16x128xf32> -> vector<16x128xf32>
    %c0_42 = arith.constant 0 : index
    %c0_43 = arith.constant 0 : index
    %42 = vector.load %arg3[%c0_42, %c0_43] : memref<1x128xf32, #tpu.memory_space<vmem>>, vector<1x128xf32>
    %43 = vector.broadcast %42 : vector<1x128xf32> to vector<16x128xf32>
    %44 = arith.addf %41, %43 : vector<16x128xf32>
    %45 = math.tanh %44 : vector<16x128xf32>
    %c0_44 = arith.constant 0 : index
    %c0_45 = arith.constant 0 : index
    %46 = vector.load %arg4[%c0_44, %c0_45] : memref<128x128xf32, #tpu.memory_space<vmem>>, vector<128x128xf32>
    %cst_46 = arith.constant dense<0.000000e+00> : vector<16x128xf32>
    %47 = tpu.matmul %45, %46, %cst_46 {dimension_numbers = #tpu.dot_dimension_numbers<[1], [0], [0], [1], [0, 0, 1, 1], [], []>} : vector<16x128xf32>, vector<128x128xf32>, vector<16x128xf32> -> vector<16x128xf32>
    %48 = arith.addf %39, %47 : vector<16x128xf32>
    %c0_47 = arith.constant 0 : index
    %c0_48 = arith.constant 0 : index
    %49 = vector.load %arg5[%c0_47, %c0_48] : memref<1x128xf32, #tpu.memory_space<vmem>>, vector<1x128xf32>
    %50 = vector.broadcast %49 : vector<1x128xf32> to vector<16x128xf32>
    %51 = arith.addf %48, %50 : vector<16x128xf32>
    %c0_49 = arith.constant 0 : index
    %c0_50 = arith.constant 0 : index
    %52 = vector.load %arg7[%c0_49, %c0_50] : memref<16x128xf32, #tpu.memory_space<vmem>>, vector<16x128xf32>
    tpu.vector_store %arg7[%c0_49, %c0_50], %51 {strides = array<i32>} : memref<16x128xf32, #tpu.memory_space<vmem>>, vector<16x128xf32>,
    %c0_51 = arith.constant 0 : index
    %53 = arith.index_cast %c2_i32 : i32 to index
    %c0_52 = arith.constant 0 : index
    %c0_53 = arith.constant 0 : index
    %54 = vector.load %arg6[%c0_51, %53, %c0_52, %c0_53] : memref<1x4x16x128xf32, #tpu.memory_space<vmem>>, vector<1x1x16x128xf32>
    %55 = vector.shape_cast %54 : vector<1x1x16x128xf32> to vector<16x128xf32>
    %56 = vector.shape_cast %51 : vector<16x128xf32> to vector<1x1x16x128xf32>
    tpu.vector_store %arg6[%c0_51, %53, %c0_52, %c0_53], %56 {strides = array<i32>} : memref<1x4x16x128xf32, #tpu.memory_space<vmem>>, vector<1x1x16x128xf32>,
    %c3_i32 = arith.constant 3 : i32
    %c0_54 = arith.constant 0 : index
    %c0_55 = arith.constant 0 : index
    %57 = vector.load %arg7[%c0_54, %c0_55] : memref<16x128xf32, #tpu.memory_space<vmem>>, vector<16x128xf32>
    %c0_56 = arith.constant 0 : index
    %c0_57 = arith.constant 0 : index
    %58 = vector.load %arg2[%c0_56, %c0_57] : memref<128x128xf32, #tpu.memory_space<vmem>>, vector<128x128xf32>
    %cst_58 = arith.constant dense<0.000000e+00> : vector<16x128xf32>
    %59 = tpu.matmul %57, %58, %cst_58 {dimension_numbers = #tpu.dot_dimension_numbers<[1], [0], [0], [1], [0, 0, 1, 1], [], []>} : vector<16x128xf32>, vector<128x128xf32>, vector<16x128xf32> -> vector<16x128xf32>
    %c0_59 = arith.constant 0 : index
    %c0_60 = arith.constant 0 : index
    %60 = vector.load %arg3[%c0_59, %c0_60] : memref<1x128xf32, #tpu.memory_space<vmem>>, vector<1x128xf32>
    %61 = vector.broadcast %60 : vector<1x128xf32> to vector<16x128xf32>
    %62 = arith.addf %59, %61 : vector<16x128xf32>
    %63 = math.tanh %62 : vector<16x128xf32>
    %c0_61 = arith.constant 0 : index
    %c0_62 = arith.constant 0 : index
    %64 = vector.load %arg4[%c0_61, %c0_62] : memref<128x128xf32, #tpu.memory_space<vmem>>, vector<128x128xf32>
    %cst_63 = arith.constant dense<0.000000e+00> : vector<16x128xf32>
    %65 = tpu.matmul %63, %64, %cst_63 {dimension_numbers = #tpu.dot_dimension_numbers<[1], [0], [0], [1], [0, 0, 1, 1], [], []>} : vector<16x128xf32>, vector<128x128xf32>, vector<16x128xf32> -> vector<16x128xf32>
    %66 = arith.addf %57, %65 : vector<16x128xf32>
    %c0_64 = arith.constant 0 : index
    %c0_65 = arith.constant 0 : index
    %67 = vector.load %arg5[%c0_64, %c0_65] : memref<1x128xf32, #tpu.memory_space<vmem>>, vector<1x128xf32>
    %68 = vector.broadcast %67 : vector<1x128xf32> to vector<16x128xf32>
    %69 = arith.addf %66, %68 : vector<16x128xf32>
    %c0_66 = arith.constant 0 : index
    %c0_67 = arith.constant 0 : index
    %70 = vector.load %arg7[%c0_66, %c0_67] : memref<16x128xf32, #tpu.memory_space<vmem>>, vector<16x128xf32>
    tpu.vector_store %arg7[%c0_66, %c0_67], %69 {strides = array<i32>} : memref<16x128xf32, #tpu.memory_space<vmem>>, vector<16x128xf32>,
    %c0_68 = arith.constant 0 : index
    %71 = arith.index_cast %c3_i32 : i32 to index
    %c0_69 = arith.constant 0 : index
    %c0_70 = arith.constant 0 : index
    %72 = vector.load %arg6[%c0_68, %71, %c0_69, %c0_70] : memref<1x4x16x128xf32, #tpu.memory_space<vmem>>, vector<1x1x16x128xf32>
    %73 = vector.shape_cast %72 : vector<1x1x16x128xf32> to vector<16x128xf32>
    %74 = vector.shape_cast %69 : vector<16x128xf32> to vector<1x1x16x128xf32>
    tpu.vector_store %arg6[%c0_68, %71, %c0_69, %c0_70], %74 {strides = array<i32>} : memref<1x4x16x128xf32, #tpu.memory_space<vmem>>, vector<1x1x16x128xf32>,
    %c4_i32 = arith.constant 4 : i32
    return
  }
  func.func @transform_0(%arg0: i32) -> (i32, i32, i32) {
    %c0_i32 = arith.constant 0 : i32
    %c0_i32_0 = arith.constant 0 : i32
    %c0_i32_1 = arith.constant 0 : i32
    return %arg0, %c0_i32, %c0_i32_0 : i32, i32, i32
  }
  func.func @transform_1(%arg0: i32) -> (i32, i32) {
    %c0_i32 = arith.constant 0 : i32
    %c0_i32_0 = arith.constant 0 : i32
    %c0_i32_1 = arith.constant 0 : i32
    return %c0_i32, %c0_i32_0 : i32, i32
  }
  func.func @transform_2(%arg0: i32) -> (i32, i32) {
    %c0_i32 = arith.constant 0 : i32
    %c0_i32_0 = arith.constant 0 : i32
    %c0_i32_1 = arith.constant 0 : i32
    return %c0_i32, %c0_i32_0 : i32, i32
  }
  func.func @transform_3(%arg0: i32) -> (i32, i32) {
    %c0_i32 = arith.constant 0 : i32
    %c0_i32_0 = arith.constant 0 : i32
    %c0_i32_1 = arith.constant 0 : i32
    return %c0_i32, %c0_i32_0 : i32, i32
  }
  func.func @transform_4(%arg0: i32) -> (i32, i32) {
    %c0_i32 = arith.constant 0 : i32
    %c0_i32_0 = arith.constant 0 : i32
    %c0_i32_1 = arith.constant 0 : i32
    return %c0_i32, %c0_i32_0 : i32, i32
  }
  func.func @transform_5(%arg0: i32) -> (i32, i32, i32, i32) {
    %c0_i32 = arith.constant 0 : i32
    %c0_i32_0 = arith.constant 0 : i32
    %c0_i32_1 = arith.constant 0 : i32
    %c0_i32_2 = arith.constant 0 : i32
    return %arg0, %c0_i32, %c0_i32_0, %c0_i32_1 : i32, i32, i32, i32
  }
}

module attributes {stable_mosaic.version = 11 : i64} {
  func.func @_recurrent_kernel(%arg0: i32, %arg1: memref<1x7x16x32xf32, #tpu.memory_space<vmem>>, %arg2: memref<2x16x16xf32, #tpu.memory_space<vmem>>, %arg3: memref<2x32x128xf32, #tpu.memory_space<vmem>>, %arg4: memref<2x1x128xf32, #tpu.memory_space<vmem>>, %arg5: memref<2x32x64xf32, #tpu.memory_space<vmem>>, %arg6: memref<2x32x32xf32, #tpu.memory_space<vmem>>, %arg7: memref<32x128xf32, #tpu.memory_space<vmem>>, %arg8: memref<1x7x16x128xf32, #tpu.memory_space<vmem>>, %arg9: memref<2x16x32xf32, #tpu.memory_space<vmem>>) attributes {dimension_semantics = [#tpu.dimension_semantics<parallel>], iteration_bounds = array<i64: 2>, scalar_prefetch = 0 : i64, scratch_operands = 1 : i64, tpu.core_type = #tpu.core_type<tc>, window_params = [{transform_indices = @transform_0, window_bounds = array<i64: 1, 7, 16, 32>}, {pipeline_mode = #tpu.pipeline_mode<synchronous>, transform_indices = @transform_1, window_bounds = array<i64: 2, 16, 16>}, {pipeline_mode = #tpu.pipeline_mode<synchronous>, transform_indices = @transform_2, window_bounds = array<i64: 2, 32, 128>}, {pipeline_mode = #tpu.pipeline_mode<synchronous>, transform_indices = @transform_3, window_bounds = array<i64: 2, 1, 128>}, {pipeline_mode = #tpu.pipeline_mode<synchronous>, transform_indices = @transform_4, window_bounds = array<i64: 2, 32, 64>}, {pipeline_mode = #tpu.pipeline_mode<synchronous>, transform_indices = @transform_5, window_bounds = array<i64: 2, 32, 32>}, {pipeline_mode = #tpu.pipeline_mode<synchronous>, transform_indices = @transform_6, window_bounds = array<i64: 32, 128>}, {transform_indices = @transform_7, window_bounds = array<i64: 1, 7, 16, 128>}]} {
    %cst = arith.constant 0.000000e+00 : f32
    %0 = vector.broadcast %cst : f32 to vector<2x16x32xf32>
    %c0 = arith.constant 0 : index
    %c0_0 = arith.constant 0 : index
    %c0_1 = arith.constant 0 : index
    %1 = vector.load %arg9[%c0, %c0_0, %c0_1] : memref<2x16x32xf32, #tpu.memory_space<vmem>>, vector<2x16x32xf32>
    tpu.vector_store %arg9[%c0, %c0_0, %c0_1], %0 {strides = array<i32>} : memref<2x16x32xf32, #tpu.memory_space<vmem>>, vector<2x16x32xf32>,
    %c0_i32 = arith.constant 0 : i32
    %c0_2 = arith.constant 0 : index
    %2 = arith.index_cast %c0_i32 : i32 to index
    %c0_3 = arith.constant 0 : index
    %c0_4 = arith.constant 0 : index
    %3 = vector.load %arg1[%c0_2, %2, %c0_3, %c0_4] : memref<1x7x16x32xf32, #tpu.memory_space<vmem>>, vector<1x1x16x32xf32>
    %4 = vector.shape_cast %3 : vector<1x1x16x32xf32> to vector<16x32xf32>
    %c0_5 = arith.constant 0 : index
    %c0_6 = arith.constant 0 : index
    %c0_7 = arith.constant 0 : index
    %5 = vector.load %arg9[%c0_5, %c0_6, %c0_7] : memref<2x16x32xf32, #tpu.memory_space<vmem>>, vector<1x16x32xf32>
    %6 = vector.shape_cast %5 : vector<1x16x32xf32> to vector<16x32xf32>
    %c0_8 = arith.constant 0 : index
    %c0_9 = arith.constant 0 : index
    %c0_10 = arith.constant 0 : index
    %7 = vector.load %arg2[%c0_8, %c0_9, %c0_10] : memref<2x16x16xf32, #tpu.memory_space<vmem>>, vector<1x16x16xf32>
    %8 = vector.shape_cast %7 : vector<1x16x16xf32> to vector<16x16xf32>
    %cst_11 = arith.constant dense<0.000000e+00> : vector<16x32xf32>
    %9 = tpu.matmul %8, %4, %cst_11 {dimension_numbers = #tpu.dot_dimension_numbers<[1], [0], [0], [1], [0, 0, 1, 1], [], []>} : vector<16x16xf32>, vector<16x32xf32>, vector<16x32xf32> -> vector<16x32xf32>
    %cst_12 = arith.constant dense<0.000000e+00> : vector<16x32xf32>
    %10 = tpu.matmul %8, %6, %cst_12 {dimension_numbers = #tpu.dot_dimension_numbers<[1], [0], [0], [1], [0, 0, 1, 1], [], []>} : vector<16x16xf32>, vector<16x32xf32>, vector<16x32xf32> -> vector<16x32xf32>
    %c0_13 = arith.constant 0 : index
    %c0_14 = arith.constant 0 : index
    %c0_15 = arith.constant 0 : index
    %11 = vector.load %arg3[%c0_13, %c0_14, %c0_15] : memref<2x32x128xf32, #tpu.memory_space<vmem>>, vector<1x32x128xf32>
    %12 = vector.shape_cast %11 : vector<1x32x128xf32> to vector<32x128xf32>
    %cst_16 = arith.constant dense<0.000000e+00> : vector<16x128xf32>
    %13 = tpu.matmul %9, %12, %cst_16 {dimension_numbers = #tpu.dot_dimension_numbers<[1], [0], [0], [1], [0, 0, 1, 1], [], []>} : vector<16x32xf32>, vector<32x128xf32>, vector<16x128xf32> -> vector<16x128xf32>
    %c0_17 = arith.constant 0 : index
    %c0_18 = arith.constant 0 : index
    %c0_19 = arith.constant 0 : index
    %14 = vector.load %arg4[%c0_17, %c0_18, %c0_19] : memref<2x1x128xf32, #tpu.memory_space<vmem>>, vector<1x1x128xf32>
    %15 = vector.shape_cast %14 : vector<1x1x128xf32> to vector<1x128xf32>
    %16 = vector.broadcast %15 : vector<1x128xf32> to vector<16x128xf32>
    %17 = arith.addf %13, %16 : vector<16x128xf32>
    %c0_20 = arith.constant 0 : index
    %c0_21 = arith.constant 0 : index
    %c0_22 = arith.constant 0 : index
    %18 = vector.load %arg5[%c0_20, %c0_21, %c0_22] : memref<2x32x64xf32, #tpu.memory_space<vmem>>, vector<1x32x64xf32>
    %19 = vector.shape_cast %18 : vector<1x32x64xf32> to vector<32x64xf32>
    %cst_23 = arith.constant dense<0.000000e+00> : vector<16x64xf32>
    %20 = tpu.matmul %10, %19, %cst_23 {dimension_numbers = #tpu.dot_dimension_numbers<[1], [0], [0], [1], [0, 0, 1, 1], [], []>} : vector<16x32xf32>, vector<32x64xf32>, vector<16x64xf32> -> vector<16x64xf32>
    %21 = vector.extract_strided_slice %17 {offsets = [0, 0], sizes = [16, 32], strides = [1, 1]} : vector<16x128xf32> to vector<16x32xf32>
    %22 = vector.extract_strided_slice %20 {offsets = [0, 0], sizes = [16, 32], strides = [1, 1]} : vector<16x64xf32> to vector<16x32xf32>
    %23 = arith.addf %21, %22 : vector<16x32xf32>
    %24 = arith.negf %23 : vector<16x32xf32>
    %25 = math.exp %24 : vector<16x32xf32>
    %cst_24 = arith.constant 1.000000e+00 : f32
    %26 = vector.broadcast %cst_24 : f32 to vector<16x32xf32>
    %27 = arith.addf %26, %25 : vector<16x32xf32>
    %28 = arith.divf %26, %27 : vector<16x32xf32>
    %29 = vector.extract_strided_slice %17 {offsets = [0, 32], sizes = [16, 32], strides = [1, 1]} : vector<16x128xf32> to vector<16x32xf32>
    %30 = vector.extract_strided_slice %20 {offsets = [0, 32], sizes = [16, 32], strides = [1, 1]} : vector<16x64xf32> to vector<16x32xf32>
    %31 = arith.addf %29, %30 : vector<16x32xf32>
    %32 = arith.negf %31 : vector<16x32xf32>
    %33 = math.exp %32 : vector<16x32xf32>
    %cst_25 = arith.constant 1.000000e+00 : f32
    %34 = vector.broadcast %cst_25 : f32 to vector<16x32xf32>
    %35 = arith.addf %34, %33 : vector<16x32xf32>
    %36 = arith.divf %34, %35 : vector<16x32xf32>
    %37 = vector.extract_strided_slice %17 {offsets = [0, 64], sizes = [16, 32], strides = [1, 1]} : vector<16x128xf32> to vector<16x32xf32>
    %38 = arith.mulf %36, %10 : vector<16x32xf32>
    %c0_26 = arith.constant 0 : index
    %c0_27 = arith.constant 0 : index
    %c0_28 = arith.constant 0 : index
    %39 = vector.load %arg6[%c0_26, %c0_27, %c0_28] : memref<2x32x32xf32, #tpu.memory_space<vmem>>, vector<1x32x32xf32>
    %40 = vector.shape_cast %39 : vector<1x32x32xf32> to vector<32x32xf32>
    %cst_29 = arith.constant dense<0.000000e+00> : vector<16x32xf32>
    %41 = tpu.matmul %38, %40, %cst_29 {dimension_numbers = #tpu.dot_dimension_numbers<[1], [0], [0], [1], [0, 0, 1, 1], [], []>} : vector<16x32xf32>, vector<32x32xf32>, vector<16x32xf32> -> vector<16x32xf32>
    %42 = arith.addf %37, %41 : vector<16x32xf32>
    %43 = arith.mulf %28, %6 : vector<16x32xf32>
    %cst_30 = arith.constant 1.000000e+00 : f32
    %44 = vector.broadcast %cst_30 : f32 to vector<16x32xf32>
    %45 = arith.subf %44, %28 : vector<16x32xf32>
    %46 = math.tanh %42 : vector<16x32xf32>
    %47 = arith.mulf %45, %46 : vector<16x32xf32>
    %48 = arith.addf %43, %47 : vector<16x32xf32>
    %c0_31 = arith.constant 0 : index
    %c0_32 = arith.constant 0 : index
    %c0_33 = arith.constant 0 : index
    %49 = vector.load %arg9[%c0_31, %c0_32, %c0_33] : memref<2x16x32xf32, #tpu.memory_space<vmem>>, vector<1x16x32xf32>
    %50 = vector.shape_cast %49 : vector<1x16x32xf32> to vector<16x32xf32>
    %51 = vector.shape_cast %48 : vector<16x32xf32> to vector<1x16x32xf32>
    tpu.vector_store %arg9[%c0_31, %c0_32, %c0_33], %51 {strides = array<i32>} : memref<2x16x32xf32, #tpu.memory_space<vmem>>, vector<1x16x32xf32>,
    %c1 = arith.constant 1 : index
    %c0_34 = arith.constant 0 : index
    %c0_35 = arith.constant 0 : index
    %52 = vector.load %arg9[%c1, %c0_34, %c0_35] : memref<2x16x32xf32, #tpu.memory_space<vmem>>, vector<1x16x32xf32>
    %53 = vector.shape_cast %52 : vector<1x16x32xf32> to vector<16x32xf32>
    %c1_36 = arith.constant 1 : index
    %c0_37 = arith.constant 0 : index
    %c0_38 = arith.constant 0 : index
    %54 = vector.load %arg2[%c1_36, %c0_37, %c0_38] : memref<2x16x16xf32, #tpu.memory_space<vmem>>, vector<1x16x16xf32>
    %55 = vector.shape_cast %54 : vector<1x16x16xf32> to vector<16x16xf32>
    %cst_39 = arith.constant dense<0.000000e+00> : vector<16x32xf32>
    %56 = tpu.matmul %55, %48, %cst_39 {dimension_numbers = #tpu.dot_dimension_numbers<[1], [0], [0], [1], [0, 0, 1, 1], [], []>} : vector<16x16xf32>, vector<16x32xf32>, vector<16x32xf32> -> vector<16x32xf32>
    %cst_40 = arith.constant dense<0.000000e+00> : vector<16x32xf32>
    %57 = tpu.matmul %55, %53, %cst_40 {dimension_numbers = #tpu.dot_dimension_numbers<[1], [0], [0], [1], [0, 0, 1, 1], [], []>} : vector<16x16xf32>, vector<16x32xf32>, vector<16x32xf32> -> vector<16x32xf32>
    %c1_41 = arith.constant 1 : index
    %c0_42 = arith.constant 0 : index
    %c0_43 = arith.constant 0 : index
    %58 = vector.load %arg3[%c1_41, %c0_42, %c0_43] : memref<2x32x128xf32, #tpu.memory_space<vmem>>, vector<1x32x128xf32>
    %59 = vector.shape_cast %58 : vector<1x32x128xf32> to vector<32x128xf32>
    %cst_44 = arith.constant dense<0.000000e+00> : vector<16x128xf32>
    %60 = tpu.matmul %56, %59, %cst_44 {dimension_numbers = #tpu.dot_dimension_numbers<[1], [0], [0], [1], [0, 0, 1, 1], [], []>} : vector<16x32xf32>, vector<32x128xf32>, vector<16x128xf32> -> vector<16x128xf32>
    %c1_45 = arith.constant 1 : index
    %c0_46 = arith.constant 0 : index
    %c0_47 = arith.constant 0 : index
    %61 = vector.load %arg4[%c1_45, %c0_46, %c0_47] : memref<2x1x128xf32, #tpu.memory_space<vmem>>, vector<1x1x128xf32>
    %62 = vector.shape_cast %61 : vector<1x1x128xf32> to vector<1x128xf32>
    %63 = vector.broadcast %62 : vector<1x128xf32> to vector<16x128xf32>
    %64 = arith.addf %60, %63 : vector<16x128xf32>
    %c1_48 = arith.constant 1 : index
    %c0_49 = arith.constant 0 : index
    %c0_50 = arith.constant 0 : index
    %65 = vector.load %arg5[%c1_48, %c0_49, %c0_50] : memref<2x32x64xf32, #tpu.memory_space<vmem>>, vector<1x32x64xf32>
    %66 = vector.shape_cast %65 : vector<1x32x64xf32> to vector<32x64xf32>
    %cst_51 = arith.constant dense<0.000000e+00> : vector<16x64xf32>
    %67 = tpu.matmul %57, %66, %cst_51 {dimension_numbers = #tpu.dot_dimension_numbers<[1], [0], [0], [1], [0, 0, 1, 1], [], []>} : vector<16x32xf32>, vector<32x64xf32>, vector<16x64xf32> -> vector<16x64xf32>
    %68 = vector.extract_strided_slice %64 {offsets = [0, 0], sizes = [16, 32], strides = [1, 1]} : vector<16x128xf32> to vector<16x32xf32>
    %69 = vector.extract_strided_slice %67 {offsets = [0, 0], sizes = [16, 32], strides = [1, 1]} : vector<16x64xf32> to vector<16x32xf32>
    %70 = arith.addf %68, %69 : vector<16x32xf32>
    %71 = arith.negf %70 : vector<16x32xf32>
    %72 = math.exp %71 : vector<16x32xf32>
    %cst_52 = arith.constant 1.000000e+00 : f32
    %73 = vector.broadcast %cst_52 : f32 to vector<16x32xf32>
    %74 = arith.addf %73, %72 : vector<16x32xf32>
    %75 = arith.divf %73, %74 : vector<16x32xf32>
    %76 = vector.extract_strided_slice %64 {offsets = [0, 32], sizes = [16, 32], strides = [1, 1]} : vector<16x128xf32> to vector<16x32xf32>
    %77 = vector.extract_strided_slice %67 {offsets = [0, 32], sizes = [16, 32], strides = [1, 1]} : vector<16x64xf32> to vector<16x32xf32>
    %78 = arith.addf %76, %77 : vector<16x32xf32>
    %79 = arith.negf %78 : vector<16x32xf32>
    %80 = math.exp %79 : vector<16x32xf32>
    %cst_53 = arith.constant 1.000000e+00 : f32
    %81 = vector.broadcast %cst_53 : f32 to vector<16x32xf32>
    %82 = arith.addf %81, %80 : vector<16x32xf32>
    %83 = arith.divf %81, %82 : vector<16x32xf32>
    %84 = vector.extract_strided_slice %64 {offsets = [0, 64], sizes = [16, 32], strides = [1, 1]} : vector<16x128xf32> to vector<16x32xf32>
    %85 = arith.mulf %83, %57 : vector<16x32xf32>
    %c1_54 = arith.constant 1 : index
    %c0_55 = arith.constant 0 : index
    %c0_56 = arith.constant 0 : index
    %86 = vector.load %arg6[%c1_54, %c0_55, %c0_56] : memref<2x32x32xf32, #tpu.memory_space<vmem>>, vector<1x32x32xf32>
    %87 = vector.shape_cast %86 : vector<1x32x32xf32> to vector<32x32xf32>
    %cst_57 = arith.constant dense<0.000000e+00> : vector<16x32xf32>
    %88 = tpu.matmul %85, %87, %cst_57 {dimension_numbers = #tpu.dot_dimension_numbers<[1], [0], [0], [1], [0, 0, 1, 1], [], []>} : vector<16x32xf32>, vector<32x32xf32>, vector<16x32xf32> -> vector<16x32xf32>
    %89 = arith.addf %84, %88 : vector<16x32xf32>
    %90 = arith.mulf %75, %53 : vector<16x32xf32>
    %cst_58 = arith.constant 1.000000e+00 : f32
    %91 = vector.broadcast %cst_58 : f32 to vector<16x32xf32>
    %92 = arith.subf %91, %75 : vector<16x32xf32>
    %93 = math.tanh %89 : vector<16x32xf32>
    %94 = arith.mulf %92, %93 : vector<16x32xf32>
    %95 = arith.addf %90, %94 : vector<16x32xf32>
    %c1_59 = arith.constant 1 : index
    %c0_60 = arith.constant 0 : index
    %c0_61 = arith.constant 0 : index
    %96 = vector.load %arg9[%c1_59, %c0_60, %c0_61] : memref<2x16x32xf32, #tpu.memory_space<vmem>>, vector<1x16x32xf32>
    %97 = vector.shape_cast %96 : vector<1x16x32xf32> to vector<16x32xf32>
    %98 = vector.shape_cast %95 : vector<16x32xf32> to vector<1x16x32xf32>
    tpu.vector_store %arg9[%c1_59, %c0_60, %c0_61], %98 {strides = array<i32>} : memref<2x16x32xf32, #tpu.memory_space<vmem>>, vector<1x16x32xf32>,
    %c0_62 = arith.constant 0 : index
    %c0_63 = arith.constant 0 : index
    %99 = vector.load %arg7[%c0_62, %c0_63] : memref<32x128xf32, #tpu.memory_space<vmem>>, vector<32x128xf32>
    %cst_64 = arith.constant dense<0.000000e+00> : vector<16x128xf32>
    %100 = tpu.matmul %95, %99, %cst_64 {dimension_numbers = #tpu.dot_dimension_numbers<[1], [0], [0], [1], [0, 0, 1, 1], [], []>} : vector<16x32xf32>, vector<32x128xf32>, vector<16x128xf32> -> vector<16x128xf32>
    %c0_65 = arith.constant 0 : index
    %101 = arith.index_cast %c0_i32 : i32 to index
    %c0_66 = arith.constant 0 : index
    %c0_67 = arith.constant 0 : index
    %102 = vector.load %arg8[%c0_65, %101, %c0_66, %c0_67] : memref<1x7x16x128xf32, #tpu.memory_space<vmem>>, vector<1x1x16x128xf32>
    %103 = vector.shape_cast %102 : vector<1x1x16x128xf32> to vector<16x128xf32>
    %104 = vector.shape_cast %100 : vector<16x128xf32> to vector<1x1x16x128xf32>
    tpu.vector_store %arg8[%c0_65, %101, %c0_66, %c0_67], %104 {strides = array<i32>} : memref<1x7x16x128xf32, #tpu.memory_space<vmem>>, vector<1x1x16x128xf32>,
    %c1_i32 = arith.constant 1 : i32
    %c0_68 = arith.constant 0 : index
    %105 = arith.index_cast %c1_i32 : i32 to index
    %c0_69 = arith.constant 0 : index
    %c0_70 = arith.constant 0 : index
    %106 = vector.load %arg1[%c0_68, %105, %c0_69, %c0_70] : memref<1x7x16x32xf32, #tpu.memory_space<vmem>>, vector<1x1x16x32xf32>
    %107 = vector.shape_cast %106 : vector<1x1x16x32xf32> to vector<16x32xf32>
    %c0_71 = arith.constant 0 : index
    %c0_72 = arith.constant 0 : index
    %c0_73 = arith.constant 0 : index
    %108 = vector.load %arg9[%c0_71, %c0_72, %c0_73] : memref<2x16x32xf32, #tpu.memory_space<vmem>>, vector<1x16x32xf32>
    %109 = vector.shape_cast %108 : vector<1x16x32xf32> to vector<16x32xf32>
    %c0_74 = arith.constant 0 : index
    %c0_75 = arith.constant 0 : index
    %c0_76 = arith.constant 0 : index
    %110 = vector.load %arg2[%c0_74, %c0_75, %c0_76] : memref<2x16x16xf32, #tpu.memory_space<vmem>>, vector<1x16x16xf32>
    %111 = vector.shape_cast %110 : vector<1x16x16xf32> to vector<16x16xf32>
    %cst_77 = arith.constant dense<0.000000e+00> : vector<16x32xf32>
    %112 = tpu.matmul %111, %107, %cst_77 {dimension_numbers = #tpu.dot_dimension_numbers<[1], [0], [0], [1], [0, 0, 1, 1], [], []>} : vector<16x16xf32>, vector<16x32xf32>, vector<16x32xf32> -> vector<16x32xf32>
    %cst_78 = arith.constant dense<0.000000e+00> : vector<16x32xf32>
    %113 = tpu.matmul %111, %109, %cst_78 {dimension_numbers = #tpu.dot_dimension_numbers<[1], [0], [0], [1], [0, 0, 1, 1], [], []>} : vector<16x16xf32>, vector<16x32xf32>, vector<16x32xf32> -> vector<16x32xf32>
    %c0_79 = arith.constant 0 : index
    %c0_80 = arith.constant 0 : index
    %c0_81 = arith.constant 0 : index
    %114 = vector.load %arg3[%c0_79, %c0_80, %c0_81] : memref<2x32x128xf32, #tpu.memory_space<vmem>>, vector<1x32x128xf32>
    %115 = vector.shape_cast %114 : vector<1x32x128xf32> to vector<32x128xf32>
    %cst_82 = arith.constant dense<0.000000e+00> : vector<16x128xf32>
    %116 = tpu.matmul %112, %115, %cst_82 {dimension_numbers = #tpu.dot_dimension_numbers<[1], [0], [0], [1], [0, 0, 1, 1], [], []>} : vector<16x32xf32>, vector<32x128xf32>, vector<16x128xf32> -> vector<16x128xf32>
    %c0_83 = arith.constant 0 : index
    %c0_84 = arith.constant 0 : index
    %c0_85 = arith.constant 0 : index
    %117 = vector.load %arg4[%c0_83, %c0_84, %c0_85] : memref<2x1x128xf32, #tpu.memory_space<vmem>>, vector<1x1x128xf32>
    %118 = vector.shape_cast %117 : vector<1x1x128xf32> to vector<1x128xf32>
    %119 = vector.broadcast %118 : vector<1x128xf32> to vector<16x128xf32>
    %120 = arith.addf %116, %119 : vector<16x128xf32>
    %c0_86 = arith.constant 0 : index
    %c0_87 = arith.constant 0 : index
    %c0_88 = arith.constant 0 : index
    %121 = vector.load %arg5[%c0_86, %c0_87, %c0_88] : memref<2x32x64xf32, #tpu.memory_space<vmem>>, vector<1x32x64xf32>
    %122 = vector.shape_cast %121 : vector<1x32x64xf32> to vector<32x64xf32>
    %cst_89 = arith.constant dense<0.000000e+00> : vector<16x64xf32>
    %123 = tpu.matmul %113, %122, %cst_89 {dimension_numbers = #tpu.dot_dimension_numbers<[1], [0], [0], [1], [0, 0, 1, 1], [], []>} : vector<16x32xf32>, vector<32x64xf32>, vector<16x64xf32> -> vector<16x64xf32>
    %124 = vector.extract_strided_slice %120 {offsets = [0, 0], sizes = [16, 32], strides = [1, 1]} : vector<16x128xf32> to vector<16x32xf32>
    %125 = vector.extract_strided_slice %123 {offsets = [0, 0], sizes = [16, 32], strides = [1, 1]} : vector<16x64xf32> to vector<16x32xf32>
    %126 = arith.addf %124, %125 : vector<16x32xf32>
    %127 = arith.negf %126 : vector<16x32xf32>
    %128 = math.exp %127 : vector<16x32xf32>
    %cst_90 = arith.constant 1.000000e+00 : f32
    %129 = vector.broadcast %cst_90 : f32 to vector<16x32xf32>
    %130 = arith.addf %129, %128 : vector<16x32xf32>
    %131 = arith.divf %129, %130 : vector<16x32xf32>
    %132 = vector.extract_strided_slice %120 {offsets = [0, 32], sizes = [16, 32], strides = [1, 1]} : vector<16x128xf32> to vector<16x32xf32>
    %133 = vector.extract_strided_slice %123 {offsets = [0, 32], sizes = [16, 32], strides = [1, 1]} : vector<16x64xf32> to vector<16x32xf32>
    %134 = arith.addf %132, %133 : vector<16x32xf32>
    %135 = arith.negf %134 : vector<16x32xf32>
    %136 = math.exp %135 : vector<16x32xf32>
    %cst_91 = arith.constant 1.000000e+00 : f32
    %137 = vector.broadcast %cst_91 : f32 to vector<16x32xf32>
    %138 = arith.addf %137, %136 : vector<16x32xf32>
    %139 = arith.divf %137, %138 : vector<16x32xf32>
    %140 = vector.extract_strided_slice %120 {offsets = [0, 64], sizes = [16, 32], strides = [1, 1]} : vector<16x128xf32> to vector<16x32xf32>
    %141 = arith.mulf %139, %113 : vector<16x32xf32>
    %c0_92 = arith.constant 0 : index
    %c0_93 = arith.constant 0 : index
    %c0_94 = arith.constant 0 : index
    %142 = vector.load %arg6[%c0_92, %c0_93, %c0_94] : memref<2x32x32xf32, #tpu.memory_space<vmem>>, vector<1x32x32xf32>
    %143 = vector.shape_cast %142 : vector<1x32x32xf32> to vector<32x32xf32>
    %cst_95 = arith.constant dense<0.000000e+00> : vector<16x32xf32>
    %144 = tpu.matmul %141, %143, %cst_95 {dimension_numbers = #tpu.dot_dimension_numbers<[1], [0], [0], [1], [0, 0, 1, 1], [], []>} : vector<16x32xf32>, vector<32x32xf32>, vector<16x32xf32> -> vector<16x32xf32>
    %145 = arith.addf %140, %144 : vector<16x32xf32>
    %146 = arith.mulf %131, %109 : vector<16x32xf32>
    %cst_96 = arith.constant 1.000000e+00 : f32
    %147 = vector.broadcast %cst_96 : f32 to vector<16x32xf32>
    %148 = arith.subf %147, %131 : vector<16x32xf32>
    %149 = math.tanh %145 : vector<16x32xf32>
    %150 = arith.mulf %148, %149 : vector<16x32xf32>
    %151 = arith.addf %146, %150 : vector<16x32xf32>
    %c0_97 = arith.constant 0 : index
    %c0_98 = arith.constant 0 : index
    %c0_99 = arith.constant 0 : index
    %152 = vector.load %arg9[%c0_97, %c0_98, %c0_99] : memref<2x16x32xf32, #tpu.memory_space<vmem>>, vector<1x16x32xf32>
    %153 = vector.shape_cast %152 : vector<1x16x32xf32> to vector<16x32xf32>
    %154 = vector.shape_cast %151 : vector<16x32xf32> to vector<1x16x32xf32>
    tpu.vector_store %arg9[%c0_97, %c0_98, %c0_99], %154 {strides = array<i32>} : memref<2x16x32xf32, #tpu.memory_space<vmem>>, vector<1x16x32xf32>,
    %c1_100 = arith.constant 1 : index
    %c0_101 = arith.constant 0 : index
    %c0_102 = arith.constant 0 : index
    %155 = vector.load %arg9[%c1_100, %c0_101, %c0_102] : memref<2x16x32xf32, #tpu.memory_space<vmem>>, vector<1x16x32xf32>
    %156 = vector.shape_cast %155 : vector<1x16x32xf32> to vector<16x32xf32>
    %c1_103 = arith.constant 1 : index
    %c0_104 = arith.constant 0 : index
    %c0_105 = arith.constant 0 : index
    %157 = vector.load %arg2[%c1_103, %c0_104, %c0_105] : memref<2x16x16xf32, #tpu.memory_space<vmem>>, vector<1x16x16xf32>
    %158 = vector.shape_cast %157 : vector<1x16x16xf32> to vector<16x16xf32>
    %cst_106 = arith.constant dense<0.000000e+00> : vector<16x32xf32>
    %159 = tpu.matmul %158, %151, %cst_106 {dimension_numbers = #tpu.dot_dimension_numbers<[1], [0], [0], [1], [0, 0, 1, 1], [], []>} : vector<16x16xf32>, vector<16x32xf32>, vector<16x32xf32> -> vector<16x32xf32>
    %cst_107 = arith.constant dense<0.000000e+00> : vector<16x32xf32>
    %160 = tpu.matmul %158, %156, %cst_107 {dimension_numbers = #tpu.dot_dimension_numbers<[1], [0], [0], [1], [0, 0, 1, 1], [], []>} : vector<16x16xf32>, vector<16x32xf32>, vector<16x32xf32> -> vector<16x32xf32>
    %c1_108 = arith.constant 1 : index
    %c0_109 = arith.constant 0 : index
    %c0_110 = arith.constant 0 : index
    %161 = vector.load %arg3[%c1_108, %c0_109, %c0_110] : memref<2x32x128xf32, #tpu.memory_space<vmem>>, vector<1x32x128xf32>
    %162 = vector.shape_cast %161 : vector<1x32x128xf32> to vector<32x128xf32>
    %cst_111 = arith.constant dense<0.000000e+00> : vector<16x128xf32>
    %163 = tpu.matmul %159, %162, %cst_111 {dimension_numbers = #tpu.dot_dimension_numbers<[1], [0], [0], [1], [0, 0, 1, 1], [], []>} : vector<16x32xf32>, vector<32x128xf32>, vector<16x128xf32> -> vector<16x128xf32>
    %c1_112 = arith.constant 1 : index
    %c0_113 = arith.constant 0 : index
    %c0_114 = arith.constant 0 : index
    %164 = vector.load %arg4[%c1_112, %c0_113, %c0_114] : memref<2x1x128xf32, #tpu.memory_space<vmem>>, vector<1x1x128xf32>
    %165 = vector.shape_cast %164 : vector<1x1x128xf32> to vector<1x128xf32>
    %166 = vector.broadcast %165 : vector<1x128xf32> to vector<16x128xf32>
    %167 = arith.addf %163, %166 : vector<16x128xf32>
    %c1_115 = arith.constant 1 : index
    %c0_116 = arith.constant 0 : index
    %c0_117 = arith.constant 0 : index
    %168 = vector.load %arg5[%c1_115, %c0_116, %c0_117] : memref<2x32x64xf32, #tpu.memory_space<vmem>>, vector<1x32x64xf32>
    %169 = vector.shape_cast %168 : vector<1x32x64xf32> to vector<32x64xf32>
    %cst_118 = arith.constant dense<0.000000e+00> : vector<16x64xf32>
    %170 = tpu.matmul %160, %169, %cst_118 {dimension_numbers = #tpu.dot_dimension_numbers<[1], [0], [0], [1], [0, 0, 1, 1], [], []>} : vector<16x32xf32>, vector<32x64xf32>, vector<16x64xf32> -> vector<16x64xf32>
    %171 = vector.extract_strided_slice %167 {offsets = [0, 0], sizes = [16, 32], strides = [1, 1]} : vector<16x128xf32> to vector<16x32xf32>
    %172 = vector.extract_strided_slice %170 {offsets = [0, 0], sizes = [16, 32], strides = [1, 1]} : vector<16x64xf32> to vector<16x32xf32>
    %173 = arith.addf %171, %172 : vector<16x32xf32>
    %174 = arith.negf %173 : vector<16x32xf32>
    %175 = math.exp %174 : vector<16x32xf32>
    %cst_119 = arith.constant 1.000000e+00 : f32
    %176 = vector.broadcast %cst_119 : f32 to vector<16x32xf32>
    %177 = arith.addf %176, %175 : vector<16x32xf32>
    %178 = arith.divf %176, %177 : vector<16x32xf32>
    %179 = vector.extract_strided_slice %167 {offsets = [0, 32], sizes = [16, 32], strides = [1, 1]} : vector<16x128xf32> to vector<16x32xf32>
    %180 = vector.extract_strided_slice %170 {offsets = [0, 32], sizes = [16, 32], strides = [1, 1]} : vector<16x64xf32> to vector<16x32xf32>
    %181 = arith.addf %179, %180 : vector<16x32xf32>
    %182 = arith.negf %181 : vector<16x32xf32>
    %183 = math.exp %182 : vector<16x32xf32>
    %cst_120 = arith.constant 1.000000e+00 : f32
    %184 = vector.broadcast %cst_120 : f32 to vector<16x32xf32>
    %185 = arith.addf %184, %183 : vector<16x32xf32>
    %186 = arith.divf %184, %185 : vector<16x32xf32>
    %187 = vector.extract_strided_slice %167 {offsets = [0, 64], sizes = [16, 32], strides = [1, 1]} : vector<16x128xf32> to vector<16x32xf32>
    %188 = arith.mulf %186, %160 : vector<16x32xf32>
    %c1_121 = arith.constant 1 : index
    %c0_122 = arith.constant 0 : index
    %c0_123 = arith.constant 0 : index
    %189 = vector.load %arg6[%c1_121, %c0_122, %c0_123] : memref<2x32x32xf32, #tpu.memory_space<vmem>>, vector<1x32x32xf32>
    %190 = vector.shape_cast %189 : vector<1x32x32xf32> to vector<32x32xf32>
    %cst_124 = arith.constant dense<0.000000e+00> : vector<16x32xf32>
    %191 = tpu.matmul %188, %190, %cst_124 {dimension_numbers = #tpu.dot_dimension_numbers<[1], [0], [0], [1], [0, 0, 1, 1], [], []>} : vector<16x32xf32>, vector<32x32xf32>, vector<16x32xf32> -> vector<16x32xf32>
    %192 = arith.addf %187, %191 : vector<16x32xf32>
    %193 = arith.mulf %178, %156 : vector<16x32xf32>
    %cst_125 = arith.constant 1.000000e+00 : f32
    %194 = vector.broadcast %cst_125 : f32 to vector<16x32xf32>
    %195 = arith.subf %194, %178 : vector<16x32xf32>
    %196 = math.tanh %192 : vector<16x32xf32>
    %197 = arith.mulf %195, %196 : vector<16x32xf32>
    %198 = arith.addf %193, %197 : vector<16x32xf32>
    %c1_126 = arith.constant 1 : index
    %c0_127 = arith.constant 0 : index
    %c0_128 = arith.constant 0 : index
    %199 = vector.load %arg9[%c1_126, %c0_127, %c0_128] : memref<2x16x32xf32, #tpu.memory_space<vmem>>, vector<1x16x32xf32>
    %200 = vector.shape_cast %199 : vector<1x16x32xf32> to vector<16x32xf32>
    %201 = vector.shape_cast %198 : vector<16x32xf32> to vector<1x16x32xf32>
    tpu.vector_store %arg9[%c1_126, %c0_127, %c0_128], %201 {strides = array<i32>} : memref<2x16x32xf32, #tpu.memory_space<vmem>>, vector<1x16x32xf32>,
    %c0_129 = arith.constant 0 : index
    %c0_130 = arith.constant 0 : index
    %202 = vector.load %arg7[%c0_129, %c0_130] : memref<32x128xf32, #tpu.memory_space<vmem>>, vector<32x128xf32>
    %cst_131 = arith.constant dense<0.000000e+00> : vector<16x128xf32>
    %203 = tpu.matmul %198, %202, %cst_131 {dimension_numbers = #tpu.dot_dimension_numbers<[1], [0], [0], [1], [0, 0, 1, 1], [], []>} : vector<16x32xf32>, vector<32x128xf32>, vector<16x128xf32> -> vector<16x128xf32>
    %c0_132 = arith.constant 0 : index
    %204 = arith.index_cast %c1_i32 : i32 to index
    %c0_133 = arith.constant 0 : index
    %c0_134 = arith.constant 0 : index
    %205 = vector.load %arg8[%c0_132, %204, %c0_133, %c0_134] : memref<1x7x16x128xf32, #tpu.memory_space<vmem>>, vector<1x1x16x128xf32>
    %206 = vector.shape_cast %205 : vector<1x1x16x128xf32> to vector<16x128xf32>
    %207 = vector.shape_cast %203 : vector<16x128xf32> to vector<1x1x16x128xf32>
    tpu.vector_store %arg8[%c0_132, %204, %c0_133, %c0_134], %207 {strides = array<i32>} : memref<1x7x16x128xf32, #tpu.memory_space<vmem>>, vector<1x1x16x128xf32>,
    %c2_i32 = arith.constant 2 : i32
    %c0_135 = arith.constant 0 : index
    %208 = arith.index_cast %c2_i32 : i32 to index
    %c0_136 = arith.constant 0 : index
    %c0_137 = arith.constant 0 : index
    %209 = vector.load %arg1[%c0_135, %208, %c0_136, %c0_137] : memref<1x7x16x32xf32, #tpu.memory_space<vmem>>, vector<1x1x16x32xf32>
    %210 = vector.shape_cast %209 : vector<1x1x16x32xf32> to vector<16x32xf32>
    %c0_138 = arith.constant 0 : index
    %c0_139 = arith.constant 0 : index
    %c0_140 = arith.constant 0 : index
    %211 = vector.load %arg9[%c0_138, %c0_139, %c0_140] : memref<2x16x32xf32, #tpu.memory_space<vmem>>, vector<1x16x32xf32>
    %212 = vector.shape_cast %211 : vector<1x16x32xf32> to vector<16x32xf32>
    %c0_141 = arith.constant 0 : index
    %c0_142 = arith.constant 0 : index
    %c0_143 = arith.constant 0 : index
    %213 = vector.load %arg2[%c0_141, %c0_142, %c0_143] : memref<2x16x16xf32, #tpu.memory_space<vmem>>, vector<1x16x16xf32>
    %214 = vector.shape_cast %213 : vector<1x16x16xf32> to vector<16x16xf32>
    %cst_144 = arith.constant dense<0.000000e+00> : vector<16x32xf32>
    %215 = tpu.matmul %214, %210, %cst_144 {dimension_numbers = #tpu.dot_dimension_numbers<[1], [0], [0], [1], [0, 0, 1, 1], [], []>} : vector<16x16xf32>, vector<16x32xf32>, vector<16x32xf32> -> vector<16x32xf32>
    %cst_145 = arith.constant dense<0.000000e+00> : vector<16x32xf32>
    %216 = tpu.matmul %214, %212, %cst_145 {dimension_numbers = #tpu.dot_dimension_numbers<[1], [0], [0], [1], [0, 0, 1, 1], [], []>} : vector<16x16xf32>, vector<16x32xf32>, vector<16x32xf32> -> vector<16x32xf32>
    %c0_146 = arith.constant 0 : index
    %c0_147 = arith.constant 0 : index
    %c0_148 = arith.constant 0 : index
    %217 = vector.load %arg3[%c0_146, %c0_147, %c0_148] : memref<2x32x128xf32, #tpu.memory_space<vmem>>, vector<1x32x128xf32>
    %218 = vector.shape_cast %217 : vector<1x32x128xf32> to vector<32x128xf32>
    %cst_149 = arith.constant dense<0.000000e+00> : vector<16x128xf32>
    %219 = tpu.matmul %215, %218, %cst_149 {dimension_numbers = #tpu.dot_dimension_numbers<[1], [0], [0], [1], [0, 0, 1, 1], [], []>} : vector<16x32xf32>, vector<32x128xf32>, vector<16x128xf32> -> vector<16x128xf32>
    %c0_150 = arith.constant 0 : index
    %c0_151 = arith.constant 0 : index
    %c0_152 = arith.constant 0 : index
    %220 = vector.load %arg4[%c0_150, %c0_151, %c0_152] : memref<2x1x128xf32, #tpu.memory_space<vmem>>, vector<1x1x128xf32>
    %221 = vector.shape_cast %220 : vector<1x1x128xf32> to vector<1x128xf32>
    %222 = vector.broadcast %221 : vector<1x128xf32> to vector<16x128xf32>
    %223 = arith.addf %219, %222 : vector<16x128xf32>
    %c0_153 = arith.constant 0 : index
    %c0_154 = arith.constant 0 : index
    %c0_155 = arith.constant 0 : index
    %224 = vector.load %arg5[%c0_153, %c0_154, %c0_155] : memref<2x32x64xf32, #tpu.memory_space<vmem>>, vector<1x32x64xf32>
    %225 = vector.shape_cast %224 : vector<1x32x64xf32> to vector<32x64xf32>
    %cst_156 = arith.constant dense<0.000000e+00> : vector<16x64xf32>
    %226 = tpu.matmul %216, %225, %cst_156 {dimension_numbers = #tpu.dot_dimension_numbers<[1], [0], [0], [1], [0, 0, 1, 1], [], []>} : vector<16x32xf32>, vector<32x64xf32>, vector<16x64xf32> -> vector<16x64xf32>
    %227 = vector.extract_strided_slice %223 {offsets = [0, 0], sizes = [16, 32], strides = [1, 1]} : vector<16x128xf32> to vector<16x32xf32>
    %228 = vector.extract_strided_slice %226 {offsets = [0, 0], sizes = [16, 32], strides = [1, 1]} : vector<16x64xf32> to vector<16x32xf32>
    %229 = arith.addf %227, %228 : vector<16x32xf32>
    %230 = arith.negf %229 : vector<16x32xf32>
    %231 = math.exp %230 : vector<16x32xf32>
    %cst_157 = arith.constant 1.000000e+00 : f32
    %232 = vector.broadcast %cst_157 : f32 to vector<16x32xf32>
    %233 = arith.addf %232, %231 : vector<16x32xf32>
    %234 = arith.divf %232, %233 : vector<16x32xf32>
    %235 = vector.extract_strided_slice %223 {offsets = [0, 32], sizes = [16, 32], strides = [1, 1]} : vector<16x128xf32> to vector<16x32xf32>
    %236 = vector.extract_strided_slice %226 {offsets = [0, 32], sizes = [16, 32], strides = [1, 1]} : vector<16x64xf32> to vector<16x32xf32>
    %237 = arith.addf %235, %236 : vector<16x32xf32>
    %238 = arith.negf %237 : vector<16x32xf32>
    %239 = math.exp %238 : vector<16x32xf32>
    %cst_158 = arith.constant 1.000000e+00 : f32
    %240 = vector.broadcast %cst_158 : f32 to vector<16x32xf32>
    %241 = arith.addf %240, %239 : vector<16x32xf32>
    %242 = arith.divf %240, %241 : vector<16x32xf32>
    %243 = vector.extract_strided_slice %223 {offsets = [0, 64], sizes = [16, 32], strides = [1, 1]} : vector<16x128xf32> to vector<16x32xf32>
    %244 = arith.mulf %242, %216 : vector<16x32xf32>
    %c0_159 = arith.constant 0 : index
    %c0_160 = arith.constant 0 : index
    %c0_161 = arith.constant 0 : index
    %245 = vector.load %arg6[%c0_159, %c0_160, %c0_161] : memref<2x32x32xf32, #tpu.memory_space<vmem>>, vector<1x32x32xf32>
    %246 = vector.shape_cast %245 : vector<1x32x32xf32> to vector<32x32xf32>
    %cst_162 = arith.constant dense<0.000000e+00> : vector<16x32xf32>
    %247 = tpu.matmul %244, %246, %cst_162 {dimension_numbers = #tpu.dot_dimension_numbers<[1], [0], [0], [1], [0, 0, 1, 1], [], []>} : vector<16x32xf32>, vector<32x32xf32>, vector<16x32xf32> -> vector<16x32xf32>
    %248 = arith.addf %243, %247 : vector<16x32xf32>
    %249 = arith.mulf %234, %212 : vector<16x32xf32>
    %cst_163 = arith.constant 1.000000e+00 : f32
    %250 = vector.broadcast %cst_163 : f32 to vector<16x32xf32>
    %251 = arith.subf %250, %234 : vector<16x32xf32>
    %252 = math.tanh %248 : vector<16x32xf32>
    %253 = arith.mulf %251, %252 : vector<16x32xf32>
    %254 = arith.addf %249, %253 : vector<16x32xf32>
    %c0_164 = arith.constant 0 : index
    %c0_165 = arith.constant 0 : index
    %c0_166 = arith.constant 0 : index
    %255 = vector.load %arg9[%c0_164, %c0_165, %c0_166] : memref<2x16x32xf32, #tpu.memory_space<vmem>>, vector<1x16x32xf32>
    %256 = vector.shape_cast %255 : vector<1x16x32xf32> to vector<16x32xf32>
    %257 = vector.shape_cast %254 : vector<16x32xf32> to vector<1x16x32xf32>
    tpu.vector_store %arg9[%c0_164, %c0_165, %c0_166], %257 {strides = array<i32>} : memref<2x16x32xf32, #tpu.memory_space<vmem>>, vector<1x16x32xf32>,
    %c1_167 = arith.constant 1 : index
    %c0_168 = arith.constant 0 : index
    %c0_169 = arith.constant 0 : index
    %258 = vector.load %arg9[%c1_167, %c0_168, %c0_169] : memref<2x16x32xf32, #tpu.memory_space<vmem>>, vector<1x16x32xf32>
    %259 = vector.shape_cast %258 : vector<1x16x32xf32> to vector<16x32xf32>
    %c1_170 = arith.constant 1 : index
    %c0_171 = arith.constant 0 : index
    %c0_172 = arith.constant 0 : index
    %260 = vector.load %arg2[%c1_170, %c0_171, %c0_172] : memref<2x16x16xf32, #tpu.memory_space<vmem>>, vector<1x16x16xf32>
    %261 = vector.shape_cast %260 : vector<1x16x16xf32> to vector<16x16xf32>
    %cst_173 = arith.constant dense<0.000000e+00> : vector<16x32xf32>
    %262 = tpu.matmul %261, %254, %cst_173 {dimension_numbers = #tpu.dot_dimension_numbers<[1], [0], [0], [1], [0, 0, 1, 1], [], []>} : vector<16x16xf32>, vector<16x32xf32>, vector<16x32xf32> -> vector<16x32xf32>
    %cst_174 = arith.constant dense<0.000000e+00> : vector<16x32xf32>
    %263 = tpu.matmul %261, %259, %cst_174 {dimension_numbers = #tpu.dot_dimension_numbers<[1], [0], [0], [1], [0, 0, 1, 1], [], []>} : vector<16x16xf32>, vector<16x32xf32>, vector<16x32xf32> -> vector<16x32xf32>
    %c1_175 = arith.constant 1 : index
    %c0_176 = arith.constant 0 : index
    %c0_177 = arith.constant 0 : index
    %264 = vector.load %arg3[%c1_175, %c0_176, %c0_177] : memref<2x32x128xf32, #tpu.memory_space<vmem>>, vector<1x32x128xf32>
    %265 = vector.shape_cast %264 : vector<1x32x128xf32> to vector<32x128xf32>
    %cst_178 = arith.constant dense<0.000000e+00> : vector<16x128xf32>
    %266 = tpu.matmul %262, %265, %cst_178 {dimension_numbers = #tpu.dot_dimension_numbers<[1], [0], [0], [1], [0, 0, 1, 1], [], []>} : vector<16x32xf32>, vector<32x128xf32>, vector<16x128xf32> -> vector<16x128xf32>
    %c1_179 = arith.constant 1 : index
    %c0_180 = arith.constant 0 : index
    %c0_181 = arith.constant 0 : index
    %267 = vector.load %arg4[%c1_179, %c0_180, %c0_181] : memref<2x1x128xf32, #tpu.memory_space<vmem>>, vector<1x1x128xf32>
    %268 = vector.shape_cast %267 : vector<1x1x128xf32> to vector<1x128xf32>
    %269 = vector.broadcast %268 : vector<1x128xf32> to vector<16x128xf32>
    %270 = arith.addf %266, %269 : vector<16x128xf32>
    %c1_182 = arith.constant 1 : index
    %c0_183 = arith.constant 0 : index
    %c0_184 = arith.constant 0 : index
    %271 = vector.load %arg5[%c1_182, %c0_183, %c0_184] : memref<2x32x64xf32, #tpu.memory_space<vmem>>, vector<1x32x64xf32>
    %272 = vector.shape_cast %271 : vector<1x32x64xf32> to vector<32x64xf32>
    %cst_185 = arith.constant dense<0.000000e+00> : vector<16x64xf32>
    %273 = tpu.matmul %263, %272, %cst_185 {dimension_numbers = #tpu.dot_dimension_numbers<[1], [0], [0], [1], [0, 0, 1, 1], [], []>} : vector<16x32xf32>, vector<32x64xf32>, vector<16x64xf32> -> vector<16x64xf32>
    %274 = vector.extract_strided_slice %270 {offsets = [0, 0], sizes = [16, 32], strides = [1, 1]} : vector<16x128xf32> to vector<16x32xf32>
    %275 = vector.extract_strided_slice %273 {offsets = [0, 0], sizes = [16, 32], strides = [1, 1]} : vector<16x64xf32> to vector<16x32xf32>
    %276 = arith.addf %274, %275 : vector<16x32xf32>
    %277 = arith.negf %276 : vector<16x32xf32>
    %278 = math.exp %277 : vector<16x32xf32>
    %cst_186 = arith.constant 1.000000e+00 : f32
    %279 = vector.broadcast %cst_186 : f32 to vector<16x32xf32>
    %280 = arith.addf %279, %278 : vector<16x32xf32>
    %281 = arith.divf %279, %280 : vector<16x32xf32>
    %282 = vector.extract_strided_slice %270 {offsets = [0, 32], sizes = [16, 32], strides = [1, 1]} : vector<16x128xf32> to vector<16x32xf32>
    %283 = vector.extract_strided_slice %273 {offsets = [0, 32], sizes = [16, 32], strides = [1, 1]} : vector<16x64xf32> to vector<16x32xf32>
    %284 = arith.addf %282, %283 : vector<16x32xf32>
    %285 = arith.negf %284 : vector<16x32xf32>
    %286 = math.exp %285 : vector<16x32xf32>
    %cst_187 = arith.constant 1.000000e+00 : f32
    %287 = vector.broadcast %cst_187 : f32 to vector<16x32xf32>
    %288 = arith.addf %287, %286 : vector<16x32xf32>
    %289 = arith.divf %287, %288 : vector<16x32xf32>
    %290 = vector.extract_strided_slice %270 {offsets = [0, 64], sizes = [16, 32], strides = [1, 1]} : vector<16x128xf32> to vector<16x32xf32>
    %291 = arith.mulf %289, %263 : vector<16x32xf32>
    %c1_188 = arith.constant 1 : index
    %c0_189 = arith.constant 0 : index
    %c0_190 = arith.constant 0 : index
    %292 = vector.load %arg6[%c1_188, %c0_189, %c0_190] : memref<2x32x32xf32, #tpu.memory_space<vmem>>, vector<1x32x32xf32>
    %293 = vector.shape_cast %292 : vector<1x32x32xf32> to vector<32x32xf32>
    %cst_191 = arith.constant dense<0.000000e+00> : vector<16x32xf32>
    %294 = tpu.matmul %291, %293, %cst_191 {dimension_numbers = #tpu.dot_dimension_numbers<[1], [0], [0], [1], [0, 0, 1, 1], [], []>} : vector<16x32xf32>, vector<32x32xf32>, vector<16x32xf32> -> vector<16x32xf32>
    %295 = arith.addf %290, %294 : vector<16x32xf32>
    %296 = arith.mulf %281, %259 : vector<16x32xf32>
    %cst_192 = arith.constant 1.000000e+00 : f32
    %297 = vector.broadcast %cst_192 : f32 to vector<16x32xf32>
    %298 = arith.subf %297, %281 : vector<16x32xf32>
    %299 = math.tanh %295 : vector<16x32xf32>
    %300 = arith.mulf %298, %299 : vector<16x32xf32>
    %301 = arith.addf %296, %300 : vector<16x32xf32>
    %c1_193 = arith.constant 1 : index
    %c0_194 = arith.constant 0 : index
    %c0_195 = arith.constant 0 : index
    %302 = vector.load %arg9[%c1_193, %c0_194, %c0_195] : memref<2x16x32xf32, #tpu.memory_space<vmem>>, vector<1x16x32xf32>
    %303 = vector.shape_cast %302 : vector<1x16x32xf32> to vector<16x32xf32>
    %304 = vector.shape_cast %301 : vector<16x32xf32> to vector<1x16x32xf32>
    tpu.vector_store %arg9[%c1_193, %c0_194, %c0_195], %304 {strides = array<i32>} : memref<2x16x32xf32, #tpu.memory_space<vmem>>, vector<1x16x32xf32>,
    %c0_196 = arith.constant 0 : index
    %c0_197 = arith.constant 0 : index
    %305 = vector.load %arg7[%c0_196, %c0_197] : memref<32x128xf32, #tpu.memory_space<vmem>>, vector<32x128xf32>
    %cst_198 = arith.constant dense<0.000000e+00> : vector<16x128xf32>
    %306 = tpu.matmul %301, %305, %cst_198 {dimension_numbers = #tpu.dot_dimension_numbers<[1], [0], [0], [1], [0, 0, 1, 1], [], []>} : vector<16x32xf32>, vector<32x128xf32>, vector<16x128xf32> -> vector<16x128xf32>
    %c0_199 = arith.constant 0 : index
    %307 = arith.index_cast %c2_i32 : i32 to index
    %c0_200 = arith.constant 0 : index
    %c0_201 = arith.constant 0 : index
    %308 = vector.load %arg8[%c0_199, %307, %c0_200, %c0_201] : memref<1x7x16x128xf32, #tpu.memory_space<vmem>>, vector<1x1x16x128xf32>
    %309 = vector.shape_cast %308 : vector<1x1x16x128xf32> to vector<16x128xf32>
    %310 = vector.shape_cast %306 : vector<16x128xf32> to vector<1x1x16x128xf32>
    tpu.vector_store %arg8[%c0_199, %307, %c0_200, %c0_201], %310 {strides = array<i32>} : memref<1x7x16x128xf32, #tpu.memory_space<vmem>>, vector<1x1x16x128xf32>,
    %c3_i32 = arith.constant 3 : i32
    %c0_202 = arith.constant 0 : index
    %311 = arith.index_cast %c3_i32 : i32 to index
    %c0_203 = arith.constant 0 : index
    %c0_204 = arith.constant 0 : index
    %312 = vector.load %arg1[%c0_202, %311, %c0_203, %c0_204] : memref<1x7x16x32xf32, #tpu.memory_space<vmem>>, vector<1x1x16x32xf32>
    %313 = vector.shape_cast %312 : vector<1x1x16x32xf32> to vector<16x32xf32>
    %c0_205 = arith.constant 0 : index
    %c0_206 = arith.constant 0 : index
    %c0_207 = arith.constant 0 : index
    %314 = vector.load %arg9[%c0_205, %c0_206, %c0_207] : memref<2x16x32xf32, #tpu.memory_space<vmem>>, vector<1x16x32xf32>
    %315 = vector.shape_cast %314 : vector<1x16x32xf32> to vector<16x32xf32>
    %c0_208 = arith.constant 0 : index
    %c0_209 = arith.constant 0 : index
    %c0_210 = arith.constant 0 : index
    %316 = vector.load %arg2[%c0_208, %c0_209, %c0_210] : memref<2x16x16xf32, #tpu.memory_space<vmem>>, vector<1x16x16xf32>
    %317 = vector.shape_cast %316 : vector<1x16x16xf32> to vector<16x16xf32>
    %cst_211 = arith.constant dense<0.000000e+00> : vector<16x32xf32>
    %318 = tpu.matmul %317, %313, %cst_211 {dimension_numbers = #tpu.dot_dimension_numbers<[1], [0], [0], [1], [0, 0, 1, 1], [], []>} : vector<16x16xf32>, vector<16x32xf32>, vector<16x32xf32> -> vector<16x32xf32>
    %cst_212 = arith.constant dense<0.000000e+00> : vector<16x32xf32>
    %319 = tpu.matmul %317, %315, %cst_212 {dimension_numbers = #tpu.dot_dimension_numbers<[1], [0], [0], [1], [0, 0, 1, 1], [], []>} : vector<16x16xf32>, vector<16x32xf32>, vector<16x32xf32> -> vector<16x32xf32>
    %c0_213 = arith.constant 0 : index
    %c0_214 = arith.constant 0 : index
    %c0_215 = arith.constant 0 : index
    %320 = vector.load %arg3[%c0_213, %c0_214, %c0_215] : memref<2x32x128xf32, #tpu.memory_space<vmem>>, vector<1x32x128xf32>
    %321 = vector.shape_cast %320 : vector<1x32x128xf32> to vector<32x128xf32>
    %cst_216 = arith.constant dense<0.000000e+00> : vector<16x128xf32>
    %322 = tpu.matmul %318, %321, %cst_216 {dimension_numbers = #tpu.dot_dimension_numbers<[1], [0], [0], [1], [0, 0, 1, 1], [], []>} : vector<16x32xf32>, vector<32x128xf32>, vector<16x128xf32> -> vector<16x128xf32>
    %c0_217 = arith.constant 0 : index
    %c0_218 = arith.constant 0 : index
    %c0_219 = arith.constant 0 : index
    %323 = vector.load %arg4[%c0_217, %c0_218, %c0_219] : memref<2x1x128xf32, #tpu.memory_space<vmem>>, vector<1x1x128xf32>
    %324 = vector.shape_cast %323 : vector<1x1x128xf32> to vector<1x128xf32>
    %325 = vector.broadcast %324 : vector<1x128xf32> to vector<16x128xf32>
    %326 = arith.addf %322, %325 : vector<16x128xf32>
    %c0_220 = arith.constant 0 : index
    %c0_221 = arith.constant 0 : index
    %c0_222 = arith.constant 0 : index
    %327 = vector.load %arg5[%c0_220, %c0_221, %c0_222] : memref<2x32x64xf32, #tpu.memory_space<vmem>>, vector<1x32x64xf32>
    %328 = vector.shape_cast %327 : vector<1x32x64xf32> to vector<32x64xf32>
    %cst_223 = arith.constant dense<0.000000e+00> : vector<16x64xf32>
    %329 = tpu.matmul %319, %328, %cst_223 {dimension_numbers = #tpu.dot_dimension_numbers<[1], [0], [0], [1], [0, 0, 1, 1], [], []>} : vector<16x32xf32>, vector<32x64xf32>, vector<16x64xf32> -> vector<16x64xf32>
    %330 = vector.extract_strided_slice %326 {offsets = [0, 0], sizes = [16, 32], strides = [1, 1]} : vector<16x128xf32> to vector<16x32xf32>
    %331 = vector.extract_strided_slice %329 {offsets = [0, 0], sizes = [16, 32], strides = [1, 1]} : vector<16x64xf32> to vector<16x32xf32>
    %332 = arith.addf %330, %331 : vector<16x32xf32>
    %333 = arith.negf %332 : vector<16x32xf32>
    %334 = math.exp %333 : vector<16x32xf32>
    %cst_224 = arith.constant 1.000000e+00 : f32
    %335 = vector.broadcast %cst_224 : f32 to vector<16x32xf32>
    %336 = arith.addf %335, %334 : vector<16x32xf32>
    %337 = arith.divf %335, %336 : vector<16x32xf32>
    %338 = vector.extract_strided_slice %326 {offsets = [0, 32], sizes = [16, 32], strides = [1, 1]} : vector<16x128xf32> to vector<16x32xf32>
    %339 = vector.extract_strided_slice %329 {offsets = [0, 32], sizes = [16, 32], strides = [1, 1]} : vector<16x64xf32> to vector<16x32xf32>
    %340 = arith.addf %338, %339 : vector<16x32xf32>
    %341 = arith.negf %340 : vector<16x32xf32>
    %342 = math.exp %341 : vector<16x32xf32>
    %cst_225 = arith.constant 1.000000e+00 : f32
    %343 = vector.broadcast %cst_225 : f32 to vector<16x32xf32>
    %344 = arith.addf %343, %342 : vector<16x32xf32>
    %345 = arith.divf %343, %344 : vector<16x32xf32>
    %346 = vector.extract_strided_slice %326 {offsets = [0, 64], sizes = [16, 32], strides = [1, 1]} : vector<16x128xf32> to vector<16x32xf32>
    %347 = arith.mulf %345, %319 : vector<16x32xf32>
    %c0_226 = arith.constant 0 : index
    %c0_227 = arith.constant 0 : index
    %c0_228 = arith.constant 0 : index
    %348 = vector.load %arg6[%c0_226, %c0_227, %c0_228] : memref<2x32x32xf32, #tpu.memory_space<vmem>>, vector<1x32x32xf32>
    %349 = vector.shape_cast %348 : vector<1x32x32xf32> to vector<32x32xf32>
    %cst_229 = arith.constant dense<0.000000e+00> : vector<16x32xf32>
    %350 = tpu.matmul %347, %349, %cst_229 {dimension_numbers = #tpu.dot_dimension_numbers<[1], [0], [0], [1], [0, 0, 1, 1], [], []>} : vector<16x32xf32>, vector<32x32xf32>, vector<16x32xf32> -> vector<16x32xf32>
    %351 = arith.addf %346, %350 : vector<16x32xf32>
    %352 = arith.mulf %337, %315 : vector<16x32xf32>
    %cst_230 = arith.constant 1.000000e+00 : f32
    %353 = vector.broadcast %cst_230 : f32 to vector<16x32xf32>
    %354 = arith.subf %353, %337 : vector<16x32xf32>
    %355 = math.tanh %351 : vector<16x32xf32>
    %356 = arith.mulf %354, %355 : vector<16x32xf32>
    %357 = arith.addf %352, %356 : vector<16x32xf32>
    %c0_231 = arith.constant 0 : index
    %c0_232 = arith.constant 0 : index
    %c0_233 = arith.constant 0 : index
    %358 = vector.load %arg9[%c0_231, %c0_232, %c0_233] : memref<2x16x32xf32, #tpu.memory_space<vmem>>, vector<1x16x32xf32>
    %359 = vector.shape_cast %358 : vector<1x16x32xf32> to vector<16x32xf32>
    %360 = vector.shape_cast %357 : vector<16x32xf32> to vector<1x16x32xf32>
    tpu.vector_store %arg9[%c0_231, %c0_232, %c0_233], %360 {strides = array<i32>} : memref<2x16x32xf32, #tpu.memory_space<vmem>>, vector<1x16x32xf32>,
    %c1_234 = arith.constant 1 : index
    %c0_235 = arith.constant 0 : index
    %c0_236 = arith.constant 0 : index
    %361 = vector.load %arg9[%c1_234, %c0_235, %c0_236] : memref<2x16x32xf32, #tpu.memory_space<vmem>>, vector<1x16x32xf32>
    %362 = vector.shape_cast %361 : vector<1x16x32xf32> to vector<16x32xf32>
    %c1_237 = arith.constant 1 : index
    %c0_238 = arith.constant 0 : index
    %c0_239 = arith.constant 0 : index
    %363 = vector.load %arg2[%c1_237, %c0_238, %c0_239] : memref<2x16x16xf32, #tpu.memory_space<vmem>>, vector<1x16x16xf32>
    %364 = vector.shape_cast %363 : vector<1x16x16xf32> to vector<16x16xf32>
    %cst_240 = arith.constant dense<0.000000e+00> : vector<16x32xf32>
    %365 = tpu.matmul %364, %357, %cst_240 {dimension_numbers = #tpu.dot_dimension_numbers<[1], [0], [0], [1], [0, 0, 1, 1], [], []>} : vector<16x16xf32>, vector<16x32xf32>, vector<16x32xf32> -> vector<16x32xf32>
    %cst_241 = arith.constant dense<0.000000e+00> : vector<16x32xf32>
    %366 = tpu.matmul %364, %362, %cst_241 {dimension_numbers = #tpu.dot_dimension_numbers<[1], [0], [0], [1], [0, 0, 1, 1], [], []>} : vector<16x16xf32>, vector<16x32xf32>, vector<16x32xf32> -> vector<16x32xf32>
    %c1_242 = arith.constant 1 : index
    %c0_243 = arith.constant 0 : index
    %c0_244 = arith.constant 0 : index
    %367 = vector.load %arg3[%c1_242, %c0_243, %c0_244] : memref<2x32x128xf32, #tpu.memory_space<vmem>>, vector<1x32x128xf32>
    %368 = vector.shape_cast %367 : vector<1x32x128xf32> to vector<32x128xf32>
    %cst_245 = arith.constant dense<0.000000e+00> : vector<16x128xf32>
    %369 = tpu.matmul %365, %368, %cst_245 {dimension_numbers = #tpu.dot_dimension_numbers<[1], [0], [0], [1], [0, 0, 1, 1], [], []>} : vector<16x32xf32>, vector<32x128xf32>, vector<16x128xf32> -> vector<16x128xf32>
    %c1_246 = arith.constant 1 : index
    %c0_247 = arith.constant 0 : index
    %c0_248 = arith.constant 0 : index
    %370 = vector.load %arg4[%c1_246, %c0_247, %c0_248] : memref<2x1x128xf32, #tpu.memory_space<vmem>>, vector<1x1x128xf32>
    %371 = vector.shape_cast %370 : vector<1x1x128xf32> to vector<1x128xf32>
    %372 = vector.broadcast %371 : vector<1x128xf32> to vector<16x128xf32>
    %373 = arith.addf %369, %372 : vector<16x128xf32>
    %c1_249 = arith.constant 1 : index
    %c0_250 = arith.constant 0 : index
    %c0_251 = arith.constant 0 : index
    %374 = vector.load %arg5[%c1_249, %c0_250, %c0_251] : memref<2x32x64xf32, #tpu.memory_space<vmem>>, vector<1x32x64xf32>
    %375 = vector.shape_cast %374 : vector<1x32x64xf32> to vector<32x64xf32>
    %cst_252 = arith.constant dense<0.000000e+00> : vector<16x64xf32>
    %376 = tpu.matmul %366, %375, %cst_252 {dimension_numbers = #tpu.dot_dimension_numbers<[1], [0], [0], [1], [0, 0, 1, 1], [], []>} : vector<16x32xf32>, vector<32x64xf32>, vector<16x64xf32> -> vector<16x64xf32>
    %377 = vector.extract_strided_slice %373 {offsets = [0, 0], sizes = [16, 32], strides = [1, 1]} : vector<16x128xf32> to vector<16x32xf32>
    %378 = vector.extract_strided_slice %376 {offsets = [0, 0], sizes = [16, 32], strides = [1, 1]} : vector<16x64xf32> to vector<16x32xf32>
    %379 = arith.addf %377, %378 : vector<16x32xf32>
    %380 = arith.negf %379 : vector<16x32xf32>
    %381 = math.exp %380 : vector<16x32xf32>
    %cst_253 = arith.constant 1.000000e+00 : f32
    %382 = vector.broadcast %cst_253 : f32 to vector<16x32xf32>
    %383 = arith.addf %382, %381 : vector<16x32xf32>
    %384 = arith.divf %382, %383 : vector<16x32xf32>
    %385 = vector.extract_strided_slice %373 {offsets = [0, 32], sizes = [16, 32], strides = [1, 1]} : vector<16x128xf32> to vector<16x32xf32>
    %386 = vector.extract_strided_slice %376 {offsets = [0, 32], sizes = [16, 32], strides = [1, 1]} : vector<16x64xf32> to vector<16x32xf32>
    %387 = arith.addf %385, %386 : vector<16x32xf32>
    %388 = arith.negf %387 : vector<16x32xf32>
    %389 = math.exp %388 : vector<16x32xf32>
    %cst_254 = arith.constant 1.000000e+00 : f32
    %390 = vector.broadcast %cst_254 : f32 to vector<16x32xf32>
    %391 = arith.addf %390, %389 : vector<16x32xf32>
    %392 = arith.divf %390, %391 : vector<16x32xf32>
    %393 = vector.extract_strided_slice %373 {offsets = [0, 64], sizes = [16, 32], strides = [1, 1]} : vector<16x128xf32> to vector<16x32xf32>
    %394 = arith.mulf %392, %366 : vector<16x32xf32>
    %c1_255 = arith.constant 1 : index
    %c0_256 = arith.constant 0 : index
    %c0_257 = arith.constant 0 : index
    %395 = vector.load %arg6[%c1_255, %c0_256, %c0_257] : memref<2x32x32xf32, #tpu.memory_space<vmem>>, vector<1x32x32xf32>
    %396 = vector.shape_cast %395 : vector<1x32x32xf32> to vector<32x32xf32>
    %cst_258 = arith.constant dense<0.000000e+00> : vector<16x32xf32>
    %397 = tpu.matmul %394, %396, %cst_258 {dimension_numbers = #tpu.dot_dimension_numbers<[1], [0], [0], [1], [0, 0, 1, 1], [], []>} : vector<16x32xf32>, vector<32x32xf32>, vector<16x32xf32> -> vector<16x32xf32>
    %398 = arith.addf %393, %397 : vector<16x32xf32>
    %399 = arith.mulf %384, %362 : vector<16x32xf32>
    %cst_259 = arith.constant 1.000000e+00 : f32
    %400 = vector.broadcast %cst_259 : f32 to vector<16x32xf32>
    %401 = arith.subf %400, %384 : vector<16x32xf32>
    %402 = math.tanh %398 : vector<16x32xf32>
    %403 = arith.mulf %401, %402 : vector<16x32xf32>
    %404 = arith.addf %399, %403 : vector<16x32xf32>
    %c1_260 = arith.constant 1 : index
    %c0_261 = arith.constant 0 : index
    %c0_262 = arith.constant 0 : index
    %405 = vector.load %arg9[%c1_260, %c0_261, %c0_262] : memref<2x16x32xf32, #tpu.memory_space<vmem>>, vector<1x16x32xf32>
    %406 = vector.shape_cast %405 : vector<1x16x32xf32> to vector<16x32xf32>
    %407 = vector.shape_cast %404 : vector<16x32xf32> to vector<1x16x32xf32>
    tpu.vector_store %arg9[%c1_260, %c0_261, %c0_262], %407 {strides = array<i32>} : memref<2x16x32xf32, #tpu.memory_space<vmem>>, vector<1x16x32xf32>,
    %c0_263 = arith.constant 0 : index
    %c0_264 = arith.constant 0 : index
    %408 = vector.load %arg7[%c0_263, %c0_264] : memref<32x128xf32, #tpu.memory_space<vmem>>, vector<32x128xf32>
    %cst_265 = arith.constant dense<0.000000e+00> : vector<16x128xf32>
    %409 = tpu.matmul %404, %408, %cst_265 {dimension_numbers = #tpu.dot_dimension_numbers<[1], [0], [0], [1], [0, 0, 1, 1], [], []>} : vector<16x32xf32>, vector<32x128xf32>, vector<16x128xf32> -> vector<16x128xf32>
    %c0_266 = arith.constant 0 : index
    %410 = arith.index_cast %c3_i32 : i32 to index
    %c0_267 = arith.constant 0 : index
    %c0_268 = arith.constant 0 : index
    %411 = vector.load %arg8[%c0_266, %410, %c0_267, %c0_268] : memref<1x7x16x128xf32, #tpu.memory_space<vmem>>, vector<1x1x16x128xf32>
    %412 = vector.shape_cast %411 : vector<1x1x16x128xf32> to vector<16x128xf32>
    %413 = vector.shape_cast %409 : vector<16x128xf32> to vector<1x1x16x128xf32>
    tpu.vector_store %arg8[%c0_266, %410, %c0_267, %c0_268], %413 {strides = array<i32>} : memref<1x7x16x128xf32, #tpu.memory_space<vmem>>, vector<1x1x16x128xf32>,
    %c4_i32 = arith.constant 4 : i32
    %c0_269 = arith.constant 0 : index
    %414 = arith.index_cast %c4_i32 : i32 to index
    %c0_270 = arith.constant 0 : index
    %c0_271 = arith.constant 0 : index
    %415 = vector.load %arg1[%c0_269, %414, %c0_270, %c0_271] : memref<1x7x16x32xf32, #tpu.memory_space<vmem>>, vector<1x1x16x32xf32>
    %416 = vector.shape_cast %415 : vector<1x1x16x32xf32> to vector<16x32xf32>
    %c0_272 = arith.constant 0 : index
    %c0_273 = arith.constant 0 : index
    %c0_274 = arith.constant 0 : index
    %417 = vector.load %arg9[%c0_272, %c0_273, %c0_274] : memref<2x16x32xf32, #tpu.memory_space<vmem>>, vector<1x16x32xf32>
    %418 = vector.shape_cast %417 : vector<1x16x32xf32> to vector<16x32xf32>
    %c0_275 = arith.constant 0 : index
    %c0_276 = arith.constant 0 : index
    %c0_277 = arith.constant 0 : index
    %419 = vector.load %arg2[%c0_275, %c0_276, %c0_277] : memref<2x16x16xf32, #tpu.memory_space<vmem>>, vector<1x16x16xf32>
    %420 = vector.shape_cast %419 : vector<1x16x16xf32> to vector<16x16xf32>
    %cst_278 = arith.constant dense<0.000000e+00> : vector<16x32xf32>
    %421 = tpu.matmul %420, %416, %cst_278 {dimension_numbers = #tpu.dot_dimension_numbers<[1], [0], [0], [1], [0, 0, 1, 1], [], []>} : vector<16x16xf32>, vector<16x32xf32>, vector<16x32xf32> -> vector<16x32xf32>
    %cst_279 = arith.constant dense<0.000000e+00> : vector<16x32xf32>
    %422 = tpu.matmul %420, %418, %cst_279 {dimension_numbers = #tpu.dot_dimension_numbers<[1], [0], [0], [1], [0, 0, 1, 1], [], []>} : vector<16x16xf32>, vector<16x32xf32>, vector<16x32xf32> -> vector<16x32xf32>
    %c0_280 = arith.constant 0 : index
    %c0_281 = arith.constant 0 : index
    %c0_282 = arith.constant 0 : index
    %423 = vector.load %arg3[%c0_280, %c0_281, %c0_282] : memref<2x32x128xf32, #tpu.memory_space<vmem>>, vector<1x32x128xf32>
    %424 = vector.shape_cast %423 : vector<1x32x128xf32> to vector<32x128xf32>
    %cst_283 = arith.constant dense<0.000000e+00> : vector<16x128xf32>
    %425 = tpu.matmul %421, %424, %cst_283 {dimension_numbers = #tpu.dot_dimension_numbers<[1], [0], [0], [1], [0, 0, 1, 1], [], []>} : vector<16x32xf32>, vector<32x128xf32>, vector<16x128xf32> -> vector<16x128xf32>
    %c0_284 = arith.constant 0 : index
    %c0_285 = arith.constant 0 : index
    %c0_286 = arith.constant 0 : index
    %426 = vector.load %arg4[%c0_284, %c0_285, %c0_286] : memref<2x1x128xf32, #tpu.memory_space<vmem>>, vector<1x1x128xf32>
    %427 = vector.shape_cast %426 : vector<1x1x128xf32> to vector<1x128xf32>
    %428 = vector.broadcast %427 : vector<1x128xf32> to vector<16x128xf32>
    %429 = arith.addf %425, %428 : vector<16x128xf32>
    %c0_287 = arith.constant 0 : index
    %c0_288 = arith.constant 0 : index
    %c0_289 = arith.constant 0 : index
    %430 = vector.load %arg5[%c0_287, %c0_288, %c0_289] : memref<2x32x64xf32, #tpu.memory_space<vmem>>, vector<1x32x64xf32>
    %431 = vector.shape_cast %430 : vector<1x32x64xf32> to vector<32x64xf32>
    %cst_290 = arith.constant dense<0.000000e+00> : vector<16x64xf32>
    %432 = tpu.matmul %422, %431, %cst_290 {dimension_numbers = #tpu.dot_dimension_numbers<[1], [0], [0], [1], [0, 0, 1, 1], [], []>} : vector<16x32xf32>, vector<32x64xf32>, vector<16x64xf32> -> vector<16x64xf32>
    %433 = vector.extract_strided_slice %429 {offsets = [0, 0], sizes = [16, 32], strides = [1, 1]} : vector<16x128xf32> to vector<16x32xf32>
    %434 = vector.extract_strided_slice %432 {offsets = [0, 0], sizes = [16, 32], strides = [1, 1]} : vector<16x64xf32> to vector<16x32xf32>
    %435 = arith.addf %433, %434 : vector<16x32xf32>
    %436 = arith.negf %435 : vector<16x32xf32>
    %437 = math.exp %436 : vector<16x32xf32>
    %cst_291 = arith.constant 1.000000e+00 : f32
    %438 = vector.broadcast %cst_291 : f32 to vector<16x32xf32>
    %439 = arith.addf %438, %437 : vector<16x32xf32>
    %440 = arith.divf %438, %439 : vector<16x32xf32>
    %441 = vector.extract_strided_slice %429 {offsets = [0, 32], sizes = [16, 32], strides = [1, 1]} : vector<16x128xf32> to vector<16x32xf32>
    %442 = vector.extract_strided_slice %432 {offsets = [0, 32], sizes = [16, 32], strides = [1, 1]} : vector<16x64xf32> to vector<16x32xf32>
    %443 = arith.addf %441, %442 : vector<16x32xf32>
    %444 = arith.negf %443 : vector<16x32xf32>
    %445 = math.exp %444 : vector<16x32xf32>
    %cst_292 = arith.constant 1.000000e+00 : f32
    %446 = vector.broadcast %cst_292 : f32 to vector<16x32xf32>
    %447 = arith.addf %446, %445 : vector<16x32xf32>
    %448 = arith.divf %446, %447 : vector<16x32xf32>
    %449 = vector.extract_strided_slice %429 {offsets = [0, 64], sizes = [16, 32], strides = [1, 1]} : vector<16x128xf32> to vector<16x32xf32>
    %450 = arith.mulf %448, %422 : vector<16x32xf32>
    %c0_293 = arith.constant 0 : index
    %c0_294 = arith.constant 0 : index
    %c0_295 = arith.constant 0 : index
    %451 = vector.load %arg6[%c0_293, %c0_294, %c0_295] : memref<2x32x32xf32, #tpu.memory_space<vmem>>, vector<1x32x32xf32>
    %452 = vector.shape_cast %451 : vector<1x32x32xf32> to vector<32x32xf32>
    %cst_296 = arith.constant dense<0.000000e+00> : vector<16x32xf32>
    %453 = tpu.matmul %450, %452, %cst_296 {dimension_numbers = #tpu.dot_dimension_numbers<[1], [0], [0], [1], [0, 0, 1, 1], [], []>} : vector<16x32xf32>, vector<32x32xf32>, vector<16x32xf32> -> vector<16x32xf32>
    %454 = arith.addf %449, %453 : vector<16x32xf32>
    %455 = arith.mulf %440, %418 : vector<16x32xf32>
    %cst_297 = arith.constant 1.000000e+00 : f32
    %456 = vector.broadcast %cst_297 : f32 to vector<16x32xf32>
    %457 = arith.subf %456, %440 : vector<16x32xf32>
    %458 = math.tanh %454 : vector<16x32xf32>
    %459 = arith.mulf %457, %458 : vector<16x32xf32>
    %460 = arith.addf %455, %459 : vector<16x32xf32>
    %c0_298 = arith.constant 0 : index
    %c0_299 = arith.constant 0 : index
    %c0_300 = arith.constant 0 : index
    %461 = vector.load %arg9[%c0_298, %c0_299, %c0_300] : memref<2x16x32xf32, #tpu.memory_space<vmem>>, vector<1x16x32xf32>
    %462 = vector.shape_cast %461 : vector<1x16x32xf32> to vector<16x32xf32>
    %463 = vector.shape_cast %460 : vector<16x32xf32> to vector<1x16x32xf32>
    tpu.vector_store %arg9[%c0_298, %c0_299, %c0_300], %463 {strides = array<i32>} : memref<2x16x32xf32, #tpu.memory_space<vmem>>, vector<1x16x32xf32>,
    %c1_301 = arith.constant 1 : index
    %c0_302 = arith.constant 0 : index
    %c0_303 = arith.constant 0 : index
    %464 = vector.load %arg9[%c1_301, %c0_302, %c0_303] : memref<2x16x32xf32, #tpu.memory_space<vmem>>, vector<1x16x32xf32>
    %465 = vector.shape_cast %464 : vector<1x16x32xf32> to vector<16x32xf32>
    %c1_304 = arith.constant 1 : index
    %c0_305 = arith.constant 0 : index
    %c0_306 = arith.constant 0 : index
    %466 = vector.load %arg2[%c1_304, %c0_305, %c0_306] : memref<2x16x16xf32, #tpu.memory_space<vmem>>, vector<1x16x16xf32>
    %467 = vector.shape_cast %466 : vector<1x16x16xf32> to vector<16x16xf32>
    %cst_307 = arith.constant dense<0.000000e+00> : vector<16x32xf32>
    %468 = tpu.matmul %467, %460, %cst_307 {dimension_numbers = #tpu.dot_dimension_numbers<[1], [0], [0], [1], [0, 0, 1, 1], [], []>} : vector<16x16xf32>, vector<16x32xf32>, vector<16x32xf32> -> vector<16x32xf32>
    %cst_308 = arith.constant dense<0.000000e+00> : vector<16x32xf32>
    %469 = tpu.matmul %467, %465, %cst_308 {dimension_numbers = #tpu.dot_dimension_numbers<[1], [0], [0], [1], [0, 0, 1, 1], [], []>} : vector<16x16xf32>, vector<16x32xf32>, vector<16x32xf32> -> vector<16x32xf32>
    %c1_309 = arith.constant 1 : index
    %c0_310 = arith.constant 0 : index
    %c0_311 = arith.constant 0 : index
    %470 = vector.load %arg3[%c1_309, %c0_310, %c0_311] : memref<2x32x128xf32, #tpu.memory_space<vmem>>, vector<1x32x128xf32>
    %471 = vector.shape_cast %470 : vector<1x32x128xf32> to vector<32x128xf32>
    %cst_312 = arith.constant dense<0.000000e+00> : vector<16x128xf32>
    %472 = tpu.matmul %468, %471, %cst_312 {dimension_numbers = #tpu.dot_dimension_numbers<[1], [0], [0], [1], [0, 0, 1, 1], [], []>} : vector<16x32xf32>, vector<32x128xf32>, vector<16x128xf32> -> vector<16x128xf32>
    %c1_313 = arith.constant 1 : index
    %c0_314 = arith.constant 0 : index
    %c0_315 = arith.constant 0 : index
    %473 = vector.load %arg4[%c1_313, %c0_314, %c0_315] : memref<2x1x128xf32, #tpu.memory_space<vmem>>, vector<1x1x128xf32>
    %474 = vector.shape_cast %473 : vector<1x1x128xf32> to vector<1x128xf32>
    %475 = vector.broadcast %474 : vector<1x128xf32> to vector<16x128xf32>
    %476 = arith.addf %472, %475 : vector<16x128xf32>
    %c1_316 = arith.constant 1 : index
    %c0_317 = arith.constant 0 : index
    %c0_318 = arith.constant 0 : index
    %477 = vector.load %arg5[%c1_316, %c0_317, %c0_318] : memref<2x32x64xf32, #tpu.memory_space<vmem>>, vector<1x32x64xf32>
    %478 = vector.shape_cast %477 : vector<1x32x64xf32> to vector<32x64xf32>
    %cst_319 = arith.constant dense<0.000000e+00> : vector<16x64xf32>
    %479 = tpu.matmul %469, %478, %cst_319 {dimension_numbers = #tpu.dot_dimension_numbers<[1], [0], [0], [1], [0, 0, 1, 1], [], []>} : vector<16x32xf32>, vector<32x64xf32>, vector<16x64xf32> -> vector<16x64xf32>
    %480 = vector.extract_strided_slice %476 {offsets = [0, 0], sizes = [16, 32], strides = [1, 1]} : vector<16x128xf32> to vector<16x32xf32>
    %481 = vector.extract_strided_slice %479 {offsets = [0, 0], sizes = [16, 32], strides = [1, 1]} : vector<16x64xf32> to vector<16x32xf32>
    %482 = arith.addf %480, %481 : vector<16x32xf32>
    %483 = arith.negf %482 : vector<16x32xf32>
    %484 = math.exp %483 : vector<16x32xf32>
    %cst_320 = arith.constant 1.000000e+00 : f32
    %485 = vector.broadcast %cst_320 : f32 to vector<16x32xf32>
    %486 = arith.addf %485, %484 : vector<16x32xf32>
    %487 = arith.divf %485, %486 : vector<16x32xf32>
    %488 = vector.extract_strided_slice %476 {offsets = [0, 32], sizes = [16, 32], strides = [1, 1]} : vector<16x128xf32> to vector<16x32xf32>
    %489 = vector.extract_strided_slice %479 {offsets = [0, 32], sizes = [16, 32], strides = [1, 1]} : vector<16x64xf32> to vector<16x32xf32>
    %490 = arith.addf %488, %489 : vector<16x32xf32>
    %491 = arith.negf %490 : vector<16x32xf32>
    %492 = math.exp %491 : vector<16x32xf32>
    %cst_321 = arith.constant 1.000000e+00 : f32
    %493 = vector.broadcast %cst_321 : f32 to vector<16x32xf32>
    %494 = arith.addf %493, %492 : vector<16x32xf32>
    %495 = arith.divf %493, %494 : vector<16x32xf32>
    %496 = vector.extract_strided_slice %476 {offsets = [0, 64], sizes = [16, 32], strides = [1, 1]} : vector<16x128xf32> to vector<16x32xf32>
    %497 = arith.mulf %495, %469 : vector<16x32xf32>
    %c1_322 = arith.constant 1 : index
    %c0_323 = arith.constant 0 : index
    %c0_324 = arith.constant 0 : index
    %498 = vector.load %arg6[%c1_322, %c0_323, %c0_324] : memref<2x32x32xf32, #tpu.memory_space<vmem>>, vector<1x32x32xf32>
    %499 = vector.shape_cast %498 : vector<1x32x32xf32> to vector<32x32xf32>
    %cst_325 = arith.constant dense<0.000000e+00> : vector<16x32xf32>
    %500 = tpu.matmul %497, %499, %cst_325 {dimension_numbers = #tpu.dot_dimension_numbers<[1], [0], [0], [1], [0, 0, 1, 1], [], []>} : vector<16x32xf32>, vector<32x32xf32>, vector<16x32xf32> -> vector<16x32xf32>
    %501 = arith.addf %496, %500 : vector<16x32xf32>
    %502 = arith.mulf %487, %465 : vector<16x32xf32>
    %cst_326 = arith.constant 1.000000e+00 : f32
    %503 = vector.broadcast %cst_326 : f32 to vector<16x32xf32>
    %504 = arith.subf %503, %487 : vector<16x32xf32>
    %505 = math.tanh %501 : vector<16x32xf32>
    %506 = arith.mulf %504, %505 : vector<16x32xf32>
    %507 = arith.addf %502, %506 : vector<16x32xf32>
    %c1_327 = arith.constant 1 : index
    %c0_328 = arith.constant 0 : index
    %c0_329 = arith.constant 0 : index
    %508 = vector.load %arg9[%c1_327, %c0_328, %c0_329] : memref<2x16x32xf32, #tpu.memory_space<vmem>>, vector<1x16x32xf32>
    %509 = vector.shape_cast %508 : vector<1x16x32xf32> to vector<16x32xf32>
    %510 = vector.shape_cast %507 : vector<16x32xf32> to vector<1x16x32xf32>
    tpu.vector_store %arg9[%c1_327, %c0_328, %c0_329], %510 {strides = array<i32>} : memref<2x16x32xf32, #tpu.memory_space<vmem>>, vector<1x16x32xf32>,
    %c0_330 = arith.constant 0 : index
    %c0_331 = arith.constant 0 : index
    %511 = vector.load %arg7[%c0_330, %c0_331] : memref<32x128xf32, #tpu.memory_space<vmem>>, vector<32x128xf32>
    %cst_332 = arith.constant dense<0.000000e+00> : vector<16x128xf32>
    %512 = tpu.matmul %507, %511, %cst_332 {dimension_numbers = #tpu.dot_dimension_numbers<[1], [0], [0], [1], [0, 0, 1, 1], [], []>} : vector<16x32xf32>, vector<32x128xf32>, vector<16x128xf32> -> vector<16x128xf32>
    %c0_333 = arith.constant 0 : index
    %513 = arith.index_cast %c4_i32 : i32 to index
    %c0_334 = arith.constant 0 : index
    %c0_335 = arith.constant 0 : index
    %514 = vector.load %arg8[%c0_333, %513, %c0_334, %c0_335] : memref<1x7x16x128xf32, #tpu.memory_space<vmem>>, vector<1x1x16x128xf32>
    %515 = vector.shape_cast %514 : vector<1x1x16x128xf32> to vector<16x128xf32>
    %516 = vector.shape_cast %512 : vector<16x128xf32> to vector<1x1x16x128xf32>
    tpu.vector_store %arg8[%c0_333, %513, %c0_334, %c0_335], %516 {strides = array<i32>} : memref<1x7x16x128xf32, #tpu.memory_space<vmem>>, vector<1x1x16x128xf32>,
    %c5_i32 = arith.constant 5 : i32
    %c0_336 = arith.constant 0 : index
    %517 = arith.index_cast %c5_i32 : i32 to index
    %c0_337 = arith.constant 0 : index
    %c0_338 = arith.constant 0 : index
    %518 = vector.load %arg1[%c0_336, %517, %c0_337, %c0_338] : memref<1x7x16x32xf32, #tpu.memory_space<vmem>>, vector<1x1x16x32xf32>
    %519 = vector.shape_cast %518 : vector<1x1x16x32xf32> to vector<16x32xf32>
    %c0_339 = arith.constant 0 : index
    %c0_340 = arith.constant 0 : index
    %c0_341 = arith.constant 0 : index
    %520 = vector.load %arg9[%c0_339, %c0_340, %c0_341] : memref<2x16x32xf32, #tpu.memory_space<vmem>>, vector<1x16x32xf32>
    %521 = vector.shape_cast %520 : vector<1x16x32xf32> to vector<16x32xf32>
    %c0_342 = arith.constant 0 : index
    %c0_343 = arith.constant 0 : index
    %c0_344 = arith.constant 0 : index
    %522 = vector.load %arg2[%c0_342, %c0_343, %c0_344] : memref<2x16x16xf32, #tpu.memory_space<vmem>>, vector<1x16x16xf32>
    %523 = vector.shape_cast %522 : vector<1x16x16xf32> to vector<16x16xf32>
    %cst_345 = arith.constant dense<0.000000e+00> : vector<16x32xf32>
    %524 = tpu.matmul %523, %519, %cst_345 {dimension_numbers = #tpu.dot_dimension_numbers<[1], [0], [0], [1], [0, 0, 1, 1], [], []>} : vector<16x16xf32>, vector<16x32xf32>, vector<16x32xf32> -> vector<16x32xf32>
    %cst_346 = arith.constant dense<0.000000e+00> : vector<16x32xf32>
    %525 = tpu.matmul %523, %521, %cst_346 {dimension_numbers = #tpu.dot_dimension_numbers<[1], [0], [0], [1], [0, 0, 1, 1], [], []>} : vector<16x16xf32>, vector<16x32xf32>, vector<16x32xf32> -> vector<16x32xf32>
    %c0_347 = arith.constant 0 : index
    %c0_348 = arith.constant 0 : index
    %c0_349 = arith.constant 0 : index
    %526 = vector.load %arg3[%c0_347, %c0_348, %c0_349] : memref<2x32x128xf32, #tpu.memory_space<vmem>>, vector<1x32x128xf32>
    %527 = vector.shape_cast %526 : vector<1x32x128xf32> to vector<32x128xf32>
    %cst_350 = arith.constant dense<0.000000e+00> : vector<16x128xf32>
    %528 = tpu.matmul %524, %527, %cst_350 {dimension_numbers = #tpu.dot_dimension_numbers<[1], [0], [0], [1], [0, 0, 1, 1], [], []>} : vector<16x32xf32>, vector<32x128xf32>, vector<16x128xf32> -> vector<16x128xf32>
    %c0_351 = arith.constant 0 : index
    %c0_352 = arith.constant 0 : index
    %c0_353 = arith.constant 0 : index
    %529 = vector.load %arg4[%c0_351, %c0_352, %c0_353] : memref<2x1x128xf32, #tpu.memory_space<vmem>>, vector<1x1x128xf32>
    %530 = vector.shape_cast %529 : vector<1x1x128xf32> to vector<1x128xf32>
    %531 = vector.broadcast %530 : vector<1x128xf32> to vector<16x128xf32>
    %532 = arith.addf %528, %531 : vector<16x128xf32>
    %c0_354 = arith.constant 0 : index
    %c0_355 = arith.constant 0 : index
    %c0_356 = arith.constant 0 : index
    %533 = vector.load %arg5[%c0_354, %c0_355, %c0_356] : memref<2x32x64xf32, #tpu.memory_space<vmem>>, vector<1x32x64xf32>
    %534 = vector.shape_cast %533 : vector<1x32x64xf32> to vector<32x64xf32>
    %cst_357 = arith.constant dense<0.000000e+00> : vector<16x64xf32>
    %535 = tpu.matmul %525, %534, %cst_357 {dimension_numbers = #tpu.dot_dimension_numbers<[1], [0], [0], [1], [0, 0, 1, 1], [], []>} : vector<16x32xf32>, vector<32x64xf32>, vector<16x64xf32> -> vector<16x64xf32>
    %536 = vector.extract_strided_slice %532 {offsets = [0, 0], sizes = [16, 32], strides = [1, 1]} : vector<16x128xf32> to vector<16x32xf32>
    %537 = vector.extract_strided_slice %535 {offsets = [0, 0], sizes = [16, 32], strides = [1, 1]} : vector<16x64xf32> to vector<16x32xf32>
    %538 = arith.addf %536, %537 : vector<16x32xf32>
    %539 = arith.negf %538 : vector<16x32xf32>
    %540 = math.exp %539 : vector<16x32xf32>
    %cst_358 = arith.constant 1.000000e+00 : f32
    %541 = vector.broadcast %cst_358 : f32 to vector<16x32xf32>
    %542 = arith.addf %541, %540 : vector<16x32xf32>
    %543 = arith.divf %541, %542 : vector<16x32xf32>
    %544 = vector.extract_strided_slice %532 {offsets = [0, 32], sizes = [16, 32], strides = [1, 1]} : vector<16x128xf32> to vector<16x32xf32>
    %545 = vector.extract_strided_slice %535 {offsets = [0, 32], sizes = [16, 32], strides = [1, 1]} : vector<16x64xf32> to vector<16x32xf32>
    %546 = arith.addf %544, %545 : vector<16x32xf32>
    %547 = arith.negf %546 : vector<16x32xf32>
    %548 = math.exp %547 : vector<16x32xf32>
    %cst_359 = arith.constant 1.000000e+00 : f32
    %549 = vector.broadcast %cst_359 : f32 to vector<16x32xf32>
    %550 = arith.addf %549, %548 : vector<16x32xf32>
    %551 = arith.divf %549, %550 : vector<16x32xf32>
    %552 = vector.extract_strided_slice %532 {offsets = [0, 64], sizes = [16, 32], strides = [1, 1]} : vector<16x128xf32> to vector<16x32xf32>
    %553 = arith.mulf %551, %525 : vector<16x32xf32>
    %c0_360 = arith.constant 0 : index
    %c0_361 = arith.constant 0 : index
    %c0_362 = arith.constant 0 : index
    %554 = vector.load %arg6[%c0_360, %c0_361, %c0_362] : memref<2x32x32xf32, #tpu.memory_space<vmem>>, vector<1x32x32xf32>
    %555 = vector.shape_cast %554 : vector<1x32x32xf32> to vector<32x32xf32>
    %cst_363 = arith.constant dense<0.000000e+00> : vector<16x32xf32>
    %556 = tpu.matmul %553, %555, %cst_363 {dimension_numbers = #tpu.dot_dimension_numbers<[1], [0], [0], [1], [0, 0, 1, 1], [], []>} : vector<16x32xf32>, vector<32x32xf32>, vector<16x32xf32> -> vector<16x32xf32>
    %557 = arith.addf %552, %556 : vector<16x32xf32>
    %558 = arith.mulf %543, %521 : vector<16x32xf32>
    %cst_364 = arith.constant 1.000000e+00 : f32
    %559 = vector.broadcast %cst_364 : f32 to vector<16x32xf32>
    %560 = arith.subf %559, %543 : vector<16x32xf32>
    %561 = math.tanh %557 : vector<16x32xf32>
    %562 = arith.mulf %560, %561 : vector<16x32xf32>
    %563 = arith.addf %558, %562 : vector<16x32xf32>
    %c0_365 = arith.constant 0 : index
    %c0_366 = arith.constant 0 : index
    %c0_367 = arith.constant 0 : index
    %564 = vector.load %arg9[%c0_365, %c0_366, %c0_367] : memref<2x16x32xf32, #tpu.memory_space<vmem>>, vector<1x16x32xf32>
    %565 = vector.shape_cast %564 : vector<1x16x32xf32> to vector<16x32xf32>
    %566 = vector.shape_cast %563 : vector<16x32xf32> to vector<1x16x32xf32>
    tpu.vector_store %arg9[%c0_365, %c0_366, %c0_367], %566 {strides = array<i32>} : memref<2x16x32xf32, #tpu.memory_space<vmem>>, vector<1x16x32xf32>,
    %c1_368 = arith.constant 1 : index
    %c0_369 = arith.constant 0 : index
    %c0_370 = arith.constant 0 : index
    %567 = vector.load %arg9[%c1_368, %c0_369, %c0_370] : memref<2x16x32xf32, #tpu.memory_space<vmem>>, vector<1x16x32xf32>
    %568 = vector.shape_cast %567 : vector<1x16x32xf32> to vector<16x32xf32>
    %c1_371 = arith.constant 1 : index
    %c0_372 = arith.constant 0 : index
    %c0_373 = arith.constant 0 : index
    %569 = vector.load %arg2[%c1_371, %c0_372, %c0_373] : memref<2x16x16xf32, #tpu.memory_space<vmem>>, vector<1x16x16xf32>
    %570 = vector.shape_cast %569 : vector<1x16x16xf32> to vector<16x16xf32>
    %cst_374 = arith.constant dense<0.000000e+00> : vector<16x32xf32>
    %571 = tpu.matmul %570, %563, %cst_374 {dimension_numbers = #tpu.dot_dimension_numbers<[1], [0], [0], [1], [0, 0, 1, 1], [], []>} : vector<16x16xf32>, vector<16x32xf32>, vector<16x32xf32> -> vector<16x32xf32>
    %cst_375 = arith.constant dense<0.000000e+00> : vector<16x32xf32>
    %572 = tpu.matmul %570, %568, %cst_375 {dimension_numbers = #tpu.dot_dimension_numbers<[1], [0], [0], [1], [0, 0, 1, 1], [], []>} : vector<16x16xf32>, vector<16x32xf32>, vector<16x32xf32> -> vector<16x32xf32>
    %c1_376 = arith.constant 1 : index
    %c0_377 = arith.constant 0 : index
    %c0_378 = arith.constant 0 : index
    %573 = vector.load %arg3[%c1_376, %c0_377, %c0_378] : memref<2x32x128xf32, #tpu.memory_space<vmem>>, vector<1x32x128xf32>
    %574 = vector.shape_cast %573 : vector<1x32x128xf32> to vector<32x128xf32>
    %cst_379 = arith.constant dense<0.000000e+00> : vector<16x128xf32>
    %575 = tpu.matmul %571, %574, %cst_379 {dimension_numbers = #tpu.dot_dimension_numbers<[1], [0], [0], [1], [0, 0, 1, 1], [], []>} : vector<16x32xf32>, vector<32x128xf32>, vector<16x128xf32> -> vector<16x128xf32>
    %c1_380 = arith.constant 1 : index
    %c0_381 = arith.constant 0 : index
    %c0_382 = arith.constant 0 : index
    %576 = vector.load %arg4[%c1_380, %c0_381, %c0_382] : memref<2x1x128xf32, #tpu.memory_space<vmem>>, vector<1x1x128xf32>
    %577 = vector.shape_cast %576 : vector<1x1x128xf32> to vector<1x128xf32>
    %578 = vector.broadcast %577 : vector<1x128xf32> to vector<16x128xf32>
    %579 = arith.addf %575, %578 : vector<16x128xf32>
    %c1_383 = arith.constant 1 : index
    %c0_384 = arith.constant 0 : index
    %c0_385 = arith.constant 0 : index
    %580 = vector.load %arg5[%c1_383, %c0_384, %c0_385] : memref<2x32x64xf32, #tpu.memory_space<vmem>>, vector<1x32x64xf32>
    %581 = vector.shape_cast %580 : vector<1x32x64xf32> to vector<32x64xf32>
    %cst_386 = arith.constant dense<0.000000e+00> : vector<16x64xf32>
    %582 = tpu.matmul %572, %581, %cst_386 {dimension_numbers = #tpu.dot_dimension_numbers<[1], [0], [0], [1], [0, 0, 1, 1], [], []>} : vector<16x32xf32>, vector<32x64xf32>, vector<16x64xf32> -> vector<16x64xf32>
    %583 = vector.extract_strided_slice %579 {offsets = [0, 0], sizes = [16, 32], strides = [1, 1]} : vector<16x128xf32> to vector<16x32xf32>
    %584 = vector.extract_strided_slice %582 {offsets = [0, 0], sizes = [16, 32], strides = [1, 1]} : vector<16x64xf32> to vector<16x32xf32>
    %585 = arith.addf %583, %584 : vector<16x32xf32>
    %586 = arith.negf %585 : vector<16x32xf32>
    %587 = math.exp %586 : vector<16x32xf32>
    %cst_387 = arith.constant 1.000000e+00 : f32
    %588 = vector.broadcast %cst_387 : f32 to vector<16x32xf32>
    %589 = arith.addf %588, %587 : vector<16x32xf32>
    %590 = arith.divf %588, %589 : vector<16x32xf32>
    %591 = vector.extract_strided_slice %579 {offsets = [0, 32], sizes = [16, 32], strides = [1, 1]} : vector<16x128xf32> to vector<16x32xf32>
    %592 = vector.extract_strided_slice %582 {offsets = [0, 32], sizes = [16, 32], strides = [1, 1]} : vector<16x64xf32> to vector<16x32xf32>
    %593 = arith.addf %591, %592 : vector<16x32xf32>
    %594 = arith.negf %593 : vector<16x32xf32>
    %595 = math.exp %594 : vector<16x32xf32>
    %cst_388 = arith.constant 1.000000e+00 : f32
    %596 = vector.broadcast %cst_388 : f32 to vector<16x32xf32>
    %597 = arith.addf %596, %595 : vector<16x32xf32>
    %598 = arith.divf %596, %597 : vector<16x32xf32>
    %599 = vector.extract_strided_slice %579 {offsets = [0, 64], sizes = [16, 32], strides = [1, 1]} : vector<16x128xf32> to vector<16x32xf32>
    %600 = arith.mulf %598, %572 : vector<16x32xf32>
    %c1_389 = arith.constant 1 : index
    %c0_390 = arith.constant 0 : index
    %c0_391 = arith.constant 0 : index
    %601 = vector.load %arg6[%c1_389, %c0_390, %c0_391] : memref<2x32x32xf32, #tpu.memory_space<vmem>>, vector<1x32x32xf32>
    %602 = vector.shape_cast %601 : vector<1x32x32xf32> to vector<32x32xf32>
    %cst_392 = arith.constant dense<0.000000e+00> : vector<16x32xf32>
    %603 = tpu.matmul %600, %602, %cst_392 {dimension_numbers = #tpu.dot_dimension_numbers<[1], [0], [0], [1], [0, 0, 1, 1], [], []>} : vector<16x32xf32>, vector<32x32xf32>, vector<16x32xf32> -> vector<16x32xf32>
    %604 = arith.addf %599, %603 : vector<16x32xf32>
    %605 = arith.mulf %590, %568 : vector<16x32xf32>
    %cst_393 = arith.constant 1.000000e+00 : f32
    %606 = vector.broadcast %cst_393 : f32 to vector<16x32xf32>
    %607 = arith.subf %606, %590 : vector<16x32xf32>
    %608 = math.tanh %604 : vector<16x32xf32>
    %609 = arith.mulf %607, %608 : vector<16x32xf32>
    %610 = arith.addf %605, %609 : vector<16x32xf32>
    %c1_394 = arith.constant 1 : index
    %c0_395 = arith.constant 0 : index
    %c0_396 = arith.constant 0 : index
    %611 = vector.load %arg9[%c1_394, %c0_395, %c0_396] : memref<2x16x32xf32, #tpu.memory_space<vmem>>, vector<1x16x32xf32>
    %612 = vector.shape_cast %611 : vector<1x16x32xf32> to vector<16x32xf32>
    %613 = vector.shape_cast %610 : vector<16x32xf32> to vector<1x16x32xf32>
    tpu.vector_store %arg9[%c1_394, %c0_395, %c0_396], %613 {strides = array<i32>} : memref<2x16x32xf32, #tpu.memory_space<vmem>>, vector<1x16x32xf32>,
    %c0_397 = arith.constant 0 : index
    %c0_398 = arith.constant 0 : index
    %614 = vector.load %arg7[%c0_397, %c0_398] : memref<32x128xf32, #tpu.memory_space<vmem>>, vector<32x128xf32>
    %cst_399 = arith.constant dense<0.000000e+00> : vector<16x128xf32>
    %615 = tpu.matmul %610, %614, %cst_399 {dimension_numbers = #tpu.dot_dimension_numbers<[1], [0], [0], [1], [0, 0, 1, 1], [], []>} : vector<16x32xf32>, vector<32x128xf32>, vector<16x128xf32> -> vector<16x128xf32>
    %c0_400 = arith.constant 0 : index
    %616 = arith.index_cast %c5_i32 : i32 to index
    %c0_401 = arith.constant 0 : index
    %c0_402 = arith.constant 0 : index
    %617 = vector.load %arg8[%c0_400, %616, %c0_401, %c0_402] : memref<1x7x16x128xf32, #tpu.memory_space<vmem>>, vector<1x1x16x128xf32>
    %618 = vector.shape_cast %617 : vector<1x1x16x128xf32> to vector<16x128xf32>
    %619 = vector.shape_cast %615 : vector<16x128xf32> to vector<1x1x16x128xf32>
    tpu.vector_store %arg8[%c0_400, %616, %c0_401, %c0_402], %619 {strides = array<i32>} : memref<1x7x16x128xf32, #tpu.memory_space<vmem>>, vector<1x1x16x128xf32>,
    %c6_i32 = arith.constant 6 : i32
    %c0_403 = arith.constant 0 : index
    %620 = arith.index_cast %c6_i32 : i32 to index
    %c0_404 = arith.constant 0 : index
    %c0_405 = arith.constant 0 : index
    %621 = vector.load %arg1[%c0_403, %620, %c0_404, %c0_405] : memref<1x7x16x32xf32, #tpu.memory_space<vmem>>, vector<1x1x16x32xf32>
    %622 = vector.shape_cast %621 : vector<1x1x16x32xf32> to vector<16x32xf32>
    %c0_406 = arith.constant 0 : index
    %c0_407 = arith.constant 0 : index
    %c0_408 = arith.constant 0 : index
    %623 = vector.load %arg9[%c0_406, %c0_407, %c0_408] : memref<2x16x32xf32, #tpu.memory_space<vmem>>, vector<1x16x32xf32>
    %624 = vector.shape_cast %623 : vector<1x16x32xf32> to vector<16x32xf32>
    %c0_409 = arith.constant 0 : index
    %c0_410 = arith.constant 0 : index
    %c0_411 = arith.constant 0 : index
    %625 = vector.load %arg2[%c0_409, %c0_410, %c0_411] : memref<2x16x16xf32, #tpu.memory_space<vmem>>, vector<1x16x16xf32>
    %626 = vector.shape_cast %625 : vector<1x16x16xf32> to vector<16x16xf32>
    %cst_412 = arith.constant dense<0.000000e+00> : vector<16x32xf32>
    %627 = tpu.matmul %626, %622, %cst_412 {dimension_numbers = #tpu.dot_dimension_numbers<[1], [0], [0], [1], [0, 0, 1, 1], [], []>} : vector<16x16xf32>, vector<16x32xf32>, vector<16x32xf32> -> vector<16x32xf32>
    %cst_413 = arith.constant dense<0.000000e+00> : vector<16x32xf32>
    %628 = tpu.matmul %626, %624, %cst_413 {dimension_numbers = #tpu.dot_dimension_numbers<[1], [0], [0], [1], [0, 0, 1, 1], [], []>} : vector<16x16xf32>, vector<16x32xf32>, vector<16x32xf32> -> vector<16x32xf32>
    %c0_414 = arith.constant 0 : index
    %c0_415 = arith.constant 0 : index
    %c0_416 = arith.constant 0 : index
    %629 = vector.load %arg3[%c0_414, %c0_415, %c0_416] : memref<2x32x128xf32, #tpu.memory_space<vmem>>, vector<1x32x128xf32>
    %630 = vector.shape_cast %629 : vector<1x32x128xf32> to vector<32x128xf32>
    %cst_417 = arith.constant dense<0.000000e+00> : vector<16x128xf32>
    %631 = tpu.matmul %627, %630, %cst_417 {dimension_numbers = #tpu.dot_dimension_numbers<[1], [0], [0], [1], [0, 0, 1, 1], [], []>} : vector<16x32xf32>, vector<32x128xf32>, vector<16x128xf32> -> vector<16x128xf32>
    %c0_418 = arith.constant 0 : index
    %c0_419 = arith.constant 0 : index
    %c0_420 = arith.constant 0 : index
    %632 = vector.load %arg4[%c0_418, %c0_419, %c0_420] : memref<2x1x128xf32, #tpu.memory_space<vmem>>, vector<1x1x128xf32>
    %633 = vector.shape_cast %632 : vector<1x1x128xf32> to vector<1x128xf32>
    %634 = vector.broadcast %633 : vector<1x128xf32> to vector<16x128xf32>
    %635 = arith.addf %631, %634 : vector<16x128xf32>
    %c0_421 = arith.constant 0 : index
    %c0_422 = arith.constant 0 : index
    %c0_423 = arith.constant 0 : index
    %636 = vector.load %arg5[%c0_421, %c0_422, %c0_423] : memref<2x32x64xf32, #tpu.memory_space<vmem>>, vector<1x32x64xf32>
    %637 = vector.shape_cast %636 : vector<1x32x64xf32> to vector<32x64xf32>
    %cst_424 = arith.constant dense<0.000000e+00> : vector<16x64xf32>
    %638 = tpu.matmul %628, %637, %cst_424 {dimension_numbers = #tpu.dot_dimension_numbers<[1], [0], [0], [1], [0, 0, 1, 1], [], []>} : vector<16x32xf32>, vector<32x64xf32>, vector<16x64xf32> -> vector<16x64xf32>
    %639 = vector.extract_strided_slice %635 {offsets = [0, 0], sizes = [16, 32], strides = [1, 1]} : vector<16x128xf32> to vector<16x32xf32>
    %640 = vector.extract_strided_slice %638 {offsets = [0, 0], sizes = [16, 32], strides = [1, 1]} : vector<16x64xf32> to vector<16x32xf32>
    %641 = arith.addf %639, %640 : vector<16x32xf32>
    %642 = arith.negf %641 : vector<16x32xf32>
    %643 = math.exp %642 : vector<16x32xf32>
    %cst_425 = arith.constant 1.000000e+00 : f32
    %644 = vector.broadcast %cst_425 : f32 to vector<16x32xf32>
    %645 = arith.addf %644, %643 : vector<16x32xf32>
    %646 = arith.divf %644, %645 : vector<16x32xf32>
    %647 = vector.extract_strided_slice %635 {offsets = [0, 32], sizes = [16, 32], strides = [1, 1]} : vector<16x128xf32> to vector<16x32xf32>
    %648 = vector.extract_strided_slice %638 {offsets = [0, 32], sizes = [16, 32], strides = [1, 1]} : vector<16x64xf32> to vector<16x32xf32>
    %649 = arith.addf %647, %648 : vector<16x32xf32>
    %650 = arith.negf %649 : vector<16x32xf32>
    %651 = math.exp %650 : vector<16x32xf32>
    %cst_426 = arith.constant 1.000000e+00 : f32
    %652 = vector.broadcast %cst_426 : f32 to vector<16x32xf32>
    %653 = arith.addf %652, %651 : vector<16x32xf32>
    %654 = arith.divf %652, %653 : vector<16x32xf32>
    %655 = vector.extract_strided_slice %635 {offsets = [0, 64], sizes = [16, 32], strides = [1, 1]} : vector<16x128xf32> to vector<16x32xf32>
    %656 = arith.mulf %654, %628 : vector<16x32xf32>
    %c0_427 = arith.constant 0 : index
    %c0_428 = arith.constant 0 : index
    %c0_429 = arith.constant 0 : index
    %657 = vector.load %arg6[%c0_427, %c0_428, %c0_429] : memref<2x32x32xf32, #tpu.memory_space<vmem>>, vector<1x32x32xf32>
    %658 = vector.shape_cast %657 : vector<1x32x32xf32> to vector<32x32xf32>
    %cst_430 = arith.constant dense<0.000000e+00> : vector<16x32xf32>
    %659 = tpu.matmul %656, %658, %cst_430 {dimension_numbers = #tpu.dot_dimension_numbers<[1], [0], [0], [1], [0, 0, 1, 1], [], []>} : vector<16x32xf32>, vector<32x32xf32>, vector<16x32xf32> -> vector<16x32xf32>
    %660 = arith.addf %655, %659 : vector<16x32xf32>
    %661 = arith.mulf %646, %624 : vector<16x32xf32>
    %cst_431 = arith.constant 1.000000e+00 : f32
    %662 = vector.broadcast %cst_431 : f32 to vector<16x32xf32>
    %663 = arith.subf %662, %646 : vector<16x32xf32>
    %664 = math.tanh %660 : vector<16x32xf32>
    %665 = arith.mulf %663, %664 : vector<16x32xf32>
    %666 = arith.addf %661, %665 : vector<16x32xf32>
    %c0_432 = arith.constant 0 : index
    %c0_433 = arith.constant 0 : index
    %c0_434 = arith.constant 0 : index
    %667 = vector.load %arg9[%c0_432, %c0_433, %c0_434] : memref<2x16x32xf32, #tpu.memory_space<vmem>>, vector<1x16x32xf32>
    %668 = vector.shape_cast %667 : vector<1x16x32xf32> to vector<16x32xf32>
    %669 = vector.shape_cast %666 : vector<16x32xf32> to vector<1x16x32xf32>
    tpu.vector_store %arg9[%c0_432, %c0_433, %c0_434], %669 {strides = array<i32>} : memref<2x16x32xf32, #tpu.memory_space<vmem>>, vector<1x16x32xf32>,
    %c1_435 = arith.constant 1 : index
    %c0_436 = arith.constant 0 : index
    %c0_437 = arith.constant 0 : index
    %670 = vector.load %arg9[%c1_435, %c0_436, %c0_437] : memref<2x16x32xf32, #tpu.memory_space<vmem>>, vector<1x16x32xf32>
    %671 = vector.shape_cast %670 : vector<1x16x32xf32> to vector<16x32xf32>
    %c1_438 = arith.constant 1 : index
    %c0_439 = arith.constant 0 : index
    %c0_440 = arith.constant 0 : index
    %672 = vector.load %arg2[%c1_438, %c0_439, %c0_440] : memref<2x16x16xf32, #tpu.memory_space<vmem>>, vector<1x16x16xf32>
    %673 = vector.shape_cast %672 : vector<1x16x16xf32> to vector<16x16xf32>
    %cst_441 = arith.constant dense<0.000000e+00> : vector<16x32xf32>
    %674 = tpu.matmul %673, %666, %cst_441 {dimension_numbers = #tpu.dot_dimension_numbers<[1], [0], [0], [1], [0, 0, 1, 1], [], []>} : vector<16x16xf32>, vector<16x32xf32>, vector<16x32xf32> -> vector<16x32xf32>
    %cst_442 = arith.constant dense<0.000000e+00> : vector<16x32xf32>
    %675 = tpu.matmul %673, %671, %cst_442 {dimension_numbers = #tpu.dot_dimension_numbers<[1], [0], [0], [1], [0, 0, 1, 1], [], []>} : vector<16x16xf32>, vector<16x32xf32>, vector<16x32xf32> -> vector<16x32xf32>
    %c1_443 = arith.constant 1 : index
    %c0_444 = arith.constant 0 : index
    %c0_445 = arith.constant 0 : index
    %676 = vector.load %arg3[%c1_443, %c0_444, %c0_445] : memref<2x32x128xf32, #tpu.memory_space<vmem>>, vector<1x32x128xf32>
    %677 = vector.shape_cast %676 : vector<1x32x128xf32> to vector<32x128xf32>
    %cst_446 = arith.constant dense<0.000000e+00> : vector<16x128xf32>
    %678 = tpu.matmul %674, %677, %cst_446 {dimension_numbers = #tpu.dot_dimension_numbers<[1], [0], [0], [1], [0, 0, 1, 1], [], []>} : vector<16x32xf32>, vector<32x128xf32>, vector<16x128xf32> -> vector<16x128xf32>
    %c1_447 = arith.constant 1 : index
    %c0_448 = arith.constant 0 : index
    %c0_449 = arith.constant 0 : index
    %679 = vector.load %arg4[%c1_447, %c0_448, %c0_449] : memref<2x1x128xf32, #tpu.memory_space<vmem>>, vector<1x1x128xf32>
    %680 = vector.shape_cast %679 : vector<1x1x128xf32> to vector<1x128xf32>
    %681 = vector.broadcast %680 : vector<1x128xf32> to vector<16x128xf32>
    %682 = arith.addf %678, %681 : vector<16x128xf32>
    %c1_450 = arith.constant 1 : index
    %c0_451 = arith.constant 0 : index
    %c0_452 = arith.constant 0 : index
    %683 = vector.load %arg5[%c1_450, %c0_451, %c0_452] : memref<2x32x64xf32, #tpu.memory_space<vmem>>, vector<1x32x64xf32>
    %684 = vector.shape_cast %683 : vector<1x32x64xf32> to vector<32x64xf32>
    %cst_453 = arith.constant dense<0.000000e+00> : vector<16x64xf32>
    %685 = tpu.matmul %675, %684, %cst_453 {dimension_numbers = #tpu.dot_dimension_numbers<[1], [0], [0], [1], [0, 0, 1, 1], [], []>} : vector<16x32xf32>, vector<32x64xf32>, vector<16x64xf32> -> vector<16x64xf32>
    %686 = vector.extract_strided_slice %682 {offsets = [0, 0], sizes = [16, 32], strides = [1, 1]} : vector<16x128xf32> to vector<16x32xf32>
    %687 = vector.extract_strided_slice %685 {offsets = [0, 0], sizes = [16, 32], strides = [1, 1]} : vector<16x64xf32> to vector<16x32xf32>
    %688 = arith.addf %686, %687 : vector<16x32xf32>
    %689 = arith.negf %688 : vector<16x32xf32>
    %690 = math.exp %689 : vector<16x32xf32>
    %cst_454 = arith.constant 1.000000e+00 : f32
    %691 = vector.broadcast %cst_454 : f32 to vector<16x32xf32>
    %692 = arith.addf %691, %690 : vector<16x32xf32>
    %693 = arith.divf %691, %692 : vector<16x32xf32>
    %694 = vector.extract_strided_slice %682 {offsets = [0, 32], sizes = [16, 32], strides = [1, 1]} : vector<16x128xf32> to vector<16x32xf32>
    %695 = vector.extract_strided_slice %685 {offsets = [0, 32], sizes = [16, 32], strides = [1, 1]} : vector<16x64xf32> to vector<16x32xf32>
    %696 = arith.addf %694, %695 : vector<16x32xf32>
    %697 = arith.negf %696 : vector<16x32xf32>
    %698 = math.exp %697 : vector<16x32xf32>
    %cst_455 = arith.constant 1.000000e+00 : f32
    %699 = vector.broadcast %cst_455 : f32 to vector<16x32xf32>
    %700 = arith.addf %699, %698 : vector<16x32xf32>
    %701 = arith.divf %699, %700 : vector<16x32xf32>
    %702 = vector.extract_strided_slice %682 {offsets = [0, 64], sizes = [16, 32], strides = [1, 1]} : vector<16x128xf32> to vector<16x32xf32>
    %703 = arith.mulf %701, %675 : vector<16x32xf32>
    %c1_456 = arith.constant 1 : index
    %c0_457 = arith.constant 0 : index
    %c0_458 = arith.constant 0 : index
    %704 = vector.load %arg6[%c1_456, %c0_457, %c0_458] : memref<2x32x32xf32, #tpu.memory_space<vmem>>, vector<1x32x32xf32>
    %705 = vector.shape_cast %704 : vector<1x32x32xf32> to vector<32x32xf32>
    %cst_459 = arith.constant dense<0.000000e+00> : vector<16x32xf32>
    %706 = tpu.matmul %703, %705, %cst_459 {dimension_numbers = #tpu.dot_dimension_numbers<[1], [0], [0], [1], [0, 0, 1, 1], [], []>} : vector<16x32xf32>, vector<32x32xf32>, vector<16x32xf32> -> vector<16x32xf32>
    %707 = arith.addf %702, %706 : vector<16x32xf32>
    %708 = arith.mulf %693, %671 : vector<16x32xf32>
    %cst_460 = arith.constant 1.000000e+00 : f32
    %709 = vector.broadcast %cst_460 : f32 to vector<16x32xf32>
    %710 = arith.subf %709, %693 : vector<16x32xf32>
    %711 = math.tanh %707 : vector<16x32xf32>
    %712 = arith.mulf %710, %711 : vector<16x32xf32>
    %713 = arith.addf %708, %712 : vector<16x32xf32>
    %c1_461 = arith.constant 1 : index
    %c0_462 = arith.constant 0 : index
    %c0_463 = arith.constant 0 : index
    %714 = vector.load %arg9[%c1_461, %c0_462, %c0_463] : memref<2x16x32xf32, #tpu.memory_space<vmem>>, vector<1x16x32xf32>
    %715 = vector.shape_cast %714 : vector<1x16x32xf32> to vector<16x32xf32>
    %716 = vector.shape_cast %713 : vector<16x32xf32> to vector<1x16x32xf32>
    tpu.vector_store %arg9[%c1_461, %c0_462, %c0_463], %716 {strides = array<i32>} : memref<2x16x32xf32, #tpu.memory_space<vmem>>, vector<1x16x32xf32>,
    %c0_464 = arith.constant 0 : index
    %c0_465 = arith.constant 0 : index
    %717 = vector.load %arg7[%c0_464, %c0_465] : memref<32x128xf32, #tpu.memory_space<vmem>>, vector<32x128xf32>
    %cst_466 = arith.constant dense<0.000000e+00> : vector<16x128xf32>
    %718 = tpu.matmul %713, %717, %cst_466 {dimension_numbers = #tpu.dot_dimension_numbers<[1], [0], [0], [1], [0, 0, 1, 1], [], []>} : vector<16x32xf32>, vector<32x128xf32>, vector<16x128xf32> -> vector<16x128xf32>
    %c0_467 = arith.constant 0 : index
    %719 = arith.index_cast %c6_i32 : i32 to index
    %c0_468 = arith.constant 0 : index
    %c0_469 = arith.constant 0 : index
    %720 = vector.load %arg8[%c0_467, %719, %c0_468, %c0_469] : memref<1x7x16x128xf32, #tpu.memory_space<vmem>>, vector<1x1x16x128xf32>
    %721 = vector.shape_cast %720 : vector<1x1x16x128xf32> to vector<16x128xf32>
    %722 = vector.shape_cast %718 : vector<16x128xf32> to vector<1x1x16x128xf32>
    tpu.vector_store %arg8[%c0_467, %719, %c0_468, %c0_469], %722 {strides = array<i32>} : memref<1x7x16x128xf32, #tpu.memory_space<vmem>>, vector<1x1x16x128xf32>,
    %c7_i32 = arith.constant 7 : i32
    return
  }
  func.func @transform_0(%arg0: i32) -> (i32, i32, i32, i32) {
    %c0_i32 = arith.constant 0 : i32
    %c0_i32_0 = arith.constant 0 : i32
    %c0_i32_1 = arith.constant 0 : i32
    %c0_i32_2 = arith.constant 0 : i32
    return %arg0, %c0_i32, %c0_i32_0, %c0_i32_1 : i32, i32, i32, i32
  }
  func.func @transform_1(%arg0: i32) -> (i32, i32, i32) {
    %c0_i32 = arith.constant 0 : i32
    %c0_i32_0 = arith.constant 0 : i32
    %c0_i32_1 = arith.constant 0 : i32
    %c0_i32_2 = arith.constant 0 : i32
    return %c0_i32, %c0_i32_0, %c0_i32_1 : i32, i32, i32
  }
  func.func @transform_2(%arg0: i32) -> (i32, i32, i32) {
    %c0_i32 = arith.constant 0 : i32
    %c0_i32_0 = arith.constant 0 : i32
    %c0_i32_1 = arith.constant 0 : i32
    %c0_i32_2 = arith.constant 0 : i32
    return %c0_i32, %c0_i32_0, %c0_i32_1 : i32, i32, i32
  }
  func.func @transform_3(%arg0: i32) -> (i32, i32, i32) {
    %c0_i32 = arith.constant 0 : i32
    %c0_i32_0 = arith.constant 0 : i32
    %c0_i32_1 = arith.constant 0 : i32
    %c0_i32_2 = arith.constant 0 : i32
    return %c0_i32, %c0_i32_0, %c0_i32_1 : i32, i32, i32
  }
  func.func @transform_4(%arg0: i32) -> (i32, i32, i32) {
    %c0_i32 = arith.constant 0 : i32
    %c0_i32_0 = arith.constant 0 : i32
    %c0_i32_1 = arith.constant 0 : i32
    %c0_i32_2 = arith.constant 0 : i32
    return %c0_i32, %c0_i32_0, %c0_i32_1 : i32, i32, i32
  }
  func.func @transform_5(%arg0: i32) -> (i32, i32, i32) {
    %c0_i32 = arith.constant 0 : i32
    %c0_i32_0 = arith.constant 0 : i32
    %c0_i32_1 = arith.constant 0 : i32
    %c0_i32_2 = arith.constant 0 : i32
    return %c0_i32, %c0_i32_0, %c0_i32_1 : i32, i32, i32
  }
  func.func @transform_6(%arg0: i32) -> (i32, i32) {
    %c0_i32 = arith.constant 0 : i32
    %c0_i32_0 = arith.constant 0 : i32
    %c0_i32_1 = arith.constant 0 : i32
    return %c0_i32, %c0_i32_0 : i32, i32
  }
  func.func @transform_7(%arg0: i32) -> (i32, i32, i32, i32) {
    %c0_i32 = arith.constant 0 : i32
    %c0_i32_0 = arith.constant 0 : i32
    %c0_i32_1 = arith.constant 0 : i32
    %c0_i32_2 = arith.constant 0 : i32
    return %arg0, %c0_i32, %c0_i32_0, %c0_i32_1 : i32, i32, i32, i32
  }
}

module attributes {stable_mosaic.version = 11 : i64} {
  func.func @_linear_kernel(%arg0: i32, %arg1: memref<224x64xf32, #tpu.memory_space<vmem>>, %arg2: memref<64x128xf32, #tpu.memory_space<vmem>>, %arg3: memref<1x128xf32, #tpu.memory_space<vmem>>, %arg4: memref<224x128xf32, #tpu.memory_space<vmem>>) attributes {dimension_semantics = [#tpu.dimension_semantics<arbitrary>], iteration_bounds = array<i64: 1>, scalar_prefetch = 0 : i64, scratch_operands = 0 : i64, tpu.core_type = #tpu.core_type<tc>, window_params = [{pipeline_mode = #tpu.pipeline_mode<synchronous>, transform_indices = @transform_0, window_bounds = array<i64: 224, 64>}, {pipeline_mode = #tpu.pipeline_mode<synchronous>, transform_indices = @transform_1, window_bounds = array<i64: 64, 128>}, {pipeline_mode = #tpu.pipeline_mode<synchronous>, transform_indices = @transform_2, window_bounds = array<i64: 1, 128>}, {pipeline_mode = #tpu.pipeline_mode<synchronous>, transform_indices = @transform_3, window_bounds = array<i64: 224, 128>}]} {
    %c0 = arith.constant 0 : index
    %c0_0 = arith.constant 0 : index
    %0 = vector.load %arg1[%c0, %c0_0] : memref<224x64xf32, #tpu.memory_space<vmem>>, vector<224x64xf32>
    %c0_1 = arith.constant 0 : index
    %c0_2 = arith.constant 0 : index
    %1 = vector.load %arg2[%c0_1, %c0_2] : memref<64x128xf32, #tpu.memory_space<vmem>>, vector<64x128xf32>
    %cst = arith.constant dense<0.000000e+00> : vector<224x128xf32>
    %2 = tpu.matmul %0, %1, %cst {dimension_numbers = #tpu.dot_dimension_numbers<[1], [0], [0], [1], [0, 0, 1, 1], [], []>} : vector<224x64xf32>, vector<64x128xf32>, vector<224x128xf32> -> vector<224x128xf32>
    %c0_3 = arith.constant 0 : index
    %c0_4 = arith.constant 0 : index
    %3 = vector.load %arg3[%c0_3, %c0_4] : memref<1x128xf32, #tpu.memory_space<vmem>>, vector<1x128xf32>
    %4 = vector.broadcast %3 : vector<1x128xf32> to vector<224x128xf32>
    %5 = arith.addf %2, %4 : vector<224x128xf32>
    %c0_5 = arith.constant 0 : index
    %c0_6 = arith.constant 0 : index
    %6 = vector.load %arg4[%c0_5, %c0_6] : memref<224x128xf32, #tpu.memory_space<vmem>>, vector<224x128xf32>
    tpu.vector_store %arg4[%c0_5, %c0_6], %5 {strides = array<i32>} : memref<224x128xf32, #tpu.memory_space<vmem>>, vector<224x128xf32>,
    return
  }
  func.func @transform_0(%arg0: i32) -> (i32, i32) {
    %c0_i32 = arith.constant 0 : i32
    %c0_i32_0 = arith.constant 0 : i32
    %c0_i32_1 = arith.constant 0 : i32
    return %c0_i32, %c0_i32_0 : i32, i32
  }
  func.func @transform_1(%arg0: i32) -> (i32, i32) {
    %c0_i32 = arith.constant 0 : i32
    %c0_i32_0 = arith.constant 0 : i32
    %c0_i32_1 = arith.constant 0 : i32
    return %c0_i32, %c0_i32_0 : i32, i32
  }
  func.func @transform_2(%arg0: i32) -> (i32, i32) {
    %c0_i32 = arith.constant 0 : i32
    %c0_i32_0 = arith.constant 0 : i32
    %c0_i32_1 = arith.constant 0 : i32
    return %c0_i32, %c0_i32_0 : i32, i32
  }
  func.func @transform_3(%arg0: i32) -> (i32, i32) {
    %c0_i32 = arith.constant 0 : i32
    %c0_i32_0 = arith.constant 0 : i32
    %c0_i32_1 = arith.constant 0 : i32
    return %c0_i32, %c0_i32_0 : i32, i32
  }
}

module attributes {stable_mosaic.version = 11 : i64} {
  func.func @_warp_kernel(%arg0: i32, %arg1: memref<1x4x256xf32, #tpu.memory_space<vmem>>, %arg2: memref<1x7x256x256xf32, #tpu.memory_space<vmem>>, %arg3: memref<1x7x4x256xf32, #tpu.memory_space<vmem>>, %arg4: memref<4x256xf32, #tpu.memory_space<vmem>>) attributes {dimension_semantics = [#tpu.dimension_semantics<parallel>], iteration_bounds = array<i64: 2>, scalar_prefetch = 0 : i64, scratch_operands = 1 : i64, tpu.core_type = #tpu.core_type<tc>, window_params = [{transform_indices = @transform_0, window_bounds = array<i64: 1, 4, 256>}, {transform_indices = @transform_1, window_bounds = array<i64: 1, 7, 256, 256>}, {transform_indices = @transform_2, window_bounds = array<i64: 1, 7, 4, 256>}]} {
    %c0 = arith.constant 0 : index
    %c0_0 = arith.constant 0 : index
    %c0_1 = arith.constant 0 : index
    %0 = vector.load %arg1[%c0, %c0_0, %c0_1] : memref<1x4x256xf32, #tpu.memory_space<vmem>>, vector<1x4x256xf32>
    %1 = vector.shape_cast %0 : vector<1x4x256xf32> to vector<4x256xf32>
    %c0_2 = arith.constant 0 : index
    %c0_3 = arith.constant 0 : index
    %2 = vector.load %arg4[%c0_2, %c0_3] : memref<4x256xf32, #tpu.memory_space<vmem>>, vector<4x256xf32>
    tpu.vector_store %arg4[%c0_2, %c0_3], %1 {strides = array<i32>} : memref<4x256xf32, #tpu.memory_space<vmem>>, vector<4x256xf32>,
    %c0_i32 = arith.constant 0 : i32
    %c0_4 = arith.constant 0 : index
    %c0_5 = arith.constant 0 : index
    %3 = vector.load %arg4[%c0_4, %c0_5] : memref<4x256xf32, #tpu.memory_space<vmem>>, vector<4x256xf32>
    %c0_6 = arith.constant 0 : index
    %4 = arith.index_cast %c0_i32 : i32 to index
    %c0_7 = arith.constant 0 : index
    %c0_8 = arith.constant 0 : index
    %5 = vector.load %arg2[%c0_6, %4, %c0_7, %c0_8] : memref<1x7x256x256xf32, #tpu.memory_space<vmem>>, vector<1x1x256x256xf32>
    %6 = vector.shape_cast %5 : vector<1x1x256x256xf32> to vector<256x256xf32>
    %cst = arith.constant dense<0.000000e+00> : vector<4x256xf32>
    %7 = tpu.matmul %3, %6, %cst {dimension_numbers = #tpu.dot_dimension_numbers<[1], [0], [0], [1], [0, 0, 1, 1], [], []>} : vector<4x256xf32>, vector<256x256xf32>, vector<4x256xf32> -> vector<4x256xf32>
    %c0_9 = arith.constant 0 : index
    %c0_10 = arith.constant 0 : index
    %8 = vector.load %arg4[%c0_9, %c0_10] : memref<4x256xf32, #tpu.memory_space<vmem>>, vector<4x256xf32>
    tpu.vector_store %arg4[%c0_9, %c0_10], %7 {strides = array<i32>} : memref<4x256xf32, #tpu.memory_space<vmem>>, vector<4x256xf32>,
    %c0_11 = arith.constant 0 : index
    %9 = arith.index_cast %c0_i32 : i32 to index
    %c0_12 = arith.constant 0 : index
    %c0_13 = arith.constant 0 : index
    %10 = vector.load %arg3[%c0_11, %9, %c0_12, %c0_13] : memref<1x7x4x256xf32, #tpu.memory_space<vmem>>, vector<1x1x4x256xf32>
    %11 = vector.shape_cast %10 : vector<1x1x4x256xf32> to vector<4x256xf32>
    %12 = vector.shape_cast %7 : vector<4x256xf32> to vector<1x1x4x256xf32>
    tpu.vector_store %arg3[%c0_11, %9, %c0_12, %c0_13], %12 {strides = array<i32>} : memref<1x7x4x256xf32, #tpu.memory_space<vmem>>, vector<1x1x4x256xf32>,
    %c1_i32 = arith.constant 1 : i32
    %c0_14 = arith.constant 0 : index
    %c0_15 = arith.constant 0 : index
    %13 = vector.load %arg4[%c0_14, %c0_15] : memref<4x256xf32, #tpu.memory_space<vmem>>, vector<4x256xf32>
    %c0_16 = arith.constant 0 : index
    %14 = arith.index_cast %c1_i32 : i32 to index
    %c0_17 = arith.constant 0 : index
    %c0_18 = arith.constant 0 : index
    %15 = vector.load %arg2[%c0_16, %14, %c0_17, %c0_18] : memref<1x7x256x256xf32, #tpu.memory_space<vmem>>, vector<1x1x256x256xf32>
    %16 = vector.shape_cast %15 : vector<1x1x256x256xf32> to vector<256x256xf32>
    %cst_19 = arith.constant dense<0.000000e+00> : vector<4x256xf32>
    %17 = tpu.matmul %13, %16, %cst_19 {dimension_numbers = #tpu.dot_dimension_numbers<[1], [0], [0], [1], [0, 0, 1, 1], [], []>} : vector<4x256xf32>, vector<256x256xf32>, vector<4x256xf32> -> vector<4x256xf32>
    %c0_20 = arith.constant 0 : index
    %c0_21 = arith.constant 0 : index
    %18 = vector.load %arg4[%c0_20, %c0_21] : memref<4x256xf32, #tpu.memory_space<vmem>>, vector<4x256xf32>
    tpu.vector_store %arg4[%c0_20, %c0_21], %17 {strides = array<i32>} : memref<4x256xf32, #tpu.memory_space<vmem>>, vector<4x256xf32>,
    %c0_22 = arith.constant 0 : index
    %19 = arith.index_cast %c1_i32 : i32 to index
    %c0_23 = arith.constant 0 : index
    %c0_24 = arith.constant 0 : index
    %20 = vector.load %arg3[%c0_22, %19, %c0_23, %c0_24] : memref<1x7x4x256xf32, #tpu.memory_space<vmem>>, vector<1x1x4x256xf32>
    %21 = vector.shape_cast %20 : vector<1x1x4x256xf32> to vector<4x256xf32>
    %22 = vector.shape_cast %17 : vector<4x256xf32> to vector<1x1x4x256xf32>
    tpu.vector_store %arg3[%c0_22, %19, %c0_23, %c0_24], %22 {strides = array<i32>} : memref<1x7x4x256xf32, #tpu.memory_space<vmem>>, vector<1x1x4x256xf32>,
    %c2_i32 = arith.constant 2 : i32
    %c0_25 = arith.constant 0 : index
    %c0_26 = arith.constant 0 : index
    %23 = vector.load %arg4[%c0_25, %c0_26] : memref<4x256xf32, #tpu.memory_space<vmem>>, vector<4x256xf32>
    %c0_27 = arith.constant 0 : index
    %24 = arith.index_cast %c2_i32 : i32 to index
    %c0_28 = arith.constant 0 : index
    %c0_29 = arith.constant 0 : index
    %25 = vector.load %arg2[%c0_27, %24, %c0_28, %c0_29] : memref<1x7x256x256xf32, #tpu.memory_space<vmem>>, vector<1x1x256x256xf32>
    %26 = vector.shape_cast %25 : vector<1x1x256x256xf32> to vector<256x256xf32>
    %cst_30 = arith.constant dense<0.000000e+00> : vector<4x256xf32>
    %27 = tpu.matmul %23, %26, %cst_30 {dimension_numbers = #tpu.dot_dimension_numbers<[1], [0], [0], [1], [0, 0, 1, 1], [], []>} : vector<4x256xf32>, vector<256x256xf32>, vector<4x256xf32> -> vector<4x256xf32>
    %c0_31 = arith.constant 0 : index
    %c0_32 = arith.constant 0 : index
    %28 = vector.load %arg4[%c0_31, %c0_32] : memref<4x256xf32, #tpu.memory_space<vmem>>, vector<4x256xf32>
    tpu.vector_store %arg4[%c0_31, %c0_32], %27 {strides = array<i32>} : memref<4x256xf32, #tpu.memory_space<vmem>>, vector<4x256xf32>,
    %c0_33 = arith.constant 0 : index
    %29 = arith.index_cast %c2_i32 : i32 to index
    %c0_34 = arith.constant 0 : index
    %c0_35 = arith.constant 0 : index
    %30 = vector.load %arg3[%c0_33, %29, %c0_34, %c0_35] : memref<1x7x4x256xf32, #tpu.memory_space<vmem>>, vector<1x1x4x256xf32>
    %31 = vector.shape_cast %30 : vector<1x1x4x256xf32> to vector<4x256xf32>
    %32 = vector.shape_cast %27 : vector<4x256xf32> to vector<1x1x4x256xf32>
    tpu.vector_store %arg3[%c0_33, %29, %c0_34, %c0_35], %32 {strides = array<i32>} : memref<1x7x4x256xf32, #tpu.memory_space<vmem>>, vector<1x1x4x256xf32>,
    %c3_i32 = arith.constant 3 : i32
    %c0_36 = arith.constant 0 : index
    %c0_37 = arith.constant 0 : index
    %33 = vector.load %arg4[%c0_36, %c0_37] : memref<4x256xf32, #tpu.memory_space<vmem>>, vector<4x256xf32>
    %c0_38 = arith.constant 0 : index
    %34 = arith.index_cast %c3_i32 : i32 to index
    %c0_39 = arith.constant 0 : index
    %c0_40 = arith.constant 0 : index
    %35 = vector.load %arg2[%c0_38, %34, %c0_39, %c0_40] : memref<1x7x256x256xf32, #tpu.memory_space<vmem>>, vector<1x1x256x256xf32>
    %36 = vector.shape_cast %35 : vector<1x1x256x256xf32> to vector<256x256xf32>
    %cst_41 = arith.constant dense<0.000000e+00> : vector<4x256xf32>
    %37 = tpu.matmul %33, %36, %cst_41 {dimension_numbers = #tpu.dot_dimension_numbers<[1], [0], [0], [1], [0, 0, 1, 1], [], []>} : vector<4x256xf32>, vector<256x256xf32>, vector<4x256xf32> -> vector<4x256xf32>
    %c0_42 = arith.constant 0 : index
    %c0_43 = arith.constant 0 : index
    %38 = vector.load %arg4[%c0_42, %c0_43] : memref<4x256xf32, #tpu.memory_space<vmem>>, vector<4x256xf32>
    tpu.vector_store %arg4[%c0_42, %c0_43], %37 {strides = array<i32>} : memref<4x256xf32, #tpu.memory_space<vmem>>, vector<4x256xf32>,
    %c0_44 = arith.constant 0 : index
    %39 = arith.index_cast %c3_i32 : i32 to index
    %c0_45 = arith.constant 0 : index
    %c0_46 = arith.constant 0 : index
    %40 = vector.load %arg3[%c0_44, %39, %c0_45, %c0_46] : memref<1x7x4x256xf32, #tpu.memory_space<vmem>>, vector<1x1x4x256xf32>
    %41 = vector.shape_cast %40 : vector<1x1x4x256xf32> to vector<4x256xf32>
    %42 = vector.shape_cast %37 : vector<4x256xf32> to vector<1x1x4x256xf32>
    tpu.vector_store %arg3[%c0_44, %39, %c0_45, %c0_46], %42 {strides = array<i32>} : memref<1x7x4x256xf32, #tpu.memory_space<vmem>>, vector<1x1x4x256xf32>,
    %c4_i32 = arith.constant 4 : i32
    %c0_47 = arith.constant 0 : index
    %c0_48 = arith.constant 0 : index
    %43 = vector.load %arg4[%c0_47, %c0_48] : memref<4x256xf32, #tpu.memory_space<vmem>>, vector<4x256xf32>
    %c0_49 = arith.constant 0 : index
    %44 = arith.index_cast %c4_i32 : i32 to index
    %c0_50 = arith.constant 0 : index
    %c0_51 = arith.constant 0 : index
    %45 = vector.load %arg2[%c0_49, %44, %c0_50, %c0_51] : memref<1x7x256x256xf32, #tpu.memory_space<vmem>>, vector<1x1x256x256xf32>
    %46 = vector.shape_cast %45 : vector<1x1x256x256xf32> to vector<256x256xf32>
    %cst_52 = arith.constant dense<0.000000e+00> : vector<4x256xf32>
    %47 = tpu.matmul %43, %46, %cst_52 {dimension_numbers = #tpu.dot_dimension_numbers<[1], [0], [0], [1], [0, 0, 1, 1], [], []>} : vector<4x256xf32>, vector<256x256xf32>, vector<4x256xf32> -> vector<4x256xf32>
    %c0_53 = arith.constant 0 : index
    %c0_54 = arith.constant 0 : index
    %48 = vector.load %arg4[%c0_53, %c0_54] : memref<4x256xf32, #tpu.memory_space<vmem>>, vector<4x256xf32>
    tpu.vector_store %arg4[%c0_53, %c0_54], %47 {strides = array<i32>} : memref<4x256xf32, #tpu.memory_space<vmem>>, vector<4x256xf32>,
    %c0_55 = arith.constant 0 : index
    %49 = arith.index_cast %c4_i32 : i32 to index
    %c0_56 = arith.constant 0 : index
    %c0_57 = arith.constant 0 : index
    %50 = vector.load %arg3[%c0_55, %49, %c0_56, %c0_57] : memref<1x7x4x256xf32, #tpu.memory_space<vmem>>, vector<1x1x4x256xf32>
    %51 = vector.shape_cast %50 : vector<1x1x4x256xf32> to vector<4x256xf32>
    %52 = vector.shape_cast %47 : vector<4x256xf32> to vector<1x1x4x256xf32>
    tpu.vector_store %arg3[%c0_55, %49, %c0_56, %c0_57], %52 {strides = array<i32>} : memref<1x7x4x256xf32, #tpu.memory_space<vmem>>, vector<1x1x4x256xf32>,
    %c5_i32 = arith.constant 5 : i32
    %c0_58 = arith.constant 0 : index
    %c0_59 = arith.constant 0 : index
    %53 = vector.load %arg4[%c0_58, %c0_59] : memref<4x256xf32, #tpu.memory_space<vmem>>, vector<4x256xf32>
    %c0_60 = arith.constant 0 : index
    %54 = arith.index_cast %c5_i32 : i32 to index
    %c0_61 = arith.constant 0 : index
    %c0_62 = arith.constant 0 : index
    %55 = vector.load %arg2[%c0_60, %54, %c0_61, %c0_62] : memref<1x7x256x256xf32, #tpu.memory_space<vmem>>, vector<1x1x256x256xf32>
    %56 = vector.shape_cast %55 : vector<1x1x256x256xf32> to vector<256x256xf32>
    %cst_63 = arith.constant dense<0.000000e+00> : vector<4x256xf32>
    %57 = tpu.matmul %53, %56, %cst_63 {dimension_numbers = #tpu.dot_dimension_numbers<[1], [0], [0], [1], [0, 0, 1, 1], [], []>} : vector<4x256xf32>, vector<256x256xf32>, vector<4x256xf32> -> vector<4x256xf32>
    %c0_64 = arith.constant 0 : index
    %c0_65 = arith.constant 0 : index
    %58 = vector.load %arg4[%c0_64, %c0_65] : memref<4x256xf32, #tpu.memory_space<vmem>>, vector<4x256xf32>
    tpu.vector_store %arg4[%c0_64, %c0_65], %57 {strides = array<i32>} : memref<4x256xf32, #tpu.memory_space<vmem>>, vector<4x256xf32>,
    %c0_66 = arith.constant 0 : index
    %59 = arith.index_cast %c5_i32 : i32 to index
    %c0_67 = arith.constant 0 : index
    %c0_68 = arith.constant 0 : index
    %60 = vector.load %arg3[%c0_66, %59, %c0_67, %c0_68] : memref<1x7x4x256xf32, #tpu.memory_space<vmem>>, vector<1x1x4x256xf32>
    %61 = vector.shape_cast %60 : vector<1x1x4x256xf32> to vector<4x256xf32>
    %62 = vector.shape_cast %57 : vector<4x256xf32> to vector<1x1x4x256xf32>
    tpu.vector_store %arg3[%c0_66, %59, %c0_67, %c0_68], %62 {strides = array<i32>} : memref<1x7x4x256xf32, #tpu.memory_space<vmem>>, vector<1x1x4x256xf32>,
    %c6_i32 = arith.constant 6 : i32
    %c0_69 = arith.constant 0 : index
    %c0_70 = arith.constant 0 : index
    %63 = vector.load %arg4[%c0_69, %c0_70] : memref<4x256xf32, #tpu.memory_space<vmem>>, vector<4x256xf32>
    %c0_71 = arith.constant 0 : index
    %64 = arith.index_cast %c6_i32 : i32 to index
    %c0_72 = arith.constant 0 : index
    %c0_73 = arith.constant 0 : index
    %65 = vector.load %arg2[%c0_71, %64, %c0_72, %c0_73] : memref<1x7x256x256xf32, #tpu.memory_space<vmem>>, vector<1x1x256x256xf32>
    %66 = vector.shape_cast %65 : vector<1x1x256x256xf32> to vector<256x256xf32>
    %cst_74 = arith.constant dense<0.000000e+00> : vector<4x256xf32>
    %67 = tpu.matmul %63, %66, %cst_74 {dimension_numbers = #tpu.dot_dimension_numbers<[1], [0], [0], [1], [0, 0, 1, 1], [], []>} : vector<4x256xf32>, vector<256x256xf32>, vector<4x256xf32> -> vector<4x256xf32>
    %c0_75 = arith.constant 0 : index
    %c0_76 = arith.constant 0 : index
    %68 = vector.load %arg4[%c0_75, %c0_76] : memref<4x256xf32, #tpu.memory_space<vmem>>, vector<4x256xf32>
    tpu.vector_store %arg4[%c0_75, %c0_76], %67 {strides = array<i32>} : memref<4x256xf32, #tpu.memory_space<vmem>>, vector<4x256xf32>,
    %c0_77 = arith.constant 0 : index
    %69 = arith.index_cast %c6_i32 : i32 to index
    %c0_78 = arith.constant 0 : index
    %c0_79 = arith.constant 0 : index
    %70 = vector.load %arg3[%c0_77, %69, %c0_78, %c0_79] : memref<1x7x4x256xf32, #tpu.memory_space<vmem>>, vector<1x1x4x256xf32>
    %71 = vector.shape_cast %70 : vector<1x1x4x256xf32> to vector<4x256xf32>
    %72 = vector.shape_cast %67 : vector<4x256xf32> to vector<1x1x4x256xf32>
    tpu.vector_store %arg3[%c0_77, %69, %c0_78, %c0_79], %72 {strides = array<i32>} : memref<1x7x4x256xf32, #tpu.memory_space<vmem>>, vector<1x1x4x256xf32>,
    %c7_i32 = arith.constant 7 : i32
    return
  }
  func.func @transform_0(%arg0: i32) -> (i32, i32, i32) {
    %c0_i32 = arith.constant 0 : i32
    %c0_i32_0 = arith.constant 0 : i32
    %c0_i32_1 = arith.constant 0 : i32
    return %arg0, %c0_i32, %c0_i32_0 : i32, i32, i32
  }
  func.func @transform_1(%arg0: i32) -> (i32, i32, i32, i32) {
    %c0_i32 = arith.constant 0 : i32
    %c0_i32_0 = arith.constant 0 : i32
    %c0_i32_1 = arith.constant 0 : i32
    %c0_i32_2 = arith.constant 0 : i32
    return %arg0, %c0_i32, %c0_i32_0, %c0_i32_1 : i32, i32, i32, i32
  }
  func.func @transform_2(%arg0: i32) -> (i32, i32, i32, i32) {
    %c0_i32 = arith.constant 0 : i32
    %c0_i32_0 = arith.constant 0 : i32
    %c0_i32_1 = arith.constant 0 : i32
    %c0_i32_2 = arith.constant 0 : i32
    return %arg0, %c0_i32, %c0_i32_0, %c0_i32_1 : i32, i32, i32, i32
  }
}

</mosaic_0001>

<bundles_post_ra>
// kernel: forward.5
= control target key start
LH: loop header
LB: loop body
LE: loop exit
PB: predicated region body
PF: predicated region fallthrough
CT: control target
= control target key end

     0   :  { %vm61_vm0 = vcmask 523264   ;;  %s909_s1 = inlined_call_operand.vmem [shape: f32[64,128], index: 1, kind: input, shape index: {}]   ;;  %s910_s0 = inlined_call_operand.vmem [shape: f32[256,64], index: 0, kind: input, shape index: {}]   ;;  %s911_s2 = inlined_call_operand.vmem [shape: f32[1,128], index: 2, kind: input, shape index: {}]   ;;  %s912_s3 = inlined_call_operand.vmem [shape: f32[256,128], index: 3, kind: output, shape index: {}]  }
   0x1   :  { %v53_v0 = vld [vmem:[%s909_s1 + $0x38] sm:$0xff]  ;;  %v52_v1 = vld [vmem:[%s909_s1 + $0x30] sm:$0xff]  ;;  %v51_v2 = vld [vmem:[%s909_s1 + $0x28] sm:$0xff] }
   0x2   :  { %524 = vmatprep.subr.mxu0 %v53_v0  ;;  %588 = vmatprep.subr.mxu1 %v53_v0  ;;  %v50_v3 = vld [vmem:[%s909_s1 + $0x20] sm:$0xff]  ;;  %v49_v4 = vld [vmem:[%s909_s1 + $0x18] sm:$0xff]  ;;  %v48_v5 = vld [vmem:[%s909_s1 + $0x10] sm:$0xff] }
   0x3   :  { %525 = vmatpush3.msra.mxu0 %v53_v0  ;;  %596 = vmatpush3.msra.mxu1 %v53_v0  ;;  %v47_v6 = vld [vmem:[%s909_s1 + $0x8] sm:$0xff]  ;;  %v46_v7 = vld [vmem:[%s909_s1] sm:$0xff]  ;;  %v16_v12 = vld [vmem:[%s910_s0 + $0x10] sm:$0xff] }
   0x4   :  { %526 = vmatprep.subr.mxu0 %v52_v1  ;;  %589 = vmatprep.subr.mxu1 %v52_v1  ;;  %v14_v8 = vld [vmem:[%s910_s0] sm:$0xff]  ;;  %v15_v10 = vld [vmem:[%s910_s0 + $0x8] sm:$0xff]  ;;  %v32_v13 = vld [vmem:[%s910_s0 + $0x90] sm:$0xff] }
   0x5   :  { %527 = vmatpush3.msra.mxu0 %v52_v1  ;;  %597 = vmatpush3.msra.mxu1 %v52_v1  ;;  %v30_v9 = vld [vmem:[%s910_s0 + $0x80] sm:$0xff]  ;;  %v31_v11 = vld [vmem:[%s910_s0 + $0x88] sm:$0xff]  ;;  %v17_v14 = vld [vmem:[%s910_s0 + $0x18] sm:$0xff] }
   0x6   :  { %528 = vmatprep.subr.mxu0 %v51_v2  ;;  %590 = vmatprep.subr.mxu1 %v51_v2  ;;  %v33_v15 = vld [vmem:[%s910_s0 + $0x98] sm:$0xff]  ;;  %v18_v16 = vld [vmem:[%s910_s0 + $0x20] sm:$0xff]  ;;  %v19_v18 = vld [vmem:[%s910_s0 + $0x28] sm:$0xff] }
   0x7   :  { %529 = vmatpush3.msra.mxu0 %v51_v2  ;;  %598 = vmatpush3.msra.mxu1 %v51_v2  ;;  %v34_v17 = vld [vmem:[%s910_s0 + $0xa0] sm:$0xff]  ;;  %v35_v19 = vld [vmem:[%s910_s0 + $0xa8] sm:$0xff]  ;;  %v20_v20 = vld [vmem:[%s910_s0 + $0x30] sm:$0xff] }
   0x8   :  { %530 = vmatprep.subr.mxu0 %v50_v3  ;;  %591 = vmatprep.subr.mxu1 %v50_v3  ;;  %v36_v21 = vld [vmem:[%s910_s0 + $0xb0] sm:$0xff]  ;;  %v21_v22 = vld [vmem:[%s910_s0 + $0x38] sm:$0xff]  ;;  %v22_v24 = vld [vmem:[%s910_s0 + $0x40] sm:$0xff] }
   0x9   :  { %531 = vmatpush3.msra.mxu0 %v50_v3  ;;  %599 = vmatpush3.msra.mxu1 %v50_v3  ;;  %v37_v23 = vld [vmem:[%s910_s0 + $0xb8] sm:$0xff]  ;;  %v38_v25 = vld [vmem:[%s910_s0 + $0xc0] sm:$0xff]  ;;  %v23_v26 = vld [vmem:[%s910_s0 + $0x48] sm:$0xff] }
   0xa   :  { %532 = vmatprep.subr.mxu0 %v49_v4  ;;  %592 = vmatprep.subr.mxu1 %v49_v4  ;;  %v39_v27 = vld [vmem:[%s910_s0 + $0xc8] sm:$0xff]  ;;  %v24_v28 = vld [vmem:[%s910_s0 + $0x50] sm:$0xff]  ;;  %v25_v30 = vld [vmem:[%s910_s0 + $0x58] sm:$0xff] }
   0xb   :  { %533 = vmatpush3.msra.mxu0 %v49_v4  ;;  %600 = vmatpush3.msra.mxu1 %v49_v4  ;;  %v40_v29 = vld [vmem:[%s910_s0 + $0xd0] sm:$0xff]  ;;  %v41_v31 = vld [vmem:[%s910_s0 + $0xd8] sm:$0xff]  ;;  %v26_v32 = vld [vmem:[%s910_s0 + $0x60] sm:$0xff] }
   0xc   :  { %534 = vmatprep.subr.mxu0 %v48_v5  ;;  %593 = vmatprep.subr.mxu1 %v48_v5  ;;  %v42_v33 = vld [vmem:[%s910_s0 + $0xe0] sm:$0xff]  ;;  %v27_v34 = vld [vmem:[%s910_s0 + $0x68] sm:$0xff]  ;;  %v28_v36 = vld [vmem:[%s910_s0 + $0x70] sm:$0xff] }
   0xd   :  { %535 = vmatpush3.msra.mxu0 %v48_v5  ;;  %601 = vmatpush3.msra.mxu1 %v48_v5  ;;  %v43_v35 = vld [vmem:[%s910_s0 + $0xe8] sm:$0xff]  ;;  %v44_v37 = vld [vmem:[%s910_s0 + $0xf0] sm:$0xff]  ;;  %v29_v38 = vld [vmem:[%s910_s0 + $0x78] sm:$0xff] }
   0xe   :  { %536 = vmatprep.subr.mxu0 %v47_v6  ;;  %594 = vmatprep.subr.mxu1 %v47_v6  ;;  %v45_v39 = vld [vmem:[%s910_s0 + $0xf8] sm:$0xff]  ;;  %v779_v40 = vld [vmem:[%s911_s2] ss:$0 sm:$0xff] }
   0xf   :  { %537 = vmatpush3.msra.mxu0 %v47_v6  ;;  %602 = vmatpush3.msra.mxu1 %v47_v6 }
  0x10   :  { %538 = vmatprep.subr.mxu0 %v46_v7  ;;  %595 = vmatprep.subr.mxu1 %v46_v7 }
  0x11   :  { %539 = vmatpush3.msra.mxu0 %v46_v7  ;;  %603 = vmatpush3.msra.mxu1 %v46_v7 }
  0x12   :  { %540 = vmatprep.mubr.msk.f32.mxu0 %vm61_vm0, %v14_v8  ;;  %564 = vmatprep.mubr.msk.f32.mxu1 %vm61_vm0, %v30_v9 }
  0x13   :  { %541 = vmatmul.mubr.msk.f32.vlgmr.msra.gmra.mxu0 %vm61_vm0, %v15_v10  ;;  %565 = vmatmul.mubr.msk.f32.vlgmr.msra.gmra.mxu1 %vm61_vm0, %v31_v11 }
  0x14   :  { %543 = vmatprep.mubr.msk.f32.mxu0 %vm61_vm0, %v16_v12  ;;  %567 = vmatprep.mubr.msk.f32.mxu1 %vm61_vm0, %v32_v13 }
  0x17   :  { %544 = vmatmul.mubr.msk.f32.gmra.mxu0 %vm61_vm0, %v17_v14  ;;  %568 = vmatmul.mubr.msk.f32.gmra.mxu1 %vm61_vm0, %v33_v15 }
  0x18   :  { %546 = vmatprep.mubr.msk.f32.mxu0 %vm61_vm0, %v18_v16  ;;  %570 = vmatprep.mubr.msk.f32.mxu1 %vm61_vm0, %v34_v17 }
  0x1b   :  { %547 = vmatmul.mubr.msk.f32.gmra.mxu0 %vm61_vm0, %v19_v18  ;;  %571 = vmatmul.mubr.msk.f32.gmra.mxu1 %vm61_vm0, %v35_v19 }
  0x1c   :  { %549 = vmatprep.mubr.msk.f32.mxu0 %vm61_vm0, %v20_v20  ;;  %573 = vmatprep.mubr.msk.f32.mxu1 %vm61_vm0, %v36_v21 }
  0x1f   :  { %550 = vmatmul.mubr.msk.f32.gmra.mxu0 %vm61_vm0, %v21_v22  ;;  %574 = vmatmul.mubr.msk.f32.gmra.mxu1 %vm61_vm0, %v37_v23 }
  0x20   :  { %552 = vmatprep.mubr.msk.f32.mxu0 %vm61_vm0, %v22_v24  ;;  %576 = vmatprep.mubr.msk.f32.mxu1 %vm61_vm0, %v38_v25 }
  0x23   :  { %553 = vmatmul.mubr.msk.f32.gmra.mxu0 %vm61_vm0, %v23_v26  ;;  %577 = vmatmul.mubr.msk.f32.gmra.mxu1 %vm61_vm0, %v39_v27 }
  0x24   :  { %555 = vmatprep.mubr.msk.f32.mxu0 %vm61_vm0, %v24_v28  ;;  %579 = vmatprep.mubr.msk.f32.mxu1 %vm61_vm0, %v40_v29 }
  0x27   :  { %556 = vmatmul.mubr.msk.f32.gmra.mxu0 %vm61_vm0, %v25_v30  ;;  %580 = vmatmul.mubr.msk.f32.gmra.mxu1 %vm61_vm0, %v41_v31 }
  0x28   :  { %558 = vmatprep.mubr.msk.f32.mxu0 %vm61_vm0, %v26_v32  ;;  %582 = vmatprep.mubr.msk.f32.mxu1 %vm61_vm0, %v42_v33 }
  0x2b   :  { %559 = vmatmul.mubr.msk.f32.gmra.mxu0 %vm61_vm0, %v27_v34  ;;  %583 = vmatmul.mubr.msk.f32.gmra.mxu1 %vm61_vm0, %v43_v35 }
  0x2c   :  { %561 = vmatprep.mubr.msk.f32.mxu0 %vm61_vm0, %v28_v36  ;;  %585 = vmatprep.mubr.msk.f32.mxu1 %vm61_vm0, %v44_v37 }
  0x2f   :  { %562 = vmatmul.mubr.msk.f32.gmra.mxu0 %vm61_vm0, %v29_v38  ;;  %586 = vmatmul.mubr.msk.f32.gmra.mxu1 %vm61_vm0, %v45_v39 }
  0xd3   :  { %v542_v41 = vpop.f32.mrf.mxu0  ;;  %v566_v42 = vpop.f32.mrf.mxu1 }
  0xd4   :  { %v230_v43 = vadd.f32 %v542_v41, %v779_v40  ;;  %v310_v44 = vadd.f32 %v566_v42, %v779_v40 }
  0xd5   :  { %v224_v45 = vpop.f32.mrf.mxu0  ;;  %v304_v46 = vpop.f32.mrf.mxu1 }
  0xd6   :  { %v384_v47 = vmax.f32 %v230_v43, 0.0  ;;  %v400_v48 = vmax.f32 %v310_v44, 0.0  ;;  %v225_v49 = vadd.f32 %v779_v40, %v224_v45  ;;  %v305_v50 = vadd.f32 %v779_v40, %v304_v46 }
  0xd7   :  { %v545_v51 = vpop.f32.mrf.mxu0  ;;  %v569_v52 = vpop.f32.mrf.mxu1 }
  0xd8   :  { %416 = vst [vmem:[%s912_s3 + $0x8] sm:$0xff] %v384_v47  ;;  %432 = vst [vmem:[%s912_s3 + $0x88] sm:$0xff] %v400_v48  ;;  %v383_v53 = vmax.f32 %v225_v49, 0.0  ;;  %v399_v54 = vmax.f32 %v305_v50, 0.0  ;;  %v240_v55 = vadd.f32 %v545_v51, %v779_v40  ;;  %v320_v56 = vadd.f32 %v569_v52, %v779_v40 }
  0xd9   :  { %v234_v57 = vpop.f32.mrf.mxu0  ;;  %v314_v58 = vpop.f32.mrf.mxu1 }
  0xda   :  { %415 = vst [vmem:[%s912_s3] sm:$0xff] %v383_v53  ;;  %431 = vst [vmem:[%s912_s3 + $0x80] sm:$0xff] %v399_v54  ;;  %v386_v59 = vmax.f32 %v240_v55, 0.0  ;;  %v402_v60 = vmax.f32 %v320_v56, 0.0  ;;  %v235_v61 = vadd.f32 %v779_v40, %v234_v57  ;;  %v315_v62 = vadd.f32 %v779_v40, %v314_v58 }
  0xdb   :  { %v548_v63 = vpop.f32.mrf.mxu0  ;;  %v572_v0 = vpop.f32.mrf.mxu1 }
  0xdc   :  { %418 = vst [vmem:[%s912_s3 + $0x18] sm:$0xff] %v386_v59  ;;  %434 = vst [vmem:[%s912_s3 + $0x98] sm:$0xff] %v402_v60  ;;  %v385_v1 = vmax.f32 %v235_v61, 0.0  ;;  %v401_v2 = vmax.f32 %v315_v62, 0.0  ;;  %v250_v3 = vadd.f32 %v548_v63, %v779_v40  ;;  %v330_v4 = vadd.f32 %v572_v0, %v779_v40 }
  0xdd   :  { %v244_v5 = vpop.f32.mrf.mxu0  ;;  %v324_v6 = vpop.f32.mrf.mxu1 }
  0xde   :  { %417 = vst [vmem:[%s912_s3 + $0x10] sm:$0xff] %v385_v1  ;;  %433 = vst [vmem:[%s912_s3 + $0x90] sm:$0xff] %v401_v2  ;;  %v388_v7 = vmax.f32 %v250_v3, 0.0  ;;  %v404_v8 = vmax.f32 %v330_v4, 0.0  ;;  %v245_v9 = vadd.f32 %v779_v40, %v244_v5  ;;  %v325_v10 = vadd.f32 %v779_v40, %v324_v6 }
  0xdf   :  { %v551_v11 = vpop.f32.mrf.mxu0  ;;  %v575_v12 = vpop.f32.mrf.mxu1 }
  0xe0   :  { %420 = vst [vmem:[%s912_s3 + $0x28] sm:$0xff] %v388_v7  ;;  %436 = vst [vmem:[%s912_s3 + $0xa8] sm:$0xff] %v404_v8  ;;  %v387_v13 = vmax.f32 %v245_v9, 0.0  ;;  %v403_v14 = vmax.f32 %v325_v10, 0.0  ;;  %v260_v15 = vadd.f32 %v551_v11, %v779_v40  ;;  %v340_v16 = vadd.f32 %v575_v12, %v779_v40 }
  0xe1   :  { %v254_v17 = vpop.f32.mrf.mxu0  ;;  %v334_v18 = vpop.f32.mrf.mxu1 }
  0xe2   :  { %419 = vst [vmem:[%s912_s3 + $0x20] sm:$0xff] %v387_v13  ;;  %435 = vst [vmem:[%s912_s3 + $0xa0] sm:$0xff] %v403_v14  ;;  %v390_v19 = vmax.f32 %v260_v15, 0.0  ;;  %v406_v20 = vmax.f32 %v340_v16, 0.0  ;;  %v255_v21 = vadd.f32 %v779_v40, %v254_v17  ;;  %v335_v22 = vadd.f32 %v779_v40, %v334_v18 }
  0xe3   :  { %v554_v23 = vpop.f32.mrf.mxu0  ;;  %v578_v24 = vpop.f32.mrf.mxu1 }
  0xe4   :  { %422 = vst [vmem:[%s912_s3 + $0x38] sm:$0xff] %v390_v19  ;;  %438 = vst [vmem:[%s912_s3 + $0xb8] sm:$0xff] %v406_v20  ;;  %v389_v25 = vmax.f32 %v255_v21, 0.0  ;;  %v405_v26 = vmax.f32 %v335_v22, 0.0  ;;  %v270_v27 = vadd.f32 %v554_v23, %v779_v40  ;;  %v350_v28 = vadd.f32 %v578_v24, %v779_v40 }
  0xe5   :  { %v264_v29 = vpop.f32.mrf.mxu0  ;;  %v344_v30 = vpop.f32.mrf.mxu1 }
  0xe6   :  { %421 = vst [vmem:[%s912_s3 + $0x30] sm:$0xff] %v389_v25  ;;  %437 = vst [vmem:[%s912_s3 + $0xb0] sm:$0xff] %v405_v26  ;;  %v392_v31 = vmax.f32 %v270_v27, 0.0  ;;  %v408_v32 = vmax.f32 %v350_v28, 0.0  ;;  %v265_v33 = vadd.f32 %v779_v40, %v264_v29  ;;  %v345_v34 = vadd.f32 %v779_v40, %v344_v30 }
  0xe7   :  { %v557_v35 = vpop.f32.mrf.mxu0  ;;  %v581_v36 = vpop.f32.mrf.mxu1 }
  0xe8   :  { %424 = vst [vmem:[%s912_s3 + $0x48] sm:$0xff] %v392_v31  ;;  %440 = vst [vmem:[%s912_s3 + $0xc8] sm:$0xff] %v408_v32  ;;  %v391_v37 = vmax.f32 %v265_v33, 0.0  ;;  %v407_v38 = vmax.f32 %v345_v34, 0.0  ;;  %v280_v39 = vadd.f32 %v557_v35, %v779_v40  ;;  %v360_v41 = vadd.f32 %v581_v36, %v779_v40 }
  0xe9   :  { %v274_v42 = vpop.f32.mrf.mxu0  ;;  %v354_v43 = vpop.f32.mrf.mxu1 }
  0xea   :  { %423 = vst [vmem:[%s912_s3 + $0x40] sm:$0xff] %v391_v37  ;;  %439 = vst [vmem:[%s912_s3 + $0xc0] sm:$0xff] %v407_v38  ;;  %v394_v44 = vmax.f32 %v280_v39, 0.0  ;;  %v410_v45 = vmax.f32 %v360_v41, 0.0  ;;  %v275_v46 = vadd.f32 %v779_v40, %v274_v42  ;;  %v355_v47 = vadd.f32 %v779_v40, %v354_v43 }
  0xeb   :  { %v560_v48 = vpop.f32.mrf.mxu0  ;;  %v584_v49 = vpop.f32.mrf.mxu1 }
  0xec   :  { %426 = vst [vmem:[%s912_s3 + $0x58] sm:$0xff] %v394_v44  ;;  %442 = vst [vmem:[%s912_s3 + $0xd8] sm:$0xff] %v410_v45  ;;  %v393_v50 = vmax.f32 %v275_v46, 0.0  ;;  %v409_v51 = vmax.f32 %v355_v47, 0.0  ;;  %v290_v52 = vadd.f32 %v560_v48, %v779_v40  ;;  %v370_v53 = vadd.f32 %v584_v49, %v779_v40 }
  0xed   :  { %v284_v54 = vpop.f32.mrf.mxu0  ;;  %v364_v55 = vpop.f32.mrf.mxu1 }
  0xee   :  { %425 = vst [vmem:[%s912_s3 + $0x50] sm:$0xff] %v393_v50  ;;  %441 = vst [vmem:[%s912_s3 + $0xd0] sm:$0xff] %v409_v51  ;;  %v396_v56 = vmax.f32 %v290_v52, 0.0  ;;  %v412_v57 = vmax.f32 %v370_v53, 0.0  ;;  %v285_v58 = vadd.f32 %v779_v40, %v284_v54  ;;  %v365_v59 = vadd.f32 %v779_v40, %v364_v55 }
  0xef   :  { %v563_v60 = vpop.f32.mrf.mxu0  ;;  %v587_v61 = vpop.f32.mrf.mxu1 }
  0xf0   :  { %428 = vst [vmem:[%s912_s3 + $0x68] sm:$0xff] %v396_v56  ;;  %444 = vst [vmem:[%s912_s3 + $0xe8] sm:$0xff] %v412_v57  ;;  %v395_v62 = vmax.f32 %v285_v58, 0.0  ;;  %v411_v63 = vmax.f32 %v365_v59, 0.0  ;;  %v300_v0 = vadd.f32 %v563_v60, %v779_v40  ;;  %v380_v1 = vadd.f32 %v587_v61, %v779_v40 }
  0xf1   :  { %v294_v2 = vpop.f32.mrf.mxu0  ;;  %v374_v3 = vpop.f32.mrf.mxu1 }
  0xf2   :  { %427 = vst [vmem:[%s912_s3 + $0x60] sm:$0xff] %v395_v62  ;;  %443 = vst [vmem:[%s912_s3 + $0xe0] sm:$0xff] %v411_v63  ;;  %v398_v4 = vmax.f32 %v300_v0, 0.0  ;;  %v414_v5 = vmax.f32 %v380_v1, 0.0  ;;  %v295_v6 = vadd.f32 %v779_v40, %v294_v2  ;;  %v375_v7 = vadd.f32 %v779_v40, %v374_v3 }
  0xf4   :  { %430 = vst [vmem:[%s912_s3 + $0x78] sm:$0xff] %v398_v4  ;;  %446 = vst [vmem:[%s912_s3 + $0xf8] sm:$0xff] %v414_v5  ;;  %v397_v8 = vmax.f32 %v295_v6, 0.0  ;;  %v413_v9 = vmax.f32 %v375_v7, 0.0 }
  0xf6   :  { %429 = vst [vmem:[%s912_s3 + $0x70] sm:$0xff] %v397_v8  ;;  %445 = vst [vmem:[%s912_s3 + $0xf0] sm:$0xff] %v413_v9 }

// kernel: forward.6
= control target key start
LH: loop header
LB: loop body
LE: loop exit
PB: predicated region body
PF: predicated region fallthrough
CT: control target
= control target key end

     0   :  { %s1632_s18 = smov 0   ;;  %s2137_s0 = inlined_call_operand.vmem [shape: f32[2,16,128], index: 0, kind: input, shape index: {}]   ;;  %s2138_s1 = inlined_call_operand.vmem [shape: f32[128,128], index: 1, kind: input, shape index: {}]   ;;  %s2139_s2 = inlined_call_operand.vmem [shape: f32[1,128], index: 2, kind: input, shape index: {}]   ;;  %s2140_s3 = inlined_call_operand.vmem [shape: f32[128,128], index: 3, kind: input, shape index: {}]   ;;  %s2141_s4 = inlined_call_operand.vmem [shape: f32[1,128], index: 4, kind: input, shape index: {}]   ;;  %s2142_s5 = inlined_call_operand.vmem [shape: f32[2,4,16,128], index: 5, kind: output, shape index: {}]  }
   0x1 LB: > { %s1119_s19 = sadd.s32 4294967295, %s1600_s18   ;;  %p1123_p0 = scmp.ge.s32.totalorder %s1600_s18, 1  ;;  %s1600_s18 = sphi %s1632_s18, %s15_s18  }
   0x2   : > { %p187_p1 = scmp.lt.s32.totalorder %s1600_s18, 3 }
   0x4   : > { %p188_p2 = pnand %p1123_p0, %p187_p1 }
   0x5   : > { %p215_p3 = scmp.lt.s32.totalorder (!%p188_p2), %s1119_s19, 1 }
   0x6   : > { %191 = sbr.rel (%p188_p2) target bundleno = 1692 (0x69c), region = 40 }
   0xb   : > { %v1643_v0 = vld [vmem:[%s2138_s1 + $0x78] sm:$0xff]  ;;  %v1648_v1 = vld [vmem:[%s2138_s1 + $0x70] sm:$0xff]  ;;  %v1655_v2 = vld [vmem:[%s2138_s1 + $0x68] sm:$0xff]  ;;  %s2144_s19 = smov (!%p215_p3, %s1119_s19), 1 }
   0xc   : > { %1290 = vmatprep.subr.mxu0 %v1643_v0  ;;  %v1664_v3 = vld [vmem:[%s2138_s1 + $0x60] sm:$0xff]  ;;  %s1144_s28 = sshll.u32 %s2144_s19, 4  ;;  %v1676_v4 = vld [vmem:[%s2140_s3 + $0x78] sm:$0xff]  ;;  %v1691_v7 = vld [vmem:[%s2140_s3 + $0x70] sm:$0xff]  ;;  %s1145_s22 = sshll.u32 %s2144_s19, 6 }
   0xd   : > { %1291 = vmatpush3.msra.mxu0 %v1643_v0  ;;  %s1671_s6 = scalar_lea.vmem %s2137_s0, %s1144_s28  ;;  %v1682_v5 = vld [vmem:[%s2138_s1 + $0x58] sm:$0xff]  ;;  %1325 = vmatprep.subr.mxu1 %v1676_v4  ;;  %v1699_v8 = vld [vmem:[%s2138_s1 + $0x50] sm:$0xff]  ;;  %v1705_v9 = vld [vmem:[%s2140_s3 + $0x68] sm:$0xff]  ;;  %s1963_s26 = scalar_lea.vmem %s2142_s5, %s1145_s22 }
   0xe   : > { %1292 = vmatprep.subr.mxu0 %v1648_v1  ;;  %v1685_v6 = vld [vmem:[%s1671_s6] sm:$0xff]  ;;  %1326 = vmatpush3.msra.mxu1 %v1676_v4  ;;  %v1713_v10 = vld [vmem:[%s2138_s1 + $0x48] sm:$0xff]  ;;  %v1733_v13 = vld [vmem:[%s2140_s3 + $0x58] sm:$0xff] }
   0xf   : > { %1293 = vmatpush3.msra.mxu0 %v1648_v1  ;;  %1322 = vmatprep.mubr.f32.mxu0 %v1685_v6  ;;  %v1719_v11 = vld [vmem:[%s2140_s3 + $0x60] sm:$0xff]  ;;  %v1741_v14 = vld [vmem:[%s2138_s1 + $0x38] sm:$0xff]  ;;  %v1747_v15 = vld [vmem:[%s2140_s3 + $0x50] sm:$0xff] }
  0x10   : > { %1294 = vmatprep.subr.mxu0 %v1655_v2  ;;  %1327 = vmatprep.subr.mxu1 %v1691_v7  ;;  %v1727_v12 = vld [vmem:[%s2138_s1 + $0x40] sm:$0xff]  ;;  %v1755_v16 = vld [vmem:[%s2138_s1 + $0x30] sm:$0xff]  ;;  %v1764_v17 = vld [vmem:[%s2138_s1 + $0x28] sm:$0xff] }
  0x11   : > { %1295 = vmatpush3.msra.mxu0 %v1655_v2  ;;  %1328 = vmatpush3.msra.mxu1 %v1691_v7  ;;  %v1772_v18 = vld [vmem:[%s2138_s1 + $0x20] sm:$0xff]  ;;  %v1779_v19 = vld [vmem:[%s2138_s1 + $0x18] sm:$0xff]  ;;  %v1786_v20 = vld [vmem:[%s2138_s1 + $0x10] sm:$0xff] }
  0x12   : > { %1296 = vmatprep.subr.mxu0 %v1664_v3  ;;  %1329 = vmatprep.subr.mxu1 %v1705_v9  ;;  %v1793_v21 = vld [vmem:[%s2138_s1 + $0x8] sm:$0xff]  ;;  %v1800_v22 = vld [vmem:[%s2138_s1] sm:$0xff]  ;;  %v1860_v26 = vld [vmem:[%s2140_s3 + $0x38] sm:$0xff] }
  0x13   : > { %1297 = vmatpush3.msra.mxu0 %v1664_v3  ;;  %1330 = vmatpush3.msra.mxu1 %v1705_v9  ;;  %v1805_v23 = vld [vmem:[%s1671_s6 + $0x8] sm:$0xff]  ;;  %v1853_v25 = vld [vmem:[%s2140_s3 + $0x40] sm:$0xff]  ;;  %v1867_v27 = vld [vmem:[%s2140_s3 + $0x30] sm:$0xff] }
  0x14   : > { %1298 = vmatprep.subr.mxu0 %v1682_v5  ;;  %1331 = vmatprep.subr.mxu1 %v1719_v11  ;;  %v1846_v24 = vld [vmem:[%s2140_s3 + $0x48] sm:$0xff]  ;;  %v1879_v29 = vld [vmem:[%s2140_s3 + $0x20] sm:$0xff]  ;;  %v1886_v30 = vld [vmem:[%s2140_s3 + $0x18] sm:$0xff] }
  0x15   : > { %1299 = vmatpush3.msra.mxu0 %v1682_v5  ;;  %1332 = vmatpush3.msra.mxu1 %v1719_v11  ;;  %v1872_v28 = vld [vmem:[%s2140_s3 + $0x28] sm:$0xff]  ;;  %v1893_v31 = vld [vmem:[%s2140_s3 + $0x10] sm:$0xff]  ;;  %v1907_v33 = vld [vmem:[%s2140_s3] sm:$0xff] }
  0x16   : > { %1300 = vmatprep.subr.mxu0 %v1699_v8  ;;  %1333 = vmatprep.subr.mxu1 %v1733_v13  ;;  %v1900_v32 = vld [vmem:[%s2140_s3 + $0x8] sm:$0xff]  ;;  %v1917_v34 = vld [vmem:[%s2139_s2] ss:$0 sm:$0xff] }
  0x17   : > { %1301 = vmatpush3.msra.mxu0 %v1699_v8  ;;  %1334 = vmatpush3.msra.mxu1 %v1733_v13  ;;  %v1957_v42 = vld [vmem:[%s2141_s4] ss:$0 sm:$0xff] }
  0x18   : > { %1302 = vmatprep.subr.mxu0 %v1713_v10  ;;  %1335 = vmatprep.subr.mxu1 %v1747_v15 }
  0x19   : > { %1303 = vmatpush3.msra.mxu0 %v1713_v10  ;;  %1336 = vmatpush3.msra.mxu1 %v1747_v15 }
  0x1a   : > { %1304 = vmatprep.subr.mxu0 %v1727_v12  ;;  %1337 = vmatprep.subr.mxu1 %v1846_v24 }
  0x1b   : > { %1305 = vmatpush3.msra.mxu0 %v1727_v12  ;;  %1338 = vmatpush3.msra.mxu1 %v1846_v24 }
  0x1c   : > { %1306 = vmatprep.subr.mxu0 %v1741_v14  ;;  %1339 = vmatprep.subr.mxu1 %v1853_v25 }
  0x1d   : > { %1307 = vmatpush3.msra.mxu0 %v1741_v14  ;;  %1340 = vmatpush3.msra.mxu1 %v1853_v25 }
  0x1e   : > { %1308 = vmatprep.subr.mxu0 %v1755_v16  ;;  %1341 = vmatprep.subr.mxu1 %v1860_v26 }
  0x1f   : > { %1309 = vmatpush3.msra.mxu0 %v1755_v16  ;;  %1342 = vmatpush3.msra.mxu1 %v1860_v26 }
  0x20   : > { %1310 = vmatprep.subr.mxu0 %v1764_v17  ;;  %1343 = vmatprep.subr.mxu1 %v1867_v27 }
  0x21   : > { %1311 = vmatpush3.msra.mxu0 %v1764_v17  ;;  %1344 = vmatpush3.msra.mxu1 %v1867_v27 }
  0x22   : > { %1312 = vmatprep.subr.mxu0 %v1772_v18  ;;  %1345 = vmatprep.subr.mxu1 %v1872_v28 }
  0x23   : > { %1313 = vmatpush3.msra.mxu0 %v1772_v18  ;;  %1346 = vmatpush3.msra.mxu1 %v1872_v28 }
  0x24   : > { %1314 = vmatprep.subr.mxu0 %v1779_v19  ;;  %1347 = vmatprep.subr.mxu1 %v1879_v29 }
  0x25   : > { %1315 = vmatpush3.msra.mxu0 %v1779_v19  ;;  %1348 = vmatpush3.msra.mxu1 %v1879_v29 }
  0x26   : > { %1316 = vmatprep.subr.mxu0 %v1786_v20  ;;  %1349 = vmatprep.subr.mxu1 %v1886_v30 }
  0x27   : > { %1317 = vmatpush3.msra.mxu0 %v1786_v20  ;;  %1350 = vmatpush3.msra.mxu1 %v1886_v30 }
  0x28   : > { %1318 = vmatprep.subr.mxu0 %v1793_v21  ;;  %1351 = vmatprep.subr.mxu1 %v1893_v31 }
  0x29   : > { %1319 = vmatpush3.msra.mxu0 %v1793_v21  ;;  %1352 = vmatpush3.msra.mxu1 %v1893_v31 }
  0x2a   : > { %1320 = vmatprep.subr.mxu0 %v1800_v22  ;;  %1353 = vmatprep.subr.mxu1 %v1900_v32 }
  0x2b   : > { %1321 = vmatpush3.msra.mxu0 %v1800_v22  ;;  %1354 = vmatpush3.msra.mxu1 %v1900_v32 }
  0x2c   : > { %1323 = vmatmul.mubr.f32.vlgmr.msra.gmra.mxu0 %v1805_v23  ;;  %1360 = vmatprep.subr.mxu0 %v1643_v0 }
  0x2d   : > { %1361 = vmatpush3.msra.mxu0 %v1643_v0  ;;  %1355 = vmatprep.subr.mxu1 %v1907_v33 }
  0x2e   : > { %1362 = vmatprep.subr.mxu0 %v1648_v1  ;;  %1356 = vmatpush3.msra.mxu1 %v1907_v33 }
  0x2f   : > { %1363 = vmatpush3.msra.mxu0 %v1648_v1  ;;  %1395 = vmatprep.subr.mxu1 %v1676_v4 }
  0x30   : > { %1364 = vmatprep.subr.mxu0 %v1655_v2 }
  0x31   : > { %1365 = vmatpush3.msra.mxu0 %v1655_v2 }
  0x32   : > { %1366 = vmatprep.subr.mxu0 %v1664_v3 }
  0x33   : > { %1367 = vmatpush3.msra.mxu0 %v1664_v3 }
  0x34   : > { %1368 = vmatprep.subr.mxu0 %v1682_v5 }
  0x35   : > { %1369 = vmatpush3.msra.mxu0 %v1682_v5 }
  0x36   : > { %1370 = vmatprep.subr.mxu0 %v1699_v8 }
  0x37   : > { %1371 = vmatpush3.msra.mxu0 %v1699_v8 }
  0x38   : > { %1372 = vmatprep.subr.mxu0 %v1713_v10 }
  0x39   : > { %1373 = vmatpush3.msra.mxu0 %v1713_v10 }
  0x3a   : > { %1374 = vmatprep.subr.mxu0 %v1727_v12 }
  0x3b   : > { %1375 = vmatpush3.msra.mxu0 %v1727_v12 }
  0x3c   : > { %1376 = vmatprep.subr.mxu0 %v1741_v14 }
  0x3d   : > { %1377 = vmatpush3.msra.mxu0 %v1741_v14 }
  0x3e   : > { %1378 = vmatprep.subr.mxu0 %v1755_v16 }
  0x3f   : > { %1379 = vmatpush3.msra.mxu0 %v1755_v16 }
  0x40   : > { %1380 = vmatprep.subr.mxu0 %v1764_v17 }
  0x41   : > { %1381 = vmatpush3.msra.mxu0 %v1764_v17 }
  0x42   : > { %1382 = vmatprep.subr.mxu0 %v1772_v18 }
  0x43   : > { %1383 = vmatpush3.msra.mxu0 %v1772_v18 }
  0x44   : > { %1384 = vmatprep.subr.mxu0 %v1779_v19 }
  0x45   : > { %1385 = vmatpush3.msra.mxu0 %v1779_v19 }
  0x46   : > { %1386 = vmatprep.subr.mxu0 %v1786_v20 }
  0x47   : > { %1387 = vmatpush3.msra.mxu0 %v1786_v20 }
  0x48   : > { %1388 = vmatprep.subr.mxu0 %v1793_v21 }
  0x49   : > { %1389 = vmatpush3.msra.mxu0 %v1793_v21 }
  0x4a   : > { %1390 = vmatprep.subr.mxu0 %v1800_v22 }
  0x4b   : > { %1391 = vmatpush3.msra.mxu0 %v1800_v22 }
  0x4c   : > { %1430 = vmatprep.subr.mxu0 %v1643_v0 }
  0xec   : > { %v1324_v35 = vpop.f32.mrf.mxu0 }
  0xed   : > { %v326_v36 = vadd.f32 %v1324_v35, %v1917_v34 }
  0xee   : > { %v320_v37 = vpop.f32.mrf.mxu0 }
  0xef   : > { %v321_v38 = vadd.f32 %v1917_v34, %v320_v37 }
  0xf1   : > { %1578 = vtanh.f32 %v321_v38 }
  0xf2   : > { %1580 = vtanh.f32 %v326_v36 }
  0xfe   : > { %v1579_v39 = vpop.eup %1578 }
  0xff   : > { %v1581_v40 = vpop.eup %1580  ;;  %1357 = vmatprep.mubr.f32.mxu1 %v1579_v39 }
 0x100   : > { %1358 = vmatmul.mubr.f32.vlgmr.msra.gmra.mxu1 %v1581_v40 }
 0x101   : > { %1396 = vmatpush3.msra.mxu1 %v1676_v4 }
 0x102   : > { %1397 = vmatprep.subr.mxu1 %v1691_v7 }
 0x103   : > { %1398 = vmatpush3.msra.mxu1 %v1691_v7 }
 0x104   : > { %1399 = vmatprep.subr.mxu1 %v1705_v9 }
 0x105   : > { %1400 = vmatpush3.msra.mxu1 %v1705_v9 }
 0x106   : > { %1401 = vmatprep.subr.mxu1 %v1719_v11 }
 0x107   : > { %1402 = vmatpush3.msra.mxu1 %v1719_v11 }
 0x108   : > { %1403 = vmatprep.subr.mxu1 %v1733_v13 }
 0x109   : > { %1404 = vmatpush3.msra.mxu1 %v1733_v13 }
 0x10a   : > { %1405 = vmatprep.subr.mxu1 %v1747_v15 }
 0x10b   : > { %1406 = vmatpush3.msra.mxu1 %v1747_v15 }
 0x10c   : > { %1407 = vmatprep.subr.mxu1 %v1846_v24 }
 0x10d   : > { %1408 = vmatpush3.msra.mxu1 %v1846_v24 }
 0x10e   : > { %1409 = vmatprep.subr.mxu1 %v1853_v25 }
 0x10f   : > { %1410 = vmatpush3.msra.mxu1 %v1853_v25 }
 0x110   : > { %1411 = vmatprep.subr.mxu1 %v1860_v26 }
 0x111   : > { %1412 = vmatpush3.msra.mxu1 %v1860_v26 }
 0x112   : > { %1413 = vmatprep.subr.mxu1 %v1867_v27 }
 0x113   : > { %1414 = vmatpush3.msra.mxu1 %v1867_v27 }
 0x114   : > { %1415 = vmatprep.subr.mxu1 %v1872_v28 }
 0x115   : > { %1416 = vmatpush3.msra.mxu1 %v1872_v28 }
 0x116   : > { %1417 = vmatprep.subr.mxu1 %v1879_v29 }
 0x117   : > { %1418 = vmatpush3.msra.mxu1 %v1879_v29 }
 0x118   : > { %1419 = vmatprep.subr.mxu1 %v1886_v30 }
 0x119   : > { %1420 = vmatpush3.msra.mxu1 %v1886_v30 }
 0x11a   : > { %1421 = vmatprep.subr.mxu1 %v1893_v31 }
 0x11b   : > { %1422 = vmatpush3.msra.mxu1 %v1893_v31 }
 0x11c   : > { %1423 = vmatprep.subr.mxu1 %v1900_v32 }
 0x11d   : > { %1424 = vmatpush3.msra.mxu1 %v1900_v32 }
 0x11e   : > { %1425 = vmatprep.subr.mxu1 %v1907_v33 }
 0x11f   : > { %1426 = vmatpush3.msra.mxu1 %v1907_v33 }
 0x120   : > { %1465 = vmatprep.subr.mxu1 %v1676_v4 }
 0x1c0   : > { %v1359_v41 = vpop.f32.mrf.mxu1 }
 0x1c1   : > { %v423_v43 = vadd.f32 %v1359_v41, %v1805_v23 }
 0x1c2   : > { %v413_v44 = vpop.f32.mrf.mxu1 }
 0x1c3   : > { %v1966_v45 = vadd.f32 %v1957_v42, %v423_v43  ;;  %v422_v46 = vadd.f32 %v413_v44, %v1685_v6 }
 0x1c5   : > { %436 = vst [vmem:[%s1963_s26 + $0x8] sm:$0xff] %v1966_v45  ;;  %v1972_v47 = vadd.f32 %v1957_v42, %v422_v46 }
 0x1c7   : > { %435 = vst [vmem:[%s1963_s26] sm:$0xff] %v1972_v47  ;;  %1392 = vmatprep.mubr.f32.mxu0 %v1972_v47 }
 0x1c8   : > { %1393 = vmatmul.mubr.f32.vlgmr.msra.gmra.mxu0 %v1966_v45 }
 0x1c9   : > { %1431 = vmatpush3.msra.mxu0 %v1643_v0 }
 0x1ca   : > { %1432 = vmatprep.subr.mxu0 %v1648_v1 }
 0x1cb   : > { %1433 = vmatpush3.msra.mxu0 %v1648_v1 }
 0x1cc   : > { %1434 = vmatprep.subr.mxu0 %v1655_v2 }
 0x1cd   : > { %1435 = vmatpush3.msra.mxu0 %v1655_v2 }
 0x1ce   : > { %1436 = vmatprep.subr.mxu0 %v1664_v3 }
 0x1cf   : > { %1437 = vmatpush3.msra.mxu0 %v1664_v3 }
 0x1d0   : > { %1438 = vmatprep.subr.mxu0 %v1682_v5 }
 0x1d1   : > { %1439 = vmatpush3.msra.mxu0 %v1682_v5 }
 0x1d2   : > { %1440 = vmatprep.subr.mxu0 %v1699_v8 }
 0x1d3   : > { %1441 = vmatpush3.msra.mxu0 %v1699_v8 }
 0x1d4   : > { %1442 = vmatprep.subr.mxu0 %v1713_v10 }
 0x1d5   : > { %1443 = vmatpush3.msra.mxu0 %v1713_v10 }
 0x1d6   : > { %1444 = vmatprep.subr.mxu0 %v1727_v12 }
 0x1d7   : > { %1445 = vmatpush3.msra.mxu0 %v1727_v12 }
 0x1d8   : > { %1446 = vmatprep.subr.mxu0 %v1741_v14 }
 0x1d9   : > { %1447 = vmatpush3.msra.mxu0 %v1741_v14 }
 0x1da   : > { %1448 = vmatprep.subr.mxu0 %v1755_v16 }
 0x1db   : > { %1449 = vmatpush3.msra.mxu0 %v1755_v16 }
 0x1dc   : > { %1450 = vmatprep.subr.mxu0 %v1764_v17 }
 0x1dd   : > { %1451 = vmatpush3.msra.mxu0 %v1764_v17 }
 0x1de   : > { %1452 = vmatprep.subr.mxu0 %v1772_v18 }
 0x1df   : > { %1453 = vmatpush3.msra.mxu0 %v1772_v18 }
 0x1e0   : > { %1454 = vmatprep.subr.mxu0 %v1779_v19 }
 0x1e1   : > { %1455 = vmatpush3.msra.mxu0 %v1779_v19 }
 0x1e2   : > { %1456 = vmatprep.subr.mxu0 %v1786_v20 }
 0x1e3   : > { %1457 = vmatpush3.msra.mxu0 %v1786_v20 }
 0x1e4   : > { %1458 = vmatprep.subr.mxu0 %v1793_v21 }
 0x1e5   : > { %1459 = vmatpush3.msra.mxu0 %v1793_v21 }
 0x1e6   : > { %1460 = vmatprep.subr.mxu0 %v1800_v22 }
 0x1e7   : > { %1461 = vmatpush3.msra.mxu0 %v1800_v22 }
 0x1e8   : > { %1500 = vmatprep.subr.mxu0 %v1643_v0 }
 0x288   : > { %v1394_v48 = vpop.f32.mrf.mxu0 }
 0x289   : > { %v534_v49 = vadd.f32 %v1394_v48, %v1917_v34 }
 0x28a   : > { %v528_v50 = vpop.f32.mrf.mxu0 }
 0x28b   : > { %v529_v51 = vadd.f32 %v1917_v34, %v528_v50 }
 0x28d   : > { %1582 = vtanh.f32 %v529_v51 }
 0x28e   : > { %1584 = vtanh.f32 %v534_v49 }
 0x29a   : > { %v1583_v52 = vpop.eup %1582 }
 0x29b   : > { %v1585_v53 = vpop.eup %1584  ;;  %1427 = vmatprep.mubr.f32.mxu1 %v1583_v52 }
 0x29c   : > { %1428 = vmatmul.mubr.f32.vlgmr.msra.gmra.mxu1 %v1585_v53 }
 0x29d   : > { %1466 = vmatpush3.msra.mxu1 %v1676_v4 }
 0x29e   : > { %1467 = vmatprep.subr.mxu1 %v1691_v7 }
 0x29f   : > { %1468 = vmatpush3.msra.mxu1 %v1691_v7 }
 0x2a0   : > { %1469 = vmatprep.subr.mxu1 %v1705_v9 }
 0x2a1   : > { %1470 = vmatpush3.msra.mxu1 %v1705_v9 }
 0x2a2   : > { %1471 = vmatprep.subr.mxu1 %v1719_v11 }
 0x2a3   : > { %1472 = vmatpush3.msra.mxu1 %v1719_v11 }
 0x2a4   : > { %1473 = vmatprep.subr.mxu1 %v1733_v13 }
 0x2a5   : > { %1474 = vmatpush3.msra.mxu1 %v1733_v13 }
 0x2a6   : > { %1475 = vmatprep.subr.mxu1 %v1747_v15 }
 0x2a7   : > { %1476 = vmatpush3.msra.mxu1 %v1747_v15 }
 0x2a8   : > { %1477 = vmatprep.subr.mxu1 %v1846_v24 }
 0x2a9   : > { %1478 = vmatpush3.msra.mxu1 %v1846_v24 }
 0x2aa   : > { %1479 = vmatprep.subr.mxu1 %v1853_v25 }
 0x2ab   : > { %1480 = vmatpush3.msra.mxu1 %v1853_v25 }
 0x2ac   : > { %1481 = vmatprep.subr.mxu1 %v1860_v26 }
 0x2ad   : > { %1482 = vmatpush3.msra.mxu1 %v1860_v26 }
 0x2ae   : > { %1483 = vmatprep.subr.mxu1 %v1867_v27 }
 0x2af   : > { %1484 = vmatpush3.msra.mxu1 %v1867_v27 }
 0x2b0   : > { %1485 = vmatprep.subr.mxu1 %v1872_v28 }
 0x2b1   : > { %1486 = vmatpush3.msra.mxu1 %v1872_v28 }
 0x2b2   : > { %1487 = vmatprep.subr.mxu1 %v1879_v29 }
 0x2b3   : > { %1488 = vmatpush3.msra.mxu1 %v1879_v29 }
 0x2b4   : > { %1489 = vmatprep.subr.mxu1 %v1886_v30 }
 0x2b5   : > { %1490 = vmatpush3.msra.mxu1 %v1886_v30 }
 0x2b6   : > { %1491 = vmatprep.subr.mxu1 %v1893_v31 }
 0x2b7   : > { %1492 = vmatpush3.msra.mxu1 %v1893_v31 }
 0x2b8   : > { %1493 = vmatprep.subr.mxu1 %v1900_v32 }
 0x2b9   : > { %1494 = vmatpush3.msra.mxu1 %v1900_v32 }
 0x2ba   : > { %1495 = vmatprep.subr.mxu1 %v1907_v33 }
 0x2bb   : > { %1496 = vmatpush3.msra.mxu1 %v1907_v33 }
 0x2bc   : > { %1535 = vmatprep.subr.mxu1 %v1676_v4 }
 0x35c   : > { %v1429_v54 = vpop.f32.mrf.mxu1 }
 0x35d   : > { %v631_v55 = vadd.f32 %v1429_v54, %v1966_v45 }
 0x35e   : > { %v621_v56 = vpop.f32.mrf.mxu1 }
 0x35f   : > { %v2046_v57 = vadd.f32 %v1957_v42, %v631_v55  ;;  %v630_v58 = vadd.f32 %v621_v56, %v1972_v47 }
 0x361   : > { %1133 = vst [vmem:[%s1963_s26 + $0x18] sm:$0xff] %v2046_v57  ;;  %v2052_v59 = vadd.f32 %v1957_v42, %v630_v58 }
 0x363   : > { %1132 = vst [vmem:[%s1963_s26 + $0x10] sm:$0xff] %v2052_v59  ;;  %1462 = vmatprep.mubr.f32.mxu0 %v2052_v59 }
 0x364   : > { %1463 = vmatmul.mubr.f32.vlgmr.msra.gmra.mxu0 %v2046_v57 }
 0x365   : > { %1501 = vmatpush3.msra.mxu0 %v1643_v0 }
 0x366   : > { %1502 = vmatprep.subr.mxu0 %v1648_v1 }
 0x367   : > { %1503 = vmatpush3.msra.mxu0 %v1648_v1 }
 0x368   : > { %1504 = vmatprep.subr.mxu0 %v1655_v2 }
 0x369   : > { %1505 = vmatpush3.msra.mxu0 %v1655_v2 }
 0x36a   : > { %1506 = vmatprep.subr.mxu0 %v1664_v3 }
 0x36b   : > { %1507 = vmatpush3.msra.mxu0 %v1664_v3 }
 0x36c   : > { %1508 = vmatprep.subr.mxu0 %v1682_v5 }
 0x36d   : > { %1509 = vmatpush3.msra.mxu0 %v1682_v5 }
 0x36e   : > { %1510 = vmatprep.subr.mxu0 %v1699_v8 }
 0x36f   : > { %1511 = vmatpush3.msra.mxu0 %v1699_v8 }
 0x370   : > { %1512 = vmatprep.subr.mxu0 %v1713_v10 }
 0x371   : > { %1513 = vmatpush3.msra.mxu0 %v1713_v10 }
 0x372   : > { %1514 = vmatprep.subr.mxu0 %v1727_v12 }
 0x373   : > { %1515 = vmatpush3.msra.mxu0 %v1727_v12 }
 0x374   : > { %1516 = vmatprep.subr.mxu0 %v1741_v14 }
 0x375   : > { %1517 = vmatpush3.msra.mxu0 %v1741_v14 }
 0x376   : > { %1518 = vmatprep.subr.mxu0 %v1755_v16 }
 0x377   : > { %1519 = vmatpush3.msra.mxu0 %v1755_v16 }
 0x378   : > { %1520 = vmatprep.subr.mxu0 %v1764_v17 }
 0x379   : > { %1521 = vmatpush3.msra.mxu0 %v1764_v17 }
 0x37a   : > { %1522 = vmatprep.subr.mxu0 %v1772_v18 }
 0x37b   : > { %1523 = vmatpush3.msra.mxu0 %v1772_v18 }
 0x37c   : > { %1524 = vmatprep.subr.mxu0 %v1779_v19 }
 0x37d   : > { %1525 = vmatpush3.msra.mxu0 %v1779_v19 }
 0x37e   : > { %1526 = vmatprep.subr.mxu0 %v1786_v20 }
 0x37f   : > { %1527 = vmatpush3.msra.mxu0 %v1786_v20 }
 0x380   : > { %1528 = vmatprep.subr.mxu0 %v1793_v21 }
 0x381   : > { %1529 = vmatpush3.msra.mxu0 %v1793_v21 }
 0x382   : > { %1530 = vmatprep.subr.mxu0 %v1800_v22 }
 0x383   : > { %1531 = vmatpush3.msra.mxu0 %v1800_v22 }
 0x424   : > { %v1464_v60 = vpop.f32.mrf.mxu0 }
 0x425   : > { %v743_v61 = vadd.f32 %v1464_v60, %v1917_v34 }
 0x426   : > { %v737_v62 = vpop.f32.mrf.mxu0 }
 0x427   : > { %v738_v63 = vadd.f32 %v1917_v34, %v737_v62 }
 0x429   : > { %1586 = vtanh.f32 %v738_v63 }
 0x42a   : > { %1588 = vtanh.f32 %v743_v61 }
 0x436   : > { %v1587_v0 = vpop.eup %1586 }
 0x437   : > { %v1589_v1 = vpop.eup %1588  ;;  %1497 = vmatprep.mubr.f32.mxu1 %v1587_v0 }
 0x438   : > { %1498 = vmatmul.mubr.f32.vlgmr.msra.gmra.mxu1 %v1589_v1 }
 0x439   : > { %1536 = vmatpush3.msra.mxu1 %v1676_v4 }
 0x43a   : > { %1537 = vmatprep.subr.mxu1 %v1691_v7 }
 0x43b   : > { %1538 = vmatpush3.msra.mxu1 %v1691_v7 }
 0x43c   : > { %1539 = vmatprep.subr.mxu1 %v1705_v9 }
 0x43d   : > { %1540 = vmatpush3.msra.mxu1 %v1705_v9 }
 0x43e   : > { %1541 = vmatprep.subr.mxu1 %v1719_v11 }
 0x43f   : > { %1542 = vmatpush3.msra.mxu1 %v1719_v11 }
 0x440   : > { %1543 = vmatprep.subr.mxu1 %v1733_v13 }
 0x441   : > { %1544 = vmatpush3.msra.mxu1 %v1733_v13 }
 0x442   : > { %1545 = vmatprep.subr.mxu1 %v1747_v15 }
 0x443   : > { %1546 = vmatpush3.msra.mxu1 %v1747_v15 }
 0x444   : > { %1547 = vmatprep.subr.mxu1 %v1846_v24 }
 0x445   : > { %1548 = vmatpush3.msra.mxu1 %v1846_v24 }
 0x446   : > { %1549 = vmatprep.subr.mxu1 %v1853_v25 }
 0x447   : > { %1550 = vmatpush3.msra.mxu1 %v1853_v25 }
 0x448   : > { %1551 = vmatprep.subr.mxu1 %v1860_v26 }
 0x449   : > { %1552 = vmatpush3.msra.mxu1 %v1860_v26 }
 0x44a   : > { %1553 = vmatprep.subr.mxu1 %v1867_v27 }
 0x44b   : > { %1554 = vmatpush3.msra.mxu1 %v1867_v27 }
 0x44c   : > { %1555 = vmatprep.subr.mxu1 %v1872_v28 }
 0x44d   : > { %1556 = vmatpush3.msra.mxu1 %v1872_v28 }
 0x44e   : > { %1557 = vmatprep.subr.mxu1 %v1879_v29 }
 0x44f   : > { %1558 = vmatpush3.msra.mxu1 %v1879_v29 }
 0x450   : > { %1559 = vmatprep.subr.mxu1 %v1886_v30 }
 0x451   : > { %1560 = vmatpush3.msra.mxu1 %v1886_v30 }
 0x452   : > { %1561 = vmatprep.subr.mxu1 %v1893_v31 }
 0x453   : > { %1562 = vmatpush3.msra.mxu1 %v1893_v31 }
 0x454   : > { %1563 = vmatprep.subr.mxu1 %v1900_v32 }
 0x455   : > { %1564 = vmatpush3.msra.mxu1 %v1900_v32 }
 0x456   : > { %1565 = vmatprep.subr.mxu1 %v1907_v33 }
 0x457   : > { %1566 = vmatpush3.msra.mxu1 %v1907_v33 }
 0x4f8   : > { %v1499_v2 = vpop.f32.mrf.mxu1 }
 0x4f9   : > { %v840_v3 = vadd.f32 %v1499_v2, %v2046_v57 }
 0x4fa   : > { %v830_v4 = vpop.f32.mrf.mxu1 }
 0x4fb   : > { %v849_v5 = vadd.f32 %v1957_v42, %v840_v3  ;;  %v839_v6 = vadd.f32 %v830_v4, %v2052_v59 }
 0x4fd   : > { %1137 = vst [vmem:[%s1963_s26 + $0x28] sm:$0xff] %v849_v5  ;;  %v848_v7 = vadd.f32 %v1957_v42, %v839_v6 }
 0x4ff   : > { %1136 = vst [vmem:[%s1963_s26 + $0x20] sm:$0xff] %v848_v7  ;;  %1532 = vmatprep.mubr.f32.mxu0 %v848_v7 }
 0x500   : > { %1533 = vmatmul.mubr.f32.vlgmr.msra.gmra.mxu0 %v849_v5 }
 0x5c0   : > { %v1534_v8 = vpop.f32.mrf.mxu0 }
 0x5c1   : > { %v952_v9 = vadd.f32 %v1534_v8, %v1917_v34 }
 0x5c2   : > { %v946_v10 = vpop.f32.mrf.mxu0 }
 0x5c3   : > { %v947_v11 = vadd.f32 %v1917_v34, %v946_v10 }
 0x5c5   : > { %1590 = vtanh.f32 %v947_v11 }
 0x5c6   : > { %1592 = vtanh.f32 %v952_v9 }
 0x5d2   : > { %v1591_v12 = vpop.eup %1590 }
 0x5d3   : > { %v1593_v13 = vpop.eup %1592  ;;  %1567 = vmatprep.mubr.f32.mxu1 %v1591_v12 }
 0x5d4   : > { %1568 = vmatmul.mubr.f32.vlgmr.msra.gmra.mxu1 %v1593_v13 }
 0x694   : > { %v1569_v14 = vpop.f32.mrf.mxu1 }
 0x695   : > { %v1049_v15 = vadd.f32 %v1569_v14, %v849_v5 }
 0x696   : > { %v1039_v16 = vpop.f32.mrf.mxu1 }
 0x697   : > { %v1058_v17 = vadd.f32 %v1957_v42, %v1049_v15  ;;  %v1048_v18 = vadd.f32 %v1039_v16, %v848_v7 }
 0x699   : > { %1141 = vst [vmem:[%s1963_s26 + $0x38] sm:$0xff] %v1058_v17  ;;  %v1057_v19 = vadd.f32 %v1957_v42, %v1048_v18 }
 0x69b   : > { %1140 = vst [vmem:[%s1963_s26 + $0x30] sm:$0xff] %v1057_v19 }
 0x69c PF: > { %s15_s18 = sadd.s32 1, %s1600_s18  }
 0x69d   : > { %p12_p4 = scmp.ge.s32.totalorder %s15_s18, 4  }
 0x69f   :  { %14 = sbr.rel (!%p12_p4) target bundleno = 1 (0x1), region = 73 }

// kernel: forward.8
= control target key start
LH: loop header
LB: loop body
LE: loop exit
PB: predicated region body
PF: predicated region fallthrough
CT: control target
= control target key end

     0   :  { %vm57_vm0 = vcmask 523264   ;;  %s791_s1 = inlined_call_operand.vmem [shape: f32[64,128], index: 1, kind: input, shape index: {}]   ;;  %s792_s0 = inlined_call_operand.vmem [shape: f32[224,64], index: 0, kind: input, shape index: {}]   ;;  %s793_s2 = inlined_call_operand.vmem [shape: f32[1,128], index: 2, kind: input, shape index: {}]   ;;  %s794_s3 = inlined_call_operand.vmem [shape: f32[224,128], index: 3, kind: output, shape index: {}]  }
   0x1   :  { %v49_v0 = vld [vmem:[%s791_s1 + $0x38] sm:$0xff]  ;;  %v48_v1 = vld [vmem:[%s791_s1 + $0x30] sm:$0xff]  ;;  %v47_v2 = vld [vmem:[%s791_s1 + $0x28] sm:$0xff] }
   0x2   :  { %444 = vmatprep.subr.mxu0 %v49_v0  ;;  %502 = vmatprep.subr.mxu1 %v49_v0  ;;  %v46_v3 = vld [vmem:[%s791_s1 + $0x20] sm:$0xff]  ;;  %v45_v4 = vld [vmem:[%s791_s1 + $0x18] sm:$0xff]  ;;  %v44_v5 = vld [vmem:[%s791_s1 + $0x10] sm:$0xff] }
   0x3   :  { %445 = vmatpush3.msra.mxu0 %v49_v0  ;;  %510 = vmatpush3.msra.mxu1 %v49_v0  ;;  %v43_v6 = vld [vmem:[%s791_s1 + $0x8] sm:$0xff]  ;;  %v42_v7 = vld [vmem:[%s791_s1] sm:$0xff]  ;;  %v28_v9 = vld [vmem:[%s792_s0 + $0x70] sm:$0xff] }
   0x4   :  { %446 = vmatprep.subr.mxu0 %v48_v1  ;;  %503 = vmatprep.subr.mxu1 %v48_v1  ;;  %v14_v8 = vld [vmem:[%s792_s0] sm:$0xff]  ;;  %v15_v10 = vld [vmem:[%s792_s0 + $0x8] sm:$0xff]  ;;  %v29_v11 = vld [vmem:[%s792_s0 + $0x78] sm:$0xff] }
   0x5   :  { %447 = vmatpush3.msra.mxu0 %v48_v1  ;;  %511 = vmatpush3.msra.mxu1 %v48_v1  ;;  %v16_v12 = vld [vmem:[%s792_s0 + $0x10] sm:$0xff]  ;;  %v30_v13 = vld [vmem:[%s792_s0 + $0x80] sm:$0xff]  ;;  %v17_v14 = vld [vmem:[%s792_s0 + $0x18] sm:$0xff] }
   0x6   :  { %448 = vmatprep.subr.mxu0 %v47_v2  ;;  %504 = vmatprep.subr.mxu1 %v47_v2  ;;  %v31_v15 = vld [vmem:[%s792_s0 + $0x88] sm:$0xff]  ;;  %v18_v16 = vld [vmem:[%s792_s0 + $0x20] sm:$0xff]  ;;  %v32_v17 = vld [vmem:[%s792_s0 + $0x90] sm:$0xff] }
   0x7   :  { %449 = vmatpush3.msra.mxu0 %v47_v2  ;;  %512 = vmatpush3.msra.mxu1 %v47_v2  ;;  %v19_v18 = vld [vmem:[%s792_s0 + $0x28] sm:$0xff]  ;;  %v33_v19 = vld [vmem:[%s792_s0 + $0x98] sm:$0xff]  ;;  %v20_v20 = vld [vmem:[%s792_s0 + $0x30] sm:$0xff] }
   0x8   :  { %450 = vmatprep.subr.mxu0 %v46_v3  ;;  %505 = vmatprep.subr.mxu1 %v46_v3  ;;  %v34_v21 = vld [vmem:[%s792_s0 + $0xa0] sm:$0xff]  ;;  %v21_v22 = vld [vmem:[%s792_s0 + $0x38] sm:$0xff]  ;;  %v35_v23 = vld [vmem:[%s792_s0 + $0xa8] sm:$0xff] }
   0x9   :  { %451 = vmatpush3.msra.mxu0 %v46_v3  ;;  %513 = vmatpush3.msra.mxu1 %v46_v3  ;;  %v22_v24 = vld [vmem:[%s792_s0 + $0x40] sm:$0xff]  ;;  %v36_v25 = vld [vmem:[%s792_s0 + $0xb0] sm:$0xff]  ;;  %v23_v26 = vld [vmem:[%s792_s0 + $0x48] sm:$0xff] }
   0xa   :  { %452 = vmatprep.subr.mxu0 %v45_v4  ;;  %506 = vmatprep.subr.mxu1 %v45_v4  ;;  %v37_v27 = vld [vmem:[%s792_s0 + $0xb8] sm:$0xff]  ;;  %v24_v28 = vld [vmem:[%s792_s0 + $0x50] sm:$0xff]  ;;  %v38_v29 = vld [vmem:[%s792_s0 + $0xc0] sm:$0xff] }
   0xb   :  { %453 = vmatpush3.msra.mxu0 %v45_v4  ;;  %514 = vmatpush3.msra.mxu1 %v45_v4  ;;  %v25_v30 = vld [vmem:[%s792_s0 + $0x58] sm:$0xff]  ;;  %v39_v31 = vld [vmem:[%s792_s0 + $0xc8] sm:$0xff]  ;;  %v26_v32 = vld [vmem:[%s792_s0 + $0x60] sm:$0xff] }
   0xc   :  { %454 = vmatprep.subr.mxu0 %v44_v5  ;;  %507 = vmatprep.subr.mxu1 %v44_v5  ;;  %v40_v33 = vld [vmem:[%s792_s0 + $0xd0] sm:$0xff]  ;;  %v27_v34 = vld [vmem:[%s792_s0 + $0x68] sm:$0xff]  ;;  %v41_v35 = vld [vmem:[%s792_s0 + $0xd8] sm:$0xff] }
   0xd   :  { %455 = vmatpush3.msra.mxu0 %v44_v5  ;;  %515 = vmatpush3.msra.mxu1 %v44_v5  ;;  %v677_v36 = vld [vmem:[%s793_s2] ss:$0 sm:$0xff] }
   0xe   :  { %456 = vmatprep.subr.mxu0 %v43_v6  ;;  %508 = vmatprep.subr.mxu1 %v43_v6 }
   0xf   :  { %457 = vmatpush3.msra.mxu0 %v43_v6  ;;  %516 = vmatpush3.msra.mxu1 %v43_v6 }
  0x10   :  { %458 = vmatprep.subr.mxu0 %v42_v7  ;;  %509 = vmatprep.subr.mxu1 %v42_v7 }
  0x11   :  { %459 = vmatpush3.msra.mxu0 %v42_v7  ;;  %517 = vmatpush3.msra.mxu1 %v42_v7 }
  0x12   :  { %460 = vmatprep.mubr.msk.f32.mxu0 %vm57_vm0, %v14_v8  ;;  %481 = vmatprep.mubr.msk.f32.mxu1 %vm57_vm0, %v28_v9 }
  0x13   :  { %461 = vmatmul.mubr.msk.f32.vlgmr.msra.gmra.mxu0 %vm57_vm0, %v15_v10  ;;  %482 = vmatmul.mubr.msk.f32.vlgmr.msra.gmra.mxu1 %vm57_vm0, %v29_v11 }
  0x14   :  { %463 = vmatprep.mubr.msk.f32.mxu0 %vm57_vm0, %v16_v12  ;;  %484 = vmatprep.mubr.msk.f32.mxu1 %vm57_vm0, %v30_v13 }
  0x17   :  { %464 = vmatmul.mubr.msk.f32.gmra.mxu0 %vm57_vm0, %v17_v14  ;;  %485 = vmatmul.mubr.msk.f32.gmra.mxu1 %vm57_vm0, %v31_v15 }
  0x18   :  { %466 = vmatprep.mubr.msk.f32.mxu0 %vm57_vm0, %v18_v16  ;;  %487 = vmatprep.mubr.msk.f32.mxu1 %vm57_vm0, %v32_v17 }
  0x1b   :  { %467 = vmatmul.mubr.msk.f32.gmra.mxu0 %vm57_vm0, %v19_v18  ;;  %488 = vmatmul.mubr.msk.f32.gmra.mxu1 %vm57_vm0, %v33_v19 }
  0x1c   :  { %469 = vmatprep.mubr.msk.f32.mxu0 %vm57_vm0, %v20_v20  ;;  %490 = vmatprep.mubr.msk.f32.mxu1 %vm57_vm0, %v34_v21 }
  0x1f   :  { %470 = vmatmul.mubr.msk.f32.gmra.mxu0 %vm57_vm0, %v21_v22  ;;  %491 = vmatmul.mubr.msk.f32.gmra.mxu1 %vm57_vm0, %v35_v23 }
  0x20   :  { %472 = vmatprep.mubr.msk.f32.mxu0 %vm57_vm0, %v22_v24  ;;  %493 = vmatprep.mubr.msk.f32.mxu1 %vm57_vm0, %v36_v25 }
  0x23   :  { %473 = vmatmul.mubr.msk.f32.gmra.mxu0 %vm57_vm0, %v23_v26  ;;  %494 = vmatmul.mubr.msk.f32.gmra.mxu1 %vm57_vm0, %v37_v27 }
  0x24   :  { %475 = vmatprep.mubr.msk.f32.mxu0 %vm57_vm0, %v24_v28  ;;  %496 = vmatprep.mubr.msk.f32.mxu1 %vm57_vm0, %v38_v29 }
  0x27   :  { %476 = vmatmul.mubr.msk.f32.gmra.mxu0 %vm57_vm0, %v25_v30  ;;  %497 = vmatmul.mubr.msk.f32.gmra.mxu1 %vm57_vm0, %v39_v31 }
  0x28   :  { %478 = vmatprep.mubr.msk.f32.mxu0 %vm57_vm0, %v26_v32  ;;  %499 = vmatprep.mubr.msk.f32.mxu1 %vm57_vm0, %v40_v33 }
  0x2b   :  { %479 = vmatmul.mubr.msk.f32.gmra.mxu0 %vm57_vm0, %v27_v34  ;;  %500 = vmatmul.mubr.msk.f32.gmra.mxu1 %vm57_vm0, %v41_v35 }
  0xd3   :  { %v462_v37 = vpop.f32.mrf.mxu0  ;;  %v483_v38 = vpop.f32.mrf.mxu1 }
  0xd4   :  { %v214_v39 = vadd.f32 %v462_v37, %v677_v36  ;;  %v284_v40 = vadd.f32 %v483_v38, %v677_v36 }
  0xd5   :  { %v208_v41 = vpop.f32.mrf.mxu0  ;;  %v278_v42 = vpop.f32.mrf.mxu1 }
  0xd6   :  { %348 = vst [vmem:[%s794_s3 + $0x8] sm:$0xff] %v214_v39  ;;  %362 = vst [vmem:[%s794_s3 + $0x78] sm:$0xff] %v284_v40  ;;  %v209_v43 = vadd.f32 %v677_v36, %v208_v41  ;;  %v279_v44 = vadd.f32 %v677_v36, %v278_v42 }
  0xd7   :  { %v465_v45 = vpop.f32.mrf.mxu0  ;;  %v486_v46 = vpop.f32.mrf.mxu1 }
  0xd8   :  { %347 = vst [vmem:[%s794_s3] sm:$0xff] %v209_v43  ;;  %361 = vst [vmem:[%s794_s3 + $0x70] sm:$0xff] %v279_v44  ;;  %v224_v47 = vadd.f32 %v465_v45, %v677_v36  ;;  %v294_v48 = vadd.f32 %v486_v46, %v677_v36 }
  0xd9   :  { %v218_v49 = vpop.f32.mrf.mxu0  ;;  %v288_v50 = vpop.f32.mrf.mxu1 }
  0xda   :  { %350 = vst [vmem:[%s794_s3 + $0x18] sm:$0xff] %v224_v47  ;;  %364 = vst [vmem:[%s794_s3 + $0x88] sm:$0xff] %v294_v48  ;;  %v219_v51 = vadd.f32 %v677_v36, %v218_v49  ;;  %v289_v52 = vadd.f32 %v677_v36, %v288_v50 }
  0xdb   :  { %v468_v53 = vpop.f32.mrf.mxu0  ;;  %v489_v54 = vpop.f32.mrf.mxu1 }
  0xdc   :  { %349 = vst [vmem:[%s794_s3 + $0x10] sm:$0xff] %v219_v51  ;;  %363 = vst [vmem:[%s794_s3 + $0x80] sm:$0xff] %v289_v52  ;;  %v234_v55 = vadd.f32 %v468_v53, %v677_v36  ;;  %v304_v56 = vadd.f32 %v489_v54, %v677_v36 }
  0xdd   :  { %v228_v57 = vpop.f32.mrf.mxu0  ;;  %v298_v58 = vpop.f32.mrf.mxu1 }
  0xde   :  { %352 = vst [vmem:[%s794_s3 + $0x28] sm:$0xff] %v234_v55  ;;  %366 = vst [vmem:[%s794_s3 + $0x98] sm:$0xff] %v304_v56  ;;  %v229_v59 = vadd.f32 %v677_v36, %v228_v57  ;;  %v299_v60 = vadd.f32 %v677_v36, %v298_v58 }
  0xdf   :  { %v471_v61 = vpop.f32.mrf.mxu0  ;;  %v492_v62 = vpop.f32.mrf.mxu1 }
  0xe0   :  { %351 = vst [vmem:[%s794_s3 + $0x20] sm:$0xff] %v229_v59  ;;  %365 = vst [vmem:[%s794_s3 + $0x90] sm:$0xff] %v299_v60  ;;  %v244_v63 = vadd.f32 %v471_v61, %v677_v36  ;;  %v314_v0 = vadd.f32 %v492_v62, %v677_v36 }
  0xe1   :  { %v238_v1 = vpop.f32.mrf.mxu0  ;;  %v308_v2 = vpop.f32.mrf.mxu1 }
  0xe2   :  { %354 = vst [vmem:[%s794_s3 + $0x38] sm:$0xff] %v244_v63  ;;  %368 = vst [vmem:[%s794_s3 + $0xa8] sm:$0xff] %v314_v0  ;;  %v239_v3 = vadd.f32 %v677_v36, %v238_v1  ;;  %v309_v4 = vadd.f32 %v677_v36, %v308_v2 }
  0xe3   :  { %v474_v5 = vpop.f32.mrf.mxu0  ;;  %v495_v6 = vpop.f32.mrf.mxu1 }
  0xe4   :  { %353 = vst [vmem:[%s794_s3 + $0x30] sm:$0xff] %v239_v3  ;;  %367 = vst [vmem:[%s794_s3 + $0xa0] sm:$0xff] %v309_v4  ;;  %v254_v7 = vadd.f32 %v474_v5, %v677_v36  ;;  %v324_v8 = vadd.f32 %v495_v6, %v677_v36 }
  0xe5   :  { %v248_v9 = vpop.f32.mrf.mxu0  ;;  %v318_v10 = vpop.f32.mrf.mxu1 }
  0xe6   :  { %356 = vst [vmem:[%s794_s3 + $0x48] sm:$0xff] %v254_v7  ;;  %370 = vst [vmem:[%s794_s3 + $0xb8] sm:$0xff] %v324_v8  ;;  %v249_v11 = vadd.f32 %v677_v36, %v248_v9  ;;  %v319_v12 = vadd.f32 %v677_v36, %v318_v10 }
  0xe7   :  { %v477_v13 = vpop.f32.mrf.mxu0  ;;  %v498_v14 = vpop.f32.mrf.mxu1 }
  0xe8   :  { %355 = vst [vmem:[%s794_s3 + $0x40] sm:$0xff] %v249_v11  ;;  %369 = vst [vmem:[%s794_s3 + $0xb0] sm:$0xff] %v319_v12  ;;  %v264_v15 = vadd.f32 %v477_v13, %v677_v36  ;;  %v334_v16 = vadd.f32 %v498_v14, %v677_v36 }
  0xe9   :  { %v258_v17 = vpop.f32.mrf.mxu0  ;;  %v328_v18 = vpop.f32.mrf.mxu1 }
  0xea   :  { %358 = vst [vmem:[%s794_s3 + $0x58] sm:$0xff] %v264_v15  ;;  %372 = vst [vmem:[%s794_s3 + $0xc8] sm:$0xff] %v334_v16  ;;  %v259_v19 = vadd.f32 %v677_v36, %v258_v17  ;;  %v329_v20 = vadd.f32 %v677_v36, %v328_v18 }
  0xeb   :  { %v480_v21 = vpop.f32.mrf.mxu0  ;;  %v501_v22 = vpop.f32.mrf.mxu1 }
  0xec   :  { %357 = vst [vmem:[%s794_s3 + $0x50] sm:$0xff] %v259_v19  ;;  %371 = vst [vmem:[%s794_s3 + $0xc0] sm:$0xff] %v329_v20  ;;  %v274_v23 = vadd.f32 %v480_v21, %v677_v36  ;;  %v344_v24 = vadd.f32 %v501_v22, %v677_v36 }
  0xed   :  { %v268_v25 = vpop.f32.mrf.mxu0  ;;  %v338_v26 = vpop.f32.mrf.mxu1 }
  0xee   :  { %360 = vst [vmem:[%s794_s3 + $0x68] sm:$0xff] %v274_v23  ;;  %374 = vst [vmem:[%s794_s3 + $0xd8] sm:$0xff] %v344_v24  ;;  %v269_v27 = vadd.f32 %v677_v36, %v268_v25  ;;  %v339_v28 = vadd.f32 %v677_v36, %v338_v26 }
  0xf0   :  { %359 = vst [vmem:[%s794_s3 + $0x60] sm:$0xff] %v269_v27  ;;  %373 = vst [vmem:[%s794_s3 + $0xd0] sm:$0xff] %v339_v28 }

// kernel: forward.7
= control target key start
LH: loop header
LB: loop body
LE: loop exit
PB: predicated region body
PF: predicated region fallthrough
CT: control target
= control target key end

     0   :  { %s9383_s24 = smov 0   ;;  %s10731_s0 = inlined_call_operand.vmem [shape: f32[2,7,16,32], index: 0, kind: input, shape index: {}]   ;;  %s10732_s1 = inlined_call_operand.vmem [shape: f32[2,16,16], index: 1, kind: input, shape index: {}]   ;;  %s10733_s2 = inlined_call_operand.vmem [shape: f32[2,32,128], index: 2, kind: input, shape index: {}]   ;;  %s10734_s3 = inlined_call_operand.vmem [shape: f32[2,1,128], index: 3, kind: input, shape index: {}]   ;;  %s10735_s4 = inlined_call_operand.vmem [shape: f32[2,32,64], index: 4, kind: input, shape index: {}]   ;;  %s10736_s5 = inlined_call_operand.vmem [shape: f32[2,32,32], index: 5, kind: input, shape index: {}]   ;;  %s10737_s6 = inlined_call_operand.vmem [shape: f32[32,128], index: 6, kind: input, shape index: {}]   ;;  %s10738_s7 = inlined_call_operand.vmem [shape: f32[2,7,16,128], index: 7, kind: output, shape index: {}]  }
   0x1 LB: > { %s7673_s25 = sadd.s32 4294967295, %s9337_s24   ;;  %p7677_p0 = scmp.ge.s32.totalorder %s9337_s24, 1  ;;  %s9337_s24 = sphi %s9383_s24, %s17_s24  }
   0x2   : > { %p237_p1 = scmp.lt.s32.totalorder %s9337_s24, 3 }
   0x4   : > { %p238_p2 = pnand %p7677_p0, %p237_p1 }
   0x5   : > { %p269_p3 = scmp.lt.s32.totalorder (!%p238_p2), %s7673_s25, 1  ;;  %s9340_s30 = smov (!%p238_p2), 32  }
   0x6   : > { %241 = sbr.rel (%p238_p2) target bundleno = 14128 (0x3730), region = 48  ;;  %s9341_s19 = smov (!%p238_p2), 96  }
   0x7   : > { %s9342_s20 = smov (!%p238_p2), 64  }
   0xb   : > { %vm279_vm0 = vcmask 261120   ;;  %v9394_v0 = vld [vmem:[%s10732_s1] sm:$0xff]  ;;  %vm290_vm1 = vcmask 130048   ;;  %v9339_v1 = vmov 0.0   ;;  %s10740_s25 = smov (!%p269_p3, %s7673_s25), 1  ;;  %v9424_v6 = vld [vmem:[%s10732_s1 + $0x8] sm:$0xff] }
   0xc   : > { %281 = vst.msk [vmem:[#allocation2 + $0x8] sm:$0xff] %vm279_vm0, %v9339_v1  ;;  %280 = vst.msk [vmem:[#allocation2] sm:$0xff] %vm279_vm0, %v9339_v1  ;;  %8417 = vmatprep.mubr.msk.f32.mxu0 %vm290_vm1, %v9394_v0  ;;  %8424 = vmatprep.mubr.msk.f32.mxu1 %vm290_vm1, %v9394_v0  ;;  %s9148_s28 = smul.u32 112, %s10740_s25  ;;  %v9430_v7 = vld [vmem:[%s10733_s2 + $0x18] sm:$0xff]  ;;  %v9444_v9 = vld [vmem:[%s10733_s2 + $0x10] sm:$0xff] }
   0xd   : > { %282 = vst.msk [vmem:[#allocation2 + $0x10] sm:$0xff] %vm279_vm0, %v9339_v1  ;;  %283 = vst.msk [vmem:[#allocation2 + $0x18] sm:$0xff] %vm279_vm0, %v9339_v1  ;;  %v9436_v8 = vld [vmem:[%s10735_s4 + $0x18] sm:$0xff]  ;;  %v9452_v10 = vld [vmem:[%s10735_s4 + $0x10] sm:$0xff] }
   0xe   : > { %s9412_s8 = scalar_lea.vmem %s10731_s0, %s9148_s28  ;;  %v9464_v11 = vld [vmem:[%s10733_s2 + $0x8] sm:$0xff]  ;;  %v9477_v13 = vld [vmem:[%s10733_s2] sm:$0xff]  ;;  %v9498_v19 = vld [vmem:[%s10736_s5 + $0x18] sm:$0xff]  ;;  %s9757_s11 = scalar_lea.vmem %s10738_s7, %s9148_s28 }
   0xf   : > { %v285_v2 = vld [vmem:[%s9412_s8 + $0x8] sm:$0xff]  ;;  %v284_v3 = vld [vmem:[%s9412_s8] sm:$0xff]  ;;  %v9503_v20 = vld [vmem:[%s10736_s5 + $0x10] sm:$0xff] }
  0x10   : > { %8413 = vmatprep.subr.mxu0 %v285_v2  ;;  %v9470_v12 = vld [vmem:[%s10735_s4 + $0x8] sm:$0xff]  ;;  %v9484_v14 = vld [vmem:[%s10735_s4] sm:$0xff]  ;;  %v9539_v52 = vld [vmem:[%s10732_s1 + $0x10] sm:$0xff] }
  0x11   : > { %8414 = vmatpush3.msra.mxu0 %v285_v2  ;;  %v9512_v21 = vld [vmem:[%s10734_s3] ss:$0 sm:$0xff]  ;;  %v9519_v36 = vld [vmem:[%s10736_s5 + $0x8] sm:$0xff]  ;;  %v9546_v54 = vld [vmem:[%s10733_s2 + $0x38] sm:$0xff] }
  0x12   : > { %8415 = vmatprep.subr.mxu0 %v284_v3  ;;  %v9525_v37 = vld [vmem:[%s10736_s5] sm:$0xff]  ;;  %v9551_v55 = vld [vmem:[%s10733_s2 + $0x30] sm:$0xff] }
  0x13   : > { %v9416_v4 = vld [vmem:[#allocation2 + $0x8] sm:$0xff]  ;;  %v9418_v5 = vld [vmem:[#allocation2] sm:$0xff]  ;;  %8416 = vmatpush3.msra.mxu0 %v284_v3 }
  0x14   : > { %8420 = vmatprep.subr.mxu1 %v9416_v4  ;;  %8418 = vmatmul.mubr.msk.f32.vlgmr.msra.gmra.mxu0 %vm290_vm1, %v9424_v6 }
  0x15   : > { %8421 = vmatpush3.msra.mxu1 %v9416_v4  ;;  %8427 = vmatprep.subr.mxu0 %v9430_v7 }
  0x16   : > { %8422 = vmatprep.subr.mxu1 %v9418_v5  ;;  %8428 = vmatpush3.msra.mxu0 %v9430_v7 }
  0x17   : > { %8423 = vmatpush3.msra.mxu1 %v9418_v5  ;;  %8429 = vmatprep.subr.mxu0 %v9444_v9 }
  0x18   : > { %8425 = vmatmul.mubr.msk.f32.vlgmr.msra.gmra.mxu1 %vm290_vm1, %v9424_v6  ;;  %8438 = vmatprep.subr.mxu1 %v9436_v8 }
  0x19   : > { %8439 = vmatpush3.msra.mxu1 %v9436_v8  ;;  %8430 = vmatpush3.msra.mxu0 %v9444_v9 }
  0x1a   : > { %8440 = vmatprep.subr.mxu1 %v9452_v10  ;;  %8431 = vmatprep.subr.mxu0 %v9464_v11 }
  0x1b   : > { %8441 = vmatpush3.msra.mxu1 %v9452_v10  ;;  %8432 = vmatpush3.msra.mxu0 %v9464_v11 }
  0x1c   : > { %8442 = vmatprep.subr.mxu1 %v9470_v12  ;;  %8433 = vmatprep.subr.mxu0 %v9477_v13 }
  0x1d   : > { %8443 = vmatpush3.msra.mxu1 %v9470_v12  ;;  %8434 = vmatpush3.msra.mxu0 %v9477_v13 }
  0x1e   : > { %8444 = vmatprep.subr.mxu1 %v9484_v14  ;;  %8449 = vmatprep.subr.mxu0 %v9498_v19 }
  0x1f   : > { %8445 = vmatpush3.msra.mxu1 %v9484_v14 }
  0xd4   : > { %v8419_v15 = vpop.f32.mrf.mxu0 }
  0xd6   : > { %v363_v17 = vpop.f32.mrf.mxu0 }
  0xd7   : > { %8435 = vmatprep.mubr.msk.f32.mxu0 %vm279_vm0, %v363_v17  ;;  %v9592_v17 = vld [vmem:[%s10733_s2 + $0x28] sm:$0xff] }
  0xd8   : > { %v8426_v16 = vpop.f32.mrf.mxu1  ;;  %8436 = vmatmul.mubr.msk.f32.vlgmr.msra.gmra.mxu0 %vm279_vm0, %v8419_v15  ;;  %v9565_v15 = vld [vmem:[%s10732_s1 + $0x18] sm:$0xff] }
  0xd9   : > { %8450 = vmatpush3.msra.mxu0 %v9498_v19 }
  0xda   : > { %v438_v18 = vpop.f32.mrf.mxu1  ;;  %8451 = vmatprep.subr.mxu0 %v9503_v20 }
  0xdb   : > { %638 = vrot.lane.b32.xlu0 %v438_v18, %s9340_s30  ;;  %8446 = vmatprep.mubr.msk.f32.mxu1 %vm279_vm0, %v438_v18  ;;  %v9597_v18 = vld [vmem:[%s10735_s4 + $0x30] sm:$0xff] }
  0xdc   : > { %8447 = vmatmul.mubr.msk.f32.vlgmr.msra.gmra.mxu1 %vm279_vm0, %v8426_v16  ;;  %8452 = vmatpush3.msra.mxu0 %v9503_v20 }
  0xdd   : > { %8453 = vmatprep.subr.mxu0 %v9519_v36  ;;  %8464 = vmatprep.mubr.msk.f32.mxu1 %vm290_vm1, %v9539_v52 }
  0xde   : > { %8454 = vmatpush3.msra.mxu0 %v9519_v36 }
  0xdf   : > { %640 = vrot.lane.b32.xlu0 %v8426_v16, %s9340_s30  ;;  %8455 = vmatprep.subr.mxu0 %v9525_v37  ;;  %v9567_v16 = vld [vmem:[#allocation2 + $0x18] sm:$0xff] }
  0xe0   : > { %8456 = vmatpush3.msra.mxu0 %v9525_v37 }
  0xe1   : > { %8474 = vmatprep.subr.mxu0 %v9546_v54 }
 0x14d   : > { %v639_v38 = vpop.permute.xlu0 %638 }
 0x151   : > { %v641_v42 = vpop.permute.xlu0 %640 }
 0x198   : > { %v8437_v22 = vpop.f32.mrf.mxu0 }
 0x199   : > { %v536_v23 = vadd.f32 %v8437_v22, %v9512_v21  ;;  %v9605_v22 = vld [vmem:[%s10733_s2 + $0x20] sm:$0xff] }
 0x19a   : > { %v530_v25 = vpop.f32.mrf.mxu0 }
 0x19b   : > { %v531_v27 = vadd.f32 %v9512_v21, %v530_v25  ;;  %v9626_v25 = vld [vmem:[%s10737_s6 + $0x18] sm:$0xff] }
 0x19c   : > { %v8448_v24 = vpop.f32.mrf.mxu1 }
 0x19d   : > { %v625_v26 = vadd.f32 %v8448_v24, %v536_v23  ;;  %v9619_v24 = vld [vmem:[%s10735_s4 + $0x20] sm:$0xff] }
 0x19e   : > { %v615_v28 = vpop.f32.mrf.mxu1 }
 0x19f   : > { %v7690_v29 = vmul.f32 -1.442695, %v625_v26  ;;  %v624_v30 = vadd.f32 %v615_v28, %v531_v27 }
 0x1a1   : > { %9161 = vpow2.f32 %v7690_v29  ;;  %v7689_v31 = vmul.f32 -1.442695, %v624_v30  ;;  %v9638_v30 = vld [vmem:[%s10737_s6 + $0x10] sm:$0xff] }
 0x1a3   : > { %9163 = vpow2.f32 %v7689_v31  ;;  %v9645_v31 = vld [vmem:[%s10737_s6 + $0x8] sm:$0xff] }
 0x1ae   : > { %v9162_v32 = vpop.eup %9161 }
 0x1af   : > { %v633_v34 = vadd.f32 1.0, %v9162_v32  ;;  %v9652_v32 = vld [vmem:[%s10737_s6] sm:$0xff] }
 0x1b0   : > { %v9164_v33 = vpop.eup %9163 }
 0x1b1   : > { %v632_v35 = vadd.f32 1.0, %v9164_v33 }
 0x1b3   : > { %9165 = vrcp.f32 %v632_v35  ;;  %v9669_v35 = vld [vmem:[%s10736_s5 + $0x30] sm:$0xff] }
 0x1b4   : > { %9167 = vrcp.f32 %v633_v34  ;;  %v9664_v34 = vld [vmem:[%s10736_s5 + $0x38] sm:$0xff] }
 0x1c0   : > { %v9166_v39 = vpop.eup %9165 }
 0x1c1   : > { %v644_v40 = vmul.f32 %v9166_v39, %v639_v38  ;;  %v9168_v41 = vpop.eup %9167  ;;  %v747_v61 = vsub.f32 1.0, %v9166_v39  ;;  %v745_v1 = vmul.f32 %v9166_v39, %v9418_v5  ;;  %v9581_v5 = vld [vmem:[%s10735_s4 + $0x38] sm:$0xff]  ;;  %v9676_v38 = vld [vmem:[%s10736_s5 + $0x28] sm:$0xff] }
 0x1c2   : > { %v645_v43 = vmul.f32 %v9168_v41, %v641_v42  ;;  %v748_v57 = vsub.f32 1.0, %v9168_v41  ;;  %v746_v59 = vmul.f32 %v9168_v41, %v9416_v4  ;;  %v9570_v4 = vld [vmem:[#allocation2 + $0x10] sm:$0xff] }
 0x1c3   : > { %652 = vrot.lane.b32.xlu1 %v644_v40, %s9341_s19  ;;  %v9685_v40 = vld [vmem:[%s10734_s3 + $0x1] ss:$0 sm:$0xff] }
 0x1c7   : > { %654 = vrot.lane.b32.xlu1 %v645_v43, %s9341_s19 }
 0x235   : > { %v653_v44 = vpop.permute.xlu1 %652 }
 0x236   : > { %8457 = vmatprep.mubr.msk.f32.mxu0 %vm279_vm0, %v653_v44 }
 0x239   : > { %v655_v45 = vpop.permute.xlu1 %654 }
 0x23a   : > { %8458 = vmatmul.mubr.msk.f32.vlgmr.msra.gmra.mxu0 %vm279_vm0, %v655_v45 }
 0x23b   : > { %8475 = vmatpush3.msra.mxu0 %v9546_v54 }
 0x23c   : > { %8476 = vmatprep.subr.mxu0 %v9551_v55 }
 0x23d   : > { %8477 = vmatpush3.msra.mxu0 %v9551_v55 }
 0x23e   : > { %8478 = vmatprep.subr.mxu0 %v9592_v17 }
 0x23f   : > { %8479 = vmatpush3.msra.mxu0 %v9592_v17 }
 0x240   : > { %8480 = vmatprep.subr.mxu0 %v9605_v22 }
 0x241   : > { %8481 = vmatpush3.msra.mxu0 %v9605_v22 }
 0x242   : > { %8496 = vmatprep.subr.mxu0 %v9664_v34 }
 0x2fa   : > { %v8459_v46 = vpop.f32.mrf.mxu0 }
 0x2fb   : > { %739 = vrot.lane.b32.xlu0 %v8459_v46, %s9342_s20 }
 0x2fc   : > { %v726_v47 = vpop.f32.mrf.mxu0 }
 0x2fd   : > { %737 = vrot.lane.b32.xlu1 %v726_v47, %s9342_s20 }
 0x36d   : > { %v740_v48 = vpop.permute.xlu0 %739 }
 0x36e   : > { %v744_v49 = vadd.f32 %v740_v48, %v536_v23  ;;  %v9612_v23 = vld [vmem:[%s10735_s4 + $0x28] sm:$0xff] }
 0x36f   : > { %v738_v50 = vpop.permute.xlu1 %737 }
 0x370   : > { %9169 = vtanh.f32 %v744_v49  ;;  %v743_v51 = vadd.f32 %v738_v50, %v531_v27 }
 0x372   : > { %9171 = vtanh.f32 %v743_v51 }
 0x37d   : > { %v9170_v53 = vpop.eup %9169 }
 0x37e   : > { %755 = vrot.lane.b32.xlu0 %v9170_v53, %s9342_s20 }
 0x37f   : > { %v9172_v56 = vpop.eup %9171 }
 0x380   : > { %753 = vrot.lane.b32.xlu1 %v9172_v56, %s9342_s20 }
 0x3f0   : > { %v756_v58 = vpop.permute.xlu0 %755 }
 0x3f1   : > { %v760_v60 = vmul.f32 %v756_v58, %v748_v57  ;;  %v9692_v57 = vld [vmem:[%s10736_s5 + $0x20] sm:$0xff] }
 0x3f2   : > { %v754_v62 = vpop.permute.xlu1 %753 }
 0x3f3   : > { %v762_v63 = vadd.f32 %v760_v60, %v746_v59  ;;  %v759_v2 = vmul.f32 %v754_v62, %v747_v61 }
 0x3f5   : > { %764 = vst.msk [vmem:[#allocation2 + $0x8] sm:$0xff] %vm279_vm0, %v762_v63  ;;  %v761_v3 = vadd.f32 %v759_v2, %v745_v1  ;;  %8460 = vmatprep.subr.mxu1 %v762_v63 }
 0x3f6   : > { %8461 = vmatpush3.msra.mxu1 %v762_v63 }
 0x3f7   : > { %763 = vst.msk [vmem:[#allocation2] sm:$0xff] %vm279_vm0, %v761_v3  ;;  %8462 = vmatprep.subr.mxu1 %v761_v3 }
 0x3f8   : > { %8463 = vmatpush3.msra.mxu1 %v761_v3 }
 0x3f9   : > { %8465 = vmatmul.mubr.msk.f32.vlgmr.msra.gmra.mxu1 %vm290_vm1, %v9565_v15  ;;  %8467 = vmatprep.subr.mxu1 %v9567_v16 }
 0x3fa   : > { %8468 = vmatpush3.msra.mxu1 %v9567_v16  ;;  %8471 = vmatprep.mubr.msk.f32.mxu1 %vm290_vm1, %v9539_v52 }
 0x3fb   : > { %8469 = vmatprep.subr.mxu1 %v9570_v4 }
 0x3fc   : > { %8470 = vmatpush3.msra.mxu1 %v9570_v4  ;;  %v9658_v33 = vld [vmem:[#allocation2 + $0x8] sm:$0xff] }
 0x3fd   : > { %8472 = vmatmul.mubr.msk.f32.vlgmr.msra.gmra.mxu1 %vm290_vm1, %v9565_v15  ;;  %8485 = vmatprep.subr.mxu1 %v9581_v5 }
 0x3fe   : > { %8486 = vmatpush3.msra.mxu1 %v9581_v5 }
 0x3ff   : > { %8487 = vmatprep.subr.mxu1 %v9597_v18 }
 0x400   : > { %8488 = vmatpush3.msra.mxu1 %v9597_v18 }
 0x401   : > { %8489 = vmatprep.subr.mxu1 %v9612_v23 }
 0x402   : > { %8490 = vmatpush3.msra.mxu1 %v9612_v23 }
 0x403   : > { %8491 = vmatprep.subr.mxu1 %v9619_v24 }
 0x404   : > { %8492 = vmatpush3.msra.mxu1 %v9619_v24 }
 0x405   : > { %8507 = vmatprep.subr.mxu1 %v9626_v25 }
 0x4b9   : > { %v8466_v26 = vpop.f32.mrf.mxu1 }
 0x4bb   : > { %v843_v27 = vpop.f32.mrf.mxu1 }
 0x4bc   : > { %8482 = vmatprep.mubr.msk.f32.mxu0 %vm279_vm0, %v843_v27 }
 0x4bd   : > { %v8473_v28 = vpop.f32.mrf.mxu1  ;;  %8483 = vmatmul.mubr.msk.f32.vlgmr.msra.gmra.mxu0 %vm279_vm0, %v8466_v26 }
 0x4be   : > { %1123 = vrot.lane.b32.xlu1 %v8473_v28, %s9340_s30  ;;  %8497 = vmatpush3.msra.mxu0 %v9664_v34 }
 0x4bf   : > { %v918_v29 = vpop.f32.mrf.mxu1  ;;  %8498 = vmatprep.subr.mxu0 %v9669_v35 }
 0x4c0   : > { %1121 = vrot.lane.b32.xlu0 %v918_v29, %s9340_s30  ;;  %8493 = vmatprep.mubr.msk.f32.mxu1 %vm279_vm0, %v918_v29 }
 0x4c1   : > { %8494 = vmatmul.mubr.msk.f32.vlgmr.msra.gmra.mxu1 %vm279_vm0, %v8473_v28  ;;  %8499 = vmatpush3.msra.mxu0 %v9669_v35 }
 0x4c2   : > { %8508 = vmatpush3.msra.mxu1 %v9626_v25  ;;  %8500 = vmatprep.subr.mxu0 %v9676_v38 }
 0x4c3   : > { %8509 = vmatprep.subr.mxu1 %v9638_v30  ;;  %8501 = vmatpush3.msra.mxu0 %v9676_v38 }
 0x4c4   : > { %8510 = vmatpush3.msra.mxu1 %v9638_v30  ;;  %8502 = vmatprep.subr.mxu0 %v9692_v57 }
 0x4c5   : > { %8511 = vmatprep.subr.mxu1 %v9645_v31  ;;  %8503 = vmatpush3.msra.mxu0 %v9692_v57 }
 0x4c6   : > { %8512 = vmatpush3.msra.mxu1 %v9645_v31 }
 0x4c7   : > { %8513 = vmatprep.subr.mxu1 %v9652_v32 }
 0x4c8   : > { %8514 = vmatpush3.msra.mxu1 %v9652_v32 }
 0x4c9   : > { %8525 = vmatprep.subr.mxu1 %v9658_v33 }
 0x530   : > { %v1124_v59 = vpop.permute.xlu1 %1123 }
 0x532   : > { %v1122_v62 = vpop.permute.xlu0 %1121 }
 0x57d   : > { %v8484_v39 = vpop.f32.mrf.mxu0 }
 0x57e   : > { %v1018_v42 = vadd.f32 %v8484_v39, %v9685_v40 }
 0x57f   : > { %v1012_v41 = vpop.f32.mrf.mxu0 }
 0x580   : > { %v1013_v44 = vadd.f32 %v9685_v40, %v1012_v41  ;;  %v7724_v41 = vld [vmem:[%s9412_s8 + $0x18] sm:$0xff] }
 0x581   : > { %v8495_v43 = vpop.f32.mrf.mxu1  ;;  %8518 = vmatprep.subr.mxu0 %v7724_v41 }
 0x582   : > { %v1108_v45 = vadd.f32 %v8495_v43, %v1018_v42  ;;  %v7723_v43 = vld [vmem:[%s9412_s8 + $0x10] sm:$0xff] }
 0x583   : > { %v1098_v46 = vpop.f32.mrf.mxu1 }
 0x584   : > { %v7714_v47 = vmul.f32 -1.442695, %v1108_v45  ;;  %v1107_v48 = vadd.f32 %v1098_v46, %v1013_v44 }
 0x586   : > { %9173 = vpow2.f32 %v7714_v47  ;;  %v7713_v49 = vmul.f32 -1.442695, %v1107_v48 }
 0x588   : > { %9175 = vpow2.f32 %v7713_v49 }
 0x593   : > { %v9174_v50 = vpop.eup %9173 }
 0x594   : > { %v1116_v51 = vadd.f32 1.0, %v9174_v50 }
 0x595   : > { %v9176_v53 = vpop.eup %9175 }
 0x596   : > { %9177 = vrcp.f32 %v1116_v51  ;;  %v1115_v56 = vadd.f32 1.0, %v9176_v53 }
 0x598   : > { %9179 = vrcp.f32 %v1115_v56 }
 0x5a3   : > { %v9178_v58 = vpop.eup %9177 }
 0x5a4   : > { %v1128_v60 = vmul.f32 %v9178_v58, %v1124_v59  ;;  %v1232_v45 = vsub.f32 1.0, %v9178_v58  ;;  %v1230_v47 = vmul.f32 %v9178_v58, %v9567_v16 }
 0x5a5   : > { %v9180_v61 = vpop.eup %9179 }
 0x5a6   : > { %1138 = vrot.lane.b32.xlu1 %v1128_v60, %s9341_s19  ;;  %v1127_v63 = vmul.f32 %v9180_v61, %v1122_v62  ;;  %v1231_v49 = vsub.f32 1.0, %v9180_v61  ;;  %v1229_v53 = vmul.f32 %v9180_v61, %v9570_v4  ;;  %v9726_v60 = vld [vmem:[#allocation2] sm:$0xff] }
 0x5a8   : > { %1136 = vrot.lane.b32.xlu0 %v1127_v63, %s9341_s19 }
 0x618   : > { %v1139_v2 = vpop.permute.xlu1 %1138 }
 0x61a   : > { %v1137_v1 = vpop.permute.xlu0 %1136 }
 0x61b   : > { %8504 = vmatprep.mubr.msk.f32.mxu0 %vm279_vm0, %v1137_v1 }
 0x61c   : > { %8505 = vmatmul.mubr.msk.f32.vlgmr.msra.gmra.mxu0 %vm279_vm0, %v1139_v2 }
 0x61d   : > { %8522 = vmatprep.mubr.msk.f32.mxu0 %vm290_vm1, %v9394_v0  ;;  %8519 = vmatpush3.msra.mxu0 %v7724_v41 }
 0x61e   : > { %8520 = vmatprep.subr.mxu0 %v7723_v43 }
 0x61f   : > { %8521 = vmatpush3.msra.mxu0 %v7723_v43 }
 0x620   : > { %8523 = vmatmul.mubr.msk.f32.vlgmr.msra.gmra.mxu0 %vm290_vm1, %v9424_v6  ;;  %8532 = vmatprep.subr.mxu0 %v9430_v7 }
 0x621   : > { %8533 = vmatpush3.msra.mxu0 %v9430_v7 }
 0x622   : > { %8534 = vmatprep.subr.mxu0 %v9444_v9 }
 0x623   : > { %8535 = vmatpush3.msra.mxu0 %v9444_v9 }
 0x624   : > { %8536 = vmatprep.subr.mxu0 %v9464_v11 }
 0x625   : > { %8537 = vmatpush3.msra.mxu0 %v9464_v11 }
 0x626   : > { %8538 = vmatprep.subr.mxu0 %v9477_v13 }
 0x627   : > { %8539 = vmatpush3.msra.mxu0 %v9477_v13 }
 0x628   : > { %8554 = vmatprep.subr.mxu0 %v9498_v19 }
 0x6dc   : > { %v8506_v3 = vpop.f32.mrf.mxu0 }
 0x6dd   : > { %1223 = vrot.lane.b32.xlu1 %v8506_v3, %s9342_s20 }
 0x6de   : > { %v1210_v26 = vpop.f32.mrf.mxu0 }
 0x6df   : > { %1221 = vrot.lane.b32.xlu0 %v1210_v26, %s9342_s20 }
 0x6e0   : > { %v8524_v16 = vpop.f32.mrf.mxu0 }
 0x6e2   : > { %v1415_v4 = vpop.f32.mrf.mxu0 }
 0x6e3   : > { %8540 = vmatprep.mubr.msk.f32.mxu0 %vm279_vm0, %v1415_v4 }
 0x6e4   : > { %8541 = vmatmul.mubr.msk.f32.vlgmr.msra.gmra.mxu0 %vm279_vm0, %v8524_v16 }
 0x6e5   : > { %8555 = vmatpush3.msra.mxu0 %v9498_v19 }
 0x6e6   : > { %8556 = vmatprep.subr.mxu0 %v9503_v20 }
 0x6e7   : > { %8557 = vmatpush3.msra.mxu0 %v9503_v20 }
 0x6e8   : > { %8558 = vmatprep.subr.mxu0 %v9519_v36 }
 0x6e9   : > { %8559 = vmatpush3.msra.mxu0 %v9519_v36 }
 0x6ea   : > { %8560 = vmatprep.subr.mxu0 %v9525_v37 }
 0x6eb   : > { %8561 = vmatpush3.msra.mxu0 %v9525_v37 }
 0x6ec   : > { %8579 = vmatprep.subr.mxu0 %v9546_v54 }
 0x74f   : > { %v1224_v27 = vpop.permute.xlu1 %1223 }
 0x750   : > { %v1228_v28 = vadd.f32 %v1224_v27, %v1018_v42 }
 0x751   : > { %v1222_v29 = vpop.permute.xlu0 %1221 }
 0x752   : > { %9181 = vtanh.f32 %v1228_v28  ;;  %v1227_v39 = vadd.f32 %v1222_v29, %v1013_v44 }
 0x754   : > { %9183 = vtanh.f32 %v1227_v39 }
 0x75f   : > { %v9182_v42 = vpop.eup %9181 }
 0x760   : > { %1239 = vrot.lane.b32.xlu1 %v9182_v42, %s9342_s20 }
 0x761   : > { %v9184_v44 = vpop.eup %9183 }
 0x762   : > { %1237 = vrot.lane.b32.xlu0 %v9184_v44, %s9342_s20 }
 0x7a4   : > { %v8542_v1 = vpop.f32.mrf.mxu0 }
 0x7a5   : > { %v1588_v3 = vadd.f32 %v8542_v1, %v9512_v21 }
 0x7a6   : > { %v1582_v2 = vpop.f32.mrf.mxu0 }
 0x7a7   : > { %v1583_v27 = vadd.f32 %v9512_v21, %v1582_v2 }
 0x7d2   : > { %v1240_v46 = vpop.permute.xlu1 %1239 }
 0x7d3   : > { %v1244_v48 = vmul.f32 %v1240_v46, %v1232_v45 }
 0x7d4   : > { %v1238_v50 = vpop.permute.xlu0 %1237 }
 0x7d5   : > { %v1246_v51 = vadd.f32 %v1244_v48, %v1230_v47  ;;  %v1243_v56 = vmul.f32 %v1238_v50, %v1231_v49 }
 0x7d7   : > { %1248 = vst.msk [vmem:[#allocation2 + $0x18] sm:$0xff] %vm279_vm0, %v1246_v51  ;;  %v1245_v59 = vadd.f32 %v1243_v56, %v1229_v53 }
 0x7d9   : > { %1247 = vst.msk [vmem:[#allocation2 + $0x10] sm:$0xff] %vm279_vm0, %v1245_v59  ;;  %8515 = vmatprep.mubr.msk.f32.mxu1 %vm279_vm0, %v1245_v59 }
 0x7da   : > { %8516 = vmatmul.mubr.msk.f32.vlgmr.msra.gmra.mxu1 %vm279_vm0, %v1246_v51 }
 0x7db   : > { %8526 = vmatpush3.msra.mxu1 %v9658_v33  ;;  %8529 = vmatprep.mubr.msk.f32.mxu1 %vm290_vm1, %v9394_v0 }
 0x7dc   : > { %8527 = vmatprep.subr.mxu1 %v9726_v60 }
 0x7dd   : > { %8528 = vmatpush3.msra.mxu1 %v9726_v60 }
 0x7de   : > { %8530 = vmatmul.mubr.msk.f32.vlgmr.msra.gmra.mxu1 %vm290_vm1, %v9424_v6  ;;  %8543 = vmatprep.subr.mxu1 %v9436_v8 }
 0x7df   : > { %8544 = vmatpush3.msra.mxu1 %v9436_v8 }
 0x7e0   : > { %8545 = vmatprep.subr.mxu1 %v9452_v10 }
 0x7e1   : > { %8546 = vmatpush3.msra.mxu1 %v9452_v10 }
 0x7e2   : > { %8547 = vmatprep.subr.mxu1 %v9470_v12 }
 0x7e3   : > { %8548 = vmatpush3.msra.mxu1 %v9470_v12 }
 0x7e4   : > { %8549 = vmatprep.subr.mxu1 %v9484_v14 }
 0x7e5   : > { %8550 = vmatpush3.msra.mxu1 %v9484_v14 }
 0x89a   : > { %v8517_v58 = vpop.f32.mrf.mxu1 }
 0x89b   : > { %1335 = vst [vmem:[%s9757_s11 + $0x8] sm:$0xff] %v8517_v58 }
 0x89c   : > { %v1325_v61 = vpop.f32.mrf.mxu1 }
 0x89d   : > { %1334 = vst [vmem:[%s9757_s11] sm:$0xff] %v1325_v61 }
 0x89e   : > { %v8531_v62 = vpop.f32.mrf.mxu1 }
 0x89f   : > { %1692 = vrot.lane.b32.xlu1 %v8531_v62, %s9340_s30 }
 0x8a0   : > { %v1490_v63 = vpop.f32.mrf.mxu1 }
 0x8a1   : > { %1690 = vrot.lane.b32.xlu0 %v1490_v63, %s9340_s30  ;;  %8551 = vmatprep.mubr.msk.f32.mxu1 %vm279_vm0, %v1490_v63 }
 0x8a2   : > { %8552 = vmatmul.mubr.msk.f32.vlgmr.msra.gmra.mxu1 %vm279_vm0, %v8531_v62 }
 0x8a3   : > { %8569 = vmatprep.mubr.msk.f32.mxu1 %vm290_vm1, %v9539_v52 }
 0x911   : > { %v1693_v48 = vpop.permute.xlu1 %1692 }
 0x913   : > { %v1691_v51 = vpop.permute.xlu0 %1690 }
 0x962   : > { %v8553_v26 = vpop.f32.mrf.mxu1 }
 0x963   : > { %v1677_v28 = vadd.f32 %v8553_v26, %v1588_v3 }
 0x964   : > { %v1667_v29 = vpop.f32.mrf.mxu1 }
 0x965   : > { %v7735_v39 = vmul.f32 -1.442695, %v1677_v28  ;;  %v1676_v41 = vadd.f32 %v1667_v29, %v1583_v27 }
 0x967   : > { %9185 = vpow2.f32 %v7735_v39  ;;  %v7734_v43 = vmul.f32 -1.442695, %v1676_v41 }
 0x969   : > { %9187 = vpow2.f32 %v7734_v43 }
 0x974   : > { %v9186_v42 = vpop.eup %9185 }
 0x975   : > { %v1685_v44 = vadd.f32 1.0, %v9186_v42 }
 0x976   : > { %v9188_v45 = vpop.eup %9187 }
 0x977   : > { %9189 = vrcp.f32 %v1685_v44  ;;  %v1684_v46 = vadd.f32 1.0, %v9188_v45  ;;  %v9789_v45 = vld [vmem:[#allocation2 + $0x18] sm:$0xff] }
 0x979   : > { %9191 = vrcp.f32 %v1684_v46 }
 0x984   : > { %v9190_v47 = vpop.eup %9189 }
 0x985   : > { %v1697_v49 = vmul.f32 %v9190_v47, %v1693_v48  ;;  %v1800_v26 = vsub.f32 1.0, %v9190_v47  ;;  %v1798_v29 = vmul.f32 %v9190_v47, %v9658_v33  ;;  %v9795_v33 = vld [vmem:[#allocation2 + $0x10] sm:$0xff] }
 0x986   : > { %v9192_v50 = vpop.eup %9191 }
 0x987   : > { %1706 = vrot.lane.b32.xlu1 %v1697_v49, %s9341_s19  ;;  %v1696_v53 = vmul.f32 %v9192_v50, %v1691_v51  ;;  %v1799_v41 = vsub.f32 1.0, %v9192_v50 }
 0x989   : > { %1704 = vrot.lane.b32.xlu0 %v1696_v53, %s9341_s19 }
 0x9f9   : > { %v1707_v59 = vpop.permute.xlu1 %1706 }
 0x9fb   : > { %v1705_v56 = vpop.permute.xlu0 %1704 }
 0x9fc   : > { %8562 = vmatprep.mubr.msk.f32.mxu0 %vm279_vm0, %v1705_v56 }
 0x9fd   : > { %8563 = vmatmul.mubr.msk.f32.vlgmr.msra.gmra.mxu0 %vm279_vm0, %v1707_v59 }
 0x9fe   : > { %8580 = vmatpush3.msra.mxu0 %v9546_v54 }
 0x9ff   : > { %8581 = vmatprep.subr.mxu0 %v9551_v55 }
 0xa00   : > { %8582 = vmatpush3.msra.mxu0 %v9551_v55 }
 0xa01   : > { %8583 = vmatprep.subr.mxu0 %v9592_v17 }
 0xa02   : > { %8584 = vmatpush3.msra.mxu0 %v9592_v17 }
 0xa03   : > { %8585 = vmatprep.subr.mxu0 %v9605_v22 }
 0xa04   : > { %8586 = vmatpush3.msra.mxu0 %v9605_v22 }
 0xa05   : > { %8601 = vmatprep.subr.mxu0 %v9664_v34 }
 0xabd   : > { %v8564_v16 = vpop.f32.mrf.mxu0 }
 0xabe   : > { %1791 = vrot.lane.b32.xlu0 %v8564_v16, %s9342_s20 }
 0xabf   : > { %v1778_v4 = vpop.f32.mrf.mxu0 }
 0xac0   : > { %1789 = vrot.lane.b32.xlu1 %v1778_v4, %s9342_s20 }
 0xb30   : > { %v1792_v58 = vpop.permute.xlu0 %1791 }
 0xb31   : > { %v1796_v61 = vadd.f32 %v1792_v58, %v1588_v3  ;;  %v1797_v3 = vmul.f32 %v9192_v50, %v9726_v60 }
 0xb32   : > { %v1790_v62 = vpop.permute.xlu1 %1789 }
 0xb33   : > { %9193 = vtanh.f32 %v1796_v61  ;;  %v1795_v63 = vadd.f32 %v1790_v62, %v1583_v27 }
 0xb35   : > { %9195 = vtanh.f32 %v1795_v63 }
 0xb40   : > { %v9194_v1 = vpop.eup %9193 }
 0xb41   : > { %1807 = vrot.lane.b32.xlu0 %v9194_v1, %s9342_s20 }
 0xb42   : > { %v9196_v2 = vpop.eup %9195 }
 0xb43   : > { %1805 = vrot.lane.b32.xlu1 %v9196_v2, %s9342_s20 }
 0xbb3   : > { %v1808_v28 = vpop.permute.xlu0 %1807 }
 0xbb4   : > { %v1812_v39 = vmul.f32 %v1808_v28, %v1800_v26 }
 0xbb5   : > { %v1806_v43 = vpop.permute.xlu1 %1805 }
 0xbb6   : > { %v1814_v42 = vadd.f32 %v1812_v39, %v1798_v29  ;;  %v1811_v44 = vmul.f32 %v1806_v43, %v1799_v41 }
 0xbb8   : > { %1816 = vst.msk [vmem:[#allocation2 + $0x8] sm:$0xff] %vm279_vm0, %v1814_v42  ;;  %v1813_v27 = vadd.f32 %v1811_v44, %v1797_v3  ;;  %8565 = vmatprep.subr.mxu1 %v1814_v42 }
 0xbb9   : > { %8566 = vmatpush3.msra.mxu1 %v1814_v42 }
 0xbba   : > { %1815 = vst.msk [vmem:[#allocation2] sm:$0xff] %vm279_vm0, %v1813_v27  ;;  %8567 = vmatprep.subr.mxu1 %v1813_v27 }
 0xbbb   : > { %8568 = vmatpush3.msra.mxu1 %v1813_v27 }
 0xbbc   : > { %8570 = vmatmul.mubr.msk.f32.vlgmr.msra.gmra.mxu1 %vm290_vm1, %v9565_v15  ;;  %8572 = vmatprep.subr.mxu1 %v9789_v45 }
 0xbbd   : > { %8573 = vmatpush3.msra.mxu1 %v9789_v45  ;;  %8576 = vmatprep.mubr.msk.f32.mxu1 %vm290_vm1, %v9539_v52 }
 0xbbe   : > { %8574 = vmatprep.subr.mxu1 %v9795_v33 }
 0xbbf   : > { %8575 = vmatpush3.msra.mxu1 %v9795_v33  ;;  %v9832_v49 = vld [vmem:[#allocation2 + $0x8] sm:$0xff] }
 0xbc0   : > { %8577 = vmatmul.mubr.msk.f32.vlgmr.msra.gmra.mxu1 %vm290_vm1, %v9565_v15  ;;  %8590 = vmatprep.subr.mxu1 %v9581_v5 }
 0xbc1   : > { %8591 = vmatpush3.msra.mxu1 %v9581_v5 }
 0xbc2   : > { %8592 = vmatprep.subr.mxu1 %v9597_v18 }
 0xbc3   : > { %8593 = vmatpush3.msra.mxu1 %v9597_v18 }
 0xbc4   : > { %8594 = vmatprep.subr.mxu1 %v9612_v23 }
 0xbc5   : > { %8595 = vmatpush3.msra.mxu1 %v9612_v23 }
 0xbc6   : > { %8596 = vmatprep.subr.mxu1 %v9619_v24 }
 0xbc7   : > { %8597 = vmatpush3.msra.mxu1 %v9619_v24 }
 0xbc8   : > { %8612 = vmatprep.subr.mxu1 %v9626_v25 }
 0xc7c   : > { %v8571_v60 = vpop.f32.mrf.mxu1 }
 0xc7e   : > { %v1893_v46 = vpop.f32.mrf.mxu1 }
 0xc7f   : > { %8587 = vmatprep.mubr.msk.f32.mxu0 %vm279_vm0, %v1893_v46 }
 0xc80   : > { %v8578_v47 = vpop.f32.mrf.mxu1  ;;  %8588 = vmatmul.mubr.msk.f32.vlgmr.msra.gmra.mxu0 %vm279_vm0, %v8571_v60 }
 0xc81   : > { %2170 = vrot.lane.b32.xlu1 %v8578_v47, %s9340_s30  ;;  %8602 = vmatpush3.msra.mxu0 %v9664_v34 }
 0xc82   : > { %v1968_v48 = vpop.f32.mrf.mxu1  ;;  %8603 = vmatprep.subr.mxu0 %v9669_v35 }
 0xc83   : > { %2168 = vrot.lane.b32.xlu0 %v1968_v48, %s9340_s30  ;;  %8598 = vmatprep.mubr.msk.f32.mxu1 %vm279_vm0, %v1968_v48 }
 0xc84   : > { %8599 = vmatmul.mubr.msk.f32.vlgmr.msra.gmra.mxu1 %vm279_vm0, %v8578_v47  ;;  %8604 = vmatpush3.msra.mxu0 %v9669_v35 }
 0xc85   : > { %8613 = vmatpush3.msra.mxu1 %v9626_v25  ;;  %8605 = vmatprep.subr.mxu0 %v9676_v38 }
 0xc86   : > { %8614 = vmatprep.subr.mxu1 %v9638_v30  ;;  %8606 = vmatpush3.msra.mxu0 %v9676_v38 }
 0xc87   : > { %8615 = vmatpush3.msra.mxu1 %v9638_v30  ;;  %8607 = vmatprep.subr.mxu0 %v9692_v57 }
 0xc88   : > { %8616 = vmatprep.subr.mxu1 %v9645_v31  ;;  %8608 = vmatpush3.msra.mxu0 %v9692_v57 }
 0xc89   : > { %8617 = vmatpush3.msra.mxu1 %v9645_v31 }
 0xc8a   : > { %8618 = vmatprep.subr.mxu1 %v9652_v32 }
 0xc8b   : > { %8619 = vmatpush3.msra.mxu1 %v9652_v32 }
 0xc8c   : > { %8630 = vmatprep.subr.mxu1 %v9832_v49 }
 0xcf3   : > { %v2171_v29 = vpop.permute.xlu1 %2170 }
 0xcf5   : > { %v2169_v43 = vpop.permute.xlu0 %2168 }
 0xd40   : > { %v8589_v50 = vpop.f32.mrf.mxu0 }
 0xd41   : > { %v2066_v53 = vadd.f32 %v8589_v50, %v9685_v40 }
 0xd42   : > { %v2060_v51 = vpop.f32.mrf.mxu0 }
 0xd43   : > { %v2061_v59 = vadd.f32 %v9685_v40, %v2060_v51  ;;  %v7771_v51 = vld [vmem:[%s9412_s8 + $0x28] sm:$0xff] }
 0xd44   : > { %v8600_v56 = vpop.f32.mrf.mxu1  ;;  %8623 = vmatprep.subr.mxu0 %v7771_v51 }
 0xd45   : > { %v2155_v16 = vadd.f32 %v8600_v56, %v2066_v53  ;;  %v7770_v56 = vld [vmem:[%s9412_s8 + $0x20] sm:$0xff] }
 0xd46   : > { %v2145_v4 = vpop.f32.mrf.mxu1 }
 0xd47   : > { %v7759_v58 = vmul.f32 -1.442695, %v2155_v16  ;;  %v2154_v61 = vadd.f32 %v2145_v4, %v2061_v59 }
 0xd49   : > { %9197 = vpow2.f32 %v7759_v58  ;;  %v7758_v62 = vmul.f32 -1.442695, %v2154_v61 }
 0xd4b   : > { %9199 = vpow2.f32 %v7758_v62 }
 0xd56   : > { %v9198_v63 = vpop.eup %9197 }
 0xd57   : > { %v2163_v1 = vadd.f32 1.0, %v9198_v63 }
 0xd58   : > { %v9200_v2 = vpop.eup %9199 }
 0xd59   : > { %9201 = vrcp.f32 %v2163_v1  ;;  %v2162_v26 = vadd.f32 1.0, %v9200_v2  ;;  %v9867_v1 = vld [vmem:[#allocation2] sm:$0xff] }
 0xd5b   : > { %9203 = vrcp.f32 %v2162_v26 }
 0xd66   : > { %v9202_v28 = vpop.eup %9201 }
 0xd67   : > { %v2175_v39 = vmul.f32 %v9202_v28, %v2171_v29 }
 0xd68   : > { %v9204_v41 = vpop.eup %9203 }
 0xd69   : > { %2184 = vrot.lane.b32.xlu1 %v2175_v39, %s9341_s19  ;;  %v2174_v42 = vmul.f32 %v9204_v41, %v2169_v43  ;;  %v2277_v58 = vsub.f32 1.0, %v9204_v41  ;;  %v2275_v62 = vmul.f32 %v9204_v41, %v9795_v33 }
 0xd6b   : > { %2182 = vrot.lane.b32.xlu0 %v2174_v42, %s9341_s19 }
 0xddb   : > { %v2185_v44 = vpop.permute.xlu1 %2184 }
 0xddd   : > { %v2183_v3 = vpop.permute.xlu0 %2182 }
 0xdde   : > { %8609 = vmatprep.mubr.msk.f32.mxu0 %vm279_vm0, %v2183_v3 }
 0xddf   : > { %8610 = vmatmul.mubr.msk.f32.vlgmr.msra.gmra.mxu0 %vm279_vm0, %v2185_v44 }
 0xde0   : > { %8627 = vmatprep.mubr.msk.f32.mxu0 %vm290_vm1, %v9394_v0  ;;  %8624 = vmatpush3.msra.mxu0 %v7771_v51 }
 0xde1   : > { %8625 = vmatprep.subr.mxu0 %v7770_v56 }
 0xde2   : > { %8626 = vmatpush3.msra.mxu0 %v7770_v56 }
 0xde3   : > { %8628 = vmatmul.mubr.msk.f32.vlgmr.msra.gmra.mxu0 %vm290_vm1, %v9424_v6  ;;  %8637 = vmatprep.subr.mxu0 %v9430_v7 }
 0xde4   : > { %8638 = vmatpush3.msra.mxu0 %v9430_v7  ;;  %v2278_v7 = vsub.f32 1.0, %v9202_v28 }
 0xde5   : > { %8639 = vmatprep.subr.mxu0 %v9444_v9 }
 0xde6   : > { %8640 = vmatpush3.msra.mxu0 %v9444_v9  ;;  %v2276_v9 = vmul.f32 %v9202_v28, %v9789_v45 }
 0xde7   : > { %8641 = vmatprep.subr.mxu0 %v9464_v11 }
 0xde8   : > { %8642 = vmatpush3.msra.mxu0 %v9464_v11 }
 0xde9   : > { %8643 = vmatprep.subr.mxu0 %v9477_v13 }
 0xdea   : > { %8644 = vmatpush3.msra.mxu0 %v9477_v13 }
 0xdeb   : > { %8659 = vmatprep.subr.mxu0 %v9498_v19 }
 0xe9f   : > { %v8611_v27 = vpop.f32.mrf.mxu0 }
 0xea0   : > { %2269 = vrot.lane.b32.xlu1 %v8611_v27, %s9342_s20 }
 0xea1   : > { %v2256_v60 = vpop.f32.mrf.mxu0 }
 0xea2   : > { %2267 = vrot.lane.b32.xlu0 %v2256_v60, %s9342_s20 }
 0xf12   : > { %v2270_v46 = vpop.permute.xlu1 %2269 }
 0xf13   : > { %v2274_v47 = vadd.f32 %v2270_v46, %v2066_v53 }
 0xf14   : > { %v2268_v48 = vpop.permute.xlu0 %2267 }
 0xf15   : > { %9205 = vtanh.f32 %v2274_v47  ;;  %v2273_v50 = vadd.f32 %v2268_v48, %v2061_v59 }
 0xf17   : > { %9207 = vtanh.f32 %v2273_v50 }
 0xf22   : > { %v9206_v53 = vpop.eup %9205 }
 0xf23   : > { %2285 = vrot.lane.b32.xlu1 %v9206_v53, %s9342_s20 }
 0xf24   : > { %v9208_v59 = vpop.eup %9207 }
 0xf25   : > { %2283 = vrot.lane.b32.xlu0 %v9208_v59, %s9342_s20 }
 0xf95   : > { %v2286_v16 = vpop.permute.xlu1 %2285 }
 0xf96   : > { %v2290_v4 = vmul.f32 %v2286_v16, %v2278_v7 }
 0xf97   : > { %v2284_v61 = vpop.permute.xlu0 %2283 }
 0xf98   : > { %v2292_v11 = vadd.f32 %v2290_v4, %v2276_v9  ;;  %v2289_v63 = vmul.f32 %v2284_v61, %v2277_v58 }
 0xf9a   : > { %2294 = vst.msk [vmem:[#allocation2 + $0x18] sm:$0xff] %vm279_vm0, %v2292_v11  ;;  %v2291_v13 = vadd.f32 %v2289_v63, %v2275_v62 }
 0xf9c   : > { %2293 = vst.msk [vmem:[#allocation2 + $0x10] sm:$0xff] %vm279_vm0, %v2291_v13  ;;  %8620 = vmatprep.mubr.msk.f32.mxu1 %vm279_vm0, %v2291_v13 }
 0xf9d   : > { %8621 = vmatmul.mubr.msk.f32.vlgmr.msra.gmra.mxu1 %vm279_vm0, %v2292_v11 }
 0xf9e   : > { %8631 = vmatpush3.msra.mxu1 %v9832_v49  ;;  %8634 = vmatprep.mubr.msk.f32.mxu1 %vm290_vm1, %v9394_v0  ;;  %v8629_v0 = vpop.f32.mrf.mxu0 }
 0xf9f   : > { %8632 = vmatprep.subr.mxu1 %v9867_v1 }
 0xfa0   : > { %8633 = vmatpush3.msra.mxu1 %v9867_v1 }
 0xfa1   : > { %8635 = vmatmul.mubr.msk.f32.vlgmr.msra.gmra.mxu1 %vm290_vm1, %v9424_v6  ;;  %8648 = vmatprep.subr.mxu1 %v9436_v8  ;;  %v2462_v6 = vpop.f32.mrf.mxu0  ;;  %v9923_v13 = vld [vmem:[#allocation2 + $0x18] sm:$0xff] }
 0xfa2   : > { %8649 = vmatpush3.msra.mxu1 %v9436_v8  ;;  %8645 = vmatprep.mubr.msk.f32.mxu0 %vm279_vm0, %v2462_v6 }
 0xfa3   : > { %8650 = vmatprep.subr.mxu1 %v9452_v10  ;;  %8646 = vmatmul.mubr.msk.f32.vlgmr.msra.gmra.mxu0 %vm279_vm0, %v8629_v0 }
 0xfa4   : > { %8651 = vmatpush3.msra.mxu1 %v9452_v10  ;;  %8660 = vmatpush3.msra.mxu0 %v9498_v19 }
 0xfa5   : > { %8652 = vmatprep.subr.mxu1 %v9470_v12  ;;  %8661 = vmatprep.subr.mxu0 %v9503_v20 }
 0xfa6   : > { %8653 = vmatpush3.msra.mxu1 %v9470_v12  ;;  %8662 = vmatpush3.msra.mxu0 %v9503_v20 }
 0xfa7   : > { %8654 = vmatprep.subr.mxu1 %v9484_v14  ;;  %8663 = vmatprep.subr.mxu0 %v9519_v36 }
 0xfa8   : > { %8655 = vmatpush3.msra.mxu1 %v9484_v14  ;;  %8664 = vmatpush3.msra.mxu0 %v9519_v36 }
 0xfa9   : > { %8665 = vmatprep.subr.mxu0 %v9525_v37 }
 0xfaa   : > { %8666 = vmatpush3.msra.mxu0 %v9525_v37 }
 0xfab   : > { %8684 = vmatprep.subr.mxu0 %v9546_v54 }
0x105d   : > { %v8622_v8 = vpop.f32.mrf.mxu1 }
0x105e   : > { %7769 = vst [vmem:[%s9757_s11 + $0x18] sm:$0xff] %v8622_v8 }
0x105f   : > { %v2371_v10 = vpop.f32.mrf.mxu1 }
0x1060   : > { %7768 = vst [vmem:[%s9757_s11 + $0x10] sm:$0xff] %v2371_v10 }
0x1061   : > { %v8636_v12 = vpop.f32.mrf.mxu1 }
0x1062   : > { %2739 = vrot.lane.b32.xlu1 %v8636_v12, %s9340_s30 }
0x1063   : > { %v2537_v14 = vpop.f32.mrf.mxu1  ;;  %v8647_v19 = vpop.f32.mrf.mxu0 }
0x1064   : > { %2737 = vrot.lane.b32.xlu0 %v2537_v14, %s9340_s30  ;;  %8656 = vmatprep.mubr.msk.f32.mxu1 %vm279_vm0, %v2537_v14  ;;  %v2635_v36 = vadd.f32 %v8647_v19, %v9512_v21 }
0x1065   : > { %8657 = vmatmul.mubr.msk.f32.vlgmr.msra.gmra.mxu1 %vm279_vm0, %v8636_v12  ;;  %v2629_v20 = vpop.f32.mrf.mxu0 }
0x1066   : > { %8674 = vmatprep.mubr.msk.f32.mxu1 %vm290_vm1, %v9539_v52  ;;  %v2630_v45 = vadd.f32 %v9512_v21, %v2629_v20 }
0x10d4   : > { %v2740_v44 = vpop.permute.xlu1 %2739 }
0x10d6   : > { %v2738_v46 = vpop.permute.xlu0 %2737 }
0x1125   : > { %v8658_v37 = vpop.f32.mrf.mxu1 }
0x1126   : > { %v2724_v33 = vadd.f32 %v8658_v37, %v2635_v36 }
0x1127   : > { %v2714_v2 = vpop.f32.mrf.mxu1 }
0x1128   : > { %v7782_v26 = vmul.f32 -1.442695, %v2724_v33  ;;  %v2723_v28 = vadd.f32 %v2714_v2, %v2630_v45 }
0x112a   : > { %9209 = vpow2.f32 %v7782_v26  ;;  %v7781_v29 = vmul.f32 -1.442695, %v2723_v28 }
0x112c   : > { %9211 = vpow2.f32 %v7781_v29 }
0x1137   : > { %v9210_v39 = vpop.eup %9209 }
0x1138   : > { %v2732_v41 = vadd.f32 1.0, %v9210_v39 }
0x1139   : > { %v9212_v43 = vpop.eup %9211 }
0x113a   : > { %9213 = vrcp.f32 %v2732_v41  ;;  %v2731_v42 = vadd.f32 1.0, %v9212_v43  ;;  %v7818_v41 = vld [vmem:[%s9412_s8 + $0x38] sm:$0xff]  ;;  %v7817_v43 = vld [vmem:[%s9412_s8 + $0x30] sm:$0xff] }
0x113c   : > { %9215 = vrcp.f32 %v2731_v42  ;;  %v9982_v42 = vld [vmem:[%s10732_s1] sm:$0xff] }
0x1147   : > { %v9214_v3 = vpop.eup %9213 }
0x1148   : > { %v2744_v27 = vmul.f32 %v9214_v3, %v2740_v44  ;;  %v2845_v16 = vmul.f32 %v9214_v3, %v9832_v49  ;;  %v9929_v49 = vld [vmem:[#allocation2 + $0x10] sm:$0xff]  ;;  %v9996_v44 = vld [vmem:[%s10733_s2 + $0x18] sm:$0xff] }
0x1149   : > { %v9216_v60 = vpop.eup %9215 }
0x114a   : > { %2753 = vrot.lane.b32.xlu1 %v2744_v27, %s9341_s19  ;;  %v2743_v21 = vmul.f32 %v9216_v60, %v2738_v46  ;;  %v2846_v4 = vsub.f32 1.0, %v9216_v60  ;;  %v2844_v11 = vmul.f32 %v9216_v60, %v9867_v1  ;;  %v10001_v27 = vld [vmem:[%s10733_s2 + $0x10] sm:$0xff] }
0x114c   : > { %2751 = vrot.lane.b32.xlu0 %v2743_v21, %s9341_s19  ;;  %v10012_v21 = vld [vmem:[%s10733_s2 + $0x8] sm:$0xff] }
0x11bc   : > { %v2754_v48 = vpop.permute.xlu1 %2753 }
0x11be   : > { %v2752_v47 = vpop.permute.xlu0 %2751 }
0x11bf   : > { %8667 = vmatprep.mubr.msk.f32.mxu0 %vm279_vm0, %v2752_v47  ;;  %v10019_v47 = vld [vmem:[%s10733_s2] sm:$0xff] }
0x11c0   : > { %8668 = vmatmul.mubr.msk.f32.vlgmr.msra.gmra.mxu0 %vm279_vm0, %v2754_v48 }
0x11c1   : > { %8685 = vmatpush3.msra.mxu0 %v9546_v54 }
0x11c2   : > { %8686 = vmatprep.subr.mxu0 %v9551_v55 }
0x11c3   : > { %8687 = vmatpush3.msra.mxu0 %v9551_v55 }
0x11c4   : > { %8688 = vmatprep.subr.mxu0 %v9592_v17 }
0x11c5   : > { %8689 = vmatpush3.msra.mxu0 %v9592_v17 }
0x11c6   : > { %8690 = vmatprep.subr.mxu0 %v9605_v22 }
0x11c7   : > { %8691 = vmatpush3.msra.mxu0 %v9605_v22  ;;  %v2847_v22 = vsub.f32 1.0, %v9214_v3  ;;  %v9989_v3 = vld [vmem:[%s10732_s1 + $0x8] sm:$0xff] }
0x11c8   : > { %8706 = vmatprep.subr.mxu0 %v9664_v34 }
0x1280   : > { %v8669_v50 = vpop.f32.mrf.mxu0 }
0x1281   : > { %2838 = vrot.lane.b32.xlu0 %v8669_v50, %s9342_s20 }
0x1282   : > { %v2825_v51 = vpop.f32.mrf.mxu0 }
0x1283   : > { %2836 = vrot.lane.b32.xlu1 %v2825_v51, %s9342_s20 }
0x12f3   : > { %v2839_v54 = vpop.permute.xlu0 %2838 }
0x12f4   : > { %v2843_v56 = vadd.f32 %v2839_v54, %v2635_v36 }
0x12f5   : > { %v2837_v53 = vpop.permute.xlu1 %2836 }
0x12f6   : > { %9217 = vtanh.f32 %v2843_v56  ;;  %v2842_v55 = vadd.f32 %v2837_v53, %v2630_v45 }
0x12f8   : > { %9219 = vtanh.f32 %v2842_v55 }
0x1303   : > { %v9218_v59 = vpop.eup %9217 }
0x1304   : > { %2854 = vrot.lane.b32.xlu0 %v9218_v59, %s9342_s20 }
0x1305   : > { %v9220_v17 = vpop.eup %9219 }
0x1306   : > { %2852 = vrot.lane.b32.xlu1 %v9220_v17, %s9342_s20 }
0x1376   : > { %v2855_v7 = vpop.permute.xlu0 %2854 }
0x1377   : > { %v2859_v9 = vmul.f32 %v2855_v7, %v2847_v22 }
0x1378   : > { %v2853_v58 = vpop.permute.xlu1 %2852 }
0x1379   : > { %v2861_v61 = vadd.f32 %v2859_v9, %v2845_v16  ;;  %v2858_v62 = vmul.f32 %v2853_v58, %v2846_v4  ;;  %v10041_v4 = vld [vmem:[%s10735_s4 + $0x18] sm:$0xff]  ;;  %v10050_v58 = vld [vmem:[%s10735_s4 + $0x10] sm:$0xff] }
0x137b   : > { %2863 = vst.msk [vmem:[#allocation2 + $0x8] sm:$0xff] %vm279_vm0, %v2861_v61  ;;  %v2860_v63 = vadd.f32 %v2858_v62, %v2844_v11  ;;  %8670 = vmatprep.subr.mxu1 %v2861_v61  ;;  %v10064_v11 = vld [vmem:[%s10735_s4] sm:$0xff] }
0x137c   : > { %8671 = vmatpush3.msra.mxu1 %v2861_v61  ;;  %v10057_v61 = vld [vmem:[%s10735_s4 + $0x8] sm:$0xff] }
0x137d   : > { %2862 = vst.msk [vmem:[#allocation2] sm:$0xff] %vm279_vm0, %v2860_v63  ;;  %8672 = vmatprep.subr.mxu1 %v2860_v63 }
0x137e   : > { %8673 = vmatpush3.msra.mxu1 %v2860_v63 }
0x137f   : > { %8675 = vmatmul.mubr.msk.f32.vlgmr.msra.gmra.mxu1 %vm290_vm1, %v9565_v15  ;;  %8677 = vmatprep.subr.mxu1 %v9923_v13 }
0x1380   : > { %8678 = vmatpush3.msra.mxu1 %v9923_v13  ;;  %8681 = vmatprep.mubr.msk.f32.mxu1 %vm290_vm1, %v9539_v52 }
0x1381   : > { %8679 = vmatprep.subr.mxu1 %v9929_v49 }
0x1382   : > { %8680 = vmatpush3.msra.mxu1 %v9929_v49 }
0x1383   : > { %8682 = vmatmul.mubr.msk.f32.vlgmr.msra.gmra.mxu1 %vm290_vm1, %v9565_v15  ;;  %8695 = vmatprep.subr.mxu1 %v9581_v5 }
0x1384   : > { %8696 = vmatpush3.msra.mxu1 %v9581_v5  ;;  %v10030_v7 = vld [vmem:[#allocation2] sm:$0xff] }
0x1385   : > { %8697 = vmatprep.subr.mxu1 %v9597_v18 }
0x1386   : > { %8698 = vmatpush3.msra.mxu1 %v9597_v18  ;;  %v9966_v18 = vld [vmem:[#allocation2 + $0x8] sm:$0xff] }
0x1387   : > { %8699 = vmatprep.subr.mxu1 %v9612_v23 }
0x1388   : > { %8700 = vmatpush3.msra.mxu1 %v9612_v23 }
0x1389   : > { %8701 = vmatprep.subr.mxu1 %v9619_v24 }
0x138a   : > { %8702 = vmatpush3.msra.mxu1 %v9619_v24 }
0x138b   : > { %8717 = vmatprep.subr.mxu1 %v9626_v25 }
0x143f   : > { %v8676_v52 = vpop.f32.mrf.mxu1 }
0x1441   : > { %v2940_v15 = vpop.f32.mrf.mxu1 }
0x1442   : > { %8692 = vmatprep.mubr.msk.f32.mxu0 %vm279_vm0, %v2940_v15  ;;  %v10082_v15 = vld [vmem:[%s10736_s5 + $0x10] sm:$0xff] }
0x1443   : > { %v8683_v1 = vpop.f32.mrf.mxu1  ;;  %8693 = vmatmul.mubr.msk.f32.vlgmr.msra.gmra.mxu0 %vm279_vm0, %v8676_v52  ;;  %v10077_v52 = vld [vmem:[%s10736_s5 + $0x18] sm:$0xff] }
0x1444   : > { %3217 = vrot.lane.b32.xlu1 %v8683_v1, %s9340_s30  ;;  %8707 = vmatpush3.msra.mxu0 %v9664_v34 }
0x1445   : > { %v3015_v5 = vpop.f32.mrf.mxu1  ;;  %8708 = vmatprep.subr.mxu0 %v9669_v35 }
0x1446   : > { %3215 = vrot.lane.b32.xlu0 %v3015_v5, %s9340_s30  ;;  %8703 = vmatprep.mubr.msk.f32.mxu1 %vm279_vm0, %v3015_v5 }
0x1447   : > { %8704 = vmatmul.mubr.msk.f32.vlgmr.msra.gmra.mxu1 %vm279_vm0, %v8683_v1  ;;  %8709 = vmatpush3.msra.mxu0 %v9669_v35  ;;  %v10089_v1 = vld [vmem:[%s10736_s5 + $0x8] sm:$0xff] }
0x1448   : > { %8718 = vmatpush3.msra.mxu1 %v9626_v25  ;;  %8710 = vmatprep.subr.mxu0 %v9676_v38 }
0x1449   : > { %8719 = vmatprep.subr.mxu1 %v9638_v30  ;;  %8711 = vmatpush3.msra.mxu0 %v9676_v38 }
0x144a   : > { %8720 = vmatpush3.msra.mxu1 %v9638_v30  ;;  %8712 = vmatprep.subr.mxu0 %v9692_v57 }
0x144b   : > { %8721 = vmatprep.subr.mxu1 %v9645_v31  ;;  %8713 = vmatpush3.msra.mxu0 %v9692_v57 }
0x144c   : > { %8722 = vmatpush3.msra.mxu1 %v9645_v31  ;;  %8728 = vmatprep.subr.mxu0 %v7818_v41 }
0x144d   : > { %8723 = vmatprep.subr.mxu1 %v9652_v32 }
0x144e   : > { %8724 = vmatpush3.msra.mxu1 %v9652_v32 }
0x144f   : > { %8735 = vmatprep.subr.mxu1 %v9966_v18 }
0x14b6   : > { %v3218_v14 = vpop.permute.xlu1 %3217 }
0x14b8   : > { %v3216_v36 = vpop.permute.xlu0 %3215 }
0x1503   : > { %v8694_v23 = vpop.f32.mrf.mxu0 }
0x1504   : > { %v3113_v25 = vadd.f32 %v8694_v23, %v9685_v40  ;;  %v10098_v23 = vld [vmem:[%s10734_s3] ss:$0 sm:$0xff] }
0x1505   : > { %v3107_v24 = vpop.f32.mrf.mxu0 }
0x1506   : > { %v3108_v34 = vadd.f32 %v9685_v40, %v3107_v24 }
0x1507   : > { %v8705_v30 = vpop.f32.mrf.mxu1 }
0x1508   : > { %v3202_v35 = vadd.f32 %v8705_v30, %v3113_v25 }
0x1509   : > { %v3192_v38 = vpop.f32.mrf.mxu1 }
0x150a   : > { %v7806_v57 = vmul.f32 -1.442695, %v3202_v35  ;;  %v3201_v0 = vadd.f32 %v3192_v38, %v3108_v34 }
0x150c   : > { %9221 = vpow2.f32 %v7806_v57  ;;  %v7805_v31 = vmul.f32 -1.442695, %v3201_v0 }
0x150e   : > { %9223 = vpow2.f32 %v7805_v31 }
0x1519   : > { %v9222_v6 = vpop.eup %9221 }
0x151a   : > { %v3210_v32 = vadd.f32 1.0, %v9222_v6 }
0x151b   : > { %v9224_v8 = vpop.eup %9223 }
0x151c   : > { %9225 = vrcp.f32 %v3210_v32  ;;  %v3209_v10 = vadd.f32 1.0, %v9224_v8 }
0x151e   : > { %9227 = vrcp.f32 %v3209_v10 }
0x1529   : > { %v9226_v12 = vpop.eup %9225 }
0x152a   : > { %v3222_v19 = vmul.f32 %v9226_v12, %v3218_v14  ;;  %v3325_v48 = vsub.f32 1.0, %v9226_v12  ;;  %v3323_v51 = vmul.f32 %v9226_v12, %v9923_v13  ;;  %v10105_v12 = vld [vmem:[%s10736_s5] sm:$0xff] }
0x152b   : > { %v9228_v20 = vpop.eup %9227 }
0x152c   : > { %3231 = vrot.lane.b32.xlu1 %v3222_v19, %s9341_s19  ;;  %v3221_v40 = vmul.f32 %v9228_v20, %v3216_v36  ;;  %v3324_v56 = vsub.f32 1.0, %v9228_v20  ;;  %v3322_v59 = vmul.f32 %v9228_v20, %v9929_v49 }
0x152e   : > { %3229 = vrot.lane.b32.xlu0 %v3221_v40, %s9341_s19 }
0x159e   : > { %v3232_v45 = vpop.permute.xlu1 %3231 }
0x15a0   : > { %v3230_v37 = vpop.permute.xlu0 %3229 }
0x15a1   : > { %8714 = vmatprep.mubr.msk.f32.mxu0 %vm279_vm0, %v3230_v37 }
0x15a2   : > { %8715 = vmatmul.mubr.msk.f32.vlgmr.msra.gmra.mxu0 %vm279_vm0, %v3232_v45 }
0x15a3   : > { %8729 = vmatpush3.msra.mxu0 %v7818_v41  ;;  %8732 = vmatprep.mubr.msk.f32.mxu0 %vm290_vm1, %v9982_v42 }
0x15a4   : > { %8730 = vmatprep.subr.mxu0 %v7817_v43 }
0x15a5   : > { %8731 = vmatpush3.msra.mxu0 %v7817_v43  ;;  %v10118_v43 = vld [vmem:[%s10732_s1 + $0x10] sm:$0xff] }
0x15a6   : > { %8733 = vmatmul.mubr.msk.f32.vlgmr.msra.gmra.mxu0 %vm290_vm1, %v9989_v3  ;;  %8742 = vmatprep.subr.mxu0 %v9996_v44 }
0x15a7   : > { %8743 = vmatpush3.msra.mxu0 %v9996_v44 }
0x15a8   : > { %8744 = vmatprep.subr.mxu0 %v10001_v27 }
0x15a9   : > { %8745 = vmatpush3.msra.mxu0 %v10001_v27 }
0x15aa   : > { %8746 = vmatprep.subr.mxu0 %v10012_v21 }
0x15ab   : > { %8747 = vmatpush3.msra.mxu0 %v10012_v21 }
0x15ac   : > { %8748 = vmatprep.subr.mxu0 %v10019_v47 }
0x15ad   : > { %8749 = vmatpush3.msra.mxu0 %v10019_v47 }
0x15ae   : > { %8764 = vmatprep.subr.mxu0 %v10077_v52 }
0x1662   : > { %v8716_v33 = vpop.f32.mrf.mxu0 }
0x1663   : > { %3316 = vrot.lane.b32.xlu1 %v8716_v33, %s9342_s20 }
0x1664   : > { %v3303_v2 = vpop.f32.mrf.mxu0 }
0x1665   : > { %3314 = vrot.lane.b32.xlu0 %v3303_v2, %s9342_s20 }
0x1666   : > { %v8734_v16 = vpop.f32.mrf.mxu0 }
0x1668   : > { %v3509_v9 = vpop.f32.mrf.mxu0 }
0x1669   : > { %8750 = vmatprep.mubr.msk.f32.mxu0 %vm279_vm0, %v3509_v9 }
0x166a   : > { %8751 = vmatmul.mubr.msk.f32.vlgmr.msra.gmra.mxu0 %vm279_vm0, %v8734_v16 }
0x166b   : > { %8765 = vmatpush3.msra.mxu0 %v10077_v52 }
0x166c   : > { %8766 = vmatprep.subr.mxu0 %v10082_v15 }
0x166d   : > { %8767 = vmatpush3.msra.mxu0 %v10082_v15 }
0x166e   : > { %8768 = vmatprep.subr.mxu0 %v10089_v1 }
0x166f   : > { %8769 = vmatpush3.msra.mxu0 %v10089_v1 }
0x1670   : > { %8770 = vmatprep.subr.mxu0 %v10105_v12 }
0x1671   : > { %8771 = vmatpush3.msra.mxu0 %v10105_v12 }
0x16d5   : > { %v3317_v26 = vpop.permute.xlu1 %3316 }
0x16d6   : > { %v3321_v28 = vadd.f32 %v3317_v26, %v3113_v25 }
0x16d7   : > { %v3315_v29 = vpop.permute.xlu0 %3314 }
0x16d8   : > { %9229 = vtanh.f32 %v3321_v28  ;;  %v3320_v39 = vadd.f32 %v3315_v29, %v3108_v34 }
0x16da   : > { %9231 = vtanh.f32 %v3320_v39 }
0x16e5   : > { %v9230_v60 = vpop.eup %9229 }
0x16e6   : > { %3332 = vrot.lane.b32.xlu1 %v9230_v60, %s9342_s20 }
0x16e7   : > { %v9232_v46 = vpop.eup %9231 }
0x16e8   : > { %3330 = vrot.lane.b32.xlu0 %v9232_v46, %s9342_s20  ;;  %v10125_v46 = vld [vmem:[%s10733_s2 + $0x38] sm:$0xff] }
0x16e9   : > { %8789 = vmatprep.subr.mxu0 %v10125_v46 }
0x172a   : > { %v8752_v5 = vpop.f32.mrf.mxu0 }
0x172b   : > { %v3682_v25 = vadd.f32 %v8752_v5, %v10098_v23  ;;  %v10184_v5 = vld [vmem:[%s10733_s2 + $0x20] sm:$0xff] }
0x172c   : > { %v3676_v24 = vpop.f32.mrf.mxu0 }
0x172d   : > { %v3677_v34 = vadd.f32 %v10098_v23, %v3676_v24  ;;  %v10191_v24 = vld [vmem:[%s10735_s4 + $0x28] sm:$0xff] }
0x1758   : > { %v3333_v50 = vpop.permute.xlu1 %3332 }
0x1759   : > { %v3337_v54 = vmul.f32 %v3333_v50, %v3325_v48  ;;  %v10130_v48 = vld [vmem:[%s10733_s2 + $0x30] sm:$0xff] }
0x175a   : > { %v3331_v53 = vpop.permute.xlu0 %3330 }
0x175b   : > { %v3339_v55 = vadd.f32 %v3337_v54, %v3323_v51  ;;  %v3336_v17 = vmul.f32 %v3331_v53, %v3324_v56 }
0x175d   : > { %3341 = vst.msk [vmem:[#allocation2 + $0x18] sm:$0xff] %vm279_vm0, %v3339_v55  ;;  %v3338_v22 = vadd.f32 %v3336_v17, %v3322_v59 }
0x175f   : > { %3340 = vst.msk [vmem:[#allocation2 + $0x10] sm:$0xff] %vm279_vm0, %v3338_v22  ;;  %8725 = vmatprep.mubr.msk.f32.mxu1 %vm279_vm0, %v3338_v22 }
0x1760   : > { %8726 = vmatmul.mubr.msk.f32.vlgmr.msra.gmra.mxu1 %vm279_vm0, %v3339_v55 }
0x1761   : > { %8736 = vmatpush3.msra.mxu1 %v9966_v18  ;;  %8739 = vmatprep.mubr.msk.f32.mxu1 %vm290_vm1, %v9982_v42 }
0x1762   : > { %8737 = vmatprep.subr.mxu1 %v10030_v7 }
0x1763   : > { %8738 = vmatpush3.msra.mxu1 %v10030_v7 }
0x1764   : > { %8740 = vmatmul.mubr.msk.f32.vlgmr.msra.gmra.mxu1 %vm290_vm1, %v9989_v3  ;;  %8753 = vmatprep.subr.mxu1 %v10041_v4 }
0x1765   : > { %8754 = vmatpush3.msra.mxu1 %v10041_v4 }
0x1766   : > { %8755 = vmatprep.subr.mxu1 %v10050_v58 }
0x1767   : > { %8756 = vmatpush3.msra.mxu1 %v10050_v58 }
0x1768   : > { %8757 = vmatprep.subr.mxu1 %v10057_v61 }
0x1769   : > { %8758 = vmatpush3.msra.mxu1 %v10057_v61 }
0x176a   : > { %8759 = vmatprep.subr.mxu1 %v10064_v11 }
0x176b   : > { %8760 = vmatpush3.msra.mxu1 %v10064_v11 }
0x1820   : > { %v8727_v62 = vpop.f32.mrf.mxu1 }
0x1821   : > { %7816 = vst [vmem:[%s9757_s11 + $0x28] sm:$0xff] %v8727_v62  ;;  %v10144_v62 = vld [vmem:[%s10732_s1 + $0x18] sm:$0xff] }
0x1822   : > { %v3418_v63 = vpop.f32.mrf.mxu1 }
0x1823   : > { %7815 = vst [vmem:[%s9757_s11 + $0x20] sm:$0xff] %v3418_v63  ;;  %v10160_v63 = vld [vmem:[%s10735_s4 + $0x38] sm:$0xff] }
0x1824   : > { %v8741_v13 = vpop.f32.mrf.mxu1 }
0x1825   : > { %3786 = vrot.lane.b32.xlu1 %v8741_v13, %s9340_s30 }
0x1826   : > { %v3584_v49 = vpop.f32.mrf.mxu1 }
0x1827   : > { %3784 = vrot.lane.b32.xlu0 %v3584_v49, %s9340_s30  ;;  %8761 = vmatprep.mubr.msk.f32.mxu1 %vm279_vm0, %v3584_v49  ;;  %v10176_v49 = vld [vmem:[%s10735_s4 + $0x30] sm:$0xff] }
0x1828   : > { %8762 = vmatmul.mubr.msk.f32.vlgmr.msra.gmra.mxu1 %vm279_vm0, %v8741_v13  ;;  %v10171_v13 = vld [vmem:[%s10733_s2 + $0x28] sm:$0xff] }
0x1829   : > { %8779 = vmatprep.mubr.msk.f32.mxu1 %vm290_vm1, %v10118_v43 }
0x1897   : > { %v3787_v19 = vpop.permute.xlu1 %3786 }
0x1899   : > { %v3785_v40 = vpop.permute.xlu0 %3784 }
0x18e8   : > { %v8763_v30 = vpop.f32.mrf.mxu1 }
0x18e9   : > { %v3771_v35 = vadd.f32 %v8763_v30, %v3682_v25  ;;  %v10205_v30 = vld [vmem:[%s10737_s6 + $0x18] sm:$0xff] }
0x18ea   : > { %v3761_v38 = vpop.f32.mrf.mxu1 }
0x18eb   : > { %v7829_v57 = vmul.f32 -1.442695, %v3771_v35  ;;  %v3770_v0 = vadd.f32 %v3761_v38, %v3677_v34 }
0x18ed   : > { %9233 = vpow2.f32 %v7829_v57  ;;  %v7828_v31 = vmul.f32 -1.442695, %v3770_v0  ;;  %v10217_v0 = vld [vmem:[%s10737_s6 + $0x10] sm:$0xff] }
0x18ef   : > { %9235 = vpow2.f32 %v7828_v31  ;;  %v10224_v31 = vld [vmem:[%s10737_s6 + $0x8] sm:$0xff] }
0x18fa   : > { %v9234_v6 = vpop.eup %9233 }
0x18fb   : > { %v3779_v32 = vadd.f32 1.0, %v9234_v6  ;;  %v10231_v6 = vld [vmem:[%s10737_s6] sm:$0xff] }
0x18fc   : > { %v9236_v8 = vpop.eup %9235 }
0x18fd   : > { %9237 = vrcp.f32 %v3779_v32  ;;  %v3778_v10 = vadd.f32 1.0, %v9236_v8  ;;  %v10243_v8 = vld [vmem:[%s10736_s5 + $0x38] sm:$0xff] }
0x18ff   : > { %9239 = vrcp.f32 %v3778_v10  ;;  %v10248_v10 = vld [vmem:[%s10736_s5 + $0x30] sm:$0xff] }
0x190a   : > { %v9238_v14 = vpop.eup %9237 }
0x190b   : > { %v3791_v20 = vmul.f32 %v9238_v14, %v3787_v19  ;;  %v3894_v51 = vsub.f32 1.0, %v9238_v14  ;;  %v3892_v56 = vmul.f32 %v9238_v14, %v9966_v18  ;;  %v10147_v18 = vld [vmem:[#allocation2 + $0x18] sm:$0xff]  ;;  %v10255_v14 = vld [vmem:[%s10736_s5 + $0x28] sm:$0xff] }
0x190c   : > { %v9240_v36 = vpop.eup %9239 }
0x190d   : > { %3800 = vrot.lane.b32.xlu1 %v3791_v20, %s9341_s19  ;;  %v3790_v37 = vmul.f32 %v9240_v36, %v3785_v40  ;;  %v3893_v55 = vsub.f32 1.0, %v9240_v36  ;;  %v3891_v22 = vmul.f32 %v9240_v36, %v10030_v7  ;;  %v10153_v7 = vld [vmem:[#allocation2 + $0x10] sm:$0xff]  ;;  %v10264_v20 = vld [vmem:[%s10734_s3 + $0x1] ss:$0 sm:$0xff] }
0x190f   : > { %3798 = vrot.lane.b32.xlu0 %v3790_v37, %s9341_s19 }
0x197f   : > { %v3801_v33 = vpop.permute.xlu1 %3800 }
0x1981   : > { %v3799_v45 = vpop.permute.xlu0 %3798 }
0x1982   : > { %8772 = vmatprep.mubr.msk.f32.mxu0 %vm279_vm0, %v3799_v45 }
0x1983   : > { %8773 = vmatmul.mubr.msk.f32.vlgmr.msra.gmra.mxu0 %vm279_vm0, %v3801_v33 }
0x1984   : > { %8790 = vmatpush3.msra.mxu0 %v10125_v46 }
0x1985   : > { %8791 = vmatprep.subr.mxu0 %v10130_v48 }
0x1986   : > { %8792 = vmatpush3.msra.mxu0 %v10130_v48 }
0x1987   : > { %8793 = vmatprep.subr.mxu0 %v10171_v13 }
0x1988   : > { %8794 = vmatpush3.msra.mxu0 %v10171_v13 }
0x1989   : > { %8795 = vmatprep.subr.mxu0 %v10184_v5 }
0x198a   : > { %8796 = vmatpush3.msra.mxu0 %v10184_v5 }
0x198b   : > { %8811 = vmatprep.subr.mxu0 %v10243_v8 }
0x1a43   : > { %v8774_v2 = vpop.f32.mrf.mxu0 }
0x1a44   : > { %3885 = vrot.lane.b32.xlu0 %v8774_v2, %s9342_s20 }
0x1a45   : > { %v3872_v26 = vpop.f32.mrf.mxu0 }
0x1a46   : > { %3883 = vrot.lane.b32.xlu1 %v3872_v26, %s9342_s20 }
0x1ab6   : > { %v3886_v28 = vpop.permute.xlu0 %3885 }
0x1ab7   : > { %v3890_v29 = vadd.f32 %v3886_v28, %v3682_v25  ;;  %v10198_v25 = vld [vmem:[%s10735_s4 + $0x20] sm:$0xff] }
0x1ab8   : > { %v3884_v39 = vpop.permute.xlu1 %3883 }
0x1ab9   : > { %9241 = vtanh.f32 %v3890_v29  ;;  %v3889_v41 = vadd.f32 %v3884_v39, %v3677_v34 }
0x1abb   : > { %9243 = vtanh.f32 %v3889_v41 }
0x1ac6   : > { %v9242_v60 = vpop.eup %9241 }
0x1ac7   : > { %3901 = vrot.lane.b32.xlu0 %v9242_v60, %s9342_s20 }
0x1ac8   : > { %v9244_v50 = vpop.eup %9243 }
0x1ac9   : > { %3899 = vrot.lane.b32.xlu1 %v9244_v50, %s9342_s20 }
0x1b39   : > { %v3902_v54 = vpop.permute.xlu0 %3901 }
0x1b3a   : > { %v3906_v53 = vmul.f32 %v3902_v54, %v3894_v51  ;;  %v10271_v51 = vld [vmem:[%s10736_s5 + $0x20] sm:$0xff] }
0x1b3b   : > { %v3900_v59 = vpop.permute.xlu1 %3899 }
0x1b3c   : > { %v3908_v17 = vadd.f32 %v3906_v53, %v3892_v56  ;;  %v3905_v16 = vmul.f32 %v3900_v59, %v3893_v55 }
0x1b3e   : > { %3910 = vst.msk [vmem:[#allocation2 + $0x8] sm:$0xff] %vm279_vm0, %v3908_v17  ;;  %v3907_v9 = vadd.f32 %v3905_v16, %v3891_v22  ;;  %8775 = vmatprep.subr.mxu1 %v3908_v17 }
0x1b3f   : > { %8776 = vmatpush3.msra.mxu1 %v3908_v17 }
0x1b40   : > { %3909 = vst.msk [vmem:[#allocation2] sm:$0xff] %vm279_vm0, %v3907_v9  ;;  %8777 = vmatprep.subr.mxu1 %v3907_v9 }
0x1b41   : > { %8778 = vmatpush3.msra.mxu1 %v3907_v9 }
0x1b42   : > { %8780 = vmatmul.mubr.msk.f32.vlgmr.msra.gmra.mxu1 %vm290_vm1, %v10144_v62  ;;  %8782 = vmatprep.subr.mxu1 %v10147_v18 }
0x1b43   : > { %8783 = vmatpush3.msra.mxu1 %v10147_v18  ;;  %8786 = vmatprep.mubr.msk.f32.mxu1 %vm290_vm1, %v10118_v43 }
0x1b44   : > { %8784 = vmatprep.subr.mxu1 %v10153_v7 }
0x1b45   : > { %8785 = vmatpush3.msra.mxu1 %v10153_v7  ;;  %v10237_v32 = vld [vmem:[#allocation2 + $0x8] sm:$0xff] }
0x1b46   : > { %8787 = vmatmul.mubr.msk.f32.vlgmr.msra.gmra.mxu1 %vm290_vm1, %v10144_v62  ;;  %8800 = vmatprep.subr.mxu1 %v10160_v63 }
0x1b47   : > { %8801 = vmatpush3.msra.mxu1 %v10160_v63 }
0x1b48   : > { %8802 = vmatprep.subr.mxu1 %v10176_v49 }
0x1b49   : > { %8803 = vmatpush3.msra.mxu1 %v10176_v49 }
0x1b4a   : > { %8804 = vmatprep.subr.mxu1 %v10191_v24 }
0x1b4b   : > { %8805 = vmatpush3.msra.mxu1 %v10191_v24 }
0x1b4c   : > { %8806 = vmatprep.subr.mxu1 %v10198_v25 }
0x1b4d   : > { %8807 = vmatpush3.msra.mxu1 %v10198_v25 }
0x1b4e   : > { %8822 = vmatprep.subr.mxu1 %v10205_v30 }
0x1c02   : > { %v8781_v34 = vpop.f32.mrf.mxu1 }
0x1c04   : > { %v3987_v35 = vpop.f32.mrf.mxu1 }
0x1c05   : > { %8797 = vmatprep.mubr.msk.f32.mxu0 %vm279_vm0, %v3987_v35 }
0x1c06   : > { %v8788_v38 = vpop.f32.mrf.mxu1  ;;  %8798 = vmatmul.mubr.msk.f32.vlgmr.msra.gmra.mxu0 %vm279_vm0, %v8781_v34 }
0x1c07   : > { %4264 = vrot.lane.b32.xlu1 %v8788_v38, %s9340_s30  ;;  %8812 = vmatpush3.msra.mxu0 %v10243_v8 }
0x1c08   : > { %v4062_v57 = vpop.f32.mrf.mxu1  ;;  %8813 = vmatprep.subr.mxu0 %v10248_v10 }
0x1c09   : > { %4262 = vrot.lane.b32.xlu0 %v4062_v57, %s9340_s30  ;;  %8808 = vmatprep.mubr.msk.f32.mxu1 %vm279_vm0, %v4062_v57 }
0x1c0a   : > { %8809 = vmatmul.mubr.msk.f32.vlgmr.msra.gmra.mxu1 %vm279_vm0, %v8788_v38  ;;  %8814 = vmatpush3.msra.mxu0 %v10248_v10 }
0x1c0b   : > { %8823 = vmatpush3.msra.mxu1 %v10205_v30  ;;  %8815 = vmatprep.subr.mxu0 %v10255_v14 }
0x1c0c   : > { %8824 = vmatprep.subr.mxu1 %v10217_v0  ;;  %8816 = vmatpush3.msra.mxu0 %v10255_v14 }
0x1c0d   : > { %8825 = vmatpush3.msra.mxu1 %v10217_v0  ;;  %8817 = vmatprep.subr.mxu0 %v10271_v51 }
0x1c0e   : > { %8826 = vmatprep.subr.mxu1 %v10224_v31  ;;  %8818 = vmatpush3.msra.mxu0 %v10271_v51 }
0x1c0f   : > { %8827 = vmatpush3.msra.mxu1 %v10224_v31 }
0x1c10   : > { %8828 = vmatprep.subr.mxu1 %v10231_v6 }
0x1c11   : > { %8829 = vmatpush3.msra.mxu1 %v10231_v6 }
0x1c12   : > { %8840 = vmatprep.subr.mxu1 %v10237_v32 }
0x1c79   : > { %v4265_v56 = vpop.permute.xlu1 %4264 }
0x1c7b   : > { %v4263_v59 = vpop.permute.xlu0 %4262 }
0x1cc6   : > { %v8799_v19 = vpop.f32.mrf.mxu0 }
0x1cc7   : > { %v4160_v40 = vadd.f32 %v8799_v19, %v10264_v20 }
0x1cc8   : > { %v4154_v36 = vpop.f32.mrf.mxu0 }
0x1cc9   : > { %v4155_v45 = vadd.f32 %v10264_v20, %v4154_v36  ;;  %v7865_v36 = vld [vmem:[%s9412_s8 + $0x48] sm:$0xff] }
0x1cca   : > { %v8810_v37 = vpop.f32.mrf.mxu1  ;;  %8833 = vmatprep.subr.mxu0 %v7865_v36 }
0x1ccb   : > { %v4249_v33 = vadd.f32 %v8810_v37, %v4160_v40  ;;  %v7864_v37 = vld [vmem:[%s9412_s8 + $0x40] sm:$0xff] }
0x1ccc   : > { %v4239_v2 = vpop.f32.mrf.mxu1 }
0x1ccd   : > { %v7853_v26 = vmul.f32 -1.442695, %v4249_v33  ;;  %v4248_v28 = vadd.f32 %v4239_v2, %v4155_v45 }
0x1ccf   : > { %9245 = vpow2.f32 %v7853_v26  ;;  %v7852_v29 = vmul.f32 -1.442695, %v4248_v28 }
0x1cd1   : > { %9247 = vpow2.f32 %v7852_v29 }
0x1cdc   : > { %v9246_v39 = vpop.eup %9245 }
0x1cdd   : > { %v4257_v41 = vadd.f32 1.0, %v9246_v39 }
0x1cde   : > { %v9248_v60 = vpop.eup %9247 }
0x1cdf   : > { %9249 = vrcp.f32 %v4257_v41  ;;  %v4256_v50 = vadd.f32 1.0, %v9248_v60 }
0x1ce1   : > { %9251 = vrcp.f32 %v4256_v50 }
0x1cec   : > { %v9250_v54 = vpop.eup %9249 }
0x1ced   : > { %v4269_v53 = vmul.f32 %v9250_v54, %v4265_v56  ;;  %v4372_v33 = vsub.f32 1.0, %v9250_v54  ;;  %v4370_v26 = vmul.f32 %v9250_v54, %v10147_v18 }
0x1cee   : > { %v9252_v55 = vpop.eup %9251 }
0x1cef   : > { %4278 = vrot.lane.b32.xlu1 %v4269_v53, %s9341_s19  ;;  %v4268_v17 = vmul.f32 %v9252_v55, %v4263_v59  ;;  %v4371_v29 = vsub.f32 1.0, %v9252_v55  ;;  %v4369_v60 = vmul.f32 %v9252_v55, %v10153_v7  ;;  %v10305_v53 = vld [vmem:[#allocation2] sm:$0xff] }
0x1cf1   : > { %4276 = vrot.lane.b32.xlu0 %v4268_v17, %s9341_s19 }
0x1d61   : > { %v4279_v16 = vpop.permute.xlu1 %4278 }
0x1d63   : > { %v4277_v22 = vpop.permute.xlu0 %4276 }
0x1d64   : > { %8819 = vmatprep.mubr.msk.f32.mxu0 %vm279_vm0, %v4277_v22 }
0x1d65   : > { %8820 = vmatmul.mubr.msk.f32.vlgmr.msra.gmra.mxu0 %vm279_vm0, %v4279_v16 }
0x1d66   : > { %8837 = vmatprep.mubr.msk.f32.mxu0 %vm290_vm1, %v9982_v42  ;;  %8834 = vmatpush3.msra.mxu0 %v7865_v36 }
0x1d67   : > { %8835 = vmatprep.subr.mxu0 %v7864_v37 }
0x1d68   : > { %8836 = vmatpush3.msra.mxu0 %v7864_v37 }
0x1d69   : > { %8838 = vmatmul.mubr.msk.f32.vlgmr.msra.gmra.mxu0 %vm290_vm1, %v9989_v3  ;;  %8847 = vmatprep.subr.mxu0 %v9996_v44 }
0x1d6a   : > { %8848 = vmatpush3.msra.mxu0 %v9996_v44 }
0x1d6b   : > { %8849 = vmatprep.subr.mxu0 %v10001_v27 }
0x1d6c   : > { %8850 = vmatpush3.msra.mxu0 %v10001_v27 }
0x1d6d   : > { %8851 = vmatprep.subr.mxu0 %v10012_v21 }
0x1d6e   : > { %8852 = vmatpush3.msra.mxu0 %v10012_v21 }
0x1d6f   : > { %8853 = vmatprep.subr.mxu0 %v10019_v47 }
0x1d70   : > { %8854 = vmatpush3.msra.mxu0 %v10019_v47 }
0x1d71   : > { %8869 = vmatprep.subr.mxu0 %v10077_v52 }
0x1e25   : > { %v8821_v9 = vpop.f32.mrf.mxu0 }
0x1e26   : > { %4363 = vrot.lane.b32.xlu1 %v8821_v9, %s9342_s20 }
0x1e27   : > { %v4350_v34 = vpop.f32.mrf.mxu0 }
0x1e28   : > { %4361 = vrot.lane.b32.xlu0 %v4350_v34, %s9342_s20 }
0x1e29   : > { %v8839_v18 = vpop.f32.mrf.mxu0 }
0x1e2b   : > { %v4556_v7 = vpop.f32.mrf.mxu0 }
0x1e2c   : > { %8855 = vmatprep.mubr.msk.f32.mxu0 %vm279_vm0, %v4556_v7 }
0x1e2d   : > { %8856 = vmatmul.mubr.msk.f32.vlgmr.msra.gmra.mxu0 %vm279_vm0, %v8839_v18 }
0x1e2e   : > { %8870 = vmatpush3.msra.mxu0 %v10077_v52 }
0x1e2f   : > { %8871 = vmatprep.subr.mxu0 %v10082_v15 }
0x1e30   : > { %8872 = vmatpush3.msra.mxu0 %v10082_v15 }
0x1e31   : > { %8873 = vmatprep.subr.mxu0 %v10089_v1 }
0x1e32   : > { %8874 = vmatpush3.msra.mxu0 %v10089_v1 }
0x1e33   : > { %8875 = vmatprep.subr.mxu0 %v10105_v12 }
0x1e34   : > { %8876 = vmatpush3.msra.mxu0 %v10105_v12 }
0x1e35   : > { %8894 = vmatprep.subr.mxu0 %v10125_v46 }
0x1e98   : > { %v4364_v35 = vpop.permute.xlu1 %4363 }
0x1e99   : > { %v4368_v38 = vadd.f32 %v4364_v35, %v4160_v40 }
0x1e9a   : > { %v4362_v57 = vpop.permute.xlu0 %4361 }
0x1e9b   : > { %9253 = vtanh.f32 %v4368_v38  ;;  %v4367_v19 = vadd.f32 %v4362_v57, %v4155_v45 }
0x1e9d   : > { %9255 = vtanh.f32 %v4367_v19 }
0x1ea8   : > { %v9254_v40 = vpop.eup %9253 }
0x1ea9   : > { %4379 = vrot.lane.b32.xlu1 %v9254_v40, %s9342_s20 }
0x1eaa   : > { %v9256_v45 = vpop.eup %9255 }
0x1eab   : > { %4377 = vrot.lane.b32.xlu0 %v9256_v45, %s9342_s20 }
0x1eed   : > { %v8857_v22 = vpop.f32.mrf.mxu0 }
0x1eee   : > { %v4729_v9 = vadd.f32 %v8857_v22, %v10098_v23 }
0x1eef   : > { %v4723_v16 = vpop.f32.mrf.mxu0 }
0x1ef0   : > { %v4724_v35 = vadd.f32 %v10098_v23, %v4723_v16 }
0x1f1b   : > { %v4380_v2 = vpop.permute.xlu1 %4379 }
0x1f1c   : > { %v4384_v28 = vmul.f32 %v4380_v2, %v4372_v33 }
0x1f1d   : > { %v4378_v39 = vpop.permute.xlu0 %4377 }
0x1f1e   : > { %v4386_v41 = vadd.f32 %v4384_v28, %v4370_v26  ;;  %v4383_v50 = vmul.f32 %v4378_v39, %v4371_v29 }
0x1f20   : > { %4388 = vst.msk [vmem:[#allocation2 + $0x18] sm:$0xff] %vm279_vm0, %v4386_v41  ;;  %v4385_v56 = vadd.f32 %v4383_v50, %v4369_v60 }
0x1f22   : > { %4387 = vst.msk [vmem:[#allocation2 + $0x10] sm:$0xff] %vm279_vm0, %v4385_v56  ;;  %8830 = vmatprep.mubr.msk.f32.mxu1 %vm279_vm0, %v4385_v56 }
0x1f23   : > { %8831 = vmatmul.mubr.msk.f32.vlgmr.msra.gmra.mxu1 %vm279_vm0, %v4386_v41 }
0x1f24   : > { %8841 = vmatpush3.msra.mxu1 %v10237_v32  ;;  %8844 = vmatprep.mubr.msk.f32.mxu1 %vm290_vm1, %v9982_v42 }
0x1f25   : > { %8842 = vmatprep.subr.mxu1 %v10305_v53 }
0x1f26   : > { %8843 = vmatpush3.msra.mxu1 %v10305_v53 }
0x1f27   : > { %8845 = vmatmul.mubr.msk.f32.vlgmr.msra.gmra.mxu1 %vm290_vm1, %v9989_v3  ;;  %8858 = vmatprep.subr.mxu1 %v10041_v4 }
0x1f28   : > { %8859 = vmatpush3.msra.mxu1 %v10041_v4 }
0x1f29   : > { %8860 = vmatprep.subr.mxu1 %v10050_v58 }
0x1f2a   : > { %8861 = vmatpush3.msra.mxu1 %v10050_v58 }
0x1f2b   : > { %8862 = vmatprep.subr.mxu1 %v10057_v61 }
0x1f2c   : > { %8863 = vmatpush3.msra.mxu1 %v10057_v61 }
0x1f2d   : > { %8864 = vmatprep.subr.mxu1 %v10064_v11 }
0x1f2e   : > { %8865 = vmatpush3.msra.mxu1 %v10064_v11 }
0x1fe3   : > { %v8832_v54 = vpop.f32.mrf.mxu1 }
0x1fe4   : > { %7863 = vst [vmem:[%s9757_s11 + $0x38] sm:$0xff] %v8832_v54 }
0x1fe5   : > { %v4465_v55 = vpop.f32.mrf.mxu1 }
0x1fe6   : > { %7862 = vst [vmem:[%s9757_s11 + $0x30] sm:$0xff] %v4465_v55 }
0x1fe7   : > { %v8846_v59 = vpop.f32.mrf.mxu1 }
0x1fe8   : > { %4833 = vrot.lane.b32.xlu1 %v8846_v59, %s9340_s30 }
0x1fe9   : > { %v4631_v17 = vpop.f32.mrf.mxu1 }
0x1fea   : > { %4831 = vrot.lane.b32.xlu0 %v4631_v17, %s9340_s30  ;;  %8866 = vmatprep.mubr.msk.f32.mxu1 %vm279_vm0, %v4631_v17 }
0x1feb   : > { %8867 = vmatmul.mubr.msk.f32.vlgmr.msra.gmra.mxu1 %vm279_vm0, %v8846_v59 }
0x1fec   : > { %8884 = vmatprep.mubr.msk.f32.mxu1 %vm290_vm1, %v10118_v43 }
0x205a   : > { %v4834_v28 = vpop.permute.xlu1 %4833 }
0x205c   : > { %v4832_v41 = vpop.permute.xlu0 %4831 }
0x20ab   : > { %v8868_v34 = vpop.f32.mrf.mxu1 }
0x20ac   : > { %v4818_v38 = vadd.f32 %v8868_v34, %v4729_v9 }
0x20ad   : > { %v4808_v57 = vpop.f32.mrf.mxu1 }
0x20ae   : > { %v7876_v19 = vmul.f32 -1.442695, %v4818_v38  ;;  %v4817_v36 = vadd.f32 %v4808_v57, %v4724_v35 }
0x20b0   : > { %9257 = vpow2.f32 %v7876_v19  ;;  %v7875_v37 = vmul.f32 -1.442695, %v4817_v36 }
0x20b2   : > { %9259 = vpow2.f32 %v7875_v37 }
0x20bd   : > { %v9258_v40 = vpop.eup %9257 }
0x20be   : > { %v4826_v45 = vadd.f32 1.0, %v9258_v40 }
0x20bf   : > { %v9260_v33 = vpop.eup %9259 }
0x20c0   : > { %9261 = vrcp.f32 %v4826_v45  ;;  %v4825_v2 = vadd.f32 1.0, %v9260_v33  ;;  %v10361_v33 = vld [vmem:[#allocation2 + $0x18] sm:$0xff] }
0x20c2   : > { %9263 = vrcp.f32 %v4825_v2 }
0x20cd   : > { %v9262_v26 = vpop.eup %9261 }
0x20ce   : > { %v4838_v29 = vmul.f32 %v9262_v26, %v4834_v28  ;;  %v4941_v34 = vsub.f32 1.0, %v9262_v26  ;;  %v4939_v57 = vmul.f32 %v9262_v26, %v10237_v32  ;;  %v10367_v32 = vld [vmem:[#allocation2 + $0x10] sm:$0xff] }
0x20cf   : > { %v9264_v39 = vpop.eup %9263 }
0x20d0   : > { %4847 = vrot.lane.b32.xlu1 %v4838_v29, %s9341_s19  ;;  %v4837_v60 = vmul.f32 %v9264_v39, %v4832_v41  ;;  %v4940_v36 = vsub.f32 1.0, %v9264_v39 }
0x20d2   : > { %4845 = vrot.lane.b32.xlu0 %v4837_v60, %s9341_s19 }
0x2142   : > { %v4848_v56 = vpop.permute.xlu1 %4847 }
0x2144   : > { %v4846_v50 = vpop.permute.xlu0 %4845 }
0x2145   : > { %8877 = vmatprep.mubr.msk.f32.mxu0 %vm279_vm0, %v4846_v50 }
0x2146   : > { %8878 = vmatmul.mubr.msk.f32.vlgmr.msra.gmra.mxu0 %vm279_vm0, %v4848_v56 }
0x2147   : > { %8895 = vmatpush3.msra.mxu0 %v10125_v46 }
0x2148   : > { %8896 = vmatprep.subr.mxu0 %v10130_v48 }
0x2149   : > { %8897 = vmatpush3.msra.mxu0 %v10130_v48 }
0x214a   : > { %8898 = vmatprep.subr.mxu0 %v10171_v13 }
0x214b   : > { %8899 = vmatpush3.msra.mxu0 %v10171_v13 }
0x214c   : > { %8900 = vmatprep.subr.mxu0 %v10184_v5 }
0x214d   : > { %8901 = vmatpush3.msra.mxu0 %v10184_v5 }
0x214e   : > { %8916 = vmatprep.subr.mxu0 %v10243_v8 }
0x2206   : > { %v8879_v18 = vpop.f32.mrf.mxu0 }
0x2207   : > { %4932 = vrot.lane.b32.xlu0 %v8879_v18, %s9342_s20 }
0x2208   : > { %v4919_v7 = vpop.f32.mrf.mxu0 }
0x2209   : > { %4930 = vrot.lane.b32.xlu1 %v4919_v7, %s9342_s20 }
0x2279   : > { %v4933_v54 = vpop.permute.xlu0 %4932 }
0x227a   : > { %v4937_v55 = vadd.f32 %v4933_v54, %v4729_v9  ;;  %v4938_v9 = vmul.f32 %v9264_v39, %v10305_v53 }
0x227b   : > { %v4931_v59 = vpop.permute.xlu1 %4930 }
0x227c   : > { %9265 = vtanh.f32 %v4937_v55  ;;  %v4936_v17 = vadd.f32 %v4931_v59, %v4724_v35 }
0x227e   : > { %9267 = vtanh.f32 %v4936_v17 }
0x2289   : > { %v9266_v22 = vpop.eup %9265 }
0x228a   : > { %4948 = vrot.lane.b32.xlu0 %v9266_v22, %s9342_s20 }
0x228b   : > { %v9268_v16 = vpop.eup %9267 }
0x228c   : > { %4946 = vrot.lane.b32.xlu1 %v9268_v16, %s9342_s20 }
0x22fc   : > { %v4949_v38 = vpop.permute.xlu0 %4948 }
0x22fd   : > { %v4953_v19 = vmul.f32 %v4949_v38, %v4941_v34 }
0x22fe   : > { %v4947_v37 = vpop.permute.xlu1 %4946 }
0x22ff   : > { %v4955_v40 = vadd.f32 %v4953_v19, %v4939_v57  ;;  %v4952_v45 = vmul.f32 %v4947_v37, %v4940_v36 }
0x2301   : > { %4957 = vst.msk [vmem:[#allocation2 + $0x8] sm:$0xff] %vm279_vm0, %v4955_v40  ;;  %v4954_v35 = vadd.f32 %v4952_v45, %v4938_v9  ;;  %8880 = vmatprep.subr.mxu1 %v4955_v40 }
0x2302   : > { %8881 = vmatpush3.msra.mxu1 %v4955_v40 }
0x2303   : > { %4956 = vst.msk [vmem:[#allocation2] sm:$0xff] %vm279_vm0, %v4954_v35  ;;  %8882 = vmatprep.subr.mxu1 %v4954_v35 }
0x2304   : > { %8883 = vmatpush3.msra.mxu1 %v4954_v35 }
0x2305   : > { %8885 = vmatmul.mubr.msk.f32.vlgmr.msra.gmra.mxu1 %vm290_vm1, %v10144_v62  ;;  %8887 = vmatprep.subr.mxu1 %v10361_v33 }
0x2306   : > { %8888 = vmatpush3.msra.mxu1 %v10361_v33  ;;  %8891 = vmatprep.mubr.msk.f32.mxu1 %vm290_vm1, %v10118_v43 }
0x2307   : > { %8889 = vmatprep.subr.mxu1 %v10367_v32 }
0x2308   : > { %8890 = vmatpush3.msra.mxu1 %v10367_v32  ;;  %v10404_v29 = vld [vmem:[#allocation2 + $0x8] sm:$0xff] }
0x2309   : > { %8892 = vmatmul.mubr.msk.f32.vlgmr.msra.gmra.mxu1 %vm290_vm1, %v10144_v62  ;;  %8905 = vmatprep.subr.mxu1 %v10160_v63 }
0x230a   : > { %8906 = vmatpush3.msra.mxu1 %v10160_v63 }
0x230b   : > { %8907 = vmatprep.subr.mxu1 %v10176_v49 }
0x230c   : > { %8908 = vmatpush3.msra.mxu1 %v10176_v49 }
0x230d   : > { %8909 = vmatprep.subr.mxu1 %v10191_v24 }
0x230e   : > { %8910 = vmatpush3.msra.mxu1 %v10191_v24 }
0x230f   : > { %8911 = vmatprep.subr.mxu1 %v10198_v25 }
0x2310   : > { %8912 = vmatpush3.msra.mxu1 %v10198_v25 }
0x2311   : > { %8927 = vmatprep.subr.mxu1 %v10205_v30 }
0x23c5   : > { %v8886_v53 = vpop.f32.mrf.mxu1 }
0x23c7   : > { %v5034_v2 = vpop.f32.mrf.mxu1 }
0x23c8   : > { %8902 = vmatprep.mubr.msk.f32.mxu0 %vm279_vm0, %v5034_v2 }
0x23c9   : > { %v8893_v26 = vpop.f32.mrf.mxu1  ;;  %8903 = vmatmul.mubr.msk.f32.vlgmr.msra.gmra.mxu0 %vm279_vm0, %v8886_v53 }
0x23ca   : > { %5311 = vrot.lane.b32.xlu1 %v8893_v26, %s9340_s30  ;;  %8917 = vmatpush3.msra.mxu0 %v10243_v8 }
0x23cb   : > { %v5109_v28 = vpop.f32.mrf.mxu1  ;;  %8918 = vmatprep.subr.mxu0 %v10248_v10 }
0x23cc   : > { %5309 = vrot.lane.b32.xlu0 %v5109_v28, %s9340_s30  ;;  %8913 = vmatprep.mubr.msk.f32.mxu1 %vm279_vm0, %v5109_v28 }
0x23cd   : > { %8914 = vmatmul.mubr.msk.f32.vlgmr.msra.gmra.mxu1 %vm279_vm0, %v8893_v26  ;;  %8919 = vmatpush3.msra.mxu0 %v10248_v10 }
0x23ce   : > { %8928 = vmatpush3.msra.mxu1 %v10205_v30  ;;  %8920 = vmatprep.subr.mxu0 %v10255_v14 }
0x23cf   : > { %8929 = vmatprep.subr.mxu1 %v10217_v0  ;;  %8921 = vmatpush3.msra.mxu0 %v10255_v14 }
0x23d0   : > { %8930 = vmatpush3.msra.mxu1 %v10217_v0  ;;  %8922 = vmatprep.subr.mxu0 %v10271_v51 }
0x23d1   : > { %8931 = vmatprep.subr.mxu1 %v10224_v31  ;;  %8923 = vmatpush3.msra.mxu0 %v10271_v51 }
0x23d2   : > { %8932 = vmatpush3.msra.mxu1 %v10224_v31 }
0x23d3   : > { %8933 = vmatprep.subr.mxu1 %v10231_v6 }
0x23d4   : > { %8934 = vmatpush3.msra.mxu1 %v10231_v6 }
0x23d5   : > { %8945 = vmatprep.subr.mxu1 %v10404_v29 }
0x243c   : > { %v5312_v57 = vpop.permute.xlu1 %5311 }
0x243e   : > { %v5310_v37 = vpop.permute.xlu0 %5309 }
0x2489   : > { %v8904_v39 = vpop.f32.mrf.mxu0 }
0x248a   : > { %v5207_v60 = vadd.f32 %v8904_v39, %v10264_v20 }
0x248b   : > { %v5201_v41 = vpop.f32.mrf.mxu0 }
0x248c   : > { %v5202_v56 = vadd.f32 %v10264_v20, %v5201_v41  ;;  %v7912_v41 = vld [vmem:[%s9412_s8 + $0x58] sm:$0xff] }
0x248d   : > { %v8915_v50 = vpop.f32.mrf.mxu1  ;;  %8938 = vmatprep.subr.mxu0 %v7912_v41 }
0x248e   : > { %v5296_v18 = vadd.f32 %v8915_v50, %v5207_v60  ;;  %v7911_v50 = vld [vmem:[%s9412_s8 + $0x50] sm:$0xff] }
0x248f   : > { %v5286_v7 = vpop.f32.mrf.mxu1 }
0x2490   : > { %v7900_v54 = vmul.f32 -1.442695, %v5296_v18  ;;  %v5295_v55 = vadd.f32 %v5286_v7, %v5202_v56 }
0x2492   : > { %9269 = vpow2.f32 %v7900_v54  ;;  %v7899_v59 = vmul.f32 -1.442695, %v5295_v55 }
0x2494   : > { %9271 = vpow2.f32 %v7899_v59  ;;  %v10439_v59 = vld [vmem:[#allocation2] sm:$0xff] }
0x249f   : > { %v9270_v17 = vpop.eup %9269 }
0x24a0   : > { %v5304_v22 = vadd.f32 1.0, %v9270_v17 }
0x24a1   : > { %v9272_v16 = vpop.eup %9271 }
0x24a2   : > { %9273 = vrcp.f32 %v5304_v22  ;;  %v5303_v34 = vadd.f32 1.0, %v9272_v16 }
0x24a4   : > { %9275 = vrcp.f32 %v5303_v34 }
0x24af   : > { %v9274_v38 = vpop.eup %9273 }
0x24b0   : > { %v5316_v19 = vmul.f32 %v9274_v38, %v5312_v57 }
0x24b1   : > { %v9276_v36 = vpop.eup %9275 }
0x24b2   : > { %5325 = vrot.lane.b32.xlu1 %v5316_v19, %s9341_s19  ;;  %v5315_v40 = vmul.f32 %v9276_v36, %v5310_v37  ;;  %v5418_v18 = vsub.f32 1.0, %v9276_v36  ;;  %v5416_v54 = vmul.f32 %v9276_v36, %v10367_v32  ;;  %v9330_v32 = vld [vmem:[%s10732_s1 + $0x8] sm:$0xff] }
0x24b4   : > { %5323 = vrot.lane.b32.xlu0 %v5315_v40, %s9341_s19 }
0x2524   : > { %v5326_v45 = vpop.permute.xlu1 %5325 }
0x2526   : > { %v5324_v9 = vpop.permute.xlu0 %5323 }
0x2527   : > { %8924 = vmatprep.mubr.msk.f32.mxu0 %vm279_vm0, %v5324_v9 }
0x2528   : > { %8925 = vmatmul.mubr.msk.f32.vlgmr.msra.gmra.mxu0 %vm279_vm0, %v5326_v45 }
0x2529   : > { %8942 = vmatprep.mubr.msk.f32.mxu0 %vm290_vm1, %v9982_v42  ;;  %8939 = vmatpush3.msra.mxu0 %v7912_v41 }
0x252a   : > { %8940 = vmatprep.subr.mxu0 %v7911_v50 }
0x252b   : > { %8941 = vmatpush3.msra.mxu0 %v7911_v50 }
0x252c   : > { %8943 = vmatmul.mubr.msk.f32.vlgmr.msra.gmra.mxu0 %vm290_vm1, %v9989_v3  ;;  %8952 = vmatprep.subr.mxu0 %v9996_v44 }
0x252d   : > { %8953 = vmatpush3.msra.mxu0 %v9996_v44  ;;  %v5419_v44 = vsub.f32 1.0, %v9274_v38 }
0x252e   : > { %8954 = vmatprep.subr.mxu0 %v10001_v27 }
0x252f   : > { %8955 = vmatpush3.msra.mxu0 %v10001_v27  ;;  %v5417_v27 = vmul.f32 %v9274_v38, %v10361_v33  ;;  %v9329_v33 = vld [vmem:[%s10732_s1] sm:$0xff] }
0x2530   : > { %8956 = vmatprep.subr.mxu0 %v10012_v21 }
0x2531   : > { %8957 = vmatpush3.msra.mxu0 %v10012_v21 }
0x2532   : > { %8958 = vmatprep.subr.mxu0 %v10019_v47 }
0x2533   : > { %8959 = vmatpush3.msra.mxu0 %v10019_v47 }
0x2534   : > { %8974 = vmatprep.subr.mxu0 %v10077_v52 }
0x25e8   : > { %v8926_v35 = vpop.f32.mrf.mxu0 }
0x25e9   : > { %5410 = vrot.lane.b32.xlu1 %v8926_v35, %s9342_s20 }
0x25ea   : > { %v5397_v53 = vpop.f32.mrf.mxu0 }
0x25eb   : > { %5408 = vrot.lane.b32.xlu0 %v5397_v53, %s9342_s20 }
0x25ec   : > { %v8944_v17 = vpop.f32.mrf.mxu0 }
0x25ee   : > { %v5603_v22 = vpop.f32.mrf.mxu0 }
0x25ef   : > { %8960 = vmatprep.mubr.msk.f32.mxu0 %vm279_vm0, %v5603_v22 }
0x25f0   : > { %8961 = vmatmul.mubr.msk.f32.vlgmr.msra.gmra.mxu0 %vm279_vm0, %v8944_v17 }
0x25f1   : > { %8975 = vmatpush3.msra.mxu0 %v10077_v52 }
0x25f2   : > { %8976 = vmatprep.subr.mxu0 %v10082_v15 }
0x25f3   : > { %8977 = vmatpush3.msra.mxu0 %v10082_v15 }
0x25f4   : > { %8978 = vmatprep.subr.mxu0 %v10089_v1 }
0x25f5   : > { %8979 = vmatpush3.msra.mxu0 %v10089_v1 }
0x25f6   : > { %8980 = vmatprep.subr.mxu0 %v10105_v12 }
0x25f7   : > { %8981 = vmatpush3.msra.mxu0 %v10105_v12 }
0x25f8   : > { %8999 = vmatprep.subr.mxu0 %v10125_v46 }
0x265b   : > { %v5411_v2 = vpop.permute.xlu1 %5410 }
0x265c   : > { %v5415_v26 = vadd.f32 %v5411_v2, %v5207_v60 }
0x265d   : > { %v5409_v28 = vpop.permute.xlu0 %5408 }
0x265e   : > { %9277 = vtanh.f32 %v5415_v26  ;;  %v5414_v39 = vadd.f32 %v5409_v28, %v5202_v56 }
0x2660   : > { %9279 = vtanh.f32 %v5414_v39 }
0x266b   : > { %v9278_v42 = vpop.eup %9277 }
0x266c   : > { %5426 = vrot.lane.b32.xlu1 %v9278_v42, %s9342_s20 }
0x266d   : > { %v9280_v3 = vpop.eup %9279 }
0x266e   : > { %5424 = vrot.lane.b32.xlu0 %v9280_v3, %s9342_s20 }
0x26b0   : > { %v8962_v52 = vpop.f32.mrf.mxu0 }
0x26b1   : > { %v5776_v1 = vadd.f32 %v8962_v52, %v10098_v23 }
0x26b2   : > { %v5770_v15 = vpop.f32.mrf.mxu0 }
0x26b3   : > { %v5771_v16 = vadd.f32 %v10098_v23, %v5770_v15 }
0x26de   : > { %v5427_v60 = vpop.permute.xlu1 %5426 }
0x26df   : > { %v5431_v56 = vmul.f32 %v5427_v60, %v5419_v44 }
0x26e0   : > { %v5425_v7 = vpop.permute.xlu0 %5424 }
0x26e1   : > { %v5433_v21 = vadd.f32 %v5431_v56, %v5417_v27  ;;  %v5430_v55 = vmul.f32 %v5425_v7, %v5418_v18 }
0x26e3   : > { %5435 = vst.msk [vmem:[#allocation2 + $0x18] sm:$0xff] %vm279_vm0, %v5433_v21  ;;  %v5432_v47 = vadd.f32 %v5430_v55, %v5416_v54 }
0x26e5   : > { %5434 = vst.msk [vmem:[#allocation2 + $0x10] sm:$0xff] %vm279_vm0, %v5432_v47  ;;  %8935 = vmatprep.mubr.msk.f32.mxu1 %vm279_vm0, %v5432_v47 }
0x26e6   : > { %8936 = vmatmul.mubr.msk.f32.vlgmr.msra.gmra.mxu1 %vm279_vm0, %v5433_v21 }
0x26e7   : > { %8946 = vmatpush3.msra.mxu1 %v10404_v29  ;;  %8949 = vmatprep.mubr.msk.f32.mxu1 %vm290_vm1, %v9329_v33 }
0x26e8   : > { %8947 = vmatprep.subr.mxu1 %v10439_v59 }
0x26e9   : > { %8948 = vmatpush3.msra.mxu1 %v10439_v59 }
0x26ea   : > { %8950 = vmatmul.mubr.msk.f32.vlgmr.msra.gmra.mxu1 %vm290_vm1, %v9330_v32  ;;  %8963 = vmatprep.subr.mxu1 %v10041_v4  ;;  %v10499_v32 = vld [vmem:[#allocation2 + $0x18] sm:$0xff] }
0x26eb   : > { %8964 = vmatpush3.msra.mxu1 %v10041_v4 }
0x26ec   : > { %8965 = vmatprep.subr.mxu1 %v10050_v58 }
0x26ed   : > { %8966 = vmatpush3.msra.mxu1 %v10050_v58 }
0x26ee   : > { %8967 = vmatprep.subr.mxu1 %v10057_v61 }
0x26ef   : > { %8968 = vmatpush3.msra.mxu1 %v10057_v61 }
0x26f0   : > { %8969 = vmatprep.subr.mxu1 %v10064_v11 }
0x26f1   : > { %8970 = vmatpush3.msra.mxu1 %v10064_v11 }
0x27a6   : > { %v8937_v4 = vpop.f32.mrf.mxu1 }
0x27a7   : > { %7910 = vst [vmem:[%s9757_s11 + $0x48] sm:$0xff] %v8937_v4 }
0x27a8   : > { %v5512_v58 = vpop.f32.mrf.mxu1 }
0x27a9   : > { %7909 = vst [vmem:[%s9757_s11 + $0x40] sm:$0xff] %v5512_v58 }
0x27aa   : > { %v8951_v61 = vpop.f32.mrf.mxu1 }
0x27ab   : > { %5880 = vrot.lane.b32.xlu1 %v8951_v61, %s9340_s30 }
0x27ac   : > { %v5678_v11 = vpop.f32.mrf.mxu1 }
0x27ad   : > { %5878 = vrot.lane.b32.xlu0 %v5678_v11, %s9340_s30  ;;  %8971 = vmatprep.mubr.msk.f32.mxu1 %vm279_vm0, %v5678_v11 }
0x27ae   : > { %8972 = vmatmul.mubr.msk.f32.vlgmr.msra.gmra.mxu1 %vm279_vm0, %v8951_v61 }
0x27af   : > { %8989 = vmatprep.mubr.msk.f32.mxu1 %vm290_vm1, %v10118_v43 }
0x281d   : > { %v5881_v53 = vpop.permute.xlu1 %5880 }
0x281f   : > { %v5879_v28 = vpop.permute.xlu0 %5878 }
0x286e   : > { %v8973_v12 = vpop.f32.mrf.mxu1 }
0x286f   : > { %v5865_v34 = vadd.f32 %v8973_v12, %v5776_v1 }
0x2870   : > { %v5855_v38 = vpop.f32.mrf.mxu1 }
0x2871   : > { %v7923_v57 = vmul.f32 -1.442695, %v5865_v34  ;;  %v5864_v19 = vadd.f32 %v5855_v38, %v5771_v16 }
0x2873   : > { %9281 = vpow2.f32 %v7923_v57  ;;  %v7922_v36 = vmul.f32 -1.442695, %v5864_v19 }
0x2875   : > { %9283 = vpow2.f32 %v7922_v36 }
0x2880   : > { %v9282_v37 = vpop.eup %9281 }
0x2881   : > { %v5873_v40 = vadd.f32 1.0, %v9282_v37 }
0x2882   : > { %v9284_v9 = vpop.eup %9283 }
0x2883   : > { %9285 = vrcp.f32 %v5873_v40  ;;  %v5872_v45 = vadd.f32 1.0, %v9284_v9  ;;  %v7959_v40 = vld [vmem:[%s9412_s8 + $0x68] sm:$0xff]  ;;  %v7958_v9 = vld [vmem:[%s9412_s8 + $0x60] sm:$0xff] }
0x2885   : > { %9287 = vrcp.f32 %v5872_v45  ;;  %v6576_v45 = vld [vmem:[%s10732_s1] sm:$0xff] }
0x2890   : > { %v9286_v35 = vpop.eup %9285 }
0x2891   : > { %v5885_v2 = vmul.f32 %v9286_v35, %v5881_v53  ;;  %v5986_v56 = vmul.f32 %v9286_v35, %v10404_v29  ;;  %v10505_v29 = vld [vmem:[#allocation2 + $0x10] sm:$0xff]  ;;  %v6737_v53 = vld [vmem:[%s10733_s2 + $0x18] sm:$0xff] }
0x2892   : > { %v9288_v26 = vpop.eup %9287 }
0x2893   : > { %5894 = vrot.lane.b32.xlu1 %v5885_v2, %s9341_s19  ;;  %v5884_v23 = vmul.f32 %v9288_v26, %v5879_v28  ;;  %v5987_v7 = vsub.f32 1.0, %v9288_v26  ;;  %v5985_v55 = vmul.f32 %v9288_v26, %v10439_v59  ;;  %v6736_v2 = vld [vmem:[%s10733_s2 + $0x10] sm:$0xff] }
0x2895   : > { %5892 = vrot.lane.b32.xlu0 %v5884_v23, %s9341_s19  ;;  %v6735_v23 = vld [vmem:[%s10733_s2 + $0x8] sm:$0xff] }
0x2905   : > { %v5895_v41 = vpop.permute.xlu1 %5894 }
0x2907   : > { %v5893_v39 = vpop.permute.xlu0 %5892 }
0x2908   : > { %8982 = vmatprep.mubr.msk.f32.mxu0 %vm279_vm0, %v5893_v39  ;;  %v6734_v39 = vld [vmem:[%s10733_s2] sm:$0xff] }
0x2909   : > { %8983 = vmatmul.mubr.msk.f32.vlgmr.msra.gmra.mxu0 %vm279_vm0, %v5895_v41 }
0x290a   : > { %9000 = vmatpush3.msra.mxu0 %v10125_v46 }
0x290b   : > { %9001 = vmatprep.subr.mxu0 %v10130_v48 }
0x290c   : > { %9002 = vmatpush3.msra.mxu0 %v10130_v48 }
0x290d   : > { %9003 = vmatprep.subr.mxu0 %v10171_v13 }
0x290e   : > { %9004 = vmatpush3.msra.mxu0 %v10171_v13 }
0x290f   : > { %9005 = vmatprep.subr.mxu0 %v10184_v5 }
0x2910   : > { %9006 = vmatpush3.msra.mxu0 %v10184_v5  ;;  %v5988_v5 = vsub.f32 1.0, %v9286_v35  ;;  %v6577_v35 = vld [vmem:[%s10732_s1 + $0x8] sm:$0xff] }
0x2911   : > { %9021 = vmatprep.subr.mxu0 %v10243_v8 }
0x29c9   : > { %v8984_v50 = vpop.f32.mrf.mxu0 }
0x29ca   : > { %5979 = vrot.lane.b32.xlu0 %v8984_v50, %s9342_s20 }
0x29cb   : > { %v5966_v42 = vpop.f32.mrf.mxu0 }
0x29cc   : > { %5977 = vrot.lane.b32.xlu1 %v5966_v42, %s9342_s20 }
0x2a3c   : > { %v5980_v46 = vpop.permute.xlu0 %5979 }
0x2a3d   : > { %v5984_v3 = vadd.f32 %v5980_v46, %v5776_v1 }
0x2a3e   : > { %v5978_v44 = vpop.permute.xlu1 %5977 }
0x2a3f   : > { %9289 = vtanh.f32 %v5984_v3  ;;  %v5983_v48 = vadd.f32 %v5978_v44, %v5771_v16 }
0x2a41   : > { %9291 = vtanh.f32 %v5983_v48 }
0x2a4c   : > { %v9290_v60 = vpop.eup %9289 }
0x2a4d   : > { %5995 = vrot.lane.b32.xlu0 %v9290_v60, %s9342_s20 }
0x2a4e   : > { %v9292_v13 = vpop.eup %9291 }
0x2a4f   : > { %5993 = vrot.lane.b32.xlu1 %v9292_v13, %s9342_s20 }
0x2abf   : > { %v5996_v27 = vpop.permute.xlu0 %5995 }
0x2ac0   : > { %v6000_v18 = vmul.f32 %v5996_v27, %v5988_v5 }
0x2ac1   : > { %v5994_v21 = vpop.permute.xlu1 %5993 }
0x2ac2   : > { %v6002_v54 = vadd.f32 %v6000_v18, %v5986_v56  ;;  %v5999_v47 = vmul.f32 %v5994_v21, %v5987_v7  ;;  %v6829_v7 = vld [vmem:[%s10735_s4 + $0x18] sm:$0xff]  ;;  %v6828_v21 = vld [vmem:[%s10735_s4 + $0x10] sm:$0xff] }
0x2ac4   : > { %6004 = vst.msk [vmem:[#allocation2 + $0x8] sm:$0xff] %vm279_vm0, %v6002_v54  ;;  %v6001_v33 = vadd.f32 %v5999_v47, %v5985_v55  ;;  %8985 = vmatprep.subr.mxu1 %v6002_v54  ;;  %v6826_v55 = vld [vmem:[%s10735_s4] sm:$0xff] }
0x2ac5   : > { %8986 = vmatpush3.msra.mxu1 %v6002_v54  ;;  %v6827_v54 = vld [vmem:[%s10735_s4 + $0x8] sm:$0xff] }
0x2ac6   : > { %6003 = vst.msk [vmem:[#allocation2] sm:$0xff] %vm279_vm0, %v6001_v33  ;;  %8987 = vmatprep.subr.mxu1 %v6001_v33 }
0x2ac7   : > { %8988 = vmatpush3.msra.mxu1 %v6001_v33 }
0x2ac8   : > { %8990 = vmatmul.mubr.msk.f32.vlgmr.msra.gmra.mxu1 %vm290_vm1, %v10144_v62  ;;  %8992 = vmatprep.subr.mxu1 %v10499_v32 }
0x2ac9   : > { %8993 = vmatpush3.msra.mxu1 %v10499_v32  ;;  %8996 = vmatprep.mubr.msk.f32.mxu1 %vm290_vm1, %v10118_v43 }
0x2aca   : > { %8994 = vmatprep.subr.mxu1 %v10505_v29 }
0x2acb   : > { %8995 = vmatpush3.msra.mxu1 %v10505_v29 }
0x2acc   : > { %8997 = vmatmul.mubr.msk.f32.vlgmr.msra.gmra.mxu1 %vm290_vm1, %v10144_v62  ;;  %9010 = vmatprep.subr.mxu1 %v10160_v63 }
0x2acd   : > { %9011 = vmatpush3.msra.mxu1 %v10160_v63  ;;  %v10584_v27 = vld [vmem:[#allocation2] sm:$0xff] }
0x2ace   : > { %9012 = vmatprep.subr.mxu1 %v10176_v49 }
0x2acf   : > { %9013 = vmatpush3.msra.mxu1 %v10176_v49  ;;  %v10542_v49 = vld [vmem:[#allocation2 + $0x8] sm:$0xff] }
0x2ad0   : > { %9014 = vmatprep.subr.mxu1 %v10191_v24 }
0x2ad1   : > { %9015 = vmatpush3.msra.mxu1 %v10191_v24 }
0x2ad2   : > { %9016 = vmatprep.subr.mxu1 %v10198_v25 }
0x2ad3   : > { %9017 = vmatpush3.msra.mxu1 %v10198_v25 }
0x2ad4   : > { %9032 = vmatprep.subr.mxu1 %v10205_v30 }
0x2b88   : > { %v8991_v43 = vpop.f32.mrf.mxu1 }
0x2b8a   : > { %v6081_v62 = vpop.f32.mrf.mxu1 }
0x2b8b   : > { %9007 = vmatprep.mubr.msk.f32.mxu0 %vm279_vm0, %v6081_v62  ;;  %v6935_v62 = vld [vmem:[%s10736_s5 + $0x10] sm:$0xff] }
0x2b8c   : > { %v8998_v59 = vpop.f32.mrf.mxu1  ;;  %9008 = vmatmul.mubr.msk.f32.vlgmr.msra.gmra.mxu0 %vm279_vm0, %v8991_v43  ;;  %v6936_v43 = vld [vmem:[%s10736_s5 + $0x18] sm:$0xff] }
0x2b8d   : > { %6358 = vrot.lane.b32.xlu1 %v8998_v59, %s9340_s30  ;;  %9022 = vmatpush3.msra.mxu0 %v10243_v8 }
0x2b8e   : > { %v6156_v63 = vpop.f32.mrf.mxu1  ;;  %9023 = vmatprep.subr.mxu0 %v10248_v10 }
0x2b8f   : > { %6356 = vrot.lane.b32.xlu0 %v6156_v63, %s9340_s30  ;;  %9018 = vmatprep.mubr.msk.f32.mxu1 %vm279_vm0, %v6156_v63 }
0x2b90   : > { %9019 = vmatmul.mubr.msk.f32.vlgmr.msra.gmra.mxu1 %vm279_vm0, %v8998_v59  ;;  %9024 = vmatpush3.msra.mxu0 %v10248_v10  ;;  %v6934_v59 = vld [vmem:[%s10736_s5 + $0x8] sm:$0xff] }
0x2b91   : > { %9033 = vmatpush3.msra.mxu1 %v10205_v30  ;;  %9025 = vmatprep.subr.mxu0 %v10255_v14 }
0x2b92   : > { %9034 = vmatprep.subr.mxu1 %v10217_v0  ;;  %9026 = vmatpush3.msra.mxu0 %v10255_v14 }
0x2b93   : > { %9035 = vmatpush3.msra.mxu1 %v10217_v0  ;;  %9027 = vmatprep.subr.mxu0 %v10271_v51 }
0x2b94   : > { %9036 = vmatprep.subr.mxu1 %v10224_v31  ;;  %9028 = vmatpush3.msra.mxu0 %v10271_v51 }
0x2b95   : > { %9037 = vmatpush3.msra.mxu1 %v10224_v31  ;;  %9043 = vmatprep.subr.mxu0 %v7959_v40 }
0x2b96   : > { %9038 = vmatprep.subr.mxu1 %v10231_v6 }
0x2b97   : > { %9039 = vmatpush3.msra.mxu1 %v10231_v6 }
0x2b98   : > { %9050 = vmatprep.subr.mxu1 %v10542_v49 }
0x2bff   : > { %v6359_v11 = vpop.permute.xlu1 %6358 }
0x2c01   : > { %v6357_v1 = vpop.permute.xlu0 %6356 }
0x2c4c   : > { %v9009_v24 = vpop.f32.mrf.mxu0 }
0x2c4d   : > { %v6254_v30 = vadd.f32 %v9009_v24, %v10264_v20  ;;  %v7964_v24 = vld [vmem:[%s10734_s3] ss:$0 sm:$0xff] }
0x2c4e   : > { %v6248_v25 = vpop.f32.mrf.mxu0 }
0x2c4f   : > { %v6249_v8 = vadd.f32 %v10264_v20, %v6248_v25 }
0x2c50   : > { %v9020_v0 = vpop.f32.mrf.mxu1 }
0x2c51   : > { %v6343_v10 = vadd.f32 %v9020_v0, %v6254_v30 }
0x2c52   : > { %v6333_v14 = vpop.f32.mrf.mxu1 }
0x2c53   : > { %v7947_v51 = vmul.f32 -1.442695, %v6343_v10  ;;  %v6342_v17 = vadd.f32 %v6333_v14, %v6249_v8 }
0x2c55   : > { %9293 = vpow2.f32 %v7947_v51  ;;  %v7946_v31 = vmul.f32 -1.442695, %v6342_v17 }
0x2c57   : > { %9295 = vpow2.f32 %v7946_v31 }
0x2c62   : > { %v9294_v22 = vpop.eup %9293 }
0x2c63   : > { %v6351_v6 = vadd.f32 1.0, %v9294_v22 }
0x2c64   : > { %v9296_v4 = vpop.eup %9295 }
0x2c65   : > { %9297 = vrcp.f32 %v6351_v6  ;;  %v6350_v58 = vadd.f32 1.0, %v9296_v4 }
0x2c67   : > { %9299 = vrcp.f32 %v6350_v58 }
0x2c72   : > { %v9298_v61 = vpop.eup %9297 }
0x2c73   : > { %v6363_v52 = vmul.f32 %v9298_v61, %v6359_v11  ;;  %v6466_v41 = vsub.f32 1.0, %v9298_v61  ;;  %v6464_v42 = vmul.f32 %v9298_v61, %v10499_v32  ;;  %v6933_v61 = vld [vmem:[%s10736_s5] sm:$0xff] }
0x2c74   : > { %v9300_v15 = vpop.eup %9299 }
0x2c75   : > { %6372 = vrot.lane.b32.xlu1 %v6363_v52, %s9341_s19  ;;  %v6362_v20 = vmul.f32 %v9300_v15, %v6357_v1  ;;  %v6465_v3 = vsub.f32 1.0, %v9300_v15  ;;  %v6463_v60 = vmul.f32 %v9300_v15, %v10505_v29 }
0x2c77   : > { %6370 = vrot.lane.b32.xlu0 %v6362_v20, %s9341_s19 }
0x2ce7   : > { %v6373_v16 = vpop.permute.xlu1 %6372 }
0x2ce9   : > { %v6371_v12 = vpop.permute.xlu0 %6370 }
0x2cea   : > { %9029 = vmatprep.mubr.msk.f32.mxu0 %vm279_vm0, %v6371_v12 }
0x2ceb   : > { %9030 = vmatmul.mubr.msk.f32.vlgmr.msra.gmra.mxu0 %vm279_vm0, %v6373_v16 }
0x2cec   : > { %9044 = vmatpush3.msra.mxu0 %v7959_v40  ;;  %9047 = vmatprep.mubr.msk.f32.mxu0 %vm290_vm1, %v6576_v45 }
0x2ced   : > { %9045 = vmatprep.subr.mxu0 %v7958_v9 }
0x2cee   : > { %9046 = vmatpush3.msra.mxu0 %v7958_v9  ;;  %v7973_v9 = vld [vmem:[%s10732_s1 + $0x10] sm:$0xff] }
0x2cef   : > { %9048 = vmatmul.mubr.msk.f32.vlgmr.msra.gmra.mxu0 %vm290_vm1, %v6577_v35  ;;  %9057 = vmatprep.subr.mxu0 %v6737_v53 }
0x2cf0   : > { %9058 = vmatpush3.msra.mxu0 %v6737_v53  ;;  %v7981_v53 = vld [vmem:[%s10733_s2 + $0x30] sm:$0xff] }
0x2cf1   : > { %9059 = vmatprep.subr.mxu0 %v6736_v2 }
0x2cf2   : > { %9060 = vmatpush3.msra.mxu0 %v6736_v2 }
0x2cf3   : > { %9061 = vmatprep.subr.mxu0 %v6735_v23 }
0x2cf4   : > { %9062 = vmatpush3.msra.mxu0 %v6735_v23 }
0x2cf5   : > { %9063 = vmatprep.subr.mxu0 %v6734_v39 }
0x2cf6   : > { %9064 = vmatpush3.msra.mxu0 %v6734_v39 }
0x2cf7   : > { %9079 = vmatprep.subr.mxu0 %v6936_v43 }
0x2dab   : > { %v9031_v34 = vpop.f32.mrf.mxu0 }
0x2dac   : > { %6457 = vrot.lane.b32.xlu1 %v9031_v34, %s9342_s20 }
0x2dad   : > { %v6444_v38 = vpop.f32.mrf.mxu0 }
0x2dae   : > { %6455 = vrot.lane.b32.xlu0 %v6444_v38, %s9342_s20 }
0x2daf   : > { %v9049_v56 = vpop.f32.mrf.mxu0 }
0x2db1   : > { %v6650_v18 = vpop.f32.mrf.mxu0 }
0x2db2   : > { %9065 = vmatprep.mubr.msk.f32.mxu0 %vm279_vm0, %v6650_v18  ;;  %v7988_v18 = vld [vmem:[%s10735_s4 + $0x28] sm:$0xff] }
0x2db3   : > { %9066 = vmatmul.mubr.msk.f32.vlgmr.msra.gmra.mxu0 %vm279_vm0, %v9049_v56  ;;  %v7989_v56 = vld [vmem:[%s10735_s4 + $0x30] sm:$0xff] }
0x2db4   : > { %9080 = vmatpush3.msra.mxu0 %v6936_v43 }
0x2db5   : > { %9081 = vmatprep.subr.mxu0 %v6935_v62 }
0x2db6   : > { %9082 = vmatpush3.msra.mxu0 %v6935_v62  ;;  %v7984_v62 = vld [vmem:[%s10734_s3 + $0x1] ss:$0 sm:$0xff] }
0x2db7   : > { %9083 = vmatprep.subr.mxu0 %v6934_v59 }
0x2db8   : > { %9084 = vmatpush3.msra.mxu0 %v6934_v59 }
0x2db9   : > { %9085 = vmatprep.subr.mxu0 %v6933_v61 }
0x2dba   : > { %9086 = vmatpush3.msra.mxu0 %v6933_v61 }
0x2e1e   : > { %v6458_v57 = vpop.permute.xlu1 %6457 }
0x2e1f   : > { %v6462_v19 = vadd.f32 %v6458_v57, %v6254_v30 }
0x2e20   : > { %v6456_v36 = vpop.permute.xlu0 %6455 }
0x2e21   : > { %9301 = vtanh.f32 %v6462_v19  ;;  %v6461_v37 = vadd.f32 %v6456_v36, %v6249_v8 }
0x2e23   : > { %9303 = vtanh.f32 %v6461_v37 }
0x2e2e   : > { %v9302_v26 = vpop.eup %9301 }
0x2e2f   : > { %6473 = vrot.lane.b32.xlu1 %v9302_v26, %s9342_s20 }
0x2e30   : > { %v9304_v28 = vpop.eup %9303 }
0x2e31   : > { %6471 = vrot.lane.b32.xlu0 %v9304_v28, %s9342_s20 }
0x2e73   : > { %v9067_v63 = vpop.f32.mrf.mxu0 }
0x2e74   : > { %v6823_v30 = vadd.f32 %v9067_v63, %v7964_v24 }
0x2e75   : > { %v6817_v25 = vpop.f32.mrf.mxu0 }
0x2e76   : > { %v6818_v8 = vadd.f32 %v7964_v24, %v6817_v25 }
0x2ea1   : > { %v6474_v50 = vpop.permute.xlu1 %6473 }
0x2ea2   : > { %v6478_v46 = vmul.f32 %v6474_v50, %v6466_v41 }
0x2ea3   : > { %v6472_v44 = vpop.permute.xlu0 %6471 }
0x2ea4   : > { %v6480_v48 = vadd.f32 %v6478_v46, %v6464_v42  ;;  %v6477_v13 = vmul.f32 %v6472_v44, %v6465_v3 }
0x2ea6   : > { %6482 = vst.msk [vmem:[#allocation2 + $0x18] sm:$0xff] %vm279_vm0, %v6480_v48  ;;  %v6479_v5 = vadd.f32 %v6477_v13, %v6463_v60  ;;  %v7980_v13 = vld [vmem:[%s10733_s2 + $0x28] sm:$0xff] }
0x2ea8   : > { %6481 = vst.msk [vmem:[#allocation2 + $0x10] sm:$0xff] %vm279_vm0, %v6479_v5  ;;  %9040 = vmatprep.mubr.msk.f32.mxu1 %vm279_vm0, %v6479_v5  ;;  %v7990_v5 = vld [vmem:[%s10735_s4 + $0x38] sm:$0xff] }
0x2ea9   : > { %9041 = vmatmul.mubr.msk.f32.vlgmr.msra.gmra.mxu1 %vm279_vm0, %v6480_v48  ;;  %v7974_v48 = vld [vmem:[%s10732_s1 + $0x18] sm:$0xff] }
0x2eaa   : > { %9051 = vmatpush3.msra.mxu1 %v10542_v49  ;;  %9054 = vmatprep.mubr.msk.f32.mxu1 %vm290_vm1, %v6576_v45 }
0x2eab   : > { %9052 = vmatprep.subr.mxu1 %v10584_v27 }
0x2eac   : > { %9053 = vmatpush3.msra.mxu1 %v10584_v27 }
0x2ead   : > { %9055 = vmatmul.mubr.msk.f32.vlgmr.msra.gmra.mxu1 %vm290_vm1, %v6577_v35  ;;  %9068 = vmatprep.subr.mxu1 %v6829_v7  ;;  %v7982_v35 = vld [vmem:[%s10733_s2 + $0x38] sm:$0xff] }
0x2eae   : > { %9069 = vmatpush3.msra.mxu1 %v6829_v7  ;;  %9104 = vmatprep.subr.mxu0 %v7982_v35  ;;  %v7987_v7 = vld [vmem:[%s10735_s4 + $0x20] sm:$0xff] }
0x2eaf   : > { %9070 = vmatprep.subr.mxu1 %v6828_v21  ;;  %v10655_v60 = vld [vmem:[#allocation2 + $0x10] sm:$0xff] }
0x2eb0   : > { %9071 = vmatpush3.msra.mxu1 %v6828_v21 }
0x2eb1   : > { %9072 = vmatprep.subr.mxu1 %v6827_v54 }
0x2eb2   : > { %9073 = vmatpush3.msra.mxu1 %v6827_v54 }
0x2eb3   : > { %9074 = vmatprep.subr.mxu1 %v6826_v55 }
0x2eb4   : > { %9075 = vmatpush3.msra.mxu1 %v6826_v55 }
0x2f69   : > { %v9042_v47 = vpop.f32.mrf.mxu1 }
0x2f6a   : > { %7957 = vst [vmem:[%s9757_s11 + $0x58] sm:$0xff] %v9042_v47 }
0x2f6b   : > { %v6559_v33 = vpop.f32.mrf.mxu1 }
0x2f6c   : > { %7956 = vst [vmem:[%s9757_s11 + $0x50] sm:$0xff] %v6559_v33  ;;  %v7998_v33 = vld [vmem:[%s10736_s5 + $0x38] sm:$0xff] }
0x2f6d   : > { %v9056_v32 = vpop.f32.mrf.mxu1 }
0x2f6e   : > { %6927 = vrot.lane.b32.xlu1 %v9056_v32, %s9340_s30 }
0x2f6f   : > { %v6725_v29 = vpop.f32.mrf.mxu1 }
0x2f70   : > { %6925 = vrot.lane.b32.xlu0 %v6725_v29, %s9340_s30  ;;  %9076 = vmatprep.mubr.msk.f32.mxu1 %vm279_vm0, %v6725_v29  ;;  %v7996_v29 = vld [vmem:[%s10736_s5 + $0x28] sm:$0xff] }
0x2f71   : > { %9077 = vmatmul.mubr.msk.f32.vlgmr.msra.gmra.mxu1 %vm279_vm0, %v9056_v32  ;;  %v7997_v32 = vld [vmem:[%s10736_s5 + $0x30] sm:$0xff] }
0x2f72   : > { %9094 = vmatprep.mubr.msk.f32.mxu1 %vm290_vm1, %v7973_v9 }
0x2fe0   : > { %v6928_v52 = vpop.permute.xlu1 %6927 }
0x2fe2   : > { %v6926_v20 = vpop.permute.xlu0 %6925 }
0x3031   : > { %v9078_v0 = vpop.f32.mrf.mxu1 }
0x3032   : > { %v6912_v10 = vadd.f32 %v9078_v0, %v6823_v30 }
0x3033   : > { %v6902_v14 = vpop.f32.mrf.mxu1 }
0x3034   : > { %v7970_v51 = vmul.f32 -1.442695, %v6912_v10  ;;  %v6911_v17 = vadd.f32 %v6902_v14, %v6818_v8 }
0x3036   : > { %9305 = vpow2.f32 %v7970_v51  ;;  %v7969_v31 = vmul.f32 -1.442695, %v6911_v17 }
0x3038   : > { %9307 = vpow2.f32 %v7969_v31 }
0x3043   : > { %v9306_v22 = vpop.eup %9305 }
0x3044   : > { %v6920_v6 = vadd.f32 1.0, %v9306_v22 }
0x3045   : > { %v9308_v4 = vpop.eup %9307 }
0x3046   : > { %9309 = vrcp.f32 %v6920_v6  ;;  %v6919_v58 = vadd.f32 1.0, %v9308_v4  ;;  %v7995_v6 = vld [vmem:[%s10736_s5 + $0x20] sm:$0xff] }
0x3048   : > { %9311 = vrcp.f32 %v6919_v58 }
0x3053   : > { %v9310_v11 = vpop.eup %9309 }
0x3054   : > { %v6932_v15 = vmul.f32 %v9310_v11, %v6928_v52  ;;  %v7035_v26 = vsub.f32 1.0, %v9310_v11  ;;  %v7033_v23 = vmul.f32 %v9310_v11, %v10542_v49  ;;  %v10650_v49 = vld [vmem:[#allocation2 + $0x18] sm:$0xff] }
0x3055   : > { %v9312_v1 = vpop.eup %9311 }
0x3056   : > { %6941 = vrot.lane.b32.xlu1 %v6932_v15, %s9341_s19  ;;  %v6931_v12 = vmul.f32 %v9312_v1, %v6926_v20  ;;  %v7034_v41 = vsub.f32 1.0, %v9312_v1  ;;  %v7032_v46 = vmul.f32 %v9312_v1, %v10584_v27  ;;  %v7979_v27 = vld [vmem:[%s10733_s2 + $0x20] sm:$0xff] }
0x3058   : > { %6939 = vrot.lane.b32.xlu0 %v6931_v12, %s9341_s19 }
0x30c8   : > { %v6942_v34 = vpop.permute.xlu1 %6941 }
0x30ca   : > { %v6940_v16 = vpop.permute.xlu0 %6939 }
0x30cb   : > { %9087 = vmatprep.mubr.msk.f32.mxu0 %vm279_vm0, %v6940_v16 }
0x30cc   : > { %9088 = vmatmul.mubr.msk.f32.vlgmr.msra.gmra.mxu0 %vm279_vm0, %v6942_v34  ;;  %v7533_v34 = vld [vmem:[%s10737_s6 + $0x18] sm:$0xff] }
0x30cd   : > { %9105 = vmatpush3.msra.mxu0 %v7982_v35 }
0x30ce   : > { %9106 = vmatprep.subr.mxu0 %v7981_v53 }
0x30cf   : > { %9107 = vmatpush3.msra.mxu0 %v7981_v53 }
0x30d0   : > { %9108 = vmatprep.subr.mxu0 %v7980_v13 }
0x30d1   : > { %9109 = vmatpush3.msra.mxu0 %v7980_v13 }
0x30d2   : > { %9110 = vmatprep.subr.mxu0 %v7979_v27 }
0x30d3   : > { %9111 = vmatpush3.msra.mxu0 %v7979_v27 }
0x30d4   : > { %9126 = vmatprep.subr.mxu0 %v7998_v33 }
0x318c   : > { %v9089_v38 = vpop.f32.mrf.mxu0 }
0x318d   : > { %7026 = vrot.lane.b32.xlu0 %v9089_v38, %s9342_s20 }
0x318e   : > { %v7013_v57 = vpop.f32.mrf.mxu0 }
0x318f   : > { %7024 = vrot.lane.b32.xlu1 %v7013_v57, %s9342_s20 }
0x31ff   : > { %v7027_v19 = vpop.permute.xlu0 %7026 }
0x3200   : > { %v7031_v36 = vadd.f32 %v7027_v19, %v6823_v30 }
0x3201   : > { %v7025_v37 = vpop.permute.xlu1 %7024 }
0x3202   : > { %9313 = vtanh.f32 %v7031_v36  ;;  %v7030_v40 = vadd.f32 %v7025_v37, %v6818_v8  ;;  %v7532_v37 = vld [vmem:[%s10737_s6 + $0x10] sm:$0xff] }
0x3204   : > { %9315 = vtanh.f32 %v7030_v40  ;;  %v7531_v40 = vld [vmem:[%s10737_s6 + $0x8] sm:$0xff] }
0x320f   : > { %v9314_v45 = vpop.eup %9313 }
0x3210   : > { %7042 = vrot.lane.b32.xlu0 %v9314_v45, %s9342_s20 }
0x3211   : > { %v9316_v2 = vpop.eup %9315 }
0x3212   : > { %7040 = vrot.lane.b32.xlu1 %v9316_v2, %s9342_s20 }
0x3282   : > { %v7043_v28 = vpop.permute.xlu0 %7042 }
0x3283   : > { %v7047_v39 = vmul.f32 %v7043_v28, %v7035_v26 }
0x3284   : > { %v7041_v50 = vpop.permute.xlu1 %7040 }
0x3285   : > { %v7049_v42 = vadd.f32 %v7047_v39, %v7033_v23  ;;  %v7046_v3 = vmul.f32 %v7041_v50, %v7034_v41 }
0x3287   : > { %7051 = vst.msk [vmem:[#allocation2 + $0x8] sm:$0xff] %vm279_vm0, %v7049_v42  ;;  %v7048_v44 = vadd.f32 %v7046_v3, %v7032_v46  ;;  %9090 = vmatprep.subr.mxu1 %v7049_v42 }
0x3288   : > { %9091 = vmatpush3.msra.mxu1 %v7049_v42 }
0x3289   : > { %7050 = vst.msk [vmem:[#allocation2] sm:$0xff] %vm279_vm0, %v7048_v44  ;;  %9092 = vmatprep.subr.mxu1 %v7048_v44 }
0x328a   : > { %9093 = vmatpush3.msra.mxu1 %v7048_v44 }
0x328b   : > { %9095 = vmatmul.mubr.msk.f32.vlgmr.msra.gmra.mxu1 %vm290_vm1, %v7974_v48  ;;  %9097 = vmatprep.subr.mxu1 %v10650_v49 }
0x328c   : > { %9098 = vmatpush3.msra.mxu1 %v10650_v49  ;;  %9101 = vmatprep.mubr.msk.f32.mxu1 %vm290_vm1, %v7973_v9  ;;  %v7530_v9 = vld [vmem:[%s10737_s6] sm:$0xff] }
0x328d   : > { %9099 = vmatprep.subr.mxu1 %v10655_v60 }
0x328e   : > { %9100 = vmatpush3.msra.mxu1 %v10655_v60 }
0x328f   : > { %9102 = vmatmul.mubr.msk.f32.vlgmr.msra.gmra.mxu1 %vm290_vm1, %v7974_v48  ;;  %9115 = vmatprep.subr.mxu1 %v7990_v5 }
0x3290   : > { %9116 = vmatpush3.msra.mxu1 %v7990_v5 }
0x3291   : > { %9117 = vmatprep.subr.mxu1 %v7989_v56 }
0x3292   : > { %9118 = vmatpush3.msra.mxu1 %v7989_v56 }
0x3293   : > { %9119 = vmatprep.subr.mxu1 %v7988_v18 }
0x3294   : > { %9120 = vmatpush3.msra.mxu1 %v7988_v18 }
0x3295   : > { %9121 = vmatprep.subr.mxu1 %v7987_v7 }
0x3296   : > { %9122 = vmatpush3.msra.mxu1 %v7987_v7 }
0x3297   : > { %9137 = vmatprep.subr.mxu1 %v7533_v34 }
0x334b   : > { %v9096_v21 = vpop.f32.mrf.mxu1 }
0x334d   : > { %v7128_v54 = vpop.f32.mrf.mxu1 }
0x334e   : > { %9112 = vmatprep.mubr.msk.f32.mxu0 %vm279_vm0, %v7128_v54 }
0x334f   : > { %v9103_v55 = vpop.f32.mrf.mxu1  ;;  %9113 = vmatmul.mubr.msk.f32.vlgmr.msra.gmra.mxu0 %vm279_vm0, %v9096_v21 }
0x3350   : > { %7405 = vrot.lane.b32.xlu1 %v9103_v55, %s9340_s30  ;;  %9127 = vmatpush3.msra.mxu0 %v7998_v33 }
0x3351   : > { %v7203_v47 = vpop.f32.mrf.mxu1  ;;  %9128 = vmatprep.subr.mxu0 %v7997_v32 }
0x3352   : > { %7403 = vrot.lane.b32.xlu0 %v7203_v47, %s9340_s30  ;;  %9123 = vmatprep.mubr.msk.f32.mxu1 %vm279_vm0, %v7203_v47 }
0x3353   : > { %9124 = vmatmul.mubr.msk.f32.vlgmr.msra.gmra.mxu1 %vm279_vm0, %v9103_v55  ;;  %9129 = vmatpush3.msra.mxu0 %v7997_v32 }
0x3354   : > { %9130 = vmatprep.subr.mxu0 %v7996_v29  ;;  %9138 = vmatpush3.msra.mxu1 %v7533_v34 }
0x3355   : > { %9131 = vmatpush3.msra.mxu0 %v7996_v29  ;;  %9139 = vmatprep.subr.mxu1 %v7532_v37 }
0x3356   : > { %9132 = vmatprep.subr.mxu0 %v7995_v6  ;;  %9140 = vmatpush3.msra.mxu1 %v7532_v37 }
0x3357   : > { %9133 = vmatpush3.msra.mxu0 %v7995_v6  ;;  %9141 = vmatprep.subr.mxu1 %v7531_v40 }
0x3358   : > { %9142 = vmatpush3.msra.mxu1 %v7531_v40 }
0x3359   : > { %9143 = vmatprep.subr.mxu1 %v7530_v9 }
0x335a   : > { %9144 = vmatpush3.msra.mxu1 %v7530_v9 }
0x33c2   : > { %v7406_v58 = vpop.permute.xlu1 %7405 }
0x33c4   : > { %v7404_v52 = vpop.permute.xlu0 %7403 }
0x340f   : > { %v9114_v43 = vpop.f32.mrf.mxu0 }
0x3410   : > { %v7301_v63 = vadd.f32 %v9114_v43, %v7984_v62 }
0x3411   : > { %v7295_v59 = vpop.f32.mrf.mxu0 }
0x3412   : > { %v7296_v25 = vadd.f32 %v7984_v62, %v7295_v59 }
0x3413   : > { %v9125_v24 = vpop.f32.mrf.mxu1 }
0x3414   : > { %v7390_v30 = vadd.f32 %v9125_v24, %v7301_v63 }
0x3415   : > { %v7380_v0 = vpop.f32.mrf.mxu1 }
0x3416   : > { %v7994_v8 = vmul.f32 -1.442695, %v7390_v30  ;;  %v7389_v10 = vadd.f32 %v7380_v0, %v7296_v25 }
0x3418   : > { %9317 = vpow2.f32 %v7994_v8  ;;  %v7993_v14 = vmul.f32 -1.442695, %v7389_v10 }
0x341a   : > { %9319 = vpow2.f32 %v7993_v14 }
0x3425   : > { %v9318_v51 = vpop.eup %9317 }
0x3426   : > { %v7398_v17 = vadd.f32 1.0, %v9318_v51 }
0x3427   : > { %v9320_v31 = vpop.eup %9319 }
0x3428   : > { %9321 = vrcp.f32 %v7398_v17  ;;  %v7397_v22 = vadd.f32 1.0, %v9320_v31 }
0x342a   : > { %9323 = vrcp.f32 %v7397_v22 }
0x3435   : > { %v9322_v4 = vpop.eup %9321 }
0x3436   : > { %v7410_v61 = vmul.f32 %v9322_v4, %v7406_v58  ;;  %v7513_v53 = vsub.f32 1.0, %v9322_v4  ;;  %v7511_v26 = vmul.f32 %v9322_v4, %v10650_v49 }
0x3437   : > { %v9324_v11 = vpop.eup %9323 }
0x3438   : > { %7419 = vrot.lane.b32.xlu1 %v7410_v61, %s9341_s19  ;;  %v7409_v15 = vmul.f32 %v9324_v11, %v7404_v52  ;;  %v7512_v23 = vsub.f32 1.0, %v9324_v11  ;;  %v7510_v50 = vmul.f32 %v9324_v11, %v10655_v60 }
0x343a   : > { %7417 = vrot.lane.b32.xlu0 %v7409_v15, %s9341_s19 }
0x34aa   : > { %v7420_v20 = vpop.permute.xlu1 %7419 }
0x34ac   : > { %v7418_v1 = vpop.permute.xlu0 %7417 }
0x34ad   : > { %9134 = vmatprep.mubr.msk.f32.mxu0 %vm279_vm0, %v7418_v1 }
0x34ae   : > { %9135 = vmatmul.mubr.msk.f32.vlgmr.msra.gmra.mxu0 %vm279_vm0, %v7420_v20 }
0x356e   : > { %v9136_v12 = vpop.f32.mrf.mxu0 }
0x356f   : > { %7504 = vrot.lane.b32.xlu1 %v9136_v12, %s9342_s20 }
0x3570   : > { %v7491_v16 = vpop.f32.mrf.mxu0 }
0x3571   : > { %7502 = vrot.lane.b32.xlu0 %v7491_v16, %s9342_s20 }
0x35e1   : > { %v7505_v38 = vpop.permute.xlu1 %7504 }
0x35e2   : > { %v7509_v57 = vadd.f32 %v7505_v38, %v7301_v63 }
0x35e3   : > { %v7503_v19 = vpop.permute.xlu0 %7502 }
0x35e4   : > { %9325 = vtanh.f32 %v7509_v57  ;;  %v7508_v36 = vadd.f32 %v7503_v19, %v7296_v25 }
0x35e6   : > { %9327 = vtanh.f32 %v7508_v36 }
0x35f1   : > { %v9326_v45 = vpop.eup %9325 }
0x35f2   : > { %7520 = vrot.lane.b32.xlu1 %v9326_v45, %s9342_s20 }
0x35f3   : > { %v9328_v35 = vpop.eup %9327 }
0x35f4   : > { %7518 = vrot.lane.b32.xlu0 %v9328_v35, %s9342_s20 }
0x3664   : > { %v7521_v2 = vpop.permute.xlu1 %7520 }
0x3665   : > { %v7525_v28 = vmul.f32 %v7521_v2, %v7513_v53 }
0x3666   : > { %v7519_v39 = vpop.permute.xlu0 %7518 }
0x3667   : > { %v7527_v41 = vadd.f32 %v7525_v28, %v7511_v26  ;;  %v7524_v42 = vmul.f32 %v7519_v39, %v7512_v23 }
0x3669   : > { %7529 = vst.msk [vmem:[#allocation2 + $0x18] sm:$0xff] %vm279_vm0, %v7527_v41  ;;  %v7526_v46 = vadd.f32 %v7524_v42, %v7510_v50 }
0x366b   : > { %7528 = vst.msk [vmem:[#allocation2 + $0x10] sm:$0xff] %vm279_vm0, %v7526_v46  ;;  %9145 = vmatprep.mubr.msk.f32.mxu1 %vm279_vm0, %v7526_v46 }
0x366c   : > { %9146 = vmatmul.mubr.msk.f32.vlgmr.msra.gmra.mxu1 %vm279_vm0, %v7527_v41 }
0x372c   : > { %v9147_v3 = vpop.f32.mrf.mxu1 }
0x372d   : > { %8004 = vst [vmem:[%s9757_s11 + $0x68] sm:$0xff] %v9147_v3 }
0x372e   : > { %v7606_v44 = vpop.f32.mrf.mxu1 }
0x372f   : > { %8003 = vst [vmem:[%s9757_s11 + $0x60] sm:$0xff] %v7606_v44 }
0x3730 PF: > { %s17_s24 = sadd.s32 1, %s9337_s24  }
0x3731   : > { %p14_p4 = scmp.ge.s32.totalorder %s17_s24, 4  }
0x3733   :  { %16 = sbr.rel (!%p14_p4) target bundleno = 1 (0x1), region = 96 }

// kernel: squeeze.39
= control target key start
LH: loop header
LB: loop body
LE: loop exit
PB: predicated region body
PF: predicated region fallthrough
CT: control target
= control target key end

     0   :  { %vm35_vm0 = vcmask 1043458   ;;  %vm40_vm1 = vcmask 1045508   ;;  %vm45_vm2 = vcmask 1047558   ;;  %s79_s6 = smov 3  ;;  %s82_s7 = smov 12  ;;  %vm4_vm3 = vcmask 1047556   ;;  %s731_s0 = inlined_call_operand.vmem [shape: f32[2,1,4,16,16], index: 0, kind: input, shape index: {}]   ;;  %s732_s1 = inlined_call_operand.vmem [shape: f32[2,4,256], index: 1, kind: output, shape index: {}]  }
   0x1   :  { %v412_v0 = vld [vmem:[%s731_s0 + $0x6] ss:$16 sm:%s79_s6]   ;;  %s87_s12 = smov 48  ;;  %s92_s13 = smov 192  ;;  %vm6_vm4 = vcmask 130048   ;;  %vm49_vm5 = vcmask 1048448  }
   0x2   :  { %v413_v1 = vld [vmem:[%s731_s0 + $0x6] ss:$16 sm:%s82_s7]   ;;  %v414_v3 = vld [vmem:[%s731_s0 - $0x32] ss:$16 sm:%s87_s12]   ;;  %s30_s18 = smov 3  ;;  %s33_s21 = smov 12 }
   0x3   :  { %v85_v2 = vsel %vm35_vm0, %v413_v1, %v412_v0  ;;  %v415_v4 = vld [vmem:[%s731_s0 - $0x32] ss:$16 sm:%s92_s13]   ;;  %v404_v6 = vld [vmem:[%s731_s0 + $0x7] ss:$16 sm:%s30_s18]   ;;  %s38_s22 = smov 48  ;;  %s43_s27 = smov 192 }
   0x4   :  { %v90_v5 = vsel %vm40_vm1, %v414_v3, %v85_v2  ;;  %v405_v8 = vld [vmem:[%s731_s0 + $0x7] ss:$16 sm:%s33_s21]   ;;  %v406_v9 = vld [vmem:[%s731_s0 - $0x31] ss:$16 sm:%s38_s22]   ;;  %s470_s28 = smov 96   ;;  %s103_s2 = smov 3 }
   0x5   :  { %v95_v7 = vsel %vm45_vm2, %v415_v4, %v90_v5  ;;  %v36_v10 = vsel %vm35_vm0, %v405_v8, %v404_v6  ;;  %v407_v11 = vld [vmem:[%s731_s0 - $0x31] ss:$16 sm:%s43_s27]   ;;  %s106_s3 = smov 12  ;;  %v416_v13 = vld [vmem:[%s731_s0 + $0x46] ss:$16 sm:%s103_s2]   ;;  %s111_s8 = smov 48 }
   0x6   :  { %96 = vrot.lane.b32.xlu1 %v95_v7, %s470_s28  ;;  %v41_v12 = vsel %vm40_vm1, %v406_v9, %v36_v10  ;;  %v417_v14 = vld [vmem:[%s731_s0 + $0x46] ss:$16 sm:%s106_s3]   ;;  %s116_s9 = smov 192  ;;  %s54_s14 = smov 3  ;;  %vm98_vm6 = vcmask 917248   ;;  %vm147_vm7 = vcmask 786048  }
   0x7   :  { %v46_v15 = vsel %vm45_vm2, %v407_v11, %v41_v12  ;;  %v109_v16 = vsel %vm35_vm0, %v417_v14, %v416_v13  ;;  %v418_v17 = vld [vmem:[%s731_s0 + $0xe] ss:$16 sm:%s111_s8]   ;;  %s57_s15 = smov 12  ;;  %s471_s16 = smov 112   ;;  %v408_v20 = vld [vmem:[%s731_s0 + $0x47] ss:$16 sm:%s54_s14]  }
   0x8   :  { %v419_v18 = vld [vmem:[%s731_s0 + $0xe] ss:$16 sm:%s116_s9]   ;;  %47 = vrot.lane.b32.xlu0 %v46_v15, %s471_s16  ;;  %v114_v19 = vsel %vm40_vm1, %v418_v17, %v109_v16  ;;  %s62_s19 = smov 48  ;;  %s67_s20 = smov 192  ;;  %vm196_vm8 = vcmask 654848   ;;  %vm245_vm9 = vcmask 523648  }
   0x9   :  { %v119_v21 = vsel %vm45_vm2, %v419_v18, %v114_v19  ;;  %v409_v22 = vld [vmem:[%s731_s0 + $0x47] ss:$16 sm:%s57_s15]   ;;  %v410_v23 = vld [vmem:[%s731_s0 + $0xf] ss:$16 sm:%s62_s19]   ;;  %s152_s25 = smov 3  ;;  %s160_s29 = smov 48 }
   0xa   :  { %120 = vrot.lane.b32.xlu1 %v119_v21, %s470_s28  ;;  %v60_v24 = vsel %vm35_vm0, %v409_v22, %v408_v20  ;;  %v411_v25 = vld [vmem:[%s731_s0 + $0xf] ss:$16 sm:%s67_s20]   ;;  %s155_s28 = smov 12  ;;  %s165_s5 = smov 192  ;;  %vm294_vm10 = vcmask 392448   ;;  %vm343_vm11 = vcmask 261248  }
   0xb   :  { %v65_v26 = vsel %vm40_vm1, %v410_v23, %v60_v24  ;;  %v424_v27 = vld [vmem:[%s731_s0 + $0x45] ss:$16 sm:%s152_s25]   ;;  %s128_s6 = smov 3  ;;  %v426_v31 = vld [vmem:[%s731_s0 + $0xd] ss:$16 sm:%s160_s29]   ;;  %s131_s11 = smov 12 }
   0xc   :  { %v425_v28 = vld [vmem:[%s731_s0 + $0x45] ss:$16 sm:%s155_s28]   ;;  %v70_v29 = vsel %vm45_vm2, %v411_v25, %v65_v26  ;;  %v427_v32 = vld [vmem:[%s731_s0 + $0xd] ss:$16 sm:%s165_s5]   ;;  %s136_s12 = smov 48  ;;  %s141_s15 = smov 192 }
   0xd   :  { %v158_v30 = vsel %vm35_vm0, %v425_v28, %v424_v27  ;;  %71 = vrot.lane.b32.xlu0 %v70_v29, %s471_s16  ;;  %v420_v34 = vld [vmem:[%s731_s0 + $0x5] ss:$16 sm:%s128_s6]   ;;  %s201_s20 = smov 3  ;;  %s204_s21 = smov 12 }
   0xe   :  { %v163_v33 = vsel %vm40_vm1, %v426_v31, %v158_v30  ;;  %v421_v36 = vld [vmem:[%s731_s0 + $0x5] ss:$16 sm:%s131_s11]   ;;  %v422_v37 = vld [vmem:[%s731_s0 - $0x33] ss:$16 sm:%s136_s12]   ;;  %s472_s22 = smov 80   ;;  %s209_s25 = smov 48 }
   0xf   :  { %v168_v35 = vsel %vm45_vm2, %v427_v32, %v163_v33  ;;  %v134_v38 = vsel %vm35_vm0, %v421_v36, %v420_v34  ;;  %v423_v39 = vld [vmem:[%s731_s0 - $0x33] ss:$16 sm:%s141_s15]   ;;  %s214_s26 = smov 192  ;;  %v432_v41 = vld [vmem:[%s731_s0 + $0x44] ss:$16 sm:%s201_s20]   ;;  %s177_s2 = smov 3 }
  0x10   :  { %169 = vrot.lane.b32.xlu1 %v168_v35, %s472_s22  ;;  %v139_v40 = vsel %vm40_vm1, %v422_v37, %v134_v38  ;;  %v433_v42 = vld [vmem:[%s731_s0 + $0x44] ss:$16 sm:%s204_s21]   ;;  %s180_s3 = smov 12  ;;  %s185_s8 = smov 48 }
  0x11   :  { %v144_v43 = vsel %vm45_vm2, %v423_v39, %v139_v40  ;;  %v207_v44 = vsel %vm35_vm0, %v433_v42, %v432_v41  ;;  %v434_v45 = vld [vmem:[%s731_s0 + $0xc] ss:$16 sm:%s209_s25]   ;;  %s190_s9 = smov 192  ;;  %v428_v48 = vld [vmem:[%s731_s0 + $0x4] ss:$16 sm:%s177_s2]   ;;  %s250_s12 = smov 3 }
  0x12   :  { %v435_v46 = vld [vmem:[%s731_s0 + $0xc] ss:$16 sm:%s214_s26]   ;;  %145 = vrot.lane.b32.xlu0 %v144_v43, %s472_s22  ;;  %v212_v47 = vsel %vm40_vm1, %v434_v45, %v207_v44  ;;  %s253_s17 = smov 12  ;;  %s258_s18 = smov 48 }
  0x13   :  { %v217_v49 = vsel %vm45_vm2, %v435_v46, %v212_v47  ;;  %v429_v50 = vld [vmem:[%s731_s0 + $0x4] ss:$16 sm:%s180_s3]   ;;  %v430_v51 = vld [vmem:[%s731_s0 - $0x34] ss:$16 sm:%s185_s8]   ;;  %s473_s19 = smov 64   ;;  %s263_s22 = smov 192 }
  0x14   :  { %218 = vrot.lane.b32.xlu1 %v217_v49, %s473_s19  ;;  %v183_v52 = vsel %vm35_vm0, %v429_v50, %v428_v48  ;;  %v431_v53 = vld [vmem:[%s731_s0 - $0x34] ss:$16 sm:%s190_s9]   ;;  %s226_s23 = smov 3  ;;  %s229_s28 = smov 12 }
  0x15   :  { %v188_v54 = vsel %vm40_vm1, %v430_v51, %v183_v52  ;;  %v440_v55 = vld [vmem:[%s731_s0 + $0x43] ss:$16 sm:%s250_s12]   ;;  %s234_s29 = smov 48  ;;  %v442_v59 = vld [vmem:[%s731_s0 + $0xb] ss:$16 sm:%s258_s18]   ;;  %s239_s5 = smov 192 }
  0x16   :  { %v441_v56 = vld [vmem:[%s731_s0 + $0x43] ss:$16 sm:%s253_s17]   ;;  %v193_v57 = vsel %vm45_vm2, %v431_v53, %v188_v54  ;;  %v443_v60 = vld [vmem:[%s731_s0 + $0xb] ss:$16 sm:%s263_s22]   ;;  %s299_s8 = smov 3  ;;  %s302_s9 = smov 12 }
  0x17   :  { %v256_v58 = vsel %vm35_vm0, %v441_v56, %v440_v55  ;;  %194 = vrot.lane.b32.xlu0 %v193_v57, %s473_s19  ;;  %v436_v62 = vld [vmem:[%s731_s0 + $0x3] ss:$16 sm:%s226_s23]   ;;  %s307_s14 = smov 48  ;;  %s312_s15 = smov 192 }
  0x18   :  { %v261_v61 = vsel %vm40_vm1, %v442_v59, %v256_v58  ;;  %v437_v0 = vld [vmem:[%s731_s0 + $0x3] ss:$16 sm:%s229_s28]   ;;  %v438_v1 = vld [vmem:[%s731_s0 - $0x35] ss:$16 sm:%s234_s29]   ;;  %s474_s16 = smov 48   ;;  %s275_s19 = smov 3 }
  0x19   :  { %v266_v63 = vsel %vm45_vm2, %v443_v60, %v261_v61  ;;  %v232_v2 = vsel %vm35_vm0, %v437_v0, %v436_v62  ;;  %v439_v3 = vld [vmem:[%s731_s0 - $0x35] ss:$16 sm:%s239_s5]   ;;  %v448_v5 = vld [vmem:[%s731_s0 + $0x42] ss:$16 sm:%s299_s8]   ;;  %s278_s24 = smov 12  ;;  %s283_s25 = smov 48 }
  0x1a   :  { %267 = vrot.lane.b32.xlu1 %v266_v63, %s474_s16  ;;  %v237_v4 = vsel %vm40_vm1, %v438_v1, %v232_v2  ;;  %v449_v6 = vld [vmem:[%s731_s0 + $0x42] ss:$16 sm:%s302_s9]   ;;  %s288_s30 = smov 192  ;;  %s348_s4 = smov 3 }
  0x1b   :  { %v242_v7 = vsel %vm45_vm2, %v439_v3, %v237_v4  ;;  %v305_v8 = vsel %vm35_vm0, %v449_v6, %v448_v5  ;;  %v450_v9 = vld [vmem:[%s731_s0 + $0xa] ss:$16 sm:%s307_s14]   ;;  %v444_v12 = vld [vmem:[%s731_s0 + $0x2] ss:$16 sm:%s275_s19]   ;;  %s351_s5 = smov 12  ;;  %s356_s10 = smov 48 }
  0x1c   :  { %v451_v10 = vld [vmem:[%s731_s0 + $0xa] ss:$16 sm:%s312_s15]   ;;  %243 = vrot.lane.b32.xlu0 %v242_v7, %s474_s16  ;;  %v310_v11 = vsel %vm40_vm1, %v450_v9, %v305_v8  ;;  %s361_s11 = smov 192  ;;  %s475_s12 = smov 32  }
  0x1d   :  { %v315_v13 = vsel %vm45_vm2, %v451_v10, %v310_v11  ;;  %v445_v14 = vld [vmem:[%s731_s0 + $0x2] ss:$16 sm:%s278_s24]   ;;  %v446_v15 = vld [vmem:[%s731_s0 - $0x36] ss:$16 sm:%s283_s25]   ;;  %s324_s15 = smov 3  ;;  %s327_s20 = smov 12 }
  0x1e   :  { %316 = vrot.lane.b32.xlu1 %v315_v13, %s475_s12  ;;  %v281_v16 = vsel %vm35_vm0, %v445_v14, %v444_v12  ;;  %v447_v17 = vld [vmem:[%s731_s0 - $0x36] ss:$16 sm:%s288_s30]   ;;  %s332_s21 = smov 48  ;;  %s337_s26 = smov 192 }
  0x1f   :  { %v286_v18 = vsel %vm40_vm1, %v446_v15, %v281_v16  ;;  %v456_v19 = vld [vmem:[%s731_s0 + $0x41] ss:$16 sm:%s348_s4]   ;;  %v458_v23 = vld [vmem:[%s731_s0 + $0x9] ss:$16 sm:%s356_s10]   ;;  %s476_s6 = smov 16  }
  0x20   :  { %v457_v20 = vld [vmem:[%s731_s0 + $0x41] ss:$16 sm:%s351_s5]   ;;  %v291_v21 = vsel %vm45_vm2, %v447_v17, %v286_v18  ;;  %v459_v24 = vld [vmem:[%s731_s0 + $0x9] ss:$16 sm:%s361_s11]  }
  0x21   :  { %v354_v22 = vsel %vm35_vm0, %v457_v20, %v456_v19  ;;  %292 = vrot.lane.b32.xlu0 %v291_v21, %s475_s12  ;;  %v452_v26 = vld [vmem:[%s731_s0 + $0x1] ss:$16 sm:%s324_s15]   ;;  %v2_v27 = vld [vmem:[%s731_s0] ss:$8 sm:$0xf]  }
  0x22   :  { %v359_v25 = vsel %vm40_vm1, %v458_v23, %v354_v22  ;;  %v453_v29 = vld [vmem:[%s731_s0 + $0x1] ss:$16 sm:%s327_s20]   ;;  %v454_v30 = vld [vmem:[%s731_s0 - $0x37] ss:$16 sm:%s332_s21]  }
  0x23   :  { %v364_v28 = vsel %vm45_vm2, %v459_v24, %v359_v25  ;;  %v330_v31 = vsel %vm35_vm0, %v453_v29, %v452_v26  ;;  %v455_v32 = vld [vmem:[%s731_s0 - $0x37] ss:$16 sm:%s337_s26]   ;;  %v3_v33 = vld [vmem:[%s731_s0] ss:$8 sm:$0xf0]  }
  0x24   :  { %365 = vrot.lane.b32.xlu1 %v364_v28, %s476_s6  ;;  %v335_v34 = vsel %vm40_vm1, %v454_v30, %v330_v31  ;;  %v5_v35 = vsel %vm4_vm3, %v3_v33, %v2_v27  ;;  %v402_v36 = vld [vmem:[%s731_s0 + $0x40] ss:$8 sm:$0xf]  }
  0x25   :  { %v403_v37 = vld [vmem:[%s731_s0 + $0x40] ss:$8 sm:$0xf0]   ;;  %v340_v38 = vsel %vm45_vm2, %v455_v32, %v335_v34  ;;  %7 = vst.msk [vmem:[#allocation0] ss:$8 sm:$0x3] %vm6_vm4, %v5_v35  }
  0x26   :  { %9 = vst.msk [vmem:[#allocation0 - $0xf] ss:$8 sm:$0xc] %vm6_vm4, %v5_v35   ;;  %11 = vst.msk [vmem:[#allocation0 - $0x1e] ss:$8 sm:$0x30] %vm6_vm4, %v5_v35   ;;  %v19_v39 = vsel %vm4_vm3, %v403_v37, %v402_v36  ;;  %341 = vrot.lane.b32.xlu0 %v340_v38, %s476_s6 }
  0x27   :  { %13 = vst.msk [vmem:[#allocation0 - $0x2d] ss:$8 sm:$0xc0] %vm6_vm4, %v5_v35   ;;  %22 = vst.msk [vmem:[#allocation0 + $0x10] ss:$8 sm:$0x3] %vm6_vm4, %v19_v39  }
  0x28   :  { %24 = vst.msk [vmem:[#allocation0 + $0x1] ss:$8 sm:$0xc] %vm6_vm4, %v19_v39   ;;  %26 = vst.msk [vmem:[#allocation0 - $0xe] ss:$8 sm:$0x30] %vm6_vm4, %v19_v39  }
  0x29   :  { %28 = vst.msk [vmem:[#allocation0 - $0x1d] ss:$8 sm:$0xc0] %vm6_vm4, %v19_v39  }
  0x78   :  { %v97_v40 = vpop.permute.xlu1 %96  }
  0x7a   :  { %v48_v41 = vpop.permute.xlu0 %47  }
  0x7b   :  { %50 = vst.msk [vmem:[#allocation0] sm:$0xf] %vm49_vm5, %v48_v41   ;;  %52 = vst.msk [vmem:[#allocation0 + $0x4] sm:$0xf0] %vm49_vm5, %v48_v41  }
  0x7c   :  { %v121_v42 = vpop.permute.xlu1 %120   ;;  %99 = vst.msk [vmem:[#allocation0] sm:$0xf] %vm98_vm6, %v97_v40   ;;  %101 = vst.msk [vmem:[#allocation0 + $0x4] sm:$0xf0] %vm98_vm6, %v97_v40  }
  0x7f   :  { %v72_v43 = vpop.permute.xlu0 %71  }
  0x80   :  { %75 = vst.msk [vmem:[#allocation0 + $0x10] sm:$0xf] %vm49_vm5, %v72_v43   ;;  %77 = vst.msk [vmem:[#allocation0 + $0x14] sm:$0xf0] %vm49_vm5, %v72_v43  }
  0x81   :  { %124 = vst.msk [vmem:[#allocation0 + $0x10] sm:$0xf] %vm98_vm6, %v121_v42   ;;  %126 = vst.msk [vmem:[#allocation0 + $0x14] sm:$0xf0] %vm98_vm6, %v121_v42  }
  0x82   :  { %v170_v44 = vpop.permute.xlu1 %169  }
  0x83   :  { %173 = vst.msk [vmem:[#allocation0 + $0x10] sm:$0xf] %vm147_vm7, %v170_v44   ;;  %175 = vst.msk [vmem:[#allocation0 + $0x14] sm:$0xf0] %vm147_vm7, %v170_v44  }
  0x84   :  { %v146_v45 = vpop.permute.xlu0 %145  }
  0x85   :  { %148 = vst.msk [vmem:[#allocation0] sm:$0xf] %vm147_vm7, %v146_v45   ;;  %150 = vst.msk [vmem:[#allocation0 + $0x4] sm:$0xf0] %vm147_vm7, %v146_v45  }
  0x86   :  { %v219_v46 = vpop.permute.xlu1 %218  }
  0x87   :  { %222 = vst.msk [vmem:[#allocation0 + $0x10] sm:$0xf] %vm196_vm8, %v219_v46   ;;  %224 = vst.msk [vmem:[#allocation0 + $0x14] sm:$0xf0] %vm196_vm8, %v219_v46  }
  0x89   :  { %v195_v47 = vpop.permute.xlu0 %194  }
  0x8a   :  { %197 = vst.msk [vmem:[#allocation0] sm:$0xf] %vm196_vm8, %v195_v47   ;;  %199 = vst.msk [vmem:[#allocation0 + $0x4] sm:$0xf0] %vm196_vm8, %v195_v47  }
  0x8c   :  { %v268_v48 = vpop.permute.xlu1 %267  }
  0x8d   :  { %271 = vst.msk [vmem:[#allocation0 + $0x10] sm:$0xf] %vm245_vm9, %v268_v48   ;;  %273 = vst.msk [vmem:[#allocation0 + $0x14] sm:$0xf0] %vm245_vm9, %v268_v48  }
  0x8e   :  { %v244_v49 = vpop.permute.xlu0 %243  }
  0x8f   :  { %246 = vst.msk [vmem:[#allocation0] sm:$0xf] %vm245_vm9, %v244_v49   ;;  %248 = vst.msk [vmem:[#allocation0 + $0x4] sm:$0xf0] %vm245_vm9, %v244_v49  }
  0x90   :  { %v317_v50 = vpop.permute.xlu1 %316  }
  0x91   :  { %320 = vst.msk [vmem:[#allocation0 + $0x10] sm:$0xf] %vm294_vm10, %v317_v50   ;;  %322 = vst.msk [vmem:[#allocation0 + $0x14] sm:$0xf0] %vm294_vm10, %v317_v50  }
  0x93   :  { %v293_v51 = vpop.permute.xlu0 %292  }
  0x94   :  { %295 = vst.msk [vmem:[#allocation0] sm:$0xf] %vm294_vm10, %v293_v51   ;;  %297 = vst.msk [vmem:[#allocation0 + $0x4] sm:$0xf0] %vm294_vm10, %v293_v51  }
  0x96   :  { %v366_v52 = vpop.permute.xlu1 %365  }
  0x97   :  { %369 = vst.msk [vmem:[#allocation0 + $0x10] sm:$0xf] %vm343_vm11, %v366_v52   ;;  %371 = vst.msk [vmem:[#allocation0 + $0x14] sm:$0xf0] %vm343_vm11, %v366_v52  }
  0x98   :  { %v342_v53 = vpop.permute.xlu0 %341  }
  0x99   :  { %344 = vst.msk [vmem:[#allocation0] sm:$0xf] %vm343_vm11, %v342_v53   ;;  %346 = vst.msk [vmem:[#allocation0 + $0x4] sm:$0xf0] %vm343_vm11, %v342_v53  }
  0x9e   :  { %v387_v54 = vld [vmem:[#allocation0 + $0x10] sm:$0xf]  ;;  %v394_v55 = vld [vmem:[#allocation0 + $0x18] sm:$0xf] }
  0x9f   :  { %461 = vst [vmem:[%s732_s1 + $0x8] sm:$0xf] %v387_v54  ;;  %462 = vst [vmem:[%s732_s1 + $0xc] sm:$0xf] %v394_v55 }
  0xa0   :  { %v376_v56 = vld [vmem:[#allocation0] sm:$0xf]  ;;  %v381_v57 = vld [vmem:[#allocation0 + $0x8] sm:$0xf] }
  0xa1   :  { %379 = vst [vmem:[%s732_s1] sm:$0xf] %v376_v56  ;;  %460 = vst [vmem:[%s732_s1 + $0x4] sm:$0xf] %v381_v57 }

// kernel: forward.9
= control target key start
LH: loop header
LB: loop body
LE: loop exit
PB: predicated region body
PF: predicated region fallthrough
CT: control target
= control target key end

     0   :  { %s1702_s9 = smov 0   ;;  %s2191_s0 = inlined_call_operand.vmem [shape: f32[2,4,256], index: 0, kind: input, shape index: {}]   ;;  %s2192_s1 = inlined_call_operand.vmem [shape: f32[2,7,256,256], index: 1, kind: input, shape index: {}]   ;;  %s2193_s2 = inlined_call_operand.vmem [shape: f32[2,7,4,256], index: 2, kind: output, shape index: {}]  }
   0x1 LB: > { %s1260_s10 = sadd.s32 4294967295, %s1685_s9   ;;  %p1264_p0 = scmp.ge.s32.totalorder %s1685_s9, 1  ;;  %s1685_s9 = sphi %s1702_s9, %s12_s9  }
   0x2   : > { %p122_p1 = scmp.lt.s32.totalorder %s1685_s9, 3 }
   0x4   : > { %p123_p2 = pnand %p1264_p0, %p122_p1 }
   0x5   : > { %p149_p3 = scmp.lt.s32.totalorder (!%p123_p2), %s1260_s10, 1 }
   0x6   : > { %126 = sbr.rel (%p123_p2) target bundleno = 1466 (0x5ba), region = 28 }
   0xb   : > { %s2195_s10 = smov (!%p149_p3, %s1260_s10), 1 }
   0xc   : > { %s1668_s11 = smul.u32 3584, %s2195_s10  ;;  %s1661_s12 = sshll.u32 %s2195_s10, 3 }
   0xd   : > { %s153_s15 = scalar_lea.vmem %s2191_s0, %s1661_s12  ;;  %s1669_s19 = smul.u32 56, %s2195_s10 }
   0xe   : > { %s1720_s18 = scalar_lea.vmem %s2192_s1, %s1668_s11  ;;  %v1722_v0 = vld [vmem:[%s153_s15] sm:$0xff] }
   0xf   : > { %v198_v1 = vld [vmem:[%s1720_s18 + $0xf8] sm:$0xff]  ;;  %v197_v2 = vld [vmem:[%s1720_s18 + $0xf0] sm:$0xff]  ;;  %v196_v3 = vld [vmem:[%s1720_s18 + $0xe8] sm:$0xff]  ;;  %v232_v4 = vcombine.high %v1722_v0, %v1722_v0  ;;  %s1917_s22 = scalar_lea.vmem %s2193_s2, %s1669_s19 }
  0x10   : > { %234 = vmatprep.subr.mxu0 %v198_v1  ;;  %v195_v5 = vld [vmem:[%s1720_s18 + $0xe0] sm:$0xff]  ;;  %v194_v6 = vld [vmem:[%s1720_s18 + $0xd8] sm:$0xff]  ;;  %v193_v7 = vld [vmem:[%s1720_s18 + $0xd0] sm:$0xff] }
  0x11   : > { %235 = vmatpush1.msra.mxu0 %v197_v2  ;;  %298 = vmatprep.mubr.f32.mxu0 %v232_v4  ;;  %v192_v8 = vld [vmem:[%s1720_s18 + $0xc8] sm:$0xff]  ;;  %v191_v9 = vld [vmem:[%s1720_s18 + $0xc0] sm:$0xff]  ;;  %v190_v10 = vld [vmem:[%s1720_s18 + $0xb8] sm:$0xff] }
  0x12   : > { %236 = vmatprep.subr.mxu0 %v196_v3  ;;  %v189_v11 = vld [vmem:[%s1720_s18 + $0xb0] sm:$0xff]  ;;  %v188_v12 = vld [vmem:[%s1720_s18 + $0xa8] sm:$0xff]  ;;  %v187_v13 = vld [vmem:[%s1720_s18 + $0xa0] sm:$0xff] }
  0x13   : > { %237 = vmatpush1.msra.mxu0 %v195_v5  ;;  %v186_v14 = vld [vmem:[%s1720_s18 + $0x98] sm:$0xff]  ;;  %v185_v15 = vld [vmem:[%s1720_s18 + $0x90] sm:$0xff]  ;;  %v184_v16 = vld [vmem:[%s1720_s18 + $0x88] sm:$0xff] }
  0x14   : > { %238 = vmatprep.subr.mxu0 %v194_v6  ;;  %v183_v17 = vld [vmem:[%s1720_s18 + $0x80] sm:$0xff]  ;;  %v182_v18 = vld [vmem:[%s1720_s18 + $0x78] sm:$0xff]  ;;  %v181_v19 = vld [vmem:[%s1720_s18 + $0x70] sm:$0xff] }
  0x15   : > { %239 = vmatpush1.msra.mxu0 %v193_v7  ;;  %v180_v20 = vld [vmem:[%s1720_s18 + $0x68] sm:$0xff]  ;;  %v179_v21 = vld [vmem:[%s1720_s18 + $0x60] sm:$0xff]  ;;  %v178_v22 = vld [vmem:[%s1720_s18 + $0x58] sm:$0xff] }
  0x16   : > { %240 = vmatprep.subr.mxu0 %v192_v8  ;;  %v177_v23 = vld [vmem:[%s1720_s18 + $0x50] sm:$0xff]  ;;  %v176_v24 = vld [vmem:[%s1720_s18 + $0x48] sm:$0xff]  ;;  %v175_v25 = vld [vmem:[%s1720_s18 + $0x40] sm:$0xff] }
  0x17   : > { %241 = vmatpush1.msra.mxu0 %v191_v9  ;;  %v1300_v26 = vld [vmem:[%s1720_s18 + $0x2f8] sm:$0xff]  ;;  %v1299_v27 = vld [vmem:[%s1720_s18 + $0x2f0] sm:$0xff]  ;;  %v1298_v29 = vld [vmem:[%s1720_s18 + $0x2e8] sm:$0xff] }
  0x18   : > { %242 = vmatprep.subr.mxu0 %v190_v10  ;;  %v174_v28 = vld [vmem:[%s1720_s18 + $0x38] sm:$0xff]  ;;  %380 = vmatprep.subr.mxu1 %v1300_v26  ;;  %v1297_v30 = vld [vmem:[%s1720_s18 + $0x2e0] sm:$0xff]  ;;  %v173_v31 = vld [vmem:[%s1720_s18 + $0x30] sm:$0xff] }
  0x19   : > { %243 = vmatpush1.msra.mxu0 %v189_v11  ;;  %381 = vmatpush1.msra.mxu1 %v1299_v27  ;;  %v1296_v32 = vld [vmem:[%s1720_s18 + $0x2d8] sm:$0xff]  ;;  %v172_v33 = vld [vmem:[%s1720_s18 + $0x28] sm:$0xff]  ;;  %v1295_v34 = vld [vmem:[%s1720_s18 + $0x2d0] sm:$0xff] }
  0x1a   : > { %244 = vmatprep.subr.mxu0 %v188_v12  ;;  %382 = vmatprep.subr.mxu1 %v1298_v29  ;;  %v171_v35 = vld [vmem:[%s1720_s18 + $0x20] sm:$0xff]  ;;  %v1294_v36 = vld [vmem:[%s1720_s18 + $0x2c8] sm:$0xff]  ;;  %v170_v37 = vld [vmem:[%s1720_s18 + $0x18] sm:$0xff] }
  0x1b   : > { %245 = vmatpush1.msra.mxu0 %v187_v13  ;;  %383 = vmatpush1.msra.mxu1 %v1297_v30  ;;  %v1293_v38 = vld [vmem:[%s1720_s18 + $0x2c0] sm:$0xff]  ;;  %v169_v39 = vld [vmem:[%s1720_s18 + $0x10] sm:$0xff]  ;;  %v1292_v40 = vld [vmem:[%s1720_s18 + $0x2b8] sm:$0xff] }
  0x1c   : > { %246 = vmatprep.subr.mxu0 %v186_v14  ;;  %384 = vmatprep.subr.mxu1 %v1296_v32  ;;  %v168_v41 = vld [vmem:[%s1720_s18 + $0x8] sm:$0xff]  ;;  %v1291_v42 = vld [vmem:[%s1720_s18 + $0x2b0] sm:$0xff]  ;;  %v167_v43 = vld [vmem:[%s1720_s18] sm:$0xff] }
  0x1d   : > { %247 = vmatpush1.msra.mxu0 %v185_v15  ;;  %385 = vmatpush1.msra.mxu1 %v1295_v34  ;;  %v1290_v44 = vld [vmem:[%s1720_s18 + $0x2a8] sm:$0xff]  ;;  %v230_v45 = vld [vmem:[%s1720_s18 + $0x1f8] sm:$0xff]  ;;  %v1289_v46 = vld [vmem:[%s1720_s18 + $0x2a0] sm:$0xff] }
  0x1e   : > { %248 = vmatprep.subr.mxu0 %v184_v16  ;;  %386 = vmatprep.subr.mxu1 %v1294_v36  ;;  %v229_v47 = vld [vmem:[%s1720_s18 + $0x1f0] sm:$0xff]  ;;  %v1288_v48 = vld [vmem:[%s1720_s18 + $0x298] sm:$0xff]  ;;  %v228_v49 = vld [vmem:[%s1720_s18 + $0x1e8] sm:$0xff] }
  0x1f   : > { %249 = vmatpush1.msra.mxu0 %v183_v17  ;;  %387 = vmatpush1.msra.mxu1 %v1293_v38  ;;  %v1287_v50 = vld [vmem:[%s1720_s18 + $0x290] sm:$0xff]  ;;  %v227_v51 = vld [vmem:[%s1720_s18 + $0x1e0] sm:$0xff]  ;;  %v1286_v52 = vld [vmem:[%s1720_s18 + $0x288] sm:$0xff] }
  0x20   : > { %250 = vmatprep.subr.mxu0 %v182_v18  ;;  %388 = vmatprep.subr.mxu1 %v1292_v40  ;;  %v226_v53 = vld [vmem:[%s1720_s18 + $0x1d8] sm:$0xff]  ;;  %v1285_v54 = vld [vmem:[%s1720_s18 + $0x280] sm:$0xff]  ;;  %v225_v55 = vld [vmem:[%s1720_s18 + $0x1d0] sm:$0xff] }
  0x21   : > { %251 = vmatpush1.msra.mxu0 %v181_v19  ;;  %389 = vmatpush1.msra.mxu1 %v1291_v42  ;;  %v1284_v56 = vld [vmem:[%s1720_s18 + $0x278] sm:$0xff]  ;;  %v224_v57 = vld [vmem:[%s1720_s18 + $0x1c8] sm:$0xff]  ;;  %v1283_v58 = vld [vmem:[%s1720_s18 + $0x270] sm:$0xff] }
  0x22   : > { %252 = vmatprep.subr.mxu0 %v180_v20  ;;  %390 = vmatprep.subr.mxu1 %v1290_v44  ;;  %v223_v59 = vld [vmem:[%s1720_s18 + $0x1c0] sm:$0xff]  ;;  %v1282_v60 = vld [vmem:[%s1720_s18 + $0x268] sm:$0xff]  ;;  %v222_v61 = vld [vmem:[%s1720_s18 + $0x1b8] sm:$0xff] }
  0x23   : > { %253 = vmatpush1.msra.mxu0 %v179_v21  ;;  %391 = vmatpush1.msra.mxu1 %v1289_v46  ;;  %v1281_v62 = vld [vmem:[%s1720_s18 + $0x260] sm:$0xff]  ;;  %v221_v63 = vld [vmem:[%s1720_s18 + $0x1b0] sm:$0xff]  ;;  %v1280_v1 = vld [vmem:[%s1720_s18 + $0x258] sm:$0xff] }
  0x24   : > { %254 = vmatprep.subr.mxu0 %v178_v22  ;;  %392 = vmatprep.subr.mxu1 %v1288_v48  ;;  %v220_v2 = vld [vmem:[%s1720_s18 + $0x1a8] sm:$0xff]  ;;  %v1279_v3 = vld [vmem:[%s1720_s18 + $0x250] sm:$0xff]  ;;  %v219_v4 = vld [vmem:[%s1720_s18 + $0x1a0] sm:$0xff] }
  0x25   : > { %255 = vmatpush1.msra.mxu0 %v177_v23  ;;  %393 = vmatpush1.msra.mxu1 %v1287_v50  ;;  %v1278_v5 = vld [vmem:[%s1720_s18 + $0x248] sm:$0xff]  ;;  %v218_v6 = vld [vmem:[%s1720_s18 + $0x198] sm:$0xff]  ;;  %v1277_v7 = vld [vmem:[%s1720_s18 + $0x240] sm:$0xff] }
  0x26   : > { %256 = vmatprep.subr.mxu0 %v176_v24  ;;  %394 = vmatprep.subr.mxu1 %v1286_v52  ;;  %v217_v8 = vld [vmem:[%s1720_s18 + $0x190] sm:$0xff]  ;;  %v1276_v9 = vld [vmem:[%s1720_s18 + $0x238] sm:$0xff]  ;;  %v216_v10 = vld [vmem:[%s1720_s18 + $0x188] sm:$0xff] }
  0x27   : > { %257 = vmatpush1.msra.mxu0 %v175_v25  ;;  %395 = vmatpush1.msra.mxu1 %v1285_v54  ;;  %v1275_v11 = vld [vmem:[%s1720_s18 + $0x230] sm:$0xff]  ;;  %v215_v12 = vld [vmem:[%s1720_s18 + $0x180] sm:$0xff]  ;;  %v1274_v13 = vld [vmem:[%s1720_s18 + $0x228] sm:$0xff] }
  0x28   : > { %258 = vmatprep.subr.mxu0 %v174_v28  ;;  %396 = vmatprep.subr.mxu1 %v1284_v56  ;;  %v214_v14 = vld [vmem:[%s1720_s18 + $0x178] sm:$0xff]  ;;  %v1273_v15 = vld [vmem:[%s1720_s18 + $0x220] sm:$0xff]  ;;  %v213_v16 = vld [vmem:[%s1720_s18 + $0x170] sm:$0xff] }
  0x29   : > { %259 = vmatpush1.msra.mxu0 %v173_v31  ;;  %397 = vmatpush1.msra.mxu1 %v1283_v58  ;;  %v1272_v17 = vld [vmem:[%s1720_s18 + $0x218] sm:$0xff]  ;;  %v212_v18 = vld [vmem:[%s1720_s18 + $0x168] sm:$0xff]  ;;  %v1271_v19 = vld [vmem:[%s1720_s18 + $0x210] sm:$0xff] }
  0x2a   : > { %260 = vmatprep.subr.mxu0 %v172_v33  ;;  %398 = vmatprep.subr.mxu1 %v1282_v60  ;;  %v211_v20 = vld [vmem:[%s1720_s18 + $0x160] sm:$0xff]  ;;  %v1270_v21 = vld [vmem:[%s1720_s18 + $0x208] sm:$0xff]  ;;  %v210_v22 = vld [vmem:[%s1720_s18 + $0x158] sm:$0xff] }
  0x2b   : > { %261 = vmatpush1.msra.mxu0 %v171_v35  ;;  %399 = vmatpush1.msra.mxu1 %v1281_v62  ;;  %v1269_v23 = vld [vmem:[%s1720_s18 + $0x200] sm:$0xff]  ;;  %v209_v24 = vld [vmem:[%s1720_s18 + $0x150] sm:$0xff]  ;;  %v1332_v25 = vld [vmem:[%s1720_s18 + $0x3f8] sm:$0xff] }
  0x2c   : > { %262 = vmatprep.subr.mxu0 %v170_v37  ;;  %400 = vmatprep.subr.mxu1 %v1280_v1  ;;  %v208_v26 = vld [vmem:[%s1720_s18 + $0x148] sm:$0xff]  ;;  %v1331_v27 = vld [vmem:[%s1720_s18 + $0x3f0] sm:$0xff]  ;;  %v207_v28 = vld [vmem:[%s1720_s18 + $0x140] sm:$0xff] }
  0x2d   : > { %263 = vmatpush1.msra.mxu0 %v169_v39  ;;  %401 = vmatpush1.msra.mxu1 %v1279_v3  ;;  %v1330_v29 = vld [vmem:[%s1720_s18 + $0x3e8] sm:$0xff]  ;;  %v206_v30 = vld [vmem:[%s1720_s18 + $0x138] sm:$0xff]  ;;  %v1329_v31 = vld [vmem:[%s1720_s18 + $0x3e0] sm:$0xff] }
  0x2e   : > { %264 = vmatprep.subr.mxu0 %v168_v41  ;;  %402 = vmatprep.subr.mxu1 %v1278_v5  ;;  %v205_v32 = vld [vmem:[%s1720_s18 + $0x130] sm:$0xff]  ;;  %v1328_v33 = vld [vmem:[%s1720_s18 + $0x3d8] sm:$0xff]  ;;  %v204_v34 = vld [vmem:[%s1720_s18 + $0x128] sm:$0xff] }
  0x2f   : > { %265 = vmatpush1.msra.mxu0 %v167_v43  ;;  %403 = vmatpush1.msra.mxu1 %v1277_v7  ;;  %v1327_v35 = vld [vmem:[%s1720_s18 + $0x3d0] sm:$0xff]  ;;  %v203_v36 = vld [vmem:[%s1720_s18 + $0x120] sm:$0xff]  ;;  %v1326_v37 = vld [vmem:[%s1720_s18 + $0x3c8] sm:$0xff] }
  0x30   : > { %266 = vmatprep.subr.mxu0 %v230_v45  ;;  %404 = vmatprep.subr.mxu1 %v1276_v9  ;;  %v202_v38 = vld [vmem:[%s1720_s18 + $0x118] sm:$0xff]  ;;  %v1325_v39 = vld [vmem:[%s1720_s18 + $0x3c0] sm:$0xff]  ;;  %v201_v40 = vld [vmem:[%s1720_s18 + $0x110] sm:$0xff] }
  0x31   : > { %267 = vmatpush2.msra.mxu0 %v229_v47  ;;  %405 = vmatpush1.msra.mxu1 %v1275_v11  ;;  %v1324_v41 = vld [vmem:[%s1720_s18 + $0x3b8] sm:$0xff]  ;;  %v200_v42 = vld [vmem:[%s1720_s18 + $0x108] sm:$0xff]  ;;  %v1323_v43 = vld [vmem:[%s1720_s18 + $0x3b0] sm:$0xff] }
  0x32   : > { %268 = vmatprep.subr.mxu0 %v228_v49  ;;  %406 = vmatprep.subr.mxu1 %v1274_v13  ;;  %v199_v44 = vld [vmem:[%s1720_s18 + $0x100] sm:$0xff]  ;;  %v1322_v45 = vld [vmem:[%s1720_s18 + $0x3a8] sm:$0xff]  ;;  %v1320_v47 = vld [vmem:[%s1720_s18 + $0x398] sm:$0xff] }
  0x33   : > { %269 = vmatpush2.msra.mxu0 %v227_v51  ;;  %407 = vmatpush1.msra.mxu1 %v1273_v15  ;;  %v1321_v46 = vld [vmem:[%s1720_s18 + $0x3a0] sm:$0xff]  ;;  %v1319_v48 = vld [vmem:[%s1720_s18 + $0x390] sm:$0xff]  ;;  %v1318_v49 = vld [vmem:[%s1720_s18 + $0x388] sm:$0xff] }
  0x34   : > { %270 = vmatprep.subr.mxu0 %v226_v53  ;;  %408 = vmatprep.subr.mxu1 %v1272_v17  ;;  %v1317_v50 = vld [vmem:[%s1720_s18 + $0x380] sm:$0xff]  ;;  %v1316_v51 = vld [vmem:[%s1720_s18 + $0x378] sm:$0xff]  ;;  %v1315_v52 = vld [vmem:[%s1720_s18 + $0x370] sm:$0xff] }
  0x35   : > { %271 = vmatpush2.msra.mxu0 %v225_v55  ;;  %409 = vmatpush1.msra.mxu1 %v1271_v19  ;;  %v1314_v53 = vld [vmem:[%s1720_s18 + $0x368] sm:$0xff]  ;;  %v1313_v54 = vld [vmem:[%s1720_s18 + $0x360] sm:$0xff]  ;;  %v1311_v55 = vld [vmem:[%s1720_s18 + $0x350] sm:$0xff] }
  0x36   : > { %272 = vmatprep.subr.mxu0 %v224_v57  ;;  %410 = vmatprep.subr.mxu1 %v1270_v21  ;;  %v1310_v56 = vld [vmem:[%s1720_s18 + $0x348] sm:$0xff]  ;;  %v1309_v57 = vld [vmem:[%s1720_s18 + $0x340] sm:$0xff]  ;;  %v1308_v58 = vld [vmem:[%s1720_s18 + $0x338] sm:$0xff] }
  0x37   : > { %273 = vmatpush2.msra.mxu0 %v223_v59  ;;  %411 = vmatpush1.msra.mxu1 %v1269_v23  ;;  %v1307_v59 = vld [vmem:[%s1720_s18 + $0x330] sm:$0xff]  ;;  %v1306_v60 = vld [vmem:[%s1720_s18 + $0x328] sm:$0xff]  ;;  %v1304_v62 = vld [vmem:[%s1720_s18 + $0x318] sm:$0xff] }
  0x38   : > { %274 = vmatprep.subr.mxu0 %v222_v61  ;;  %412 = vmatprep.subr.mxu1 %v1332_v25  ;;  %v1305_v61 = vld [vmem:[%s1720_s18 + $0x320] sm:$0xff]  ;;  %v1302_v1 = vld [vmem:[%s1720_s18 + $0x308] sm:$0xff]  ;;  %v1365_v3 = vld [vmem:[%s1720_s18 + $0x4f8] sm:$0xff] }
  0x39   : > { %275 = vmatpush2.msra.mxu0 %v221_v63  ;;  %413 = vmatpush2.msra.mxu1 %v1331_v27  ;;  %v1303_v63 = vld [vmem:[%s1720_s18 + $0x310] sm:$0xff]  ;;  %v1363_v5 = vld [vmem:[%s1720_s18 + $0x4e8] sm:$0xff]  ;;  %v1361_v7 = vld [vmem:[%s1720_s18 + $0x4d8] sm:$0xff] }
  0x3a   : > { %276 = vmatprep.subr.mxu0 %v220_v2  ;;  %414 = vmatprep.subr.mxu1 %v1330_v29  ;;  %v1301_v2 = vld [vmem:[%s1720_s18 + $0x300] sm:$0xff]  ;;  %v1359_v9 = vld [vmem:[%s1720_s18 + $0x4c8] sm:$0xff]  ;;  %v1357_v11 = vld [vmem:[%s1720_s18 + $0x4b8] sm:$0xff] }
  0x3b   : > { %277 = vmatpush2.msra.mxu0 %v219_v4  ;;  %415 = vmatpush2.msra.mxu1 %v1329_v31  ;;  %v1364_v4 = vld [vmem:[%s1720_s18 + $0x4f0] sm:$0xff]  ;;  %v1355_v13 = vld [vmem:[%s1720_s18 + $0x4a8] sm:$0xff]  ;;  %v1353_v15 = vld [vmem:[%s1720_s18 + $0x498] sm:$0xff] }
  0x3c   : > { %278 = vmatprep.subr.mxu0 %v218_v6  ;;  %416 = vmatprep.subr.mxu1 %v1328_v33  ;;  %v1362_v6 = vld [vmem:[%s1720_s18 + $0x4e0] sm:$0xff]  ;;  %v1351_v17 = vld [vmem:[%s1720_s18 + $0x488] sm:$0xff]  ;;  %v1349_v19 = vld [vmem:[%s1720_s18 + $0x478] sm:$0xff] }
  0x3d   : > { %279 = vmatpush2.msra.mxu0 %v217_v8  ;;  %417 = vmatpush2.msra.mxu1 %v1327_v35  ;;  %v1360_v8 = vld [vmem:[%s1720_s18 + $0x4d0] sm:$0xff]  ;;  %v1347_v21 = vld [vmem:[%s1720_s18 + $0x468] sm:$0xff]  ;;  %v1345_v23 = vld [vmem:[%s1720_s18 + $0x458] sm:$0xff] }
  0x3e   : > { %280 = vmatprep.subr.mxu0 %v216_v10  ;;  %418 = vmatprep.subr.mxu1 %v1326_v37  ;;  %v1358_v10 = vld [vmem:[%s1720_s18 + $0x4c0] sm:$0xff]  ;;  %v1343_v25 = vld [vmem:[%s1720_s18 + $0x448] sm:$0xff]  ;;  %v1341_v27 = vld [vmem:[%s1720_s18 + $0x438] sm:$0xff] }
  0x3f   : > { %281 = vmatpush2.msra.mxu0 %v215_v12  ;;  %419 = vmatpush2.msra.mxu1 %v1325_v39  ;;  %v1356_v12 = vld [vmem:[%s1720_s18 + $0x4b0] sm:$0xff]  ;;  %v1339_v29 = vld [vmem:[%s1720_s18 + $0x428] sm:$0xff]  ;;  %v1337_v31 = vld [vmem:[%s1720_s18 + $0x418] sm:$0xff] }
  0x40   : > { %282 = vmatprep.subr.mxu0 %v214_v14  ;;  %420 = vmatprep.subr.mxu1 %v1324_v41  ;;  %v1354_v14 = vld [vmem:[%s1720_s18 + $0x4a0] sm:$0xff]  ;;  %v1335_v33 = vld [vmem:[%s1720_s18 + $0x408] sm:$0xff]  ;;  %v1397_v35 = vld [vmem:[%s1720_s18 + $0x5f8] sm:$0xff] }
  0x41   : > { %283 = vmatpush2.msra.mxu0 %v213_v16  ;;  %421 = vmatpush2.msra.mxu1 %v1323_v43  ;;  %v1352_v16 = vld [vmem:[%s1720_s18 + $0x490] sm:$0xff]  ;;  %v1395_v37 = vld [vmem:[%s1720_s18 + $0x5e8] sm:$0xff]  ;;  %v1393_v39 = vld [vmem:[%s1720_s18 + $0x5d8] sm:$0xff] }
  0x42   : > { %284 = vmatprep.subr.mxu0 %v212_v18  ;;  %422 = vmatprep.subr.mxu1 %v1322_v45  ;;  %v1350_v18 = vld [vmem:[%s1720_s18 + $0x480] sm:$0xff]  ;;  %v1391_v41 = vld [vmem:[%s1720_s18 + $0x5c8] sm:$0xff]  ;;  %v1389_v43 = vld [vmem:[%s1720_s18 + $0x5b8] sm:$0xff] }
  0x43   : > { %285 = vmatpush2.msra.mxu0 %v211_v20  ;;  %423 = vmatpush2.msra.mxu1 %v1321_v46  ;;  %v1348_v20 = vld [vmem:[%s1720_s18 + $0x470] sm:$0xff]  ;;  %v1387_v45 = vld [vmem:[%s1720_s18 + $0x5a8] sm:$0xff]  ;;  %v1386_v46 = vld [vmem:[%s1720_s18 + $0x5a0] sm:$0xff] }
  0x44   : > { %286 = vmatprep.subr.mxu0 %v210_v22  ;;  %424 = vmatprep.subr.mxu1 %v1320_v47  ;;  %v1346_v22 = vld [vmem:[%s1720_s18 + $0x460] sm:$0xff]  ;;  %v1385_v47 = vld [vmem:[%s1720_s18 + $0x598] sm:$0xff] }
  0x45   : > { %287 = vmatpush2.msra.mxu0 %v209_v24  ;;  %425 = vmatpush2.msra.mxu1 %v1319_v48  ;;  %v1344_v24 = vld [vmem:[%s1720_s18 + $0x450] sm:$0xff] }
  0x46   : > { %288 = vmatprep.subr.mxu0 %v208_v26  ;;  %426 = vmatprep.subr.mxu1 %v1318_v49  ;;  %v1342_v26 = vld [vmem:[%s1720_s18 + $0x440] sm:$0xff]  ;;  %v1384_v48 = vld [vmem:[%s1720_s18 + $0x590] sm:$0xff]  ;;  %v1383_v49 = vld [vmem:[%s1720_s18 + $0x588] sm:$0xff] }
  0x47   : > { %289 = vmatpush2.msra.mxu0 %v207_v28  ;;  %427 = vmatpush2.msra.mxu1 %v1317_v50  ;;  %v1340_v28 = vld [vmem:[%s1720_s18 + $0x430] sm:$0xff]  ;;  %v1382_v50 = vld [vmem:[%s1720_s18 + $0x580] sm:$0xff] }
  0x48   : > { %290 = vmatprep.subr.mxu0 %v206_v30  ;;  %428 = vmatprep.subr.mxu1 %v1316_v51  ;;  %v1338_v30 = vld [vmem:[%s1720_s18 + $0x420] sm:$0xff]  ;;  %v1381_v51 = vld [vmem:[%s1720_s18 + $0x578] sm:$0xff] }
  0x49   : > { %291 = vmatpush2.msra.mxu0 %v205_v32  ;;  %429 = vmatpush2.msra.mxu1 %v1315_v52  ;;  %v1336_v32 = vld [vmem:[%s1720_s18 + $0x410] sm:$0xff] }
  0x4a   : > { %292 = vmatprep.subr.mxu0 %v204_v34  ;;  %430 = vmatprep.subr.mxu1 %v1314_v53  ;;  %v1334_v34 = vld [vmem:[%s1720_s18 + $0x400] sm:$0xff]  ;;  %v1380_v52 = vld [vmem:[%s1720_s18 + $0x570] sm:$0xff]  ;;  %v1379_v53 = vld [vmem:[%s1720_s18 + $0x568] sm:$0xff] }
  0x4b   : > { %293 = vmatpush2.msra.mxu0 %v203_v36  ;;  %431 = vmatpush2.msra.mxu1 %v1313_v54  ;;  %v1396_v36 = vld [vmem:[%s1720_s18 + $0x5f0] sm:$0xff]  ;;  %v1378_v54 = vld [vmem:[%s1720_s18 + $0x560] sm:$0xff] }
  0x4c   : > { %294 = vmatprep.subr.mxu0 %v202_v38  ;;  %v1394_v38 = vld [vmem:[%s1720_s18 + $0x5e0] sm:$0xff] }
  0x4d   : > { %295 = vmatpush2.msra.mxu0 %v201_v40  ;;  %v1392_v40 = vld [vmem:[%s1720_s18 + $0x5d0] sm:$0xff] }
  0x4e   : > { %296 = vmatprep.subr.mxu0 %v200_v42  ;;  %v1390_v42 = vld [vmem:[%s1720_s18 + $0x5c0] sm:$0xff] }
  0x4f   : > { %297 = vmatpush2.msra.mxu0 %v199_v44  ;;  %v1388_v44 = vld [vmem:[%s1720_s18 + $0x5b0] sm:$0xff] }
  0x50   : > { %299 = vmatmul.mubr.f32.vlgmr.msra.gmra.mxu0 %v1722_v0  ;;  %v1312_v0 = vld [vmem:[%s1720_s18 + $0x358] sm:$0xff]  ;;  %527 = vmatprep.subr.mxu0 %v1365_v3 }
  0x51   : > { %432 = vmatprep.subr.mxu1 %v1312_v0  ;;  %528 = vmatpush1.msra.mxu0 %v1364_v4  ;;  %v1377_v0 = vld [vmem:[%s1720_s18 + $0x558] sm:$0xff]  ;;  %v1368_v4 = vld [vmem:[%s1720_s18 + $0x510] sm:$0xff] }
  0x52   : > { %433 = vmatpush2.msra.mxu1 %v1311_v55  ;;  %529 = vmatprep.subr.mxu0 %v1363_v5  ;;  %v1376_v55 = vld [vmem:[%s1720_s18 + $0x550] sm:$0xff]  ;;  %v1369_v3 = vld [vmem:[%s1720_s18 + $0x518] sm:$0xff]  ;;  %v1367_v5 = vld [vmem:[%s1720_s18 + $0x508] sm:$0xff] }
  0x53   : > { %434 = vmatprep.subr.mxu1 %v1310_v56  ;;  %530 = vmatpush1.msra.mxu0 %v1362_v6  ;;  %v1375_v56 = vld [vmem:[%s1720_s18 + $0x548] sm:$0xff]  ;;  %v1366_v6 = vld [vmem:[%s1720_s18 + $0x500] sm:$0xff] }
  0x54   : > { %435 = vmatpush2.msra.mxu1 %v1309_v57  ;;  %531 = vmatprep.subr.mxu0 %v1361_v7  ;;  %v1374_v57 = vld [vmem:[%s1720_s18 + $0x540] sm:$0xff]  ;;  %v1430_v7 = vld [vmem:[%s1720_s18 + $0x6f8] sm:$0xff] }
  0x55   : > { %436 = vmatprep.subr.mxu1 %v1308_v58  ;;  %532 = vmatpush1.msra.mxu0 %v1360_v8  ;;  %v1373_v58 = vld [vmem:[%s1720_s18 + $0x538] sm:$0xff]  ;;  %v1429_v8 = vld [vmem:[%s1720_s18 + $0x6f0] sm:$0xff] }
  0x56   : > { %437 = vmatpush2.msra.mxu1 %v1307_v59  ;;  %533 = vmatprep.subr.mxu0 %v1359_v9  ;;  %v1372_v59 = vld [vmem:[%s1720_s18 + $0x530] sm:$0xff]  ;;  %v1428_v9 = vld [vmem:[%s1720_s18 + $0x6e8] sm:$0xff] }
  0x57   : > { %438 = vmatprep.subr.mxu1 %v1306_v60  ;;  %534 = vmatpush1.msra.mxu0 %v1358_v10  ;;  %v1427_v10 = vld [vmem:[%s1720_s18 + $0x6e0] sm:$0xff] }
  0x58   : > { %439 = vmatpush2.msra.mxu1 %v1305_v61  ;;  %535 = vmatprep.subr.mxu0 %v1357_v11  ;;  %v1426_v11 = vld [vmem:[%s1720_s18 + $0x6d8] sm:$0xff] }
  0x59   : > { %440 = vmatprep.subr.mxu1 %v1304_v62  ;;  %536 = vmatpush1.msra.mxu0 %v1356_v12  ;;  %v1425_v12 = vld [vmem:[%s1720_s18 + $0x6d0] sm:$0xff] }
  0x5a   : > { %441 = vmatpush2.msra.mxu1 %v1303_v63  ;;  %537 = vmatprep.subr.mxu0 %v1355_v13  ;;  %v1424_v13 = vld [vmem:[%s1720_s18 + $0x6c8] sm:$0xff] }
  0x5b   : > { %442 = vmatprep.subr.mxu1 %v1302_v1  ;;  %538 = vmatpush1.msra.mxu0 %v1354_v14  ;;  %v1371_v1 = vld [vmem:[%s1720_s18 + $0x528] sm:$0xff]  ;;  %v1423_v14 = vld [vmem:[%s1720_s18 + $0x6c0] sm:$0xff] }
  0x5c   : > { %443 = vmatpush2.msra.mxu1 %v1301_v2  ;;  %539 = vmatprep.subr.mxu0 %v1353_v15  ;;  %v1370_v2 = vld [vmem:[%s1720_s18 + $0x520] sm:$0xff]  ;;  %v1422_v15 = vld [vmem:[%s1720_s18 + $0x6b8] sm:$0xff] }
  0x5d   : > { %540 = vmatpush1.msra.mxu0 %v1352_v16  ;;  %674 = vmatprep.subr.mxu1 %v1430_v7  ;;  %v1421_v16 = vld [vmem:[%s1720_s18 + $0x6b0] sm:$0xff]  ;;  %v1434_v7 = vld [vmem:[%s1720_s18 + $0x718] sm:$0xff] }
  0x5e   : > { %541 = vmatprep.subr.mxu0 %v1351_v17  ;;  %v1420_v17 = vld [vmem:[%s1720_s18 + $0x6a8] sm:$0xff] }
  0x5f   : > { %542 = vmatpush1.msra.mxu0 %v1350_v18  ;;  %v1419_v18 = vld [vmem:[%s1720_s18 + $0x6a0] sm:$0xff] }
  0x60   : > { %543 = vmatprep.subr.mxu0 %v1349_v19  ;;  %v1418_v19 = vld [vmem:[%s1720_s18 + $0x698] sm:$0xff] }
  0x61   : > { %544 = vmatpush1.msra.mxu0 %v1348_v20  ;;  %v1417_v20 = vld [vmem:[%s1720_s18 + $0x690] sm:$0xff] }
  0x62   : > { %545 = vmatprep.subr.mxu0 %v1347_v21  ;;  %v1416_v21 = vld [vmem:[%s1720_s18 + $0x688] sm:$0xff] }
  0x63   : > { %546 = vmatpush1.msra.mxu0 %v1346_v22  ;;  %v1415_v22 = vld [vmem:[%s1720_s18 + $0x680] sm:$0xff] }
  0x64   : > { %547 = vmatprep.subr.mxu0 %v1345_v23  ;;  %v1414_v23 = vld [vmem:[%s1720_s18 + $0x678] sm:$0xff] }
  0x65   : > { %548 = vmatpush1.msra.mxu0 %v1344_v24  ;;  %v1413_v24 = vld [vmem:[%s1720_s18 + $0x670] sm:$0xff] }
  0x66   : > { %549 = vmatprep.subr.mxu0 %v1343_v25  ;;  %v1412_v25 = vld [vmem:[%s1720_s18 + $0x668] sm:$0xff] }
  0x67   : > { %550 = vmatpush1.msra.mxu0 %v1342_v26  ;;  %v1411_v26 = vld [vmem:[%s1720_s18 + $0x660] sm:$0xff] }
  0x68   : > { %551 = vmatprep.subr.mxu0 %v1341_v27  ;;  %v1410_v27 = vld [vmem:[%s1720_s18 + $0x658] sm:$0xff] }
  0x69   : > { %552 = vmatpush1.msra.mxu0 %v1340_v28  ;;  %v1409_v28 = vld [vmem:[%s1720_s18 + $0x650] sm:$0xff] }
  0x6a   : > { %553 = vmatprep.subr.mxu0 %v1339_v29  ;;  %v1408_v29 = vld [vmem:[%s1720_s18 + $0x648] sm:$0xff] }
  0x6b   : > { %554 = vmatpush1.msra.mxu0 %v1338_v30  ;;  %v1407_v30 = vld [vmem:[%s1720_s18 + $0x640] sm:$0xff] }
  0x6c   : > { %555 = vmatprep.subr.mxu0 %v1337_v31  ;;  %v1406_v31 = vld [vmem:[%s1720_s18 + $0x638] sm:$0xff] }
  0x6d   : > { %556 = vmatpush1.msra.mxu0 %v1336_v32  ;;  %v1405_v32 = vld [vmem:[%s1720_s18 + $0x630] sm:$0xff] }
  0x6e   : > { %557 = vmatprep.subr.mxu0 %v1335_v33  ;;  %v1404_v33 = vld [vmem:[%s1720_s18 + $0x628] sm:$0xff] }
  0x6f   : > { %558 = vmatpush1.msra.mxu0 %v1334_v34  ;;  %v1403_v34 = vld [vmem:[%s1720_s18 + $0x620] sm:$0xff] }
  0x70   : > { %559 = vmatprep.subr.mxu0 %v1397_v35  ;;  %v1402_v35 = vld [vmem:[%s1720_s18 + $0x618] sm:$0xff] }
  0x71   : > { %560 = vmatpush2.msra.mxu0 %v1396_v36  ;;  %v1401_v36 = vld [vmem:[%s1720_s18 + $0x610] sm:$0xff] }
  0x72   : > { %561 = vmatprep.subr.mxu0 %v1395_v37  ;;  %v1400_v37 = vld [vmem:[%s1720_s18 + $0x608] sm:$0xff] }
  0x73   : > { %562 = vmatpush2.msra.mxu0 %v1394_v38  ;;  %v1399_v38 = vld [vmem:[%s1720_s18 + $0x600] sm:$0xff] }
  0x74   : > { %563 = vmatprep.subr.mxu0 %v1393_v39  ;;  %v1462_v39 = vld [vmem:[%s1720_s18 + $0x7f8] sm:$0xff] }
  0x75   : > { %564 = vmatpush2.msra.mxu0 %v1392_v40  ;;  %v1461_v40 = vld [vmem:[%s1720_s18 + $0x7f0] sm:$0xff] }
  0x76   : > { %565 = vmatprep.subr.mxu0 %v1391_v41  ;;  %v1460_v41 = vld [vmem:[%s1720_s18 + $0x7e8] sm:$0xff] }
  0x77   : > { %566 = vmatpush2.msra.mxu0 %v1390_v42  ;;  %v1459_v42 = vld [vmem:[%s1720_s18 + $0x7e0] sm:$0xff] }
  0x78   : > { %567 = vmatprep.subr.mxu0 %v1389_v43  ;;  %v1458_v43 = vld [vmem:[%s1720_s18 + $0x7d8] sm:$0xff] }
  0x79   : > { %568 = vmatpush2.msra.mxu0 %v1388_v44  ;;  %v1457_v44 = vld [vmem:[%s1720_s18 + $0x7d0] sm:$0xff] }
  0x7a   : > { %569 = vmatprep.subr.mxu0 %v1387_v45  ;;  %v1456_v45 = vld [vmem:[%s1720_s18 + $0x7c8] sm:$0xff] }
  0x7b   : > { %570 = vmatpush2.msra.mxu0 %v1386_v46  ;;  %v1455_v46 = vld [vmem:[%s1720_s18 + $0x7c0] sm:$0xff] }
  0x7c   : > { %571 = vmatprep.subr.mxu0 %v1385_v47  ;;  %v1454_v47 = vld [vmem:[%s1720_s18 + $0x7b8] sm:$0xff] }
  0x7d   : > { %572 = vmatpush2.msra.mxu0 %v1384_v48  ;;  %v1453_v48 = vld [vmem:[%s1720_s18 + $0x7b0] sm:$0xff] }
  0x7e   : > { %573 = vmatprep.subr.mxu0 %v1383_v49  ;;  %v1452_v49 = vld [vmem:[%s1720_s18 + $0x7a8] sm:$0xff] }
  0x7f   : > { %574 = vmatpush2.msra.mxu0 %v1382_v50  ;;  %v1451_v50 = vld [vmem:[%s1720_s18 + $0x7a0] sm:$0xff] }
  0x80   : > { %575 = vmatprep.subr.mxu0 %v1381_v51  ;;  %v1450_v51 = vld [vmem:[%s1720_s18 + $0x798] sm:$0xff] }
  0x81   : > { %576 = vmatpush2.msra.mxu0 %v1380_v52  ;;  %v1449_v52 = vld [vmem:[%s1720_s18 + $0x790] sm:$0xff] }
  0x82   : > { %577 = vmatprep.subr.mxu0 %v1379_v53  ;;  %v1448_v53 = vld [vmem:[%s1720_s18 + $0x788] sm:$0xff] }
  0x83   : > { %578 = vmatpush2.msra.mxu0 %v1378_v54  ;;  %v1447_v54 = vld [vmem:[%s1720_s18 + $0x780] sm:$0xff] }
  0x84   : > { %579 = vmatprep.subr.mxu0 %v1377_v0  ;;  %v1446_v0 = vld [vmem:[%s1720_s18 + $0x778] sm:$0xff] }
  0x85   : > { %580 = vmatpush2.msra.mxu0 %v1376_v55  ;;  %v1445_v55 = vld [vmem:[%s1720_s18 + $0x770] sm:$0xff] }
  0x86   : > { %581 = vmatprep.subr.mxu0 %v1375_v56  ;;  %v1444_v56 = vld [vmem:[%s1720_s18 + $0x768] sm:$0xff] }
  0x87   : > { %582 = vmatpush2.msra.mxu0 %v1374_v57  ;;  %v1443_v57 = vld [vmem:[%s1720_s18 + $0x760] sm:$0xff] }
  0x88   : > { %583 = vmatprep.subr.mxu0 %v1373_v58  ;;  %v1442_v58 = vld [vmem:[%s1720_s18 + $0x758] sm:$0xff] }
  0x89   : > { %584 = vmatpush2.msra.mxu0 %v1372_v59  ;;  %v1441_v59 = vld [vmem:[%s1720_s18 + $0x750] sm:$0xff] }
  0x8a   : > { %585 = vmatprep.subr.mxu0 %v1371_v1 }
  0x8b   : > { %586 = vmatpush2.msra.mxu0 %v1370_v2 }
  0x8c   : > { %587 = vmatprep.subr.mxu0 %v1369_v3 }
  0x8d   : > { %588 = vmatpush2.msra.mxu0 %v1368_v4 }
  0x8e   : > { %589 = vmatprep.subr.mxu0 %v1367_v5  ;;  %v1436_v5 = vld [vmem:[%s1720_s18 + $0x728] sm:$0xff] }
  0x8f   : > { %590 = vmatpush2.msra.mxu0 %v1366_v6  ;;  %v1435_v6 = vld [vmem:[%s1720_s18 + $0x720] sm:$0xff] }
 0x110   : > { %v300_v60 = vpop.f32.mrf.mxu0 }
 0x112   : > { %v302_v61 = vpop.f32.mrf.mxu0 }
 0x113   : > { %v307_v62 = vcombine.low %v300_v60, %v302_v61  ;;  %v1662_v63 = vcombine.low %v302_v61, %v302_v61  ;;  %v1440_v60 = vld [vmem:[%s1720_s18 + $0x748] sm:$0xff]  ;;  %v1439_v61 = vld [vmem:[%s1720_s18 + $0x740] sm:$0xff] }
 0x115   : > { %310 = vst [vmem:[%s1917_s22] sm:$0xff] %v307_v62  ;;  %444 = vmatprep.mubr.f32.mxu1 %v1662_v63  ;;  %v1437_v63 = vld [vmem:[%s1720_s18 + $0x730] sm:$0xff] }
 0x116   : > { %445 = vmatmul.mubr.f32.vlgmr.msra.gmra.mxu1 %v307_v62  ;;  %v1438_v62 = vld [vmem:[%s1720_s18 + $0x738] sm:$0xff] }
 0x117   : > { %675 = vmatpush1.msra.mxu1 %v1429_v8  ;;  %v1433_v8 = vld [vmem:[%s1720_s18 + $0x710] sm:$0xff] }
 0x118   : > { %676 = vmatprep.subr.mxu1 %v1428_v9  ;;  %v1432_v9 = vld [vmem:[%s1720_s18 + $0x708] sm:$0xff] }
 0x119   : > { %677 = vmatpush1.msra.mxu1 %v1427_v10  ;;  %v1431_v10 = vld [vmem:[%s1720_s18 + $0x700] sm:$0xff] }
 0x11a   : > { %678 = vmatprep.subr.mxu1 %v1426_v11  ;;  %v1495_v11 = vld [vmem:[%s1720_s18 + $0x8f8] sm:$0xff] }
 0x11b   : > { %679 = vmatpush1.msra.mxu1 %v1425_v12  ;;  %v1494_v12 = vld [vmem:[%s1720_s18 + $0x8f0] sm:$0xff]  ;;  %821 = vmatprep.subr.mxu0 %v1495_v11  ;;  %v1499_v11 = vld [vmem:[%s1720_s18 + $0x918] sm:$0xff] }
 0x11c   : > { %680 = vmatprep.subr.mxu1 %v1424_v13  ;;  %v1493_v13 = vld [vmem:[%s1720_s18 + $0x8e8] sm:$0xff] }
 0x11d   : > { %681 = vmatpush1.msra.mxu1 %v1423_v14  ;;  %v1492_v14 = vld [vmem:[%s1720_s18 + $0x8e0] sm:$0xff] }
 0x11e   : > { %682 = vmatprep.subr.mxu1 %v1422_v15  ;;  %v1491_v15 = vld [vmem:[%s1720_s18 + $0x8d8] sm:$0xff] }
 0x11f   : > { %683 = vmatpush1.msra.mxu1 %v1421_v16  ;;  %v1490_v16 = vld [vmem:[%s1720_s18 + $0x8d0] sm:$0xff] }
 0x120   : > { %684 = vmatprep.subr.mxu1 %v1420_v17  ;;  %v1489_v17 = vld [vmem:[%s1720_s18 + $0x8c8] sm:$0xff] }
 0x121   : > { %685 = vmatpush1.msra.mxu1 %v1419_v18  ;;  %v1488_v18 = vld [vmem:[%s1720_s18 + $0x8c0] sm:$0xff] }
 0x122   : > { %686 = vmatprep.subr.mxu1 %v1418_v19  ;;  %v1487_v19 = vld [vmem:[%s1720_s18 + $0x8b8] sm:$0xff] }
 0x123   : > { %687 = vmatpush1.msra.mxu1 %v1417_v20  ;;  %v1486_v20 = vld [vmem:[%s1720_s18 + $0x8b0] sm:$0xff] }
 0x124   : > { %688 = vmatprep.subr.mxu1 %v1416_v21  ;;  %v1485_v21 = vld [vmem:[%s1720_s18 + $0x8a8] sm:$0xff] }
 0x125   : > { %689 = vmatpush1.msra.mxu1 %v1415_v22  ;;  %v1484_v22 = vld [vmem:[%s1720_s18 + $0x8a0] sm:$0xff] }
 0x126   : > { %690 = vmatprep.subr.mxu1 %v1414_v23  ;;  %v1483_v23 = vld [vmem:[%s1720_s18 + $0x898] sm:$0xff] }
 0x127   : > { %691 = vmatpush1.msra.mxu1 %v1413_v24  ;;  %v1482_v24 = vld [vmem:[%s1720_s18 + $0x890] sm:$0xff] }
 0x128   : > { %692 = vmatprep.subr.mxu1 %v1412_v25  ;;  %v1481_v25 = vld [vmem:[%s1720_s18 + $0x888] sm:$0xff] }
 0x129   : > { %693 = vmatpush1.msra.mxu1 %v1411_v26  ;;  %v1480_v26 = vld [vmem:[%s1720_s18 + $0x880] sm:$0xff] }
 0x12a   : > { %694 = vmatprep.subr.mxu1 %v1410_v27  ;;  %v1479_v27 = vld [vmem:[%s1720_s18 + $0x878] sm:$0xff] }
 0x12b   : > { %695 = vmatpush1.msra.mxu1 %v1409_v28  ;;  %v1478_v28 = vld [vmem:[%s1720_s18 + $0x870] sm:$0xff] }
 0x12c   : > { %696 = vmatprep.subr.mxu1 %v1408_v29  ;;  %v1477_v29 = vld [vmem:[%s1720_s18 + $0x868] sm:$0xff] }
 0x12d   : > { %697 = vmatpush1.msra.mxu1 %v1407_v30  ;;  %v1476_v30 = vld [vmem:[%s1720_s18 + $0x860] sm:$0xff] }
 0x12e   : > { %698 = vmatprep.subr.mxu1 %v1406_v31  ;;  %v1475_v31 = vld [vmem:[%s1720_s18 + $0x858] sm:$0xff] }
 0x12f   : > { %699 = vmatpush1.msra.mxu1 %v1405_v32  ;;  %v1474_v32 = vld [vmem:[%s1720_s18 + $0x850] sm:$0xff] }
 0x130   : > { %700 = vmatprep.subr.mxu1 %v1404_v33  ;;  %v1473_v33 = vld [vmem:[%s1720_s18 + $0x848] sm:$0xff] }
 0x131   : > { %701 = vmatpush1.msra.mxu1 %v1403_v34  ;;  %v1472_v34 = vld [vmem:[%s1720_s18 + $0x840] sm:$0xff] }
 0x132   : > { %702 = vmatprep.subr.mxu1 %v1402_v35  ;;  %v1471_v35 = vld [vmem:[%s1720_s18 + $0x838] sm:$0xff] }
 0x133   : > { %703 = vmatpush1.msra.mxu1 %v1401_v36  ;;  %v1470_v36 = vld [vmem:[%s1720_s18 + $0x830] sm:$0xff] }
 0x134   : > { %704 = vmatprep.subr.mxu1 %v1400_v37  ;;  %v1469_v37 = vld [vmem:[%s1720_s18 + $0x828] sm:$0xff] }
 0x135   : > { %705 = vmatpush1.msra.mxu1 %v1399_v38  ;;  %v1468_v38 = vld [vmem:[%s1720_s18 + $0x820] sm:$0xff] }
 0x136   : > { %706 = vmatprep.subr.mxu1 %v1462_v39  ;;  %v1467_v39 = vld [vmem:[%s1720_s18 + $0x818] sm:$0xff] }
 0x137   : > { %707 = vmatpush2.msra.mxu1 %v1461_v40  ;;  %v1466_v40 = vld [vmem:[%s1720_s18 + $0x810] sm:$0xff] }
 0x138   : > { %708 = vmatprep.subr.mxu1 %v1460_v41  ;;  %v1465_v41 = vld [vmem:[%s1720_s18 + $0x808] sm:$0xff] }
 0x139   : > { %709 = vmatpush2.msra.mxu1 %v1459_v42  ;;  %v1464_v42 = vld [vmem:[%s1720_s18 + $0x800] sm:$0xff] }
 0x13a   : > { %710 = vmatprep.subr.mxu1 %v1458_v43  ;;  %v1527_v43 = vld [vmem:[%s1720_s18 + $0x9f8] sm:$0xff] }
 0x13b   : > { %711 = vmatpush2.msra.mxu1 %v1457_v44  ;;  %v1526_v44 = vld [vmem:[%s1720_s18 + $0x9f0] sm:$0xff] }
 0x13c   : > { %712 = vmatprep.subr.mxu1 %v1456_v45  ;;  %v1525_v45 = vld [vmem:[%s1720_s18 + $0x9e8] sm:$0xff] }
 0x13d   : > { %713 = vmatpush2.msra.mxu1 %v1455_v46  ;;  %v1524_v46 = vld [vmem:[%s1720_s18 + $0x9e0] sm:$0xff] }
 0x13e   : > { %714 = vmatprep.subr.mxu1 %v1454_v47  ;;  %v1523_v47 = vld [vmem:[%s1720_s18 + $0x9d8] sm:$0xff] }
 0x13f   : > { %715 = vmatpush2.msra.mxu1 %v1453_v48  ;;  %v1522_v48 = vld [vmem:[%s1720_s18 + $0x9d0] sm:$0xff] }
 0x140   : > { %716 = vmatprep.subr.mxu1 %v1452_v49  ;;  %v1521_v49 = vld [vmem:[%s1720_s18 + $0x9c8] sm:$0xff] }
 0x141   : > { %717 = vmatpush2.msra.mxu1 %v1451_v50  ;;  %v1520_v50 = vld [vmem:[%s1720_s18 + $0x9c0] sm:$0xff] }
 0x142   : > { %718 = vmatprep.subr.mxu1 %v1450_v51  ;;  %v1519_v51 = vld [vmem:[%s1720_s18 + $0x9b8] sm:$0xff] }
 0x143   : > { %719 = vmatpush2.msra.mxu1 %v1449_v52  ;;  %v1518_v52 = vld [vmem:[%s1720_s18 + $0x9b0] sm:$0xff] }
 0x144   : > { %720 = vmatprep.subr.mxu1 %v1448_v53  ;;  %v1517_v53 = vld [vmem:[%s1720_s18 + $0x9a8] sm:$0xff] }
 0x145   : > { %721 = vmatpush2.msra.mxu1 %v1447_v54  ;;  %v1516_v54 = vld [vmem:[%s1720_s18 + $0x9a0] sm:$0xff] }
 0x146   : > { %722 = vmatprep.subr.mxu1 %v1446_v0  ;;  %v1515_v0 = vld [vmem:[%s1720_s18 + $0x998] sm:$0xff] }
 0x147   : > { %723 = vmatpush2.msra.mxu1 %v1445_v55  ;;  %v1514_v55 = vld [vmem:[%s1720_s18 + $0x990] sm:$0xff] }
 0x148   : > { %724 = vmatprep.subr.mxu1 %v1444_v56  ;;  %v1513_v56 = vld [vmem:[%s1720_s18 + $0x988] sm:$0xff] }
 0x149   : > { %725 = vmatpush2.msra.mxu1 %v1443_v57  ;;  %v1512_v57 = vld [vmem:[%s1720_s18 + $0x980] sm:$0xff] }
 0x14a   : > { %726 = vmatprep.subr.mxu1 %v1442_v58  ;;  %v1511_v58 = vld [vmem:[%s1720_s18 + $0x978] sm:$0xff] }
 0x14b   : > { %727 = vmatpush2.msra.mxu1 %v1441_v59  ;;  %v1510_v59 = vld [vmem:[%s1720_s18 + $0x970] sm:$0xff] }
 0x14c   : > { %728 = vmatprep.subr.mxu1 %v1440_v60  ;;  %v1509_v60 = vld [vmem:[%s1720_s18 + $0x968] sm:$0xff] }
 0x14d   : > { %729 = vmatpush2.msra.mxu1 %v1439_v61  ;;  %v1508_v61 = vld [vmem:[%s1720_s18 + $0x960] sm:$0xff] }
 0x14e   : > { %730 = vmatprep.subr.mxu1 %v1438_v62  ;;  %v1507_v62 = vld [vmem:[%s1720_s18 + $0x958] sm:$0xff] }
 0x14f   : > { %731 = vmatpush2.msra.mxu1 %v1437_v63  ;;  %v1506_v63 = vld [vmem:[%s1720_s18 + $0x950] sm:$0xff] }
 0x150   : > { %732 = vmatprep.subr.mxu1 %v1436_v5 }
 0x151   : > { %733 = vmatpush2.msra.mxu1 %v1435_v6 }
 0x152   : > { %734 = vmatprep.subr.mxu1 %v1434_v7 }
 0x153   : > { %735 = vmatpush2.msra.mxu1 %v1433_v8 }
 0x154   : > { %736 = vmatprep.subr.mxu1 %v1432_v9  ;;  %v1501_v9 = vld [vmem:[%s1720_s18 + $0x928] sm:$0xff] }
 0x155   : > { %737 = vmatpush2.msra.mxu1 %v1431_v10  ;;  %v1500_v10 = vld [vmem:[%s1720_s18 + $0x920] sm:$0xff] }
 0x1d6   : > { %v446_v1 = vpop.f32.mrf.mxu1 }
 0x1d8   : > { %v448_v2 = vpop.f32.mrf.mxu1 }
 0x1d9   : > { %v453_v3 = vcombine.low %v446_v1, %v448_v2  ;;  %v1663_v4 = vcombine.low %v448_v2, %v448_v2  ;;  %v1505_v1 = vld [vmem:[%s1720_s18 + $0x948] sm:$0xff]  ;;  %v1504_v2 = vld [vmem:[%s1720_s18 + $0x940] sm:$0xff] }
 0x1db   : > { %1333 = vst [vmem:[%s1917_s22 + $0x8] sm:$0xff] %v453_v3  ;;  %591 = vmatprep.mubr.f32.mxu0 %v1663_v4  ;;  %v1502_v4 = vld [vmem:[%s1720_s18 + $0x930] sm:$0xff] }
 0x1dc   : > { %592 = vmatmul.mubr.f32.vlgmr.msra.gmra.mxu0 %v453_v3  ;;  %v1503_v3 = vld [vmem:[%s1720_s18 + $0x938] sm:$0xff] }
 0x1dd   : > { %822 = vmatpush1.msra.mxu0 %v1494_v12  ;;  %v1498_v12 = vld [vmem:[%s1720_s18 + $0x910] sm:$0xff] }
 0x1de   : > { %823 = vmatprep.subr.mxu0 %v1493_v13  ;;  %v1497_v13 = vld [vmem:[%s1720_s18 + $0x908] sm:$0xff] }
 0x1df   : > { %824 = vmatpush1.msra.mxu0 %v1492_v14  ;;  %v1496_v14 = vld [vmem:[%s1720_s18 + $0x900] sm:$0xff] }
 0x1e0   : > { %825 = vmatprep.subr.mxu0 %v1491_v15  ;;  %v1560_v15 = vld [vmem:[%s1720_s18 + $0xaf8] sm:$0xff] }
 0x1e1   : > { %826 = vmatpush1.msra.mxu0 %v1490_v16  ;;  %v1559_v16 = vld [vmem:[%s1720_s18 + $0xaf0] sm:$0xff]  ;;  %968 = vmatprep.subr.mxu1 %v1560_v15  ;;  %v1564_v15 = vld [vmem:[%s1720_s18 + $0xb18] sm:$0xff] }
 0x1e2   : > { %827 = vmatprep.subr.mxu0 %v1489_v17  ;;  %v1558_v17 = vld [vmem:[%s1720_s18 + $0xae8] sm:$0xff] }
 0x1e3   : > { %828 = vmatpush1.msra.mxu0 %v1488_v18  ;;  %v1557_v18 = vld [vmem:[%s1720_s18 + $0xae0] sm:$0xff] }
 0x1e4   : > { %829 = vmatprep.subr.mxu0 %v1487_v19  ;;  %v1556_v19 = vld [vmem:[%s1720_s18 + $0xad8] sm:$0xff] }
 0x1e5   : > { %830 = vmatpush1.msra.mxu0 %v1486_v20  ;;  %v1555_v20 = vld [vmem:[%s1720_s18 + $0xad0] sm:$0xff] }
 0x1e6   : > { %831 = vmatprep.subr.mxu0 %v1485_v21  ;;  %v1554_v21 = vld [vmem:[%s1720_s18 + $0xac8] sm:$0xff] }
 0x1e7   : > { %832 = vmatpush1.msra.mxu0 %v1484_v22  ;;  %v1553_v22 = vld [vmem:[%s1720_s18 + $0xac0] sm:$0xff] }
 0x1e8   : > { %833 = vmatprep.subr.mxu0 %v1483_v23  ;;  %v1552_v23 = vld [vmem:[%s1720_s18 + $0xab8] sm:$0xff] }
 0x1e9   : > { %834 = vmatpush1.msra.mxu0 %v1482_v24  ;;  %v1551_v24 = vld [vmem:[%s1720_s18 + $0xab0] sm:$0xff] }
 0x1ea   : > { %835 = vmatprep.subr.mxu0 %v1481_v25  ;;  %v1550_v25 = vld [vmem:[%s1720_s18 + $0xaa8] sm:$0xff] }
 0x1eb   : > { %836 = vmatpush1.msra.mxu0 %v1480_v26  ;;  %v1549_v26 = vld [vmem:[%s1720_s18 + $0xaa0] sm:$0xff] }
 0x1ec   : > { %837 = vmatprep.subr.mxu0 %v1479_v27  ;;  %v1548_v27 = vld [vmem:[%s1720_s18 + $0xa98] sm:$0xff] }
 0x1ed   : > { %838 = vmatpush1.msra.mxu0 %v1478_v28  ;;  %v1547_v28 = vld [vmem:[%s1720_s18 + $0xa90] sm:$0xff] }
 0x1ee   : > { %839 = vmatprep.subr.mxu0 %v1477_v29  ;;  %v1546_v29 = vld [vmem:[%s1720_s18 + $0xa88] sm:$0xff] }
 0x1ef   : > { %840 = vmatpush1.msra.mxu0 %v1476_v30  ;;  %v1545_v30 = vld [vmem:[%s1720_s18 + $0xa80] sm:$0xff] }
 0x1f0   : > { %841 = vmatprep.subr.mxu0 %v1475_v31  ;;  %v1544_v31 = vld [vmem:[%s1720_s18 + $0xa78] sm:$0xff] }
 0x1f1   : > { %842 = vmatpush1.msra.mxu0 %v1474_v32  ;;  %v1543_v32 = vld [vmem:[%s1720_s18 + $0xa70] sm:$0xff] }
 0x1f2   : > { %843 = vmatprep.subr.mxu0 %v1473_v33  ;;  %v1542_v33 = vld [vmem:[%s1720_s18 + $0xa68] sm:$0xff] }
 0x1f3   : > { %844 = vmatpush1.msra.mxu0 %v1472_v34  ;;  %v1541_v34 = vld [vmem:[%s1720_s18 + $0xa60] sm:$0xff] }
 0x1f4   : > { %845 = vmatprep.subr.mxu0 %v1471_v35  ;;  %v1540_v35 = vld [vmem:[%s1720_s18 + $0xa58] sm:$0xff] }
 0x1f5   : > { %846 = vmatpush1.msra.mxu0 %v1470_v36  ;;  %v1539_v36 = vld [vmem:[%s1720_s18 + $0xa50] sm:$0xff] }
 0x1f6   : > { %847 = vmatprep.subr.mxu0 %v1469_v37  ;;  %v1538_v37 = vld [vmem:[%s1720_s18 + $0xa48] sm:$0xff] }
 0x1f7   : > { %848 = vmatpush1.msra.mxu0 %v1468_v38  ;;  %v1537_v38 = vld [vmem:[%s1720_s18 + $0xa40] sm:$0xff] }
 0x1f8   : > { %849 = vmatprep.subr.mxu0 %v1467_v39  ;;  %v1536_v39 = vld [vmem:[%s1720_s18 + $0xa38] sm:$0xff] }
 0x1f9   : > { %850 = vmatpush1.msra.mxu0 %v1466_v40  ;;  %v1535_v40 = vld [vmem:[%s1720_s18 + $0xa30] sm:$0xff] }
 0x1fa   : > { %851 = vmatprep.subr.mxu0 %v1465_v41  ;;  %v1534_v41 = vld [vmem:[%s1720_s18 + $0xa28] sm:$0xff] }
 0x1fb   : > { %852 = vmatpush1.msra.mxu0 %v1464_v42  ;;  %v1533_v42 = vld [vmem:[%s1720_s18 + $0xa20] sm:$0xff] }
 0x1fc   : > { %853 = vmatprep.subr.mxu0 %v1527_v43  ;;  %v1532_v43 = vld [vmem:[%s1720_s18 + $0xa18] sm:$0xff] }
 0x1fd   : > { %854 = vmatpush2.msra.mxu0 %v1526_v44  ;;  %v1531_v44 = vld [vmem:[%s1720_s18 + $0xa10] sm:$0xff] }
 0x1fe   : > { %855 = vmatprep.subr.mxu0 %v1525_v45  ;;  %v1530_v45 = vld [vmem:[%s1720_s18 + $0xa08] sm:$0xff] }
 0x1ff   : > { %856 = vmatpush2.msra.mxu0 %v1524_v46  ;;  %v1529_v46 = vld [vmem:[%s1720_s18 + $0xa00] sm:$0xff] }
 0x200   : > { %857 = vmatprep.subr.mxu0 %v1523_v47  ;;  %v1592_v47 = vld [vmem:[%s1720_s18 + $0xbf8] sm:$0xff] }
 0x201   : > { %858 = vmatpush2.msra.mxu0 %v1522_v48  ;;  %v1591_v48 = vld [vmem:[%s1720_s18 + $0xbf0] sm:$0xff] }
 0x202   : > { %859 = vmatprep.subr.mxu0 %v1521_v49  ;;  %v1590_v49 = vld [vmem:[%s1720_s18 + $0xbe8] sm:$0xff] }
 0x203   : > { %860 = vmatpush2.msra.mxu0 %v1520_v50  ;;  %v1589_v50 = vld [vmem:[%s1720_s18 + $0xbe0] sm:$0xff] }
 0x204   : > { %861 = vmatprep.subr.mxu0 %v1519_v51  ;;  %v1588_v51 = vld [vmem:[%s1720_s18 + $0xbd8] sm:$0xff] }
 0x205   : > { %862 = vmatpush2.msra.mxu0 %v1518_v52  ;;  %v1587_v52 = vld [vmem:[%s1720_s18 + $0xbd0] sm:$0xff] }
 0x206   : > { %863 = vmatprep.subr.mxu0 %v1517_v53  ;;  %v1586_v53 = vld [vmem:[%s1720_s18 + $0xbc8] sm:$0xff] }
 0x207   : > { %864 = vmatpush2.msra.mxu0 %v1516_v54  ;;  %v1585_v54 = vld [vmem:[%s1720_s18 + $0xbc0] sm:$0xff] }
 0x208   : > { %865 = vmatprep.subr.mxu0 %v1515_v0  ;;  %v1584_v0 = vld [vmem:[%s1720_s18 + $0xbb8] sm:$0xff] }
 0x209   : > { %866 = vmatpush2.msra.mxu0 %v1514_v55  ;;  %v1583_v55 = vld [vmem:[%s1720_s18 + $0xbb0] sm:$0xff] }
 0x20a   : > { %867 = vmatprep.subr.mxu0 %v1513_v56  ;;  %v1582_v56 = vld [vmem:[%s1720_s18 + $0xba8] sm:$0xff] }
 0x20b   : > { %868 = vmatpush2.msra.mxu0 %v1512_v57  ;;  %v1581_v57 = vld [vmem:[%s1720_s18 + $0xba0] sm:$0xff] }
 0x20c   : > { %869 = vmatprep.subr.mxu0 %v1511_v58  ;;  %v1580_v58 = vld [vmem:[%s1720_s18 + $0xb98] sm:$0xff] }
 0x20d   : > { %870 = vmatpush2.msra.mxu0 %v1510_v59  ;;  %v1579_v59 = vld [vmem:[%s1720_s18 + $0xb90] sm:$0xff] }
 0x20e   : > { %871 = vmatprep.subr.mxu0 %v1509_v60  ;;  %v1578_v60 = vld [vmem:[%s1720_s18 + $0xb88] sm:$0xff] }
 0x20f   : > { %872 = vmatpush2.msra.mxu0 %v1508_v61  ;;  %v1577_v61 = vld [vmem:[%s1720_s18 + $0xb80] sm:$0xff] }
 0x210   : > { %873 = vmatprep.subr.mxu0 %v1507_v62  ;;  %v1576_v62 = vld [vmem:[%s1720_s18 + $0xb78] sm:$0xff] }
 0x211   : > { %874 = vmatpush2.msra.mxu0 %v1506_v63  ;;  %v1575_v63 = vld [vmem:[%s1720_s18 + $0xb70] sm:$0xff] }
 0x212   : > { %875 = vmatprep.subr.mxu0 %v1505_v1  ;;  %v1574_v1 = vld [vmem:[%s1720_s18 + $0xb68] sm:$0xff] }
 0x213   : > { %876 = vmatpush2.msra.mxu0 %v1504_v2  ;;  %v1573_v2 = vld [vmem:[%s1720_s18 + $0xb60] sm:$0xff] }
 0x214   : > { %877 = vmatprep.subr.mxu0 %v1503_v3  ;;  %v1572_v3 = vld [vmem:[%s1720_s18 + $0xb58] sm:$0xff] }
 0x215   : > { %878 = vmatpush2.msra.mxu0 %v1502_v4  ;;  %v1571_v4 = vld [vmem:[%s1720_s18 + $0xb50] sm:$0xff] }
 0x216   : > { %879 = vmatprep.subr.mxu0 %v1501_v9 }
 0x217   : > { %880 = vmatpush2.msra.mxu0 %v1500_v10 }
 0x218   : > { %881 = vmatprep.subr.mxu0 %v1499_v11 }
 0x219   : > { %882 = vmatpush2.msra.mxu0 %v1498_v12 }
 0x21a   : > { %883 = vmatprep.subr.mxu0 %v1497_v13  ;;  %v1566_v13 = vld [vmem:[%s1720_s18 + $0xb28] sm:$0xff] }
 0x21b   : > { %884 = vmatpush2.msra.mxu0 %v1496_v14  ;;  %v1565_v14 = vld [vmem:[%s1720_s18 + $0xb20] sm:$0xff] }
 0x29c   : > { %v593_v5 = vpop.f32.mrf.mxu0 }
 0x29e   : > { %v595_v6 = vpop.f32.mrf.mxu0 }
 0x29f   : > { %v600_v7 = vcombine.low %v593_v5, %v595_v6  ;;  %v1664_v8 = vcombine.low %v595_v6, %v595_v6  ;;  %v1570_v5 = vld [vmem:[%s1720_s18 + $0xb48] sm:$0xff]  ;;  %v1569_v6 = vld [vmem:[%s1720_s18 + $0xb40] sm:$0xff] }
 0x2a1   : > { %1398 = vst [vmem:[%s1917_s22 + $0x10] sm:$0xff] %v600_v7  ;;  %738 = vmatprep.mubr.f32.mxu1 %v1664_v8  ;;  %v1567_v8 = vld [vmem:[%s1720_s18 + $0xb30] sm:$0xff] }
 0x2a2   : > { %739 = vmatmul.mubr.f32.vlgmr.msra.gmra.mxu1 %v600_v7  ;;  %v1568_v7 = vld [vmem:[%s1720_s18 + $0xb38] sm:$0xff] }
 0x2a3   : > { %969 = vmatpush1.msra.mxu1 %v1559_v16  ;;  %v1563_v16 = vld [vmem:[%s1720_s18 + $0xb10] sm:$0xff] }
 0x2a4   : > { %970 = vmatprep.subr.mxu1 %v1558_v17  ;;  %v1562_v17 = vld [vmem:[%s1720_s18 + $0xb08] sm:$0xff] }
 0x2a5   : > { %971 = vmatpush1.msra.mxu1 %v1557_v18  ;;  %v1561_v18 = vld [vmem:[%s1720_s18 + $0xb00] sm:$0xff] }
 0x2a6   : > { %972 = vmatprep.subr.mxu1 %v1556_v19  ;;  %v1625_v19 = vld [vmem:[%s1720_s18 + $0xcf8] sm:$0xff] }
 0x2a7   : > { %973 = vmatpush1.msra.mxu1 %v1555_v20  ;;  %v1624_v20 = vld [vmem:[%s1720_s18 + $0xcf0] sm:$0xff]  ;;  %1115 = vmatprep.subr.mxu0 %v1625_v19  ;;  %v1629_v19 = vld [vmem:[%s1720_s18 + $0xd18] sm:$0xff] }
 0x2a8   : > { %974 = vmatprep.subr.mxu1 %v1554_v21  ;;  %v1623_v21 = vld [vmem:[%s1720_s18 + $0xce8] sm:$0xff] }
 0x2a9   : > { %975 = vmatpush1.msra.mxu1 %v1553_v22  ;;  %v1622_v22 = vld [vmem:[%s1720_s18 + $0xce0] sm:$0xff] }
 0x2aa   : > { %976 = vmatprep.subr.mxu1 %v1552_v23  ;;  %v1621_v23 = vld [vmem:[%s1720_s18 + $0xcd8] sm:$0xff] }
 0x2ab   : > { %977 = vmatpush1.msra.mxu1 %v1551_v24  ;;  %v1620_v24 = vld [vmem:[%s1720_s18 + $0xcd0] sm:$0xff] }
 0x2ac   : > { %978 = vmatprep.subr.mxu1 %v1550_v25  ;;  %v1619_v25 = vld [vmem:[%s1720_s18 + $0xcc8] sm:$0xff] }
 0x2ad   : > { %979 = vmatpush1.msra.mxu1 %v1549_v26  ;;  %v1618_v26 = vld [vmem:[%s1720_s18 + $0xcc0] sm:$0xff] }
 0x2ae   : > { %980 = vmatprep.subr.mxu1 %v1548_v27  ;;  %v1617_v27 = vld [vmem:[%s1720_s18 + $0xcb8] sm:$0xff] }
 0x2af   : > { %981 = vmatpush1.msra.mxu1 %v1547_v28  ;;  %v1616_v28 = vld [vmem:[%s1720_s18 + $0xcb0] sm:$0xff] }
 0x2b0   : > { %982 = vmatprep.subr.mxu1 %v1546_v29  ;;  %v1615_v29 = vld [vmem:[%s1720_s18 + $0xca8] sm:$0xff] }
 0x2b1   : > { %983 = vmatpush1.msra.mxu1 %v1545_v30  ;;  %v1614_v30 = vld [vmem:[%s1720_s18 + $0xca0] sm:$0xff] }
 0x2b2   : > { %984 = vmatprep.subr.mxu1 %v1544_v31  ;;  %v1613_v31 = vld [vmem:[%s1720_s18 + $0xc98] sm:$0xff] }
 0x2b3   : > { %985 = vmatpush1.msra.mxu1 %v1543_v32  ;;  %v1612_v32 = vld [vmem:[%s1720_s18 + $0xc90] sm:$0xff] }
 0x2b4   : > { %986 = vmatprep.subr.mxu1 %v1542_v33  ;;  %v1611_v33 = vld [vmem:[%s1720_s18 + $0xc88] sm:$0xff] }
 0x2b5   : > { %987 = vmatpush1.msra.mxu1 %v1541_v34  ;;  %v1610_v34 = vld [vmem:[%s1720_s18 + $0xc80] sm:$0xff] }
 0x2b6   : > { %988 = vmatprep.subr.mxu1 %v1540_v35  ;;  %v1609_v35 = vld [vmem:[%s1720_s18 + $0xc78] sm:$0xff] }
 0x2b7   : > { %989 = vmatpush1.msra.mxu1 %v1539_v36  ;;  %v1608_v36 = vld [vmem:[%s1720_s18 + $0xc70] sm:$0xff] }
 0x2b8   : > { %990 = vmatprep.subr.mxu1 %v1538_v37  ;;  %v1607_v37 = vld [vmem:[%s1720_s18 + $0xc68] sm:$0xff] }
 0x2b9   : > { %991 = vmatpush1.msra.mxu1 %v1537_v38  ;;  %v1606_v38 = vld [vmem:[%s1720_s18 + $0xc60] sm:$0xff] }
 0x2ba   : > { %992 = vmatprep.subr.mxu1 %v1536_v39  ;;  %v1605_v39 = vld [vmem:[%s1720_s18 + $0xc58] sm:$0xff] }
 0x2bb   : > { %993 = vmatpush1.msra.mxu1 %v1535_v40  ;;  %v1604_v40 = vld [vmem:[%s1720_s18 + $0xc50] sm:$0xff] }
 0x2bc   : > { %994 = vmatprep.subr.mxu1 %v1534_v41  ;;  %v1603_v41 = vld [vmem:[%s1720_s18 + $0xc48] sm:$0xff] }
 0x2bd   : > { %995 = vmatpush1.msra.mxu1 %v1533_v42  ;;  %v1602_v42 = vld [vmem:[%s1720_s18 + $0xc40] sm:$0xff] }
 0x2be   : > { %996 = vmatprep.subr.mxu1 %v1532_v43  ;;  %v1601_v43 = vld [vmem:[%s1720_s18 + $0xc38] sm:$0xff] }
 0x2bf   : > { %997 = vmatpush1.msra.mxu1 %v1531_v44  ;;  %v1600_v44 = vld [vmem:[%s1720_s18 + $0xc30] sm:$0xff] }
 0x2c0   : > { %998 = vmatprep.subr.mxu1 %v1530_v45  ;;  %v1599_v45 = vld [vmem:[%s1720_s18 + $0xc28] sm:$0xff] }
 0x2c1   : > { %999 = vmatpush1.msra.mxu1 %v1529_v46  ;;  %v1598_v46 = vld [vmem:[%s1720_s18 + $0xc20] sm:$0xff] }
 0x2c2   : > { %1000 = vmatprep.subr.mxu1 %v1592_v47  ;;  %v1597_v47 = vld [vmem:[%s1720_s18 + $0xc18] sm:$0xff] }
 0x2c3   : > { %1001 = vmatpush2.msra.mxu1 %v1591_v48  ;;  %v1596_v48 = vld [vmem:[%s1720_s18 + $0xc10] sm:$0xff] }
 0x2c4   : > { %1002 = vmatprep.subr.mxu1 %v1590_v49  ;;  %v1595_v49 = vld [vmem:[%s1720_s18 + $0xc08] sm:$0xff] }
 0x2c5   : > { %1003 = vmatpush2.msra.mxu1 %v1589_v50  ;;  %v1594_v50 = vld [vmem:[%s1720_s18 + $0xc00] sm:$0xff] }
 0x2c6   : > { %1004 = vmatprep.subr.mxu1 %v1588_v51  ;;  %v1657_v51 = vld [vmem:[%s1720_s18 + $0xdf8] sm:$0xff] }
 0x2c7   : > { %1005 = vmatpush2.msra.mxu1 %v1587_v52  ;;  %v1656_v52 = vld [vmem:[%s1720_s18 + $0xdf0] sm:$0xff] }
 0x2c8   : > { %1006 = vmatprep.subr.mxu1 %v1586_v53  ;;  %v1655_v53 = vld [vmem:[%s1720_s18 + $0xde8] sm:$0xff] }
 0x2c9   : > { %1007 = vmatpush2.msra.mxu1 %v1585_v54  ;;  %v1654_v54 = vld [vmem:[%s1720_s18 + $0xde0] sm:$0xff] }
 0x2ca   : > { %1008 = vmatprep.subr.mxu1 %v1584_v0  ;;  %v1653_v0 = vld [vmem:[%s1720_s18 + $0xdd8] sm:$0xff] }
 0x2cb   : > { %1009 = vmatpush2.msra.mxu1 %v1583_v55  ;;  %v1652_v55 = vld [vmem:[%s1720_s18 + $0xdd0] sm:$0xff] }
 0x2cc   : > { %1010 = vmatprep.subr.mxu1 %v1582_v56  ;;  %v1651_v56 = vld [vmem:[%s1720_s18 + $0xdc8] sm:$0xff] }
 0x2cd   : > { %1011 = vmatpush2.msra.mxu1 %v1581_v57  ;;  %v1650_v57 = vld [vmem:[%s1720_s18 + $0xdc0] sm:$0xff] }
 0x2ce   : > { %1012 = vmatprep.subr.mxu1 %v1580_v58  ;;  %v1649_v58 = vld [vmem:[%s1720_s18 + $0xdb8] sm:$0xff] }
 0x2cf   : > { %1013 = vmatpush2.msra.mxu1 %v1579_v59  ;;  %v1648_v59 = vld [vmem:[%s1720_s18 + $0xdb0] sm:$0xff] }
 0x2d0   : > { %1014 = vmatprep.subr.mxu1 %v1578_v60  ;;  %v1647_v60 = vld [vmem:[%s1720_s18 + $0xda8] sm:$0xff] }
 0x2d1   : > { %1015 = vmatpush2.msra.mxu1 %v1577_v61  ;;  %v1646_v61 = vld [vmem:[%s1720_s18 + $0xda0] sm:$0xff] }
 0x2d2   : > { %1016 = vmatprep.subr.mxu1 %v1576_v62  ;;  %v1645_v62 = vld [vmem:[%s1720_s18 + $0xd98] sm:$0xff] }
 0x2d3   : > { %1017 = vmatpush2.msra.mxu1 %v1575_v63  ;;  %v1644_v63 = vld [vmem:[%s1720_s18 + $0xd90] sm:$0xff] }
 0x2d4   : > { %1018 = vmatprep.subr.mxu1 %v1574_v1  ;;  %v1643_v1 = vld [vmem:[%s1720_s18 + $0xd88] sm:$0xff] }
 0x2d5   : > { %1019 = vmatpush2.msra.mxu1 %v1573_v2  ;;  %v1642_v2 = vld [vmem:[%s1720_s18 + $0xd80] sm:$0xff] }
 0x2d6   : > { %1020 = vmatprep.subr.mxu1 %v1572_v3  ;;  %v1641_v3 = vld [vmem:[%s1720_s18 + $0xd78] sm:$0xff] }
 0x2d7   : > { %1021 = vmatpush2.msra.mxu1 %v1571_v4  ;;  %v1640_v4 = vld [vmem:[%s1720_s18 + $0xd70] sm:$0xff] }
 0x2d8   : > { %1022 = vmatprep.subr.mxu1 %v1570_v5  ;;  %v1639_v5 = vld [vmem:[%s1720_s18 + $0xd68] sm:$0xff] }
 0x2d9   : > { %1023 = vmatpush2.msra.mxu1 %v1569_v6  ;;  %v1638_v6 = vld [vmem:[%s1720_s18 + $0xd60] sm:$0xff] }
 0x2da   : > { %1024 = vmatprep.subr.mxu1 %v1568_v7  ;;  %v1637_v7 = vld [vmem:[%s1720_s18 + $0xd58] sm:$0xff] }
 0x2db   : > { %1025 = vmatpush2.msra.mxu1 %v1567_v8  ;;  %v1636_v8 = vld [vmem:[%s1720_s18 + $0xd50] sm:$0xff] }
 0x2dc   : > { %1026 = vmatprep.subr.mxu1 %v1566_v13 }
 0x2dd   : > { %1027 = vmatpush2.msra.mxu1 %v1565_v14 }
 0x2de   : > { %1028 = vmatprep.subr.mxu1 %v1564_v15 }
 0x2df   : > { %1029 = vmatpush2.msra.mxu1 %v1563_v16 }
 0x2e0   : > { %1030 = vmatprep.subr.mxu1 %v1562_v17  ;;  %v1631_v17 = vld [vmem:[%s1720_s18 + $0xd28] sm:$0xff] }
 0x2e1   : > { %1031 = vmatpush2.msra.mxu1 %v1561_v18  ;;  %v1630_v18 = vld [vmem:[%s1720_s18 + $0xd20] sm:$0xff] }
 0x362   : > { %v740_v9 = vpop.f32.mrf.mxu1 }
 0x364   : > { %v742_v10 = vpop.f32.mrf.mxu1 }
 0x365   : > { %v747_v11 = vcombine.low %v740_v9, %v742_v10  ;;  %v1665_v12 = vcombine.low %v742_v10, %v742_v10  ;;  %v1635_v9 = vld [vmem:[%s1720_s18 + $0xd48] sm:$0xff]  ;;  %v1634_v10 = vld [vmem:[%s1720_s18 + $0xd40] sm:$0xff] }
 0x367   : > { %1463 = vst [vmem:[%s1917_s22 + $0x18] sm:$0xff] %v747_v11  ;;  %885 = vmatprep.mubr.f32.mxu0 %v1665_v12  ;;  %v1632_v12 = vld [vmem:[%s1720_s18 + $0xd30] sm:$0xff] }
 0x368   : > { %886 = vmatmul.mubr.f32.vlgmr.msra.gmra.mxu0 %v747_v11  ;;  %v1633_v11 = vld [vmem:[%s1720_s18 + $0xd38] sm:$0xff] }
 0x369   : > { %1116 = vmatpush1.msra.mxu0 %v1624_v20  ;;  %v1628_v20 = vld [vmem:[%s1720_s18 + $0xd10] sm:$0xff] }
 0x36a   : > { %1117 = vmatprep.subr.mxu0 %v1623_v21  ;;  %v1627_v21 = vld [vmem:[%s1720_s18 + $0xd08] sm:$0xff] }
 0x36b   : > { %1118 = vmatpush1.msra.mxu0 %v1622_v22  ;;  %v1626_v22 = vld [vmem:[%s1720_s18 + $0xd00] sm:$0xff] }
 0x36c   : > { %1119 = vmatprep.subr.mxu0 %v1621_v23 }
 0x36d   : > { %1120 = vmatpush1.msra.mxu0 %v1620_v24 }
 0x36e   : > { %1121 = vmatprep.subr.mxu0 %v1619_v25 }
 0x36f   : > { %1122 = vmatpush1.msra.mxu0 %v1618_v26 }
 0x370   : > { %1123 = vmatprep.subr.mxu0 %v1617_v27 }
 0x371   : > { %1124 = vmatpush1.msra.mxu0 %v1616_v28 }
 0x372   : > { %1125 = vmatprep.subr.mxu0 %v1615_v29 }
 0x373   : > { %1126 = vmatpush1.msra.mxu0 %v1614_v30 }
 0x374   : > { %1127 = vmatprep.subr.mxu0 %v1613_v31 }
 0x375   : > { %1128 = vmatpush1.msra.mxu0 %v1612_v32 }
 0x376   : > { %1129 = vmatprep.subr.mxu0 %v1611_v33 }
 0x377   : > { %1130 = vmatpush1.msra.mxu0 %v1610_v34 }
 0x378   : > { %1131 = vmatprep.subr.mxu0 %v1609_v35 }
 0x379   : > { %1132 = vmatpush1.msra.mxu0 %v1608_v36 }
 0x37a   : > { %1133 = vmatprep.subr.mxu0 %v1607_v37 }
 0x37b   : > { %1134 = vmatpush1.msra.mxu0 %v1606_v38 }
 0x37c   : > { %1135 = vmatprep.subr.mxu0 %v1605_v39 }
 0x37d   : > { %1136 = vmatpush1.msra.mxu0 %v1604_v40 }
 0x37e   : > { %1137 = vmatprep.subr.mxu0 %v1603_v41 }
 0x37f   : > { %1138 = vmatpush1.msra.mxu0 %v1602_v42 }
 0x380   : > { %1139 = vmatprep.subr.mxu0 %v1601_v43 }
 0x381   : > { %1140 = vmatpush1.msra.mxu0 %v1600_v44 }
 0x382   : > { %1141 = vmatprep.subr.mxu0 %v1599_v45 }
 0x383   : > { %1142 = vmatpush1.msra.mxu0 %v1598_v46 }
 0x384   : > { %1143 = vmatprep.subr.mxu0 %v1597_v47 }
 0x385   : > { %1144 = vmatpush1.msra.mxu0 %v1596_v48 }
 0x386   : > { %1145 = vmatprep.subr.mxu0 %v1595_v49 }
 0x387   : > { %1146 = vmatpush1.msra.mxu0 %v1594_v50 }
 0x388   : > { %1147 = vmatprep.subr.mxu0 %v1657_v51 }
 0x389   : > { %1148 = vmatpush2.msra.mxu0 %v1656_v52 }
 0x38a   : > { %1149 = vmatprep.subr.mxu0 %v1655_v53 }
 0x38b   : > { %1150 = vmatpush2.msra.mxu0 %v1654_v54 }
 0x38c   : > { %1151 = vmatprep.subr.mxu0 %v1653_v0 }
 0x38d   : > { %1152 = vmatpush2.msra.mxu0 %v1652_v55 }
 0x38e   : > { %1153 = vmatprep.subr.mxu0 %v1651_v56 }
 0x38f   : > { %1154 = vmatpush2.msra.mxu0 %v1650_v57 }
 0x390   : > { %1155 = vmatprep.subr.mxu0 %v1649_v58 }
 0x391   : > { %1156 = vmatpush2.msra.mxu0 %v1648_v59 }
 0x392   : > { %1157 = vmatprep.subr.mxu0 %v1647_v60 }
 0x393   : > { %1158 = vmatpush2.msra.mxu0 %v1646_v61 }
 0x394   : > { %1159 = vmatprep.subr.mxu0 %v1645_v62 }
 0x395   : > { %1160 = vmatpush2.msra.mxu0 %v1644_v63 }
 0x396   : > { %1161 = vmatprep.subr.mxu0 %v1643_v1 }
 0x397   : > { %1162 = vmatpush2.msra.mxu0 %v1642_v2 }
 0x398   : > { %1163 = vmatprep.subr.mxu0 %v1641_v3 }
 0x399   : > { %1164 = vmatpush2.msra.mxu0 %v1640_v4 }
 0x39a   : > { %1165 = vmatprep.subr.mxu0 %v1639_v5 }
 0x39b   : > { %1166 = vmatpush2.msra.mxu0 %v1638_v6 }
 0x39c   : > { %1167 = vmatprep.subr.mxu0 %v1637_v7 }
 0x39d   : > { %1168 = vmatpush2.msra.mxu0 %v1636_v8 }
 0x39e   : > { %1169 = vmatprep.subr.mxu0 %v1635_v9 }
 0x39f   : > { %1170 = vmatpush2.msra.mxu0 %v1634_v10 }
 0x3a0   : > { %1171 = vmatprep.subr.mxu0 %v1633_v11 }
 0x3a1   : > { %1172 = vmatpush2.msra.mxu0 %v1632_v12 }
 0x3a2   : > { %1173 = vmatprep.subr.mxu0 %v1631_v17 }
 0x3a3   : > { %1174 = vmatpush2.msra.mxu0 %v1630_v18 }
 0x3a4   : > { %1175 = vmatprep.subr.mxu0 %v1629_v19 }
 0x3a5   : > { %1176 = vmatpush2.msra.mxu0 %v1628_v20 }
 0x3a6   : > { %1177 = vmatprep.subr.mxu0 %v1627_v21 }
 0x3a7   : > { %1178 = vmatpush2.msra.mxu0 %v1626_v22 }
 0x428   : > { %v887_v13 = vpop.f32.mrf.mxu0 }
 0x42a   : > { %v889_v14 = vpop.f32.mrf.mxu0 }
 0x42b   : > { %v894_v15 = vcombine.low %v887_v13, %v889_v14  ;;  %v1666_v16 = vcombine.low %v889_v14, %v889_v14 }
 0x42d   : > { %1528 = vst [vmem:[%s1917_s22 + $0x20] sm:$0xff] %v894_v15  ;;  %1032 = vmatprep.mubr.f32.mxu1 %v1666_v16 }
 0x42e   : > { %1033 = vmatmul.mubr.f32.vlgmr.msra.gmra.mxu1 %v894_v15 }
 0x4ee   : > { %v1034_v23 = vpop.f32.mrf.mxu1 }
 0x4f0   : > { %v1036_v24 = vpop.f32.mrf.mxu1 }
 0x4f1   : > { %v1041_v25 = vcombine.low %v1034_v23, %v1036_v24  ;;  %v1667_v26 = vcombine.low %v1036_v24, %v1036_v24 }
 0x4f3   : > { %1593 = vst [vmem:[%s1917_s22 + $0x28] sm:$0xff] %v1041_v25  ;;  %1179 = vmatprep.mubr.f32.mxu0 %v1667_v26 }
 0x4f4   : > { %1180 = vmatmul.mubr.f32.vlgmr.msra.gmra.mxu0 %v1041_v25 }
 0x5b4   : > { %v1181_v27 = vpop.f32.mrf.mxu0 }
 0x5b6   : > { %v1183_v28 = vpop.f32.mrf.mxu0 }
 0x5b7   : > { %v1188_v29 = vcombine.low %v1181_v27, %v1183_v28 }
 0x5b9   : > { %1658 = vst [vmem:[%s1917_s22 + $0x30] sm:$0xff] %v1188_v29 }
 0x5ba PF: > { %s12_s9 = sadd.s32 1, %s1685_s9  }
 0x5bb   : > { %p9_p4 = scmp.ge.s32.totalorder %s12_s9, 4  }
 0x5bd   :  { %11 = sbr.rel (!%p9_p4) target bundleno = 1 (0x1), region = 73 }

</bundles_post_ra>
